<compile_context>
chip_gen: v6e
topology: v6e:2x2x1
jax: 0.10.0
libtpu: 0.0.40
codegen_flags: <defaults>
</compile_context>

<pallas_src>
import numpy as np

import jax
import jax.numpy as jnp
from jax.experimental import pallas as pl
from jax.experimental.pallas import tpu as pltpu

BATCH_TILE = 8  # samples per grid step (keeps all row dims multiples of 8)


# ------------------------------ fused kernel -------------------------------

def _net_fused_kernel(x_ref, r1_ref, m1_ref, b1_ref, ph1_ref, sw1_ref,
                      r2_ref, m2_ref, b2_ref, ph2_ref, sw2_ref,
                      rf_ref, wfc1_ref, bfc1_ref, wfc2_ref, bfc2_ref, o_ref):
    def dot(a, b):
        return jnp.dot(a, b, preferred_element_type=jnp.float32)

    x = x_ref[...]                                            # (Bt*28, 28)

    # conv1 (1->10, k=5): 5 row-window selections + 5 lowered-weight matmuls.
    y = dot(dot(r1_ref[0], x), m1_ref[0])
    for ki in range(1, 5):
        y = y + dot(dot(r1_ref[ki], x), m1_ref[ki])
    y = y + b1_ref[...]                                       # (Bt*24, 240)

    # 2x2 max-pool + relu (row pickers then width/channel pickers).
    a = jnp.maximum(dot(ph1_ref[0], y), dot(ph1_ref[1], y))   # (Bt*12, 240)
    y = jnp.maximum(dot(a, sw1_ref[0]), dot(a, sw1_ref[1]))   # (Bt*12, 120)
    y = jnp.maximum(y, 0.0)

    # conv2 (10->20, k=5).  Dropout2d is identity in eval mode.
    z = dot(dot(r2_ref[0], y), m2_ref[0])
    for ki in range(1, 5):
        z = z + dot(dot(r2_ref[ki], y), m2_ref[ki])
    z = z + b2_ref[...]                                       # (Bt*8, 160)

    a = jnp.maximum(dot(ph2_ref[0], z), dot(ph2_ref[1], z))   # (Bt*4, 160)
    z = jnp.maximum(dot(a, sw2_ref[0]), dot(a, sw2_ref[1]))   # (Bt*4, 80)
    z = jnp.maximum(z, 0.0)

    # fc1 (320->50, padded to 128) + relu.  x.view(-1, 320) is folded into the
    # per-row weight blocks wfc1.  F.dropout is identity in eval mode.
    h = dot(dot(rf_ref[0], z), wfc1_ref[0])
    for hh in range(1, 4):
        h = h + dot(dot(rf_ref[hh], z), wfc1_ref[hh])
    h = jnp.maximum(h + bfc1_ref[...], 0.0)                   # (Bt, 128)

    # fc2 (50->10, padded to 128) + log_softmax; padded logits carry -1e30
    # bias so they contribute nothing to the max / sum-exp.
    logits = dot(h, wfc2_ref[...]) + bfc2_ref[...]            # (Bt, 128)
    mx = jnp.max(logits, axis=-1, keepdims=True)
    s = logits - mx
    lse = jnp.log(jnp.sum(jnp.exp(s), axis=-1, keepdims=True))
    o_ref[...] = s - lse


# --------------------------- weight lowering (prep) ------------------------

def prepare_params(p, batch_tile=BATCH_TILE):
    """Lower PyTorch-layout weights into the matrices the fused kernel uses."""
    f32 = jnp.float32
    Bt = batch_tile
    K = 5
    eye_bt = np.eye(Bt, dtype=np.float32)

    def kron_stack(base):  # (n, r, c) -> (n, Bt*r, Bt*c) block-diagonal
        return jnp.asarray(np.stack([np.kron(eye_bt, b) for b in base]))

    def shift_sel(rows_out, rows_in):  # sel[k, i, i+k] = 1  (conv row windows)
        sel = np.zeros((K, rows_out, rows_in), np.float32)
        for k in range(K):
            sel[k, np.arange(rows_out), np.arange(rows_out) + k] = 1.0
        return kron_stack(sel)

    def pool_row_sel(rows_out):        # even / odd row pickers
        sel = np.zeros((2, rows_out, 2 * rows_out), np.float32)
        sel[0, np.arange(rows_out), 2 * np.arange(rows_out)] = 1.0
        sel[1, np.arange(rows_out), 2 * np.arange(rows_out) + 1] = 1.0
        return kron_stack(sel)

    def pool_col_sel(w_out, ch):       # even / odd width pickers (lane axis)
        sel = np.zeros((2, 2 * w_out * ch, w_out * ch), np.float32)
        wi, ci = np.meshgrid(np.arange(w_out), np.arange(ch), indexing="ij")
        sel[0, (2 * wi) * ch + ci, wi * ch + ci] = 1.0
        sel[1, (2 * wi + 1) * ch + ci, wi * ch + ci] = 1.0
        return jnp.asarray(sel)

    w1 = jnp.asarray(p["conv1_w"], f32)
    w2 = jnp.asarray(p["conv2_w"], f32)
    fw1 = jnp.asarray(p["fc1_w"], f32)
    fw2 = jnp.asarray(p["fc2_w"], f32)

    # conv1 lowered weight: m1[ki, w + kj, w*10 + o] = w1[o, 0, ki, kj]
    ki, w, kj, o = np.meshgrid(np.arange(K), np.arange(24), np.arange(K),
                               np.arange(10), indexing="ij")
    m1 = jnp.zeros((K, 28, 240), f32).at[ki, w + kj, w * 10 + o].set(
        w1[o, 0, ki, kj])
    b1 = jnp.tile(jnp.asarray(p["conv1_b"], f32), 24).reshape(1, 240)

    # conv2 lowered weight: m2[ki, (w + kj)*10 + c, w*20 + o] = w2[o, c, ki, kj]
    ki, w, kj, c, o = np.meshgrid(np.arange(K), np.arange(8), np.arange(K),
                                  np.arange(10), np.arange(20), indexing="ij")
    m2 = jnp.zeros((K, 120, 160), f32).at[
        ki, (w + kj) * 10 + c, w * 20 + o].set(w2[o, c, ki, kj])
    b2 = jnp.tile(jnp.asarray(p["conv2_b"], f32), 8).reshape(1, 160)

    # fc1: wfc1[h, w*20 + c, j] = fc1_w[j, c*16 + h*4 + w]  (view(-1,320) order)
    h, w, c, j = np.meshgrid(np.arange(4), np.arange(4), np.arange(20),
                             np.arange(50), indexing="ij")
    wfc1 = jnp.zeros((4, 80, 128), f32).at[h, w * 20 + c, j].set(
        fw1[j, c * 16 + h * 4 + w])
    bfc1 = jnp.zeros((1, 128), f32).at[0, :50].set(jnp.asarray(p["fc1_b"], f32))

    rf_base = np.zeros((4, 1, 4), np.float32)
    rf_base[np.arange(4), 0, np.arange(4)] = 1.0

    # fc2 padded to 128 lanes; padded logits masked out of the LSE via -1e30.
    wfc2 = jnp.zeros((128, 128), f32).at[:50, :10].set(fw2.T)
    bfc2 = jnp.full((1, 128), -1e30, f32).at[0, :10].set(
        jnp.asarray(p["fc2_b"], f32))

    return {
        "r1": shift_sel(24, 28),        # (5, Bt*24, Bt*28)
        "m1": m1,                       # (5, 28, 240)
        "b1": b1,                       # (1, 240)
        "ph1": pool_row_sel(12),        # (2, Bt*12, Bt*24)
        "sw1": pool_col_sel(12, 10),    # (2, 240, 120)
        "r2": shift_sel(8, 12),         # (5, Bt*8, Bt*12)
        "m2": m2,                       # (5, 120, 160)
        "b2": b2,                       # (1, 160)
        "ph2": pool_row_sel(4),         # (2, Bt*4, Bt*8)
        "sw2": pool_col_sel(4, 20),     # (2, 160, 80)
        "rf": kron_stack(rf_base),      # (4, Bt, Bt*4)
        "wfc1": wfc1,                   # (4, 80, 128)
        "bfc1": bfc1,                   # (1, 128)
        "wfc2": wfc2,                   # (128, 128)
        "bfc2": bfc2,                   # (1, 128)
    }


# ------------------------------ forward wrapper -----------------------------

def net_forward(x, prep, batch_tile=BATCH_TILE):
    """x: (B, 1, 28, 28) float32 -> (B, 10) log-probabilities (eval mode)."""
    B = x.shape[0]
    Bt = batch_tile
    Bp = ((B + Bt - 1) // Bt) * Bt
    xr = x.astype(jnp.float32).reshape(B, 28 * 28)
    if Bp != B:
        xr = jnp.pad(xr, ((0, Bp - B), (0, 0)))
    xr = xr.reshape(Bp * 28, 28)            # rows = sample*28 + input_row

    num_tiles = Bp // Bt
    c2 = lambda b: (0, 0)                   # weights: loaded once, never re-DMAed
    c3 = lambda b: (0, 0, 0)

    out = pl.pallas_call(
        _net_fused_kernel,
        out_shape=jax.ShapeDtypeStruct((Bp, 128), jnp.float32),
        grid=(num_tiles,),
        in_specs=[
            pl.BlockSpec((Bt * 28, 28), lambda b: (b, 0)),          # x tile
            pl.BlockSpec((5, Bt * 24, Bt * 28), c3),                # r1
            pl.BlockSpec((5, 28, 240), c3),                         # m1
            pl.BlockSpec((1, 240), c2),                             # b1
            pl.BlockSpec((2, Bt * 12, Bt * 24), c3),                # ph1
            pl.BlockSpec((2, 240, 120), c3),                        # sw1
            pl.BlockSpec((5, Bt * 8, Bt * 12), c3),                 # r2
            pl.BlockSpec((5, 120, 160), c3),                        # m2
            pl.BlockSpec((1, 160), c2),                             # b2
            pl.BlockSpec((2, Bt * 4, Bt * 8), c3),                  # ph2
            pl.BlockSpec((2, 160, 80), c3),                         # sw2
            pl.BlockSpec((4, Bt, Bt * 4), c3),                      # rf
            pl.BlockSpec((4, 80, 128), c3),                         # wfc1
            pl.BlockSpec((1, 128), c2),                             # bfc1
            pl.BlockSpec((128, 128), c2),                           # wfc2
            pl.BlockSpec((1, 128), c2),                             # bfc2
        ],
        out_specs=pl.BlockSpec((Bt, 128), lambda b: (b, 0)),
        compiler_params=pltpu.CompilerParams(
            dimension_semantics=("parallel",)),
    )(xr, prep["r1"], prep["m1"], prep["b1"], prep["ph1"], prep["sw1"],
      prep["r2"], prep["m2"], prep["b2"], prep["ph2"], prep["sw2"],
      prep["rf"], prep["wfc1"], prep["bfc1"], prep["wfc2"], prep["bfc2"])

    return out[:B, :10]


# --------------------------- pure-XLA reference ------------------------------

def _pool2x2(y):
    B, C, H, W = y.shape
    return jnp.max(y.reshape(B, C, H // 2, 2, W // 2, 2), axis=(3, 5))


def reference_forward(x, p):
    """Eval-mode reference of the PyTorch Net, in plain XLA (f32 precision)."""
    hi = jax.lax.Precision.HIGHEST
    dn = ("NCHW", "OIHW", "NCHW")
    y = jax.lax.conv_general_dilated(x, p["conv1_w"], (1, 1), "VALID",
                                     dimension_numbers=dn, precision=hi)
    y = y + p["conv1_b"][None, :, None, None]
    y = jnp.maximum(_pool2x2(y), 0.0)
    y = jax.lax.conv_general_dilated(y, p["conv2_w"], (1, 1), "VALID",
                                     dimension_numbers=dn, precision=hi)
    y = y + p["conv2_b"][None, :, None, None]
    y = jnp.maximum(_pool2x2(y), 0.0)
    y = y.reshape(y.shape[0], -1)                       # == x.view(-1, 320)
    y = jnp.maximum(jnp.dot(y, p["fc1_w"].T, precision=hi) + p["fc1_b"], 0.0)
    y = jnp.dot(y, p["fc2_w"].T, precision=hi) + p["fc2_b"]
    return jax.nn.log_softmax(y, axis=1)


def init_params(key):
    """PyTorch-default-style init (uniform +-1/sqrt(fan_in))."""
    ks = jax.random.split(key, 8)

    def u(k, shape, fan_in):
        bound = 1.0 / np.sqrt(fan_in)
        return jax.random.uniform(k, shape, jnp.float32, -bound, bound)

    return {
        "conv1_w": u(ks[0], (10, 1, 5, 5), 1 * 5 * 5),
        "conv1_b": u(ks[1], (10,), 1 * 5 * 5),
        "conv2_w": u(ks[2], (20, 10, 5, 5), 10 * 5 * 5),
        "conv2_b": u(ks[3], (20,), 10 * 5 * 5),
        "fc1_w": u(ks[4], (50, 320), 320),
        "fc1_b": u(ks[5], (50,), 320),
        "fc2_w": u(ks[6], (10, 50), 50),
        "fc2_b": u(ks[7], (10,), 50),
    }


if __name__ == "__main__":
    key = jax.random.PRNGKey(0)
    pkey, xkey = jax.random.split(key)
    params = init_params(pkey)
    prep = prepare_params(params)

    B = 8  # MNIST-shaped input; fc1(320) implies 1x28x28.
    x = jax.random.normal(xkey, (B, 1, 28, 28), jnp.float32)

    out = jax.jit(net_forward)(x, prep)
    out = jax.block_until_ready(out)
    assert out.shape == (B, 10), out.shape

    # Correctness vs a plain-XLA reference of the PyTorch module.
    ref = reference_forward(x, params)
    err = float(jnp.max(jnp.abs(out - ref)))
    assert err < 2e-2, f"max abs diff vs reference: {err}"

    # log_softmax sanity: each row of probabilities sums to 1.
    row_sums = jnp.exp(out).sum(axis=1)
    assert bool(jnp.allclose(row_sums, 1.0, atol=1e-4)), row_sums

    print("KERNEL_OK")
</pallas_src>

<mosaic_0001>
module attributes {stable_mosaic.version = 11 : i64} {
  func.func @_net_fused_kernel(%arg0: i32, %arg1: memref<224x28xf32, #tpu.memory_space<vmem>>, %arg2: memref<5x192x224xf32, #tpu.memory_space<vmem>>, %arg3: memref<5x28x240xf32, #tpu.memory_space<vmem>>, %arg4: memref<1x240xf32, #tpu.memory_space<vmem>>, %arg5: memref<2x96x192xf32, #tpu.memory_space<vmem>>, %arg6: memref<2x240x120xf32, #tpu.memory_space<vmem>>, %arg7: memref<5x64x96xf32, #tpu.memory_space<vmem>>, %arg8: memref<5x120x160xf32, #tpu.memory_space<vmem>>, %arg9: memref<1x160xf32, #tpu.memory_space<vmem>>, %arg10: memref<2x32x64xf32, #tpu.memory_space<vmem>>, %arg11: memref<2x160x80xf32, #tpu.memory_space<vmem>>, %arg12: memref<4x8x32xf32, #tpu.memory_space<vmem>>, %arg13: memref<4x80x128xf32, #tpu.memory_space<vmem>>, %arg14: memref<1x128xf32, #tpu.memory_space<vmem>>, %arg15: memref<128x128xf32, #tpu.memory_space<vmem>>, %arg16: memref<1x128xf32, #tpu.memory_space<vmem>>, %arg17: memref<8x128xf32, #tpu.memory_space<vmem>>) attributes {dimension_semantics = [#tpu.dimension_semantics<parallel>], iteration_bounds = array<i64: 1>, scalar_prefetch = 0 : i64, scratch_operands = 0 : i64, tpu.core_type = #tpu.core_type<tc>, window_params = [{transform_indices = @transform_0, window_bounds = array<i64: 224, 28>}, {pipeline_mode = #tpu.pipeline_mode<synchronous>, transform_indices = @transform_1, window_bounds = array<i64: 5, 192, 224>}, {pipeline_mode = #tpu.pipeline_mode<synchronous>, transform_indices = @transform_2, window_bounds = array<i64: 5, 28, 240>}, {pipeline_mode = #tpu.pipeline_mode<synchronous>, transform_indices = @transform_3, window_bounds = array<i64: 1, 240>}, {pipeline_mode = #tpu.pipeline_mode<synchronous>, transform_indices = @transform_4, window_bounds = array<i64: 2, 96, 192>}, {pipeline_mode = #tpu.pipeline_mode<synchronous>, transform_indices = @transform_5, window_bounds = array<i64: 2, 240, 120>}, {pipeline_mode = #tpu.pipeline_mode<synchronous>, transform_indices = @transform_6, window_bounds = array<i64: 5, 64, 96>}, {pipeline_mode = #tpu.pipeline_mode<synchronous>, transform_indices = @transform_7, window_bounds = array<i64: 5, 120, 160>}, {pipeline_mode = #tpu.pipeline_mode<synchronous>, transform_indices = @transform_8, window_bounds = array<i64: 1, 160>}, {pipeline_mode = #tpu.pipeline_mode<synchronous>, transform_indices = @transform_9, window_bounds = array<i64: 2, 32, 64>}, {pipeline_mode = #tpu.pipeline_mode<synchronous>, transform_indices = @transform_10, window_bounds = array<i64: 2, 160, 80>}, {pipeline_mode = #tpu.pipeline_mode<synchronous>, transform_indices = @transform_11, window_bounds = array<i64: 4, 8, 32>}, {pipeline_mode = #tpu.pipeline_mode<synchronous>, transform_indices = @transform_12, window_bounds = array<i64: 4, 80, 128>}, {pipeline_mode = #tpu.pipeline_mode<synchronous>, transform_indices = @transform_13, window_bounds = array<i64: 1, 128>}, {pipeline_mode = #tpu.pipeline_mode<synchronous>, transform_indices = @transform_14, window_bounds = array<i64: 128, 128>}, {pipeline_mode = #tpu.pipeline_mode<synchronous>, transform_indices = @transform_15, window_bounds = array<i64: 1, 128>}, {transform_indices = @transform_16, window_bounds = array<i64: 8, 128>}]} {
    %c0 = arith.constant 0 : index
    %c0_0 = arith.constant 0 : index
    %0 = vector.load %arg1[%c0, %c0_0] : memref<224x28xf32, #tpu.memory_space<vmem>>, vector<224x28xf32>
    %c0_1 = arith.constant 0 : index
    %c0_2 = arith.constant 0 : index
    %c0_3 = arith.constant 0 : index
    %1 = vector.load %arg2[%c0_1, %c0_2, %c0_3] : memref<5x192x224xf32, #tpu.memory_space<vmem>>, vector<1x192x224xf32>
    %2 = vector.shape_cast %1 : vector<1x192x224xf32> to vector<192x224xf32>
    %cst = arith.constant dense<0.000000e+00> : vector<192x28xf32>
    %3 = tpu.matmul %2, %0, %cst {dimension_numbers = #tpu.dot_dimension_numbers<[1], [0], [0], [1], [0, 0, 1, 1], [], []>} : vector<192x224xf32>, vector<224x28xf32>, vector<192x28xf32> -> vector<192x28xf32>
    %c0_4 = arith.constant 0 : index
    %c0_5 = arith.constant 0 : index
    %c0_6 = arith.constant 0 : index
    %4 = vector.load %arg3[%c0_4, %c0_5, %c0_6] : memref<5x28x240xf32, #tpu.memory_space<vmem>>, vector<1x28x240xf32>
    %5 = vector.shape_cast %4 : vector<1x28x240xf32> to vector<28x240xf32>
    %cst_7 = arith.constant dense<0.000000e+00> : vector<192x240xf32>
    %6 = tpu.matmul %3, %5, %cst_7 {dimension_numbers = #tpu.dot_dimension_numbers<[1], [0], [0], [1], [0, 0, 1, 1], [], []>} : vector<192x28xf32>, vector<28x240xf32>, vector<192x240xf32> -> vector<192x240xf32>
    %c1 = arith.constant 1 : index
    %c0_8 = arith.constant 0 : index
    %c0_9 = arith.constant 0 : index
    %7 = vector.load %arg2[%c1, %c0_8, %c0_9] : memref<5x192x224xf32, #tpu.memory_space<vmem>>, vector<1x192x224xf32>
    %8 = vector.shape_cast %7 : vector<1x192x224xf32> to vector<192x224xf32>
    %cst_10 = arith.constant dense<0.000000e+00> : vector<192x28xf32>
    %9 = tpu.matmul %8, %0, %cst_10 {dimension_numbers = #tpu.dot_dimension_numbers<[1], [0], [0], [1], [0, 0, 1, 1], [], []>} : vector<192x224xf32>, vector<224x28xf32>, vector<192x28xf32> -> vector<192x28xf32>
    %c1_11 = arith.constant 1 : index
    %c0_12 = arith.constant 0 : index
    %c0_13 = arith.constant 0 : index
    %10 = vector.load %arg3[%c1_11, %c0_12, %c0_13] : memref<5x28x240xf32, #tpu.memory_space<vmem>>, vector<1x28x240xf32>
    %11 = vector.shape_cast %10 : vector<1x28x240xf32> to vector<28x240xf32>
    %cst_14 = arith.constant dense<0.000000e+00> : vector<192x240xf32>
    %12 = tpu.matmul %9, %11, %cst_14 {dimension_numbers = #tpu.dot_dimension_numbers<[1], [0], [0], [1], [0, 0, 1, 1], [], []>} : vector<192x28xf32>, vector<28x240xf32>, vector<192x240xf32> -> vector<192x240xf32>
    %13 = arith.addf %6, %12 : vector<192x240xf32>
    %c2 = arith.constant 2 : index
    %c0_15 = arith.constant 0 : index
    %c0_16 = arith.constant 0 : index
    %14 = vector.load %arg2[%c2, %c0_15, %c0_16] : memref<5x192x224xf32, #tpu.memory_space<vmem>>, vector<1x192x224xf32>
    %15 = vector.shape_cast %14 : vector<1x192x224xf32> to vector<192x224xf32>
    %cst_17 = arith.constant dense<0.000000e+00> : vector<192x28xf32>
    %16 = tpu.matmul %15, %0, %cst_17 {dimension_numbers = #tpu.dot_dimension_numbers<[1], [0], [0], [1], [0, 0, 1, 1], [], []>} : vector<192x224xf32>, vector<224x28xf32>, vector<192x28xf32> -> vector<192x28xf32>
    %c2_18 = arith.constant 2 : index
    %c0_19 = arith.constant 0 : index
    %c0_20 = arith.constant 0 : index
    %17 = vector.load %arg3[%c2_18, %c0_19, %c0_20] : memref<5x28x240xf32, #tpu.memory_space<vmem>>, vector<1x28x240xf32>
    %18 = vector.shape_cast %17 : vector<1x28x240xf32> to vector<28x240xf32>
    %cst_21 = arith.constant dense<0.000000e+00> : vector<192x240xf32>
    %19 = tpu.matmul %16, %18, %cst_21 {dimension_numbers = #tpu.dot_dimension_numbers<[1], [0], [0], [1], [0, 0, 1, 1], [], []>} : vector<192x28xf32>, vector<28x240xf32>, vector<192x240xf32> -> vector<192x240xf32>
    %20 = arith.addf %13, %19 : vector<192x240xf32>
    %c3 = arith.constant 3 : index
    %c0_22 = arith.constant 0 : index
    %c0_23 = arith.constant 0 : index
    %21 = vector.load %arg2[%c3, %c0_22, %c0_23] : memref<5x192x224xf32, #tpu.memory_space<vmem>>, vector<1x192x224xf32>
    %22 = vector.shape_cast %21 : vector<1x192x224xf32> to vector<192x224xf32>
    %cst_24 = arith.constant dense<0.000000e+00> : vector<192x28xf32>
    %23 = tpu.matmul %22, %0, %cst_24 {dimension_numbers = #tpu.dot_dimension_numbers<[1], [0], [0], [1], [0, 0, 1, 1], [], []>} : vector<192x224xf32>, vector<224x28xf32>, vector<192x28xf32> -> vector<192x28xf32>
    %c3_25 = arith.constant 3 : index
    %c0_26 = arith.constant 0 : index
    %c0_27 = arith.constant 0 : index
    %24 = vector.load %arg3[%c3_25, %c0_26, %c0_27] : memref<5x28x240xf32, #tpu.memory_space<vmem>>, vector<1x28x240xf32>
    %25 = vector.shape_cast %24 : vector<1x28x240xf32> to vector<28x240xf32>
    %cst_28 = arith.constant dense<0.000000e+00> : vector<192x240xf32>
    %26 = tpu.matmul %23, %25, %cst_28 {dimension_numbers = #tpu.dot_dimension_numbers<[1], [0], [0], [1], [0, 0, 1, 1], [], []>} : vector<192x28xf32>, vector<28x240xf32>, vector<192x240xf32> -> vector<192x240xf32>
    %27 = arith.addf %20, %26 : vector<192x240xf32>
    %c4 = arith.constant 4 : index
    %c0_29 = arith.constant 0 : index
    %c0_30 = arith.constant 0 : index
    %28 = vector.load %arg2[%c4, %c0_29, %c0_30] : memref<5x192x224xf32, #tpu.memory_space<vmem>>, vector<1x192x224xf32>
    %29 = vector.shape_cast %28 : vector<1x192x224xf32> to vector<192x224xf32>
    %cst_31 = arith.constant dense<0.000000e+00> : vector<192x28xf32>
    %30 = tpu.matmul %29, %0, %cst_31 {dimension_numbers = #tpu.dot_dimension_numbers<[1], [0], [0], [1], [0, 0, 1, 1], [], []>} : vector<192x224xf32>, vector<224x28xf32>, vector<192x28xf32> -> vector<192x28xf32>
    %c4_32 = arith.constant 4 : index
    %c0_33 = arith.constant 0 : index
    %c0_34 = arith.constant 0 : index
    %31 = vector.load %arg3[%c4_32, %c0_33, %c0_34] : memref<5x28x240xf32, #tpu.memory_space<vmem>>, vector<1x28x240xf32>
    %32 = vector.shape_cast %31 : vector<1x28x240xf32> to vector<28x240xf32>
    %cst_35 = arith.constant dense<0.000000e+00> : vector<192x240xf32>
    %33 = tpu.matmul %30, %32, %cst_35 {dimension_numbers = #tpu.dot_dimension_numbers<[1], [0], [0], [1], [0, 0, 1, 1], [], []>} : vector<192x28xf32>, vector<28x240xf32>, vector<192x240xf32> -> vector<192x240xf32>
    %34 = arith.addf %27, %33 : vector<192x240xf32>
    %c0_36 = arith.constant 0 : index
    %c0_37 = arith.constant 0 : index
    %35 = vector.load %arg4[%c0_36, %c0_37] : memref<1x240xf32, #tpu.memory_space<vmem>>, vector<1x240xf32>
    %36 = vector.broadcast %35 : vector<1x240xf32> to vector<192x240xf32>
    %37 = arith.addf %34, %36 : vector<192x240xf32>
    %c0_38 = arith.constant 0 : index
    %c0_39 = arith.constant 0 : index
    %c0_40 = arith.constant 0 : index
    %38 = vector.load %arg5[%c0_38, %c0_39, %c0_40] : memref<2x96x192xf32, #tpu.memory_space<vmem>>, vector<1x96x192xf32>
    %39 = vector.shape_cast %38 : vector<1x96x192xf32> to vector<96x192xf32>
    %cst_41 = arith.constant dense<0.000000e+00> : vector<96x240xf32>
    %40 = tpu.matmul %39, %37, %cst_41 {dimension_numbers = #tpu.dot_dimension_numbers<[1], [0], [0], [1], [0, 0, 1, 1], [], []>} : vector<96x192xf32>, vector<192x240xf32>, vector<96x240xf32> -> vector<96x240xf32>
    %c1_42 = arith.constant 1 : index
    %c0_43 = arith.constant 0 : index
    %c0_44 = arith.constant 0 : index
    %41 = vector.load %arg5[%c1_42, %c0_43, %c0_44] : memref<2x96x192xf32, #tpu.memory_space<vmem>>, vector<1x96x192xf32>
    %42 = vector.shape_cast %41 : vector<1x96x192xf32> to vector<96x192xf32>
    %cst_45 = arith.constant dense<0.000000e+00> : vector<96x240xf32>
    %43 = tpu.matmul %42, %37, %cst_45 {dimension_numbers = #tpu.dot_dimension_numbers<[1], [0], [0], [1], [0, 0, 1, 1], [], []>} : vector<96x192xf32>, vector<192x240xf32>, vector<96x240xf32> -> vector<96x240xf32>
    %44 = arith.maximumf %40, %43 : vector<96x240xf32>
    %c0_46 = arith.constant 0 : index
    %c0_47 = arith.constant 0 : index
    %c0_48 = arith.constant 0 : index
    %45 = vector.load %arg6[%c0_46, %c0_47, %c0_48] : memref<2x240x120xf32, #tpu.memory_space<vmem>>, vector<1x240x120xf32>
    %46 = vector.shape_cast %45 : vector<1x240x120xf32> to vector<240x120xf32>
    %cst_49 = arith.constant dense<0.000000e+00> : vector<96x120xf32>
    %47 = tpu.matmul %44, %46, %cst_49 {dimension_numbers = #tpu.dot_dimension_numbers<[1], [0], [0], [1], [0, 0, 1, 1], [], []>} : vector<96x240xf32>, vector<240x120xf32>, vector<96x120xf32> -> vector<96x120xf32>
    %c1_50 = arith.constant 1 : index
    %c0_51 = arith.constant 0 : index
    %c0_52 = arith.constant 0 : index
    %48 = vector.load %arg6[%c1_50, %c0_51, %c0_52] : memref<2x240x120xf32, #tpu.memory_space<vmem>>, vector<1x240x120xf32>
    %49 = vector.shape_cast %48 : vector<1x240x120xf32> to vector<240x120xf32>
    %cst_53 = arith.constant dense<0.000000e+00> : vector<96x120xf32>
    %50 = tpu.matmul %44, %49, %cst_53 {dimension_numbers = #tpu.dot_dimension_numbers<[1], [0], [0], [1], [0, 0, 1, 1], [], []>} : vector<96x240xf32>, vector<240x120xf32>, vector<96x120xf32> -> vector<96x120xf32>
    %51 = arith.maximumf %47, %50 : vector<96x120xf32>
    %cst_54 = arith.constant 0.000000e+00 : f32
    %52 = vector.broadcast %cst_54 : f32 to vector<96x120xf32>
    %53 = arith.maximumf %51, %52 : vector<96x120xf32>
    %c0_55 = arith.constant 0 : index
    %c0_56 = arith.constant 0 : index
    %c0_57 = arith.constant 0 : index
    %54 = vector.load %arg7[%c0_55, %c0_56, %c0_57] : memref<5x64x96xf32, #tpu.memory_space<vmem>>, vector<1x64x96xf32>
    %55 = vector.shape_cast %54 : vector<1x64x96xf32> to vector<64x96xf32>
    %cst_58 = arith.constant dense<0.000000e+00> : vector<64x120xf32>
    %56 = tpu.matmul %55, %53, %cst_58 {dimension_numbers = #tpu.dot_dimension_numbers<[1], [0], [0], [1], [0, 0, 1, 1], [], []>} : vector<64x96xf32>, vector<96x120xf32>, vector<64x120xf32> -> vector<64x120xf32>
    %c0_59 = arith.constant 0 : index
    %c0_60 = arith.constant 0 : index
    %c0_61 = arith.constant 0 : index
    %57 = vector.load %arg8[%c0_59, %c0_60, %c0_61] : memref<5x120x160xf32, #tpu.memory_space<vmem>>, vector<1x120x160xf32>
    %58 = vector.shape_cast %57 : vector<1x120x160xf32> to vector<120x160xf32>
    %cst_62 = arith.constant dense<0.000000e+00> : vector<64x160xf32>
    %59 = tpu.matmul %56, %58, %cst_62 {dimension_numbers = #tpu.dot_dimension_numbers<[1], [0], [0], [1], [0, 0, 1, 1], [], []>} : vector<64x120xf32>, vector<120x160xf32>, vector<64x160xf32> -> vector<64x160xf32>
    %c1_63 = arith.constant 1 : index
    %c0_64 = arith.constant 0 : index
    %c0_65 = arith.constant 0 : index
    %60 = vector.load %arg7[%c1_63, %c0_64, %c0_65] : memref<5x64x96xf32, #tpu.memory_space<vmem>>, vector<1x64x96xf32>
    %61 = vector.shape_cast %60 : vector<1x64x96xf32> to vector<64x96xf32>
    %cst_66 = arith.constant dense<0.000000e+00> : vector<64x120xf32>
    %62 = tpu.matmul %61, %53, %cst_66 {dimension_numbers = #tpu.dot_dimension_numbers<[1], [0], [0], [1], [0, 0, 1, 1], [], []>} : vector<64x96xf32>, vector<96x120xf32>, vector<64x120xf32> -> vector<64x120xf32>
    %c1_67 = arith.constant 1 : index
    %c0_68 = arith.constant 0 : index
    %c0_69 = arith.constant 0 : index
    %63 = vector.load %arg8[%c1_67, %c0_68, %c0_69] : memref<5x120x160xf32, #tpu.memory_space<vmem>>, vector<1x120x160xf32>
    %64 = vector.shape_cast %63 : vector<1x120x160xf32> to vector<120x160xf32>
    %cst_70 = arith.constant dense<0.000000e+00> : vector<64x160xf32>
    %65 = tpu.matmul %62, %64, %cst_70 {dimension_numbers = #tpu.dot_dimension_numbers<[1], [0], [0], [1], [0, 0, 1, 1], [], []>} : vector<64x120xf32>, vector<120x160xf32>, vector<64x160xf32> -> vector<64x160xf32>
    %66 = arith.addf %59, %65 : vector<64x160xf32>
    %c2_71 = arith.constant 2 : index
    %c0_72 = arith.constant 0 : index
    %c0_73 = arith.constant 0 : index
    %67 = vector.load %arg7[%c2_71, %c0_72, %c0_73] : memref<5x64x96xf32, #tpu.memory_space<vmem>>, vector<1x64x96xf32>
    %68 = vector.shape_cast %67 : vector<1x64x96xf32> to vector<64x96xf32>
    %cst_74 = arith.constant dense<0.000000e+00> : vector<64x120xf32>
    %69 = tpu.matmul %68, %53, %cst_74 {dimension_numbers = #tpu.dot_dimension_numbers<[1], [0], [0], [1], [0, 0, 1, 1], [], []>} : vector<64x96xf32>, vector<96x120xf32>, vector<64x120xf32> -> vector<64x120xf32>
    %c2_75 = arith.constant 2 : index
    %c0_76 = arith.constant 0 : index
    %c0_77 = arith.constant 0 : index
    %70 = vector.load %arg8[%c2_75, %c0_76, %c0_77] : memref<5x120x160xf32, #tpu.memory_space<vmem>>, vector<1x120x160xf32>
    %71 = vector.shape_cast %70 : vector<1x120x160xf32> to vector<120x160xf32>
    %cst_78 = arith.constant dense<0.000000e+00> : vector<64x160xf32>
    %72 = tpu.matmul %69, %71, %cst_78 {dimension_numbers = #tpu.dot_dimension_numbers<[1], [0], [0], [1], [0, 0, 1, 1], [], []>} : vector<64x120xf32>, vector<120x160xf32>, vector<64x160xf32> -> vector<64x160xf32>
    %73 = arith.addf %66, %72 : vector<64x160xf32>
    %c3_79 = arith.constant 3 : index
    %c0_80 = arith.constant 0 : index
    %c0_81 = arith.constant 0 : index
    %74 = vector.load %arg7[%c3_79, %c0_80, %c0_81] : memref<5x64x96xf32, #tpu.memory_space<vmem>>, vector<1x64x96xf32>
    %75 = vector.shape_cast %74 : vector<1x64x96xf32> to vector<64x96xf32>
    %cst_82 = arith.constant dense<0.000000e+00> : vector<64x120xf32>
    %76 = tpu.matmul %75, %53, %cst_82 {dimension_numbers = #tpu.dot_dimension_numbers<[1], [0], [0], [1], [0, 0, 1, 1], [], []>} : vector<64x96xf32>, vector<96x120xf32>, vector<64x120xf32> -> vector<64x120xf32>
    %c3_83 = arith.constant 3 : index
    %c0_84 = arith.constant 0 : index
    %c0_85 = arith.constant 0 : index
    %77 = vector.load %arg8[%c3_83, %c0_84, %c0_85] : memref<5x120x160xf32, #tpu.memory_space<vmem>>, vector<1x120x160xf32>
    %78 = vector.shape_cast %77 : vector<1x120x160xf32> to vector<120x160xf32>
    %cst_86 = arith.constant dense<0.000000e+00> : vector<64x160xf32>
    %79 = tpu.matmul %76, %78, %cst_86 {dimension_numbers = #tpu.dot_dimension_numbers<[1], [0], [0], [1], [0, 0, 1, 1], [], []>} : vector<64x120xf32>, vector<120x160xf32>, vector<64x160xf32> -> vector<64x160xf32>
    %80 = arith.addf %73, %79 : vector<64x160xf32>
    %c4_87 = arith.constant 4 : index
    %c0_88 = arith.constant 0 : index
    %c0_89 = arith.constant 0 : index
    %81 = vector.load %arg7[%c4_87, %c0_88, %c0_89] : memref<5x64x96xf32, #tpu.memory_space<vmem>>, vector<1x64x96xf32>
    %82 = vector.shape_cast %81 : vector<1x64x96xf32> to vector<64x96xf32>
    %cst_90 = arith.constant dense<0.000000e+00> : vector<64x120xf32>
    %83 = tpu.matmul %82, %53, %cst_90 {dimension_numbers = #tpu.dot_dimension_numbers<[1], [0], [0], [1], [0, 0, 1, 1], [], []>} : vector<64x96xf32>, vector<96x120xf32>, vector<64x120xf32> -> vector<64x120xf32>
    %c4_91 = arith.constant 4 : index
    %c0_92 = arith.constant 0 : index
    %c0_93 = arith.constant 0 : index
    %84 = vector.load %arg8[%c4_91, %c0_92, %c0_93] : memref<5x120x160xf32, #tpu.memory_space<vmem>>, vector<1x120x160xf32>
    %85 = vector.shape_cast %84 : vector<1x120x160xf32> to vector<120x160xf32>
    %cst_94 = arith.constant dense<0.000000e+00> : vector<64x160xf32>
    %86 = tpu.matmul %83, %85, %cst_94 {dimension_numbers = #tpu.dot_dimension_numbers<[1], [0], [0], [1], [0, 0, 1, 1], [], []>} : vector<64x120xf32>, vector<120x160xf32>, vector<64x160xf32> -> vector<64x160xf32>
    %87 = arith.addf %80, %86 : vector<64x160xf32>
    %c0_95 = arith.constant 0 : index
    %c0_96 = arith.constant 0 : index
    %88 = vector.load %arg9[%c0_95, %c0_96] : memref<1x160xf32, #tpu.memory_space<vmem>>, vector<1x160xf32>
    %89 = vector.broadcast %88 : vector<1x160xf32> to vector<64x160xf32>
    %90 = arith.addf %87, %89 : vector<64x160xf32>
    %c0_97 = arith.constant 0 : index
    %c0_98 = arith.constant 0 : index
    %c0_99 = arith.constant 0 : index
    %91 = vector.load %arg10[%c0_97, %c0_98, %c0_99] : memref<2x32x64xf32, #tpu.memory_space<vmem>>, vector<1x32x64xf32>
    %92 = vector.shape_cast %91 : vector<1x32x64xf32> to vector<32x64xf32>
    %cst_100 = arith.constant dense<0.000000e+00> : vector<32x160xf32>
    %93 = tpu.matmul %92, %90, %cst_100 {dimension_numbers = #tpu.dot_dimension_numbers<[1], [0], [0], [1], [0, 0, 1, 1], [], []>} : vector<32x64xf32>, vector<64x160xf32>, vector<32x160xf32> -> vector<32x160xf32>
    %c1_101 = arith.constant 1 : index
    %c0_102 = arith.constant 0 : index
    %c0_103 = arith.constant 0 : index
    %94 = vector.load %arg10[%c1_101, %c0_102, %c0_103] : memref<2x32x64xf32, #tpu.memory_space<vmem>>, vector<1x32x64xf32>
    %95 = vector.shape_cast %94 : vector<1x32x64xf32> to vector<32x64xf32>
    %cst_104 = arith.constant dense<0.000000e+00> : vector<32x160xf32>
    %96 = tpu.matmul %95, %90, %cst_104 {dimension_numbers = #tpu.dot_dimension_numbers<[1], [0], [0], [1], [0, 0, 1, 1], [], []>} : vector<32x64xf32>, vector<64x160xf32>, vector<32x160xf32> -> vector<32x160xf32>
    %97 = arith.maximumf %93, %96 : vector<32x160xf32>
    %c0_105 = arith.constant 0 : index
    %c0_106 = arith.constant 0 : index
    %c0_107 = arith.constant 0 : index
    %98 = vector.load %arg11[%c0_105, %c0_106, %c0_107] : memref<2x160x80xf32, #tpu.memory_space<vmem>>, vector<1x160x80xf32>
    %99 = vector.shape_cast %98 : vector<1x160x80xf32> to vector<160x80xf32>
    %cst_108 = arith.constant dense<0.000000e+00> : vector<32x80xf32>
    %100 = tpu.matmul %97, %99, %cst_108 {dimension_numbers = #tpu.dot_dimension_numbers<[1], [0], [0], [1], [0, 0, 1, 1], [], []>} : vector<32x160xf32>, vector<160x80xf32>, vector<32x80xf32> -> vector<32x80xf32>
    %c1_109 = arith.constant 1 : index
    %c0_110 = arith.constant 0 : index
    %c0_111 = arith.constant 0 : index
    %101 = vector.load %arg11[%c1_109, %c0_110, %c0_111] : memref<2x160x80xf32, #tpu.memory_space<vmem>>, vector<1x160x80xf32>
    %102 = vector.shape_cast %101 : vector<1x160x80xf32> to vector<160x80xf32>
    %cst_112 = arith.constant dense<0.000000e+00> : vector<32x80xf32>
    %103 = tpu.matmul %97, %102, %cst_112 {dimension_numbers = #tpu.dot_dimension_numbers<[1], [0], [0], [1], [0, 0, 1, 1], [], []>} : vector<32x160xf32>, vector<160x80xf32>, vector<32x80xf32> -> vector<32x80xf32>
    %104 = arith.maximumf %100, %103 : vector<32x80xf32>
    %cst_113 = arith.constant 0.000000e+00 : f32
    %105 = vector.broadcast %cst_113 : f32 to vector<32x80xf32>
    %106 = arith.maximumf %104, %105 : vector<32x80xf32>
    %c0_114 = arith.constant 0 : index
    %c0_115 = arith.constant 0 : index
    %c0_116 = arith.constant 0 : index
    %107 = vector.load %arg12[%c0_114, %c0_115, %c0_116] : memref<4x8x32xf32, #tpu.memory_space<vmem>>, vector<1x8x32xf32>
    %108 = vector.shape_cast %107 : vector<1x8x32xf32> to vector<8x32xf32>
    %cst_117 = arith.constant dense<0.000000e+00> : vector<8x80xf32>
    %109 = tpu.matmul %108, %106, %cst_117 {dimension_numbers = #tpu.dot_dimension_numbers<[1], [0], [0], [1], [0, 0, 1, 1], [], []>} : vector<8x32xf32>, vector<32x80xf32>, vector<8x80xf32> -> vector<8x80xf32>
    %c0_118 = arith.constant 0 : index
    %c0_119 = arith.constant 0 : index
    %c0_120 = arith.constant 0 : index
    %110 = vector.load %arg13[%c0_118, %c0_119, %c0_120] : memref<4x80x128xf32, #tpu.memory_space<vmem>>, vector<1x80x128xf32>
    %111 = vector.shape_cast %110 : vector<1x80x128xf32> to vector<80x128xf32>
    %cst_121 = arith.constant dense<0.000000e+00> : vector<8x128xf32>
    %112 = tpu.matmul %109, %111, %cst_121 {dimension_numbers = #tpu.dot_dimension_numbers<[1], [0], [0], [1], [0, 0, 1, 1], [], []>} : vector<8x80xf32>, vector<80x128xf32>, vector<8x128xf32> -> vector<8x128xf32>
    %c1_122 = arith.constant 1 : index
    %c0_123 = arith.constant 0 : index
    %c0_124 = arith.constant 0 : index
    %113 = vector.load %arg12[%c1_122, %c0_123, %c0_124] : memref<4x8x32xf32, #tpu.memory_space<vmem>>, vector<1x8x32xf32>
    %114 = vector.shape_cast %113 : vector<1x8x32xf32> to vector<8x32xf32>
    %cst_125 = arith.constant dense<0.000000e+00> : vector<8x80xf32>
    %115 = tpu.matmul %114, %106, %cst_125 {dimension_numbers = #tpu.dot_dimension_numbers<[1], [0], [0], [1], [0, 0, 1, 1], [], []>} : vector<8x32xf32>, vector<32x80xf32>, vector<8x80xf32> -> vector<8x80xf32>
    %c1_126 = arith.constant 1 : index
    %c0_127 = arith.constant 0 : index
    %c0_128 = arith.constant 0 : index
    %116 = vector.load %arg13[%c1_126, %c0_127, %c0_128] : memref<4x80x128xf32, #tpu.memory_space<vmem>>, vector<1x80x128xf32>
    %117 = vector.shape_cast %116 : vector<1x80x128xf32> to vector<80x128xf32>
    %cst_129 = arith.constant dense<0.000000e+00> : vector<8x128xf32>
    %118 = tpu.matmul %115, %117, %cst_129 {dimension_numbers = #tpu.dot_dimension_numbers<[1], [0], [0], [1], [0, 0, 1, 1], [], []>} : vector<8x80xf32>, vector<80x128xf32>, vector<8x128xf32> -> vector<8x128xf32>
    %119 = arith.addf %112, %118 : vector<8x128xf32>
    %c2_130 = arith.constant 2 : index
    %c0_131 = arith.constant 0 : index
    %c0_132 = arith.constant 0 : index
    %120 = vector.load %arg12[%c2_130, %c0_131, %c0_132] : memref<4x8x32xf32, #tpu.memory_space<vmem>>, vector<1x8x32xf32>
    %121 = vector.shape_cast %120 : vector<1x8x32xf32> to vector<8x32xf32>
    %cst_133 = arith.constant dense<0.000000e+00> : vector<8x80xf32>
    %122 = tpu.matmul %121, %106, %cst_133 {dimension_numbers = #tpu.dot_dimension_numbers<[1], [0], [0], [1], [0, 0, 1, 1], [], []>} : vector<8x32xf32>, vector<32x80xf32>, vector<8x80xf32> -> vector<8x80xf32>
    %c2_134 = arith.constant 2 : index
    %c0_135 = arith.constant 0 : index
    %c0_136 = arith.constant 0 : index
    %123 = vector.load %arg13[%c2_134, %c0_135, %c0_136] : memref<4x80x128xf32, #tpu.memory_space<vmem>>, vector<1x80x128xf32>
    %124 = vector.shape_cast %123 : vector<1x80x128xf32> to vector<80x128xf32>
    %cst_137 = arith.constant dense<0.000000e+00> : vector<8x128xf32>
    %125 = tpu.matmul %122, %124, %cst_137 {dimension_numbers = #tpu.dot_dimension_numbers<[1], [0], [0], [1], [0, 0, 1, 1], [], []>} : vector<8x80xf32>, vector<80x128xf32>, vector<8x128xf32> -> vector<8x128xf32>
    %126 = arith.addf %119, %125 : vector<8x128xf32>
    %c3_138 = arith.constant 3 : index
    %c0_139 = arith.constant 0 : index
    %c0_140 = arith.constant 0 : index
    %127 = vector.load %arg12[%c3_138, %c0_139, %c0_140] : memref<4x8x32xf32, #tpu.memory_space<vmem>>, vector<1x8x32xf32>
    %128 = vector.shape_cast %127 : vector<1x8x32xf32> to vector<8x32xf32>
    %cst_141 = arith.constant dense<0.000000e+00> : vector<8x80xf32>
    %129 = tpu.matmul %128, %106, %cst_141 {dimension_numbers = #tpu.dot_dimension_numbers<[1], [0], [0], [1], [0, 0, 1, 1], [], []>} : vector<8x32xf32>, vector<32x80xf32>, vector<8x80xf32> -> vector<8x80xf32>
    %c3_142 = arith.constant 3 : index
    %c0_143 = arith.constant 0 : index
    %c0_144 = arith.constant 0 : index
    %130 = vector.load %arg13[%c3_142, %c0_143, %c0_144] : memref<4x80x128xf32, #tpu.memory_space<vmem>>, vector<1x80x128xf32>
    %131 = vector.shape_cast %130 : vector<1x80x128xf32> to vector<80x128xf32>
    %cst_145 = arith.constant dense<0.000000e+00> : vector<8x128xf32>
    %132 = tpu.matmul %129, %131, %cst_145 {dimension_numbers = #tpu.dot_dimension_numbers<[1], [0], [0], [1], [0, 0, 1, 1], [], []>} : vector<8x80xf32>, vector<80x128xf32>, vector<8x128xf32> -> vector<8x128xf32>
    %133 = arith.addf %126, %132 : vector<8x128xf32>
    %c0_146 = arith.constant 0 : index
    %c0_147 = arith.constant 0 : index
    %134 = vector.load %arg14[%c0_146, %c0_147] : memref<1x128xf32, #tpu.memory_space<vmem>>, vector<1x128xf32>
    %135 = vector.broadcast %134 : vector<1x128xf32> to vector<8x128xf32>
    %136 = arith.addf %133, %135 : vector<8x128xf32>
    %cst_148 = arith.constant 0.000000e+00 : f32
    %137 = vector.broadcast %cst_148 : f32 to vector<8x128xf32>
    %138 = arith.maximumf %136, %137 : vector<8x128xf32>
    %c0_149 = arith.constant 0 : index
    %c0_150 = arith.constant 0 : index
    %139 = vector.load %arg15[%c0_149, %c0_150] : memref<128x128xf32, #tpu.memory_space<vmem>>, vector<128x128xf32>
    %cst_151 = arith.constant dense<0.000000e+00> : vector<8x128xf32>
    %140 = tpu.matmul %138, %139, %cst_151 {dimension_numbers = #tpu.dot_dimension_numbers<[1], [0], [0], [1], [0, 0, 1, 1], [], []>} : vector<8x128xf32>, vector<128x128xf32>, vector<8x128xf32> -> vector<8x128xf32>
    %c0_152 = arith.constant 0 : index
    %c0_153 = arith.constant 0 : index
    %141 = vector.load %arg16[%c0_152, %c0_153] : memref<1x128xf32, #tpu.memory_space<vmem>>, vector<1x128xf32>
    %142 = vector.broadcast %141 : vector<1x128xf32> to vector<8x128xf32>
    %143 = arith.addf %140, %142 : vector<8x128xf32>
    %cst_154 = arith.constant dense<0xFF800000> : vector<8xf32>
    %144 = vector.multi_reduction <maximumf>, %143, %cst_154 [1] : vector<8x128xf32> to vector<8xf32>
    %145 = vector.shape_cast %144 : vector<8xf32> to vector<8x1xf32>
    %146 = vector.broadcast %145 : vector<8x1xf32> to vector<8x128xf32>
    %147 = arith.subf %143, %146 : vector<8x128xf32>
    %148 = math.exp %147 : vector<8x128xf32>
    %cst_155 = arith.constant dense<0.000000e+00> : vector<8xf32>
    %149 = vector.multi_reduction <add>, %148, %cst_155 [1] : vector<8x128xf32> to vector<8xf32>
    %150 = vector.shape_cast %149 : vector<8xf32> to vector<8x1xf32>
    %151 = math.log %150 : vector<8x1xf32>
    %152 = vector.broadcast %151 : vector<8x1xf32> to vector<8x128xf32>
    %153 = arith.subf %147, %152 : vector<8x128xf32>
    %c0_156 = arith.constant 0 : index
    %c0_157 = arith.constant 0 : index
    %154 = vector.load %arg17[%c0_156, %c0_157] : memref<8x128xf32, #tpu.memory_space<vmem>>, vector<8x128xf32>
    tpu.vector_store %arg17[%c0_156, %c0_157], %153 {strides = array<i32>} : memref<8x128xf32, #tpu.memory_space<vmem>>, vector<8x128xf32>,
    return
  }
  func.func @transform_0(%arg0: i32) -> (i32, i32) {
    %c0_i32 = arith.constant 0 : i32
    %c0_i32_0 = arith.constant 0 : i32
    return %arg0, %c0_i32 : i32, i32
  }
  func.func @transform_1(%arg0: i32) -> (i32, i32, i32) {
    %c0_i32 = arith.constant 0 : i32
    %c0_i32_0 = arith.constant 0 : i32
    %c0_i32_1 = arith.constant 0 : i32
    %c0_i32_2 = arith.constant 0 : i32
    return %c0_i32, %c0_i32_0, %c0_i32_1 : i32, i32, i32
  }
  func.func @transform_2(%arg0: i32) -> (i32, i32, i32) {
    %c0_i32 = arith.constant 0 : i32
    %c0_i32_0 = arith.constant 0 : i32
    %c0_i32_1 = arith.constant 0 : i32
    %c0_i32_2 = arith.constant 0 : i32
    return %c0_i32, %c0_i32_0, %c0_i32_1 : i32, i32, i32
  }
  func.func @transform_3(%arg0: i32) -> (i32, i32) {
    %c0_i32 = arith.constant 0 : i32
    %c0_i32_0 = arith.constant 0 : i32
    %c0_i32_1 = arith.constant 0 : i32
    return %c0_i32, %c0_i32_0 : i32, i32
  }
  func.func @transform_4(%arg0: i32) -> (i32, i32, i32) {
    %c0_i32 = arith.constant 0 : i32
    %c0_i32_0 = arith.constant 0 : i32
    %c0_i32_1 = arith.constant 0 : i32
    %c0_i32_2 = arith.constant 0 : i32
    return %c0_i32, %c0_i32_0, %c0_i32_1 : i32, i32, i32
  }
  func.func @transform_5(%arg0: i32) -> (i32, i32, i32) {
    %c0_i32 = arith.constant 0 : i32
    %c0_i32_0 = arith.constant 0 : i32
    %c0_i32_1 = arith.constant 0 : i32
    %c0_i32_2 = arith.constant 0 : i32
    return %c0_i32, %c0_i32_0, %c0_i32_1 : i32, i32, i32
  }
  func.func @transform_6(%arg0: i32) -> (i32, i32, i32) {
    %c0_i32 = arith.constant 0 : i32
    %c0_i32_0 = arith.constant 0 : i32
    %c0_i32_1 = arith.constant 0 : i32
    %c0_i32_2 = arith.constant 0 : i32
    return %c0_i32, %c0_i32_0, %c0_i32_1 : i32, i32, i32
  }
  func.func @transform_7(%arg0: i32) -> (i32, i32, i32) {
    %c0_i32 = arith.constant 0 : i32
    %c0_i32_0 = arith.constant 0 : i32
    %c0_i32_1 = arith.constant 0 : i32
    %c0_i32_2 = arith.constant 0 : i32
    return %c0_i32, %c0_i32_0, %c0_i32_1 : i32, i32, i32
  }
  func.func @transform_8(%arg0: i32) -> (i32, i32) {
    %c0_i32 = arith.constant 0 : i32
    %c0_i32_0 = arith.constant 0 : i32
    %c0_i32_1 = arith.constant 0 : i32
    return %c0_i32, %c0_i32_0 : i32, i32
  }
  func.func @transform_9(%arg0: i32) -> (i32, i32, i32) {
    %c0_i32 = arith.constant 0 : i32
    %c0_i32_0 = arith.constant 0 : i32
    %c0_i32_1 = arith.constant 0 : i32
    %c0_i32_2 = arith.constant 0 : i32
    return %c0_i32, %c0_i32_0, %c0_i32_1 : i32, i32, i32
  }
  func.func @transform_10(%arg0: i32) -> (i32, i32, i32) {
    %c0_i32 = arith.constant 0 : i32
    %c0_i32_0 = arith.constant 0 : i32
    %c0_i32_1 = arith.constant 0 : i32
    %c0_i32_2 = arith.constant 0 : i32
    return %c0_i32, %c0_i32_0, %c0_i32_1 : i32, i32, i32
  }
  func.func @transform_11(%arg0: i32) -> (i32, i32, i32) {
    %c0_i32 = arith.constant 0 : i32
    %c0_i32_0 = arith.constant 0 : i32
    %c0_i32_1 = arith.constant 0 : i32
    %c0_i32_2 = arith.constant 0 : i32
    return %c0_i32, %c0_i32_0, %c0_i32_1 : i32, i32, i32
  }
  func.func @transform_12(%arg0: i32) -> (i32, i32, i32) {
    %c0_i32 = arith.constant 0 : i32
    %c0_i32_0 = arith.constant 0 : i32
    %c0_i32_1 = arith.constant 0 : i32
    %c0_i32_2 = arith.constant 0 : i32
    return %c0_i32, %c0_i32_0, %c0_i32_1 : i32, i32, i32
  }
  func.func @transform_13(%arg0: i32) -> (i32, i32) {
    %c0_i32 = arith.constant 0 : i32
    %c0_i32_0 = arith.constant 0 : i32
    %c0_i32_1 = arith.constant 0 : i32
    return %c0_i32, %c0_i32_0 : i32, i32
  }
  func.func @transform_14(%arg0: i32) -> (i32, i32) {
    %c0_i32 = arith.constant 0 : i32
    %c0_i32_0 = arith.constant 0 : i32
    %c0_i32_1 = arith.constant 0 : i32
    return %c0_i32, %c0_i32_0 : i32, i32
  }
  func.func @transform_15(%arg0: i32) -> (i32, i32) {
    %c0_i32 = arith.constant 0 : i32
    %c0_i32_0 = arith.constant 0 : i32
    %c0_i32_1 = arith.constant 0 : i32
    return %c0_i32, %c0_i32_0 : i32, i32
  }
  func.func @transform_16(%arg0: i32) -> (i32, i32) {
    %c0_i32 = arith.constant 0 : i32
    %c0_i32_0 = arith.constant 0 : i32
    return %arg0, %c0_i32 : i32, i32
  }
}

</mosaic_0001>

<bundles_post_ra>
// kernel: net_forward.1
= control target key start
LH: loop header
LB: loop body
LE: loop exit
PB: predicated region body
PF: predicated region fallthrough
CT: control target
= control target key end

     0   :  { %s12298_s0 = inlined_call_operand.hbm [shape: f32[224,28], index: 0, kind: input, shape index: {}]   ;;  %s12299_s1 = inlined_call_operand.vmem [shape: f32[5,192,224], index: 1, kind: input, shape index: {}]   ;;  %s12300_s2 = inlined_call_operand.hbm [shape: f32[5,28,240], index: 2, kind: input, shape index: {}]   ;;  %s12301_s3 = inlined_call_operand.vmem [shape: f32[1,240], index: 3, kind: input, shape index: {}]   ;;  %s12302_s4 = inlined_call_operand.hbm [shape: f32[2,96,192], index: 4, kind: input, shape index: {}]   ;;  %s12303_s5 = inlined_call_operand.hbm [shape: f32[2,240,120], index: 5, kind: input, shape index: {}]   ;;  %s12304_s6 = inlined_call_operand.hbm [shape: f32[5,64,96], index: 6, kind: input, shape index: {}]   ;;  %s12305_s7 = inlined_call_operand.vmem [shape: f32[5,120,160], index: 7, kind: input, shape index: {}]   ;;  %s12306_s8 = inlined_call_operand.hbm [shape: f32[1,160], index: 8, kind: input, shape index: {}]   ;;  %s12307_s9 = inlined_call_operand.vmem [shape: f32[2,32,64], index: 9, kind: input, shape index: {}]   ;;  %s12308_s10 = inlined_call_operand.hbm [shape: f32[2,160,80], index: 10, kind: input, shape index: {}]   ;;  %s12309_s11 = inlined_call_operand.vmem [shape: f32[4,8,32], index: 11, kind: input, shape index: {}]   ;;  %s12310_s12 = inlined_call_operand.hbm [shape: f32[4,80,128], index: 12, kind: input, shape index: {}]   ;;  %s12311_s13 = inlined_call_operand.hbm [shape: f32[1,128], index: 13, kind: input, shape index: {}]   ;;  %s12312_s14 = inlined_call_operand.hbm [shape: f32[128,128], index: 14, kind: input, shape index: {}]   ;;  %s12313_s15 = inlined_call_operand.hbm [shape: f32[1,128], index: 15, kind: input, shape index: {}]   ;;  %s12314_s16 = inlined_call_operand.hbm [shape: f32[8,128], index: 16, kind: output, shape index: {}]  }
   0x1   :  { %12317 = sst [smem:[#allocation130_spill]] %s12298_s0 }
   0x2   :  { %21 = vsyncpa [#allocation3], 0 }
   0x3   :  { %22 = vsyncpa [#allocation6], 0 }
   0x4   :  { %23 = vsyncpa [#allocation9], 0 }
   0x5   :  { %24 = vsyncpa [#allocation12], 0 }
   0x6   :  { %25 = vsyncpa [#allocation15], 0 }
   0x7   :  { %26 = vsyncpa [#allocation18], 0 }
   0x8   :  { %27 = vsyncpa [#allocation4], 0  ;;  %s8625_s21 = smov [#allocation5]  }
   0x9   :  { %s47_s22 = sshll.u32 %s8625_s21, 4  ;;  %s48_s22 = int_to_ptr.vmem [resolvable:$true] %s47_s22 }
   0xa   :  { %s8379_s23 = scalar_lea.vmem %s48_s22, 5120  ;;  %p8384_p1 = scmp.lt.s32.totalorder %s48_s22, %s48_s22 }
   0xb   :  { %p8380_p0 = scmp.ne.s32.totalorder %s48_s22, %s8379_s23  ;;  %p8385_p2 = scmp.lt.s32.totalorder %s8379_s23, %s8379_s23 }
   0xd   :  { %p8386_p3 = por %p8385_p2, %p8384_p1 }
   0xf   :  { %p8387_p4 = pnand %p8386_p3, %p8380_p0 }
  0x11   :  { %8390 = shalt.err (!%p8387_p4)
}
  0x12   :  { %s8626_s24 = smov 256   ;;  %s8627_s25 = smov 16  }
  0x13   :  { %53 = dma.hbm_to_vmem [thread:$0]  %s12300_s2, 5120, %s48_s22, [#allocation6], %s8626_s24, %s8626_s24, %s8627_s25  }
  0x14   :  { %s8628_s28 = smov [#allocation8]   ;;  %s8629_s30 = smov [#allocation11]  }
  0x15   :  { %s73_s29 = sshll.u32 %s8628_s28, 4  ;;  %s100_s0 = sshll.u32 %s8629_s30, 4  ;;  %s74_s29 = int_to_ptr.vmem [resolvable:$true] %s73_s29  ;;  %s101_s0 = int_to_ptr.vmem [resolvable:$true] %s100_s0 }
  0x16   :  { %s8399_s17 = scalar_lea.vmem %s74_s29, 7680  ;;  %p8404_p6 = scmp.lt.s32.totalorder %s74_s29, %s74_s29 }
  0x17   :  { %p8400_p5 = scmp.ne.s32.totalorder %s74_s29, %s8399_s17  ;;  %p8405_p7 = scmp.lt.s32.totalorder %s8399_s17, %s8399_s17 }
  0x19   :  { %p8406_p8 = por %p8405_p7, %p8404_p6 }
  0x1b   :  { %p8407_p9 = pnand %p8406_p8, %p8400_p5 }
  0x1d   :  { %8410 = shalt.err (!%p8407_p9)
}
  0x1e   :  { %s8630_s18 = smov 128   ;;  %s8631_s19 = smov 8  }
  0x1f   :  { %79 = dma.hbm_to_vmem [thread:$0]  %s12303_s5, 7680, %s74_s29, [#allocation9], %s8630_s18, %s8630_s18, %s8631_s19  }
  0x20   :  { %s8419_s2 = scalar_lea.vmem %s101_s0, 32  ;;  %p8424_p11 = scmp.lt.s32.totalorder %s101_s0, %s101_s0 }
  0x21   :  { %p8420_p10 = scmp.ne.s32.totalorder %s101_s0, %s8419_s2  ;;  %p8425_p12 = scmp.lt.s32.totalorder %s8419_s2, %s8419_s2 }
  0x23   :  { %p8426_p13 = por %p8425_p12, %p8424_p11 }
  0x25   :  { %p8427_p0 = pnand %p8426_p13, %p8420_p10 }
  0x27   :  { %8430 = shalt.err (!%p8427_p0)
}
  0x28   :  { %103 = dma.hbm_to_vmem [thread:$0]  %s12306_s8, 32, %s101_s0, [#allocation12]  }
  0x29   :  { %s8632_s26 = smov [#allocation14]   ;;  %s8633_s28 = smov [#allocation17]  }
  0x2a   :  { %s125_s27 = sshll.u32 %s8632_s26, 4  ;;  %s147_s30 = sshll.u32 %s8633_s28, 4  ;;  %s126_s27 = int_to_ptr.vmem [resolvable:$true] %s125_s27  ;;  %s148_s30 = int_to_ptr.vmem [resolvable:$true] %s147_s30 }
  0x2b   :  { %s8439_s17 = scalar_lea.vmem %s126_s27, 5120  ;;  %p8444_p2 = scmp.lt.s32.totalorder %s126_s27, %s126_s27 }
  0x2c   :  { %p8440_p1 = scmp.ne.s32.totalorder %s126_s27, %s8439_s17  ;;  %p8445_p3 = scmp.lt.s32.totalorder %s8439_s17, %s8439_s17 }
  0x2e   :  { %p8446_p4 = por %p8445_p3, %p8444_p2 }
  0x30   :  { %p8447_p5 = pnand %p8446_p4, %p8440_p1 }
  0x32   :  { %8450 = shalt.err (!%p8447_p5)
}
  0x33   :  { %131 = dma.hbm_to_vmem [thread:$0]  %s12310_s12, 5120, %s126_s27, [#allocation15], %s8630_s18, %s8630_s18, %s8631_s19  }
  0x34   :  { %s8459_s8 = scalar_lea.vmem %s148_s30, 2048  ;;  %p8464_p7 = scmp.lt.s32.totalorder %s148_s30, %s148_s30 }
  0x35   :  { %p8460_p6 = scmp.ne.s32.totalorder %s148_s30, %s8459_s8  ;;  %p8465_p8 = scmp.lt.s32.totalorder %s8459_s8, %s8459_s8 }
  0x37   :  { %p8466_p9 = por %p8465_p8, %p8464_p7 }
  0x39   :  { %p8467_p10 = pnand %p8466_p9, %p8460_p6 }
  0x3b   :  { %8470 = shalt.err (!%p8467_p10)
}
  0x3c   :  { %153 = dma.hbm_to_vmem [thread:$0]  %s12312_s14, 2048, %s148_s30, [#allocation18], %s8630_s18, %s8630_s18, %s8631_s19  }
  0x3d   :  { %s8634_s21 = smov [#allocation2]   ;;  %s8635_s22 = smov [#allocation7]  }
  0x3e   :  { %s33_s2 = sshll.u32 %s8634_s21, 4  ;;  %s61_s12 = sshll.u32 %s8635_s22, 4  ;;  %s34_s2 = int_to_ptr.vmem [resolvable:$true] %s33_s2  ;;  %s62_s12 = int_to_ptr.vmem [resolvable:$true] %s61_s12 }
  0x3f   :  { %s8479_s23 = scalar_lea.vmem %s34_s2, 3584  ;;  %p8484_p12 = scmp.lt.s32.totalorder %s34_s2, %s34_s2 }
  0x40   :  { %p8480_p11 = scmp.ne.s32.totalorder %s34_s2, %s8479_s23  ;;  %p8485_p13 = scmp.lt.s32.totalorder %s8479_s23, %s8479_s23 }
  0x42   :  { %p8486_p0 = por %p8485_p13, %p8484_p12 }
  0x44   :  { %p8487_p1 = pnand %p8486_p0, %p8480_p11 }
  0x46   :  { %8490 = shalt.err (!%p8487_p1)
}
  0x47   :  { %s12318_s28 = sld [smem:[#allocation130_spill]]  ;;  %s8499_s14 = scalar_lea.vmem %s62_s12, 6144 }
  0x48   :  { %p8500_p2 = scmp.ne.s32.totalorder %s62_s12, %s8499_s14  ;;  %p8504_p3 = scmp.lt.s32.totalorder %s62_s12, %s62_s12 }
  0x49   :  { %p8505_p4 = scmp.lt.s32.totalorder %s8499_s14, %s8499_s14 }
  0x4b   :  { %p8506_p5 = por %p8505_p4, %p8504_p3 }
  0x4d   :  { %39 = dma.hbm_to_vmem [thread:$0]  %s12318_s28, 3584, %s34_s2, [#allocation3], %s8630_s18, %s8630_s18, %s8631_s19  }
  0x4e   :  { %p8507_p6 = pnand %p8506_p5, %p8500_p2 }
  0x50   :  { %8510 = shalt.err (!%p8507_p6)
}
  0x51   :  { %67 = dma.hbm_to_vmem [thread:$0]  %s12302_s4, 6144, %s62_s12, [#allocation6], %s8626_s24, %s8626_s24, %s8627_s25  }
  0x52   :  { %s8636_s5 = smov [#allocation10]   ;;  %s8637_s8 = smov [#allocation13]  }
  0x53   :  { %s85_s29 = sshll.u32 %s8636_s5, 4  ;;  %s111_s0 = sshll.u32 %s8637_s8, 4  ;;  %s86_s29 = int_to_ptr.vmem [resolvable:$true] %s85_s29  ;;  %s112_s0 = int_to_ptr.vmem [resolvable:$true] %s111_s0 }
  0x54   :  { %s8519_s20 = scalar_lea.vmem %s86_s29, 5120  ;;  %p8524_p8 = scmp.lt.s32.totalorder %s86_s29, %s86_s29 }
  0x55   :  { %p8520_p7 = scmp.ne.s32.totalorder %s86_s29, %s8519_s20  ;;  %p8525_p9 = scmp.lt.s32.totalorder %s8519_s20, %s8519_s20 }
  0x57   :  { %p8526_p10 = por %p8525_p9, %p8524_p8 }
  0x59   :  { %p8527_p11 = pnand %p8526_p10, %p8520_p7 }
  0x5b   :  { %8530 = shalt.err (!%p8527_p11)
}
  0x5c   :  { %91 = dma.hbm_to_vmem [thread:$0]  %s12304_s6, 5120, %s86_s29, [#allocation9], %s8630_s18, %s8630_s18, %s8631_s19  }
  0x5d   :  { %s8539_s4 = scalar_lea.vmem %s112_s0, 5120  ;;  %p8544_p13 = scmp.lt.s32.totalorder %s112_s0, %s112_s0 }
  0x5e   :  { %p8540_p12 = scmp.ne.s32.totalorder %s112_s0, %s8539_s4  ;;  %p8545_p0 = scmp.lt.s32.totalorder %s8539_s4, %s8539_s4 }
  0x60   :  { %p8546_p1 = por %p8545_p0, %p8544_p13 }
  0x62   :  { %p8547_p2 = pnand %p8546_p1, %p8540_p12 }
  0x64   :  { %8550 = shalt.err (!%p8547_p2)
}
  0x65   :  { %117 = dma.hbm_to_vmem [thread:$0]  %s12308_s10, 5120, %s112_s0, [#allocation12], %s8630_s18, %s8630_s18, %s8631_s19  }
  0x66   :  { %s8638_s22 = smov [#allocation16]   ;;  %s8639_s23 = smov [#allocation19]  }
  0x67   :  { %s138_s12 = sshll.u32 %s8638_s22, 4  ;;  %s160_s6 = sshll.u32 %s8639_s23, 4  ;;  %s139_s12 = int_to_ptr.vmem [resolvable:$true] %s138_s12  ;;  %s161_s6 = int_to_ptr.vmem [resolvable:$true] %s160_s6 }
  0x68   :  { %s8559_s26 = scalar_lea.vmem %s139_s12, 16  ;;  %s8563_s27 = scalar_lea.vmem %s139_s12, 32 }
  0x69   :  { %p8560_p3 = scmp.ne.s32.totalorder %s139_s12, %s8559_s26  ;;  %p8564_p4 = scmp.lt.s32.totalorder %s139_s12, %s139_s12 }
  0x6a   :  { %p8565_p5 = scmp.lt.s32.totalorder %s8563_s27, %s8559_s26 }
  0x6c   :  { %p8566_p6 = por %p8565_p5, %p8564_p4 }
  0x6e   :  { %p8567_p7 = pnand %p8566_p6, %p8560_p3 }
  0x70   :  { %8570 = shalt.err (!%p8567_p7)
}
  0x71   :  { %141 = dma.hbm_to_vmem [thread:$0]  %s12311_s13, 16, %s139_s12, [#allocation15]  }
  0x72   :  { %s8579_s30 = scalar_lea.vmem %s161_s6, 16  ;;  %s8583_s10 = scalar_lea.vmem %s161_s6, 32 }
  0x73   :  { %p8580_p8 = scmp.ne.s32.totalorder %s161_s6, %s8579_s30  ;;  %p8584_p9 = scmp.lt.s32.totalorder %s161_s6, %s161_s6 }
  0x74   :  { %p8585_p10 = scmp.lt.s32.totalorder %s8583_s10, %s8579_s30 }
  0x76   :  { %p8586_p11 = por %p8585_p10, %p8584_p9 }
  0x78   :  { %p8587_p12 = pnand %p8586_p11, %p8580_p8 }
  0x7a   :  { %8590 = shalt.err (!%p8587_p12)
}
  0x7b   :  { %163 = dma.hbm_to_vmem [thread:$0]  %s12313_s15, 16, %s161_s6, [#allocation18]  }
  0x7c   :  { %8611 = dma.done.wait [#allocation3], 3584  }
  0x7d   :  { %8612 = vsyncadd [#allocation3], 4294963712 }
  0x7e   :  { %8613 = dma.done.wait [#allocation6], 11264  }
  0x7f   :  { %8614 = vsyncadd [#allocation6], 4294956032 }
  0x80   :  { %8615 = dma.done.wait [#allocation9], 12800  }
  0x81   :  { %8616 = vsyncadd [#allocation9], 4294954496 }
  0x82   :  { %8617 = dma.done.wait [#allocation12], 5152  }
  0x83   :  { %8618 = vsyncadd [#allocation12], 4294962144 }
  0x84   :  { %8619 = dma.done.wait [#allocation15], 5136  }
  0x85   :  { %8620 = vsyncadd [#allocation15], 4294962160 }
  0x86   :  { %8621 = dma.done.wait [#allocation18], 2064  }
  0x87   :  { %8622 = vsyncadd [#allocation18], 4294965232  ;;  %v12315_v0 = vmov 0.0   ;;  %v8787_v1 = vld [vmem:[#allocation2 + $0x78] sm:$0xff]  ;;  %v8789_v2 = vld [vmem:[#allocation2 + $0x70] sm:$0xff]  ;;  %vm273_vm0 = vcmask 785408  }
  0x88   :  { %660 = vmatprep.subr.mxu1 %v12315_v0  ;;  %346 = vmatprep.subr.mxu0 %v12315_v0  ;;  %v8794_v3 = vld [vmem:[#allocation2 + $0x68] sm:$0xff]  ;;  %v8800_v4 = vld [vmem:[#allocation2 + $0x60] sm:$0xff]  ;;  %v8806_v5 = vld [vmem:[#allocation2 + $0x58] sm:$0xff]  ;;  %vm927_vm1 = vcmask 1043456   ;;  %vm854_vm2 = vcmask 228352   ;;  %vm3464_vm3 = vcmask 523264  }
  0x89   :  { %661 = vmatpush1.msra.mxu1 %v8787_v1  ;;  %347 = vmatpush1.msra.mxu0 %v8787_v1  ;;  %v8812_v6 = vld [vmem:[#allocation2 + $0x50] sm:$0xff]  ;;  %v7083_v7 = vld [vmem:[%s12299_s1 + $0x188] sm:$0xff]  ;;  %v8827_v9 = vld [vmem:[#allocation2 + $0x40] sm:$0xff]  ;;  %vm3890_vm4 = vcmask 916480   ;;  %vm4568_vm5 = vcmask 982016   ;;  %vm6076_vm6 = vcmask 261120  }
  0x8a   :  { %662 = vmatprep.subr.mxu1 %v12315_v0  ;;  %348 = vmatprep.subr.mxu0 %v12315_v0  ;;  %v8821_v8 = vld [vmem:[#allocation2 + $0x48] sm:$0xff]  ;;  %v8833_v10 = vld [vmem:[#allocation2 + $0x38] sm:$0xff]  ;;  %v8839_v11 = vld [vmem:[#allocation2 + $0x30] sm:$0xff]  ;;  %vm8641_vm7 = vmmov 0   ;;  %vm6458_vm8 = vcmask 654336  }
  0x8b   :  { %663 = vmatpush1.msra.mxu1 %v8789_v2  ;;  %349 = vmatpush1.msra.mxu0 %v8789_v2  ;;  %v8845_v12 = vld [vmem:[#allocation2 + $0x28] sm:$0xff]  ;;  %v8851_v13 = vld [vmem:[#allocation2 + $0x20] sm:$0xff]  ;;  %v8857_v14 = vld [vmem:[#allocation2 + $0x18] sm:$0xff] }
  0x8c   :  { %664 = vmatprep.subr.mxu1 %v12315_v0  ;;  %350 = vmatprep.subr.mxu0 %v12315_v0  ;;  %v8863_v15 = vld [vmem:[#allocation2 + $0x10] sm:$0xff]  ;;  %v8869_v16 = vld [vmem:[#allocation2 + $0x8] sm:$0xff]  ;;  %v8875_v17 = vld [vmem:[#allocation2] sm:$0xff] }
  0x8d   :  { %665 = vmatpush1.msra.mxu1 %v8794_v3  ;;  %351 = vmatpush1.msra.mxu0 %v8794_v3  ;;  %v8881_v18 = vld [vmem:[#allocation2 + $0xd8] sm:$0xff]  ;;  %v8887_v19 = vld [vmem:[#allocation2 + $0xd0] sm:$0xff]  ;;  %v8893_v20 = vld [vmem:[#allocation2 + $0xc8] sm:$0xff] }
  0x8e   :  { %666 = vmatprep.subr.mxu1 %v12315_v0  ;;  %352 = vmatprep.subr.mxu0 %v12315_v0  ;;  %v8899_v21 = vld [vmem:[#allocation2 + $0xc0] sm:$0xff]  ;;  %v8905_v22 = vld [vmem:[#allocation2 + $0xb8] sm:$0xff]  ;;  %v8911_v23 = vld [vmem:[#allocation2 + $0xb0] sm:$0xff] }
  0x8f   :  { %667 = vmatpush1.msra.mxu1 %v8800_v4  ;;  %353 = vmatpush1.msra.mxu0 %v8800_v4  ;;  %v8917_v24 = vld [vmem:[#allocation2 + $0xa8] sm:$0xff]  ;;  %v8923_v25 = vld [vmem:[#allocation2 + $0xa0] sm:$0xff]  ;;  %v8929_v26 = vld [vmem:[#allocation2 + $0x98] sm:$0xff] }
  0x90   :  { %668 = vmatprep.subr.mxu1 %v12315_v0  ;;  %354 = vmatprep.subr.mxu0 %v12315_v0  ;;  %v8935_v27 = vld [vmem:[#allocation2 + $0x90] sm:$0xff]  ;;  %v8941_v28 = vld [vmem:[#allocation2 + $0x88] sm:$0xff]  ;;  %v8947_v29 = vld [vmem:[#allocation2 + $0x80] sm:$0xff] }
  0x91   :  { %669 = vmatpush1.msra.mxu1 %v8806_v5  ;;  %355 = vmatpush1.msra.mxu0 %v8806_v5  ;;  %v7082_v30 = vld [vmem:[%s12299_s1 + $0x180] sm:$0xff]  ;;  %v7085_v31 = vld [vmem:[%s12299_s1 + $0x198] sm:$0xff]  ;;  %v226_v32 = vld [vmem:[%s12299_s1 + $0x8] sm:$0xff] }
  0x92   :  { %670 = vmatprep.subr.mxu1 %v12315_v0  ;;  %7130 = vmatprep.mubr.msk.f32.mxu1 %vm273_vm0, %v7083_v7  ;;  %v225_v33 = vld [vmem:[%s12299_s1] sm:$0xff]  ;;  %v853_v34 = vld [vmem:[#allocation5 + $0x78] sm:$0xf]  ;;  %v852_v36 = vld [vmem:[#allocation5 + $0x70] sm:$0xf] }
  0x93   :  { %671 = vmatpush1.msra.mxu1 %v8812_v6  ;;  %356 = vmatprep.subr.mxu0 %v12315_v0  ;;  %v228_v35 = vld [vmem:[%s12299_s1 + $0x18] sm:$0xff]  ;;  %v7084_v37 = vld [vmem:[%s12299_s1 + $0x190] sm:$0xff]  ;;  %v851_v38 = vld [vmem:[#allocation5 + $0x68] sm:$0xff] }
  0x94   :  { %672 = vmatprep.subr.mxu1 %v12315_v0  ;;  %357 = vmatpush1.msra.mxu0 %v8812_v6  ;;  %v7087_v39 = vld [vmem:[%s12299_s1 + $0x1a8] sm:$0xff]  ;;  %v850_v40 = vld [vmem:[#allocation5 + $0x60] sm:$0xff]  ;;  %v227_v41 = vld [vmem:[%s12299_s1 + $0x10] sm:$0xff] }
  0x95   :  { %673 = vmatpush1.msra.mxu1 %v8821_v8  ;;  %358 = vmatprep.subr.mxu0 %v12315_v0  ;;  %v849_v42 = vld [vmem:[#allocation5 + $0x58] sm:$0xff]  ;;  %v230_v43 = vld [vmem:[%s12299_s1 + $0x28] sm:$0xff]  ;;  %v848_v44 = vld [vmem:[#allocation5 + $0x50] sm:$0xff] }
  0x96   :  { %674 = vmatprep.subr.mxu1 %v12315_v0  ;;  %359 = vmatpush1.msra.mxu0 %v8821_v8  ;;  %v7086_v45 = vld [vmem:[%s12299_s1 + $0x1a0] sm:$0xff]  ;;  %v847_v46 = vld [vmem:[#allocation5 + $0x48] sm:$0xff]  ;;  %v7089_v47 = vld [vmem:[%s12299_s1 + $0x1b8] sm:$0xff] }
  0x97   :  { %675 = vmatpush1.msra.mxu1 %v8827_v9  ;;  %360 = vmatprep.subr.mxu0 %v12315_v0  ;;  %v229_v48 = vld [vmem:[%s12299_s1 + $0x20] sm:$0xff]  ;;  %v232_v49 = vld [vmem:[%s12299_s1 + $0x38] sm:$0xff]  ;;  %v7088_v50 = vld [vmem:[%s12299_s1 + $0x1b0] sm:$0xff] }
  0x98   :  { %676 = vmatprep.subr.mxu1 %v12315_v0  ;;  %361 = vmatpush1.msra.mxu0 %v8827_v9  ;;  %v7091_v51 = vld [vmem:[%s12299_s1 + $0x1c8] sm:$0xff]  ;;  %v231_v52 = vld [vmem:[%s12299_s1 + $0x30] sm:$0xff]  ;;  %v7090_v54 = vld [vmem:[%s12299_s1 + $0x1c0] sm:$0xff] }
  0x99   :  { %677 = vmatpush1.msra.mxu1 %v8833_v10  ;;  %362 = vmatprep.subr.mxu0 %v12315_v0  ;;  %v234_v53 = vld [vmem:[%s12299_s1 + $0x48] sm:$0xff]  ;;  %v7093_v55 = vld [vmem:[%s12299_s1 + $0x1d8] sm:$0xff]  ;;  %v233_v56 = vld [vmem:[%s12299_s1 + $0x40] sm:$0xff] }
  0x9a   :  { %678 = vmatprep.subr.mxu1 %v12315_v0  ;;  %363 = vmatpush1.msra.mxu0 %v8833_v10  ;;  %v236_v57 = vld [vmem:[%s12299_s1 + $0x58] sm:$0xff]  ;;  %v7092_v58 = vld [vmem:[%s12299_s1 + $0x1d0] sm:$0xff]  ;;  %v7095_v59 = vld [vmem:[%s12299_s1 + $0x1e8] sm:$0xff] }
  0x9b   :  { %679 = vmatpush1.msra.mxu1 %v8839_v11  ;;  %364 = vmatprep.subr.mxu0 %v12315_v0  ;;  %v235_v60 = vld [vmem:[%s12299_s1 + $0x50] sm:$0xff]  ;;  %v238_v61 = vld [vmem:[%s12299_s1 + $0x68] sm:$0xff]  ;;  %v7094_v62 = vld [vmem:[%s12299_s1 + $0x1e0] sm:$0xff] }
  0x9c   :  { %680 = vmatprep.subr.mxu1 %v12315_v0  ;;  %365 = vmatpush1.msra.mxu0 %v8839_v11  ;;  %v7097_v63 = vld [vmem:[%s12299_s1 + $0x1f8] sm:$0xff]  ;;  %v237_v7 = vld [vmem:[%s12299_s1 + $0x60] sm:$0xff] }
  0x9d   :  { %681 = vmatpush1.msra.mxu1 %v8845_v12  ;;  %366 = vmatprep.subr.mxu0 %v12315_v0 }
  0x9e   :  { %682 = vmatprep.subr.mxu1 %v12315_v0  ;;  %367 = vmatpush1.msra.mxu0 %v8845_v12 }
  0x9f   :  { %683 = vmatpush1.msra.mxu1 %v8851_v13  ;;  %368 = vmatprep.subr.mxu0 %v12315_v0 }
  0xa0   :  { %684 = vmatprep.subr.mxu1 %v12315_v0  ;;  %369 = vmatpush1.msra.mxu0 %v8851_v13 }
  0xa1   :  { %685 = vmatpush1.msra.mxu1 %v8857_v14  ;;  %370 = vmatprep.subr.mxu0 %v12315_v0 }
  0xa2   :  { %686 = vmatprep.subr.mxu1 %v12315_v0  ;;  %371 = vmatpush1.msra.mxu0 %v8857_v14 }
  0xa3   :  { %687 = vmatpush1.msra.mxu1 %v8863_v15  ;;  %372 = vmatprep.subr.mxu0 %v12315_v0 }
  0xa4   :  { %688 = vmatprep.subr.mxu1 %v12315_v0  ;;  %373 = vmatpush1.msra.mxu0 %v8863_v15 }
  0xa5   :  { %689 = vmatpush1.msra.mxu1 %v8869_v16  ;;  %374 = vmatprep.subr.mxu0 %v12315_v0 }
  0xa6   :  { %690 = vmatprep.subr.mxu1 %v12315_v0  ;;  %375 = vmatpush1.msra.mxu0 %v8869_v16 }
  0xa7   :  { %691 = vmatpush1.msra.mxu1 %v8875_v17  ;;  %376 = vmatprep.subr.mxu0 %v12315_v0 }
  0xa8   :  { %700 = vmatprep.subr.mxu1 %v12315_v0  ;;  %377 = vmatpush1.msra.mxu0 %v8875_v17 }
  0xa9   :  { %701 = vmatpush2.msra.mxu1 %v8881_v18  ;;  %386 = vmatprep.subr.mxu0 %v12315_v0 }
  0xaa   :  { %702 = vmatprep.subr.mxu1 %v12315_v0  ;;  %387 = vmatpush2.msra.mxu0 %v8881_v18 }
  0xab   :  { %703 = vmatpush2.msra.mxu1 %v8887_v19  ;;  %388 = vmatprep.subr.mxu0 %v12315_v0 }
  0xac   :  { %704 = vmatprep.subr.mxu1 %v12315_v0  ;;  %389 = vmatpush2.msra.mxu0 %v8887_v19 }
  0xad   :  { %705 = vmatpush2.msra.mxu1 %v8893_v20  ;;  %390 = vmatprep.subr.mxu0 %v12315_v0 }
  0xae   :  { %706 = vmatprep.subr.mxu1 %v12315_v0  ;;  %391 = vmatpush2.msra.mxu0 %v8893_v20 }
  0xaf   :  { %707 = vmatpush2.msra.mxu1 %v8899_v21  ;;  %392 = vmatprep.subr.mxu0 %v12315_v0 }
  0xb0   :  { %708 = vmatprep.subr.mxu1 %v12315_v0  ;;  %393 = vmatpush2.msra.mxu0 %v8899_v21 }
  0xb1   :  { %709 = vmatpush2.msra.mxu1 %v8905_v22  ;;  %394 = vmatprep.subr.mxu0 %v12315_v0 }
  0xb2   :  { %710 = vmatprep.subr.mxu1 %v12315_v0  ;;  %395 = vmatpush2.msra.mxu0 %v8905_v22 }
  0xb3   :  { %711 = vmatpush2.msra.mxu1 %v8911_v23  ;;  %396 = vmatprep.subr.mxu0 %v12315_v0 }
  0xb4   :  { %712 = vmatprep.subr.mxu1 %v12315_v0  ;;  %397 = vmatpush2.msra.mxu0 %v8911_v23 }
  0xb5   :  { %713 = vmatpush2.msra.mxu1 %v8917_v24  ;;  %398 = vmatprep.subr.mxu0 %v12315_v0 }
  0xb6   :  { %714 = vmatprep.subr.mxu1 %v12315_v0  ;;  %399 = vmatpush2.msra.mxu0 %v8917_v24 }
  0xb7   :  { %715 = vmatpush2.msra.mxu1 %v8923_v25  ;;  %400 = vmatprep.subr.mxu0 %v12315_v0 }
  0xb8   :  { %716 = vmatprep.subr.mxu1 %v12315_v0  ;;  %401 = vmatpush2.msra.mxu0 %v8923_v25 }
  0xb9   :  { %717 = vmatpush2.msra.mxu1 %v8929_v26  ;;  %402 = vmatprep.subr.mxu0 %v12315_v0 }
  0xba   :  { %718 = vmatprep.subr.mxu1 %v12315_v0  ;;  %403 = vmatpush2.msra.mxu0 %v8929_v26 }
  0xbb   :  { %719 = vmatpush2.msra.mxu1 %v8935_v27  ;;  %404 = vmatprep.subr.mxu0 %v12315_v0 }
  0xbc   :  { %720 = vmatprep.subr.mxu1 %v12315_v0  ;;  %405 = vmatpush2.msra.mxu0 %v8935_v27 }
  0xbd   :  { %721 = vmatpush2.msra.mxu1 %v8941_v28  ;;  %406 = vmatprep.subr.mxu0 %v12315_v0 }
  0xbe   :  { %722 = vmatprep.subr.mxu1 %v12315_v0  ;;  %407 = vmatpush2.msra.mxu0 %v8941_v28 }
  0xbf   :  { %723 = vmatpush2.msra.mxu1 %v8947_v29  ;;  %408 = vmatprep.subr.mxu0 %v12315_v0 }
  0xc0   :  { %725 = vmatmul.mubr.f32.vlgmr.msra.gmra.mxu1 %v7082_v30  ;;  %409 = vmatpush2.msra.mxu0 %v8947_v29  ;;  %v240_v30 = vld [vmem:[%s12299_s1 + $0x78] sm:$0xff] }
  0xc1   :  { %7131 = vmatprep.mubr.msk.f32.mxu1 %vm273_vm0, %v7085_v31  ;;  %7058 = vmatprep.mubr.msk.f32.mxu0 %vm273_vm0, %v226_v32  ;;  %v7096_v31 = vld [vmem:[%s12299_s1 + $0x1f0] sm:$0xff]  ;;  %v7099_v32 = vld [vmem:[%s12299_s1 + $0x208] sm:$0xff] }
  0xc2   :  { %411 = vmatmul.mubr.f32.vlgmr.msra.gmra.mxu0 %v225_v33  ;;  %7154 = vmatprep.subr.msk.mxu0 %vm927_vm1, %v853_v34  ;;  %v239_v33 = vld [vmem:[%s12299_s1 + $0x70] sm:$0xff] }
  0xc3   :  { %7059 = vmatprep.mubr.msk.f32.mxu0 %vm273_vm0, %v228_v35  ;;  %7155 = vmatpush1.msk.msra.mxu0 %vm927_vm1, %v852_v36  ;;  %v7098_v35 = vld [vmem:[%s12299_s1 + $0x200] sm:$0xff] }
  0xc4   :  { %730 = vmatmul.mubr.f32.gmra.mxu1 %v7084_v37  ;;  %960 = vmatprep.subr.mxu0 %v851_v38  ;;  %v241_v37 = vld [vmem:[%s12299_s1 + $0x80] sm:$0xff] }
  0xc5   :  { %7132 = vmatprep.mubr.msk.f32.mxu1 %vm273_vm0, %v7087_v39  ;;  %961 = vmatpush1.msra.mxu0 %v850_v40  ;;  %v7100_v39 = vld [vmem:[%s12299_s1 + $0x210] sm:$0xff] }
  0xc6   :  { %416 = vmatmul.mubr.f32.gmra.mxu0 %v227_v41  ;;  %962 = vmatprep.subr.mxu0 %v849_v42  ;;  %v243_v41 = vld [vmem:[%s12299_s1 + $0x90] sm:$0xff] }
  0xc7   :  { %7060 = vmatprep.mubr.msk.f32.mxu0 %vm273_vm0, %v230_v43  ;;  %963 = vmatpush1.msra.mxu0 %v848_v44  ;;  %v7102_v43 = vld [vmem:[%s12299_s1 + $0x220] sm:$0xff] }
  0xc8   :  { %735 = vmatmul.mubr.f32.gmra.mxu1 %v7086_v45  ;;  %964 = vmatprep.subr.mxu0 %v847_v46  ;;  %v245_v45 = vld [vmem:[%s12299_s1 + $0xa0] sm:$0xff] }
  0xc9   :  { %7133 = vmatprep.mubr.msk.f32.mxu1 %vm273_vm0, %v7089_v47  ;;  %8313 = vmatprep.subr.msk.mxu1 %vm927_vm1, %v853_v34  ;;  %v242_v34 = vld [vmem:[%s12299_s1 + $0x88] sm:$0xff]  ;;  %v7104_v47 = vld [vmem:[%s12299_s1 + $0x230] sm:$0xff] }
  0xca   :  { %421 = vmatmul.mubr.f32.gmra.mxu0 %v229_v48  ;;  %8317 = vmatpush1.msk.msra.mxu1 %vm927_vm1, %v852_v36  ;;  %v7101_v36 = vld [vmem:[%s12299_s1 + $0x218] sm:$0xff]  ;;  %v7107_v48 = vld [vmem:[%s12299_s1 + $0x248] sm:$0xff] }
  0xcb   :  { %7061 = vmatprep.mubr.msk.f32.mxu0 %vm273_vm0, %v232_v49  ;;  %8314 = vmatprep.subr.mxu1 %v851_v38  ;;  %v244_v38 = vld [vmem:[%s12299_s1 + $0x98] sm:$0xff]  ;;  %v247_v49 = vld [vmem:[%s12299_s1 + $0xb0] sm:$0xff] }
  0xcc   :  { %740 = vmatmul.mubr.f32.gmra.mxu1 %v7088_v50  ;;  %v250_v50 = vld [vmem:[%s12299_s1 + $0xc8] sm:$0xff] }
  0xcd   :  { %7134 = vmatprep.mubr.msk.f32.mxu1 %vm273_vm0, %v7091_v51  ;;  %8318 = vmatpush1.msra.mxu1 %v850_v40  ;;  %v7103_v40 = vld [vmem:[%s12299_s1 + $0x228] sm:$0xff]  ;;  %v7106_v51 = vld [vmem:[%s12299_s1 + $0x240] sm:$0xff] }
  0xce   :  { %426 = vmatmul.mubr.f32.gmra.mxu0 %v231_v52  ;;  %8315 = vmatprep.subr.mxu1 %v849_v42  ;;  %v246_v42 = vld [vmem:[%s12299_s1 + $0xa8] sm:$0xff]  ;;  %v7109_v52 = vld [vmem:[%s12299_s1 + $0x258] sm:$0xff] }
  0xcf   :  { %7062 = vmatprep.mubr.msk.f32.mxu0 %vm273_vm0, %v234_v53  ;;  %8319 = vmatpush1.msra.mxu1 %v848_v44  ;;  %v7105_v44 = vld [vmem:[%s12299_s1 + $0x238] sm:$0xff]  ;;  %v249_v53 = vld [vmem:[%s12299_s1 + $0xc0] sm:$0xff] }
  0xd0   :  { %745 = vmatmul.mubr.f32.gmra.mxu1 %v7090_v54  ;;  %8316 = vmatprep.subr.mxu1 %v847_v46  ;;  %v248_v46 = vld [vmem:[%s12299_s1 + $0xb8] sm:$0xff] }
  0xd1   :  { %7135 = vmatprep.mubr.msk.f32.mxu1 %vm273_vm0, %v7093_v55  ;;  %v252_v54 = vld [vmem:[%s12299_s1 + $0xd8] sm:$0xff]  ;;  %v7108_v55 = vld [vmem:[%s12299_s1 + $0x250] sm:$0xff] }
  0xd2   :  { %431 = vmatmul.mubr.f32.gmra.mxu0 %v233_v56  ;;  %v7111_v56 = vld [vmem:[%s12299_s1 + $0x268] sm:$0xff] }
  0xd3   :  { %7063 = vmatprep.mubr.msk.f32.mxu0 %vm273_vm0, %v236_v57  ;;  %v251_v57 = vld [vmem:[%s12299_s1 + $0xd0] sm:$0xff] }
  0xd4   :  { %750 = vmatmul.mubr.f32.gmra.mxu1 %v7092_v58  ;;  %v254_v58 = vld [vmem:[%s12299_s1 + $0xe8] sm:$0xff] }
  0xd5   :  { %7136 = vmatprep.mubr.msk.f32.mxu1 %vm273_vm0, %v7095_v59  ;;  %v7110_v59 = vld [vmem:[%s12299_s1 + $0x260] sm:$0xff] }
  0xd6   :  { %436 = vmatmul.mubr.f32.gmra.mxu0 %v235_v60  ;;  %v7113_v60 = vld [vmem:[%s12299_s1 + $0x278] sm:$0xff] }
  0xd7   :  { %7064 = vmatprep.mubr.msk.f32.mxu0 %vm273_vm0, %v238_v61  ;;  %v253_v61 = vld [vmem:[%s12299_s1 + $0xe0] sm:$0xff] }
  0xd8   :  { %755 = vmatmul.mubr.f32.gmra.mxu1 %v7094_v62  ;;  %v256_v62 = vld [vmem:[%s12299_s1 + $0xf8] sm:$0xff] }
  0xd9   :  { %7137 = vmatprep.mubr.msk.f32.mxu1 %vm273_vm0, %v7097_v63  ;;  %v7112_v63 = vld [vmem:[%s12299_s1 + $0x270] sm:$0xff] }
  0xda   :  { %441 = vmatmul.mubr.f32.gmra.mxu0 %v237_v7  ;;  %v7115_v7 = vld [vmem:[%s12299_s1 + $0x288] sm:$0xff] }
  0xdb   :  { %7065 = vmatprep.mubr.msk.f32.mxu0 %vm273_vm0, %v240_v30  ;;  %v255_v30 = vld [vmem:[%s12299_s1 + $0xf0] sm:$0xff] }
  0xdc   :  { %760 = vmatmul.mubr.f32.gmra.mxu1 %v7096_v31  ;;  %v258_v31 = vld [vmem:[%s12299_s1 + $0x108] sm:$0xff] }
  0xdd   :  { %7138 = vmatprep.mubr.msk.f32.mxu1 %vm273_vm0, %v7099_v32  ;;  %v7114_v32 = vld [vmem:[%s12299_s1 + $0x280] sm:$0xff] }
  0xde   :  { %446 = vmatmul.mubr.f32.gmra.mxu0 %v239_v33  ;;  %v7117_v33 = vld [vmem:[%s12299_s1 + $0x298] sm:$0xff] }
  0xdf   :  { %7066 = vmatprep.mubr.msk.f32.mxu0 %vm273_vm0, %v242_v34  ;;  %v257_v34 = vld [vmem:[%s12299_s1 + $0x100] sm:$0xff] }
  0xe0   :  { %765 = vmatmul.mubr.f32.gmra.mxu1 %v7098_v35  ;;  %v846_v35 = vld [vmem:[#allocation5 + $0x40] sm:$0xff] }
  0xe1   :  { %7139 = vmatprep.mubr.msk.f32.mxu1 %vm273_vm0, %v7101_v36  ;;  %v260_v36 = vld [vmem:[%s12299_s1 + $0x118] sm:$0xff]  ;;  %965 = vmatpush1.msra.mxu0 %v846_v35 }
  0xe2   :  { %451 = vmatmul.mubr.f32.gmra.mxu0 %v241_v37  ;;  %v7116_v37 = vld [vmem:[%s12299_s1 + $0x290] sm:$0xff]  ;;  %1551 = vmatprep.subr.mxu0 %v12315_v0 }
  0xe3   :  { %7067 = vmatprep.mubr.msk.f32.mxu0 %vm273_vm0, %v244_v38  ;;  %v7119_v38 = vld [vmem:[%s12299_s1 + $0x2a8] sm:$0xff]  ;;  %8320 = vmatpush1.msra.mxu1 %v846_v35 }
  0xe4   :  { %770 = vmatmul.mubr.f32.gmra.mxu1 %v7100_v39  ;;  %v259_v39 = vld [vmem:[%s12299_s1 + $0x110] sm:$0xff] }
  0xe5   :  { %7140 = vmatprep.mubr.msk.f32.mxu1 %vm273_vm0, %v7103_v40  ;;  %v262_v40 = vld [vmem:[%s12299_s1 + $0x128] sm:$0xff] }
  0xe6   :  { %456 = vmatmul.mubr.f32.gmra.mxu0 %v243_v41  ;;  %v7118_v41 = vld [vmem:[%s12299_s1 + $0x2a0] sm:$0xff] }
  0xe7   :  { %7068 = vmatprep.mubr.msk.f32.mxu0 %vm273_vm0, %v246_v42  ;;  %v7121_v42 = vld [vmem:[%s12299_s1 + $0x2b8] sm:$0xff] }
  0xe8   :  { %775 = vmatmul.mubr.f32.gmra.mxu1 %v7102_v43  ;;  %v261_v43 = vld [vmem:[%s12299_s1 + $0x120] sm:$0xff] }
  0xe9   :  { %7141 = vmatprep.mubr.msk.f32.mxu1 %vm273_vm0, %v7105_v44  ;;  %v264_v44 = vld [vmem:[%s12299_s1 + $0x138] sm:$0xff] }
  0xea   :  { %461 = vmatmul.mubr.f32.gmra.mxu0 %v245_v45  ;;  %v7120_v45 = vld [vmem:[%s12299_s1 + $0x2b0] sm:$0xff] }
  0xeb   :  { %7069 = vmatprep.mubr.msk.f32.mxu0 %vm273_vm0, %v248_v46  ;;  %v7123_v46 = vld [vmem:[%s12299_s1 + $0x2c8] sm:$0xff] }
  0xec   :  { %780 = vmatmul.mubr.f32.gmra.mxu1 %v7104_v47  ;;  %v263_v47 = vld [vmem:[%s12299_s1 + $0x130] sm:$0xff] }
  0xed   :  { %7142 = vmatprep.mubr.msk.f32.mxu1 %vm273_vm0, %v7107_v48  ;;  %v266_v48 = vld [vmem:[%s12299_s1 + $0x148] sm:$0xff] }
  0xee   :  { %466 = vmatmul.mubr.f32.gmra.mxu0 %v247_v49  ;;  %v7122_v49 = vld [vmem:[%s12299_s1 + $0x2c0] sm:$0xff] }
  0xef   :  { %7070 = vmatprep.mubr.msk.f32.mxu0 %vm273_vm0, %v250_v50  ;;  %v7125_v50 = vld [vmem:[%s12299_s1 + $0x2d8] sm:$0xff] }
  0xf0   :  { %785 = vmatmul.mubr.f32.gmra.mxu1 %v7106_v51  ;;  %v265_v51 = vld [vmem:[%s12299_s1 + $0x140] sm:$0xff] }
  0xf1   :  { %7143 = vmatprep.mubr.msk.f32.mxu1 %vm273_vm0, %v7109_v52  ;;  %v268_v52 = vld [vmem:[%s12299_s1 + $0x158] sm:$0xff] }
  0xf2   :  { %471 = vmatmul.mubr.f32.gmra.mxu0 %v249_v53  ;;  %v7124_v53 = vld [vmem:[%s12299_s1 + $0x2d0] sm:$0xff] }
  0xf3   :  { %7071 = vmatprep.mubr.msk.f32.mxu0 %vm273_vm0, %v252_v54  ;;  %v7127_v54 = vld [vmem:[%s12299_s1 + $0x2e8] sm:$0xff] }
  0xf4   :  { %790 = vmatmul.mubr.f32.gmra.mxu1 %v7108_v55  ;;  %v267_v55 = vld [vmem:[%s12299_s1 + $0x150] sm:$0xff] }
  0xf5   :  { %7144 = vmatprep.mubr.msk.f32.mxu1 %vm273_vm0, %v7111_v56  ;;  %v270_v56 = vld [vmem:[%s12299_s1 + $0x168] sm:$0xff] }
  0xf6   :  { %476 = vmatmul.mubr.f32.gmra.mxu0 %v251_v57  ;;  %v7126_v57 = vld [vmem:[%s12299_s1 + $0x2e0] sm:$0xff] }
  0xf7   :  { %7072 = vmatprep.mubr.msk.f32.mxu0 %vm273_vm0, %v254_v58  ;;  %v7129_v58 = vld [vmem:[%s12299_s1 + $0x2f8] sm:$0xff] }
  0xf8   :  { %795 = vmatmul.mubr.f32.gmra.mxu1 %v7110_v59  ;;  %v269_v59 = vld [vmem:[%s12299_s1 + $0x160] sm:$0xff] }
  0xf9   :  { %7145 = vmatprep.mubr.msk.f32.mxu1 %vm273_vm0, %v7113_v60  ;;  %v272_v60 = vld [vmem:[%s12299_s1 + $0x178] sm:$0xff] }
  0xfa   :  { %481 = vmatmul.mubr.f32.gmra.mxu0 %v253_v61  ;;  %v7128_v61 = vld [vmem:[%s12299_s1 + $0x2f0] sm:$0xff] }
  0xfb   :  { %7073 = vmatprep.mubr.msk.f32.mxu0 %vm273_vm0, %v256_v62  ;;  %v271_v62 = vld [vmem:[%s12299_s1 + $0x170] sm:$0xff] }
  0xfc   :  { %800 = vmatmul.mubr.f32.gmra.mxu1 %v7112_v63  ;;  %v538_v63 = vld [vmem:[#allocation5 + $0x38] sm:$0xf] }
  0xfd   :  { %7146 = vmatprep.mubr.msk.f32.mxu1 %vm273_vm0, %v7115_v7  ;;  %7180 = vmatprep.subr.msk.mxu1 %vm927_vm1, %v538_v63 }
  0xfe   :  { %486 = vmatmul.mubr.f32.gmra.mxu0 %v255_v30 }
  0xff   :  { %7074 = vmatprep.mubr.msk.f32.mxu0 %vm273_vm0, %v258_v31 }
 0x100   :  { %805 = vmatmul.mubr.f32.gmra.mxu1 %v7114_v32 }
 0x101   :  { %7147 = vmatprep.mubr.msk.f32.mxu1 %vm273_vm0, %v7117_v33 }
 0x102   :  { %491 = vmatmul.mubr.f32.gmra.mxu0 %v257_v34 }
 0x103   :  { %7075 = vmatprep.mubr.msk.f32.mxu0 %vm273_vm0, %v260_v36 }
 0x104   :  { %810 = vmatmul.mubr.f32.gmra.mxu1 %v7116_v37 }
 0x105   :  { %7148 = vmatprep.mubr.msk.f32.mxu1 %vm273_vm0, %v7119_v38 }
 0x106   :  { %496 = vmatmul.mubr.f32.gmra.mxu0 %v259_v39 }
 0x107   :  { %7076 = vmatprep.mubr.msk.f32.mxu0 %vm273_vm0, %v262_v40 }
 0x108   :  { %815 = vmatmul.mubr.f32.gmra.mxu1 %v7118_v41 }
 0x109   :  { %7149 = vmatprep.mubr.msk.f32.mxu1 %vm273_vm0, %v7121_v42 }
 0x10a   :  { %501 = vmatmul.mubr.f32.gmra.mxu0 %v261_v43 }
 0x10b   :  { %7077 = vmatprep.mubr.msk.f32.mxu0 %vm273_vm0, %v264_v44 }
 0x10c   :  { %820 = vmatmul.mubr.f32.gmra.mxu1 %v7120_v45 }
 0x10d   :  { %7150 = vmatprep.mubr.msk.f32.mxu1 %vm273_vm0, %v7123_v46 }
 0x10e   :  { %506 = vmatmul.mubr.f32.gmra.mxu0 %v263_v47 }
 0x10f   :  { %7078 = vmatprep.mubr.msk.f32.mxu0 %vm273_vm0, %v266_v48 }
 0x110   :  { %825 = vmatmul.mubr.f32.gmra.mxu1 %v7122_v49 }
 0x111   :  { %7151 = vmatprep.mubr.msk.f32.mxu1 %vm273_vm0, %v7125_v50 }
 0x112   :  { %511 = vmatmul.mubr.f32.gmra.mxu0 %v265_v51 }
 0x113   :  { %7079 = vmatprep.mubr.msk.f32.mxu0 %vm273_vm0, %v268_v52 }
 0x114   :  { %830 = vmatmul.mubr.f32.gmra.mxu1 %v7124_v53 }
 0x115   :  { %7152 = vmatprep.mubr.msk.f32.mxu1 %vm273_vm0, %v7127_v54 }
 0x116   :  { %516 = vmatmul.mubr.f32.gmra.mxu0 %v267_v55 }
 0x117   :  { %7080 = vmatprep.mubr.msk.f32.mxu0 %vm273_vm0, %v270_v56 }
 0x118   :  { %835 = vmatmul.mubr.f32.gmra.mxu1 %v7126_v57 }
 0x119   :  { %7153 = vmatprep.mubr.msk.f32.mxu1 %vm273_vm0, %v7129_v58 }
 0x11a   :  { %521 = vmatmul.mubr.f32.gmra.mxu0 %v269_v59 }
 0x11b   :  { %7081 = vmatprep.mubr.msk.f32.mxu0 %vm273_vm0, %v272_v60 }
 0x11c   :  { %840 = vmatmul.mubr.f32.gmra.mxu1 %v7128_v61 }
 0x11d   :  { %1124 = vmatprep.mubr.f32.mxu1 %v12315_v0 }
 0x11e   :  { %526 = vmatmul.mubr.f32.gmra.mxu0 %v271_v62 }
 0x11f   :  { %998 = vmatprep.mubr.f32.mxu0 %v12315_v0 }
 0x180   :  { %v726_v7 = vpop.f32.mrf.mxu1 }
 0x181   :  { %7156 = vmatmul.mubr.msk.f32.vlgmr.msra.gmra.mxu0 %vm854_vm2, %v726_v7 }
 0x182   :  { %v728_v30 = vpop.f32.mrf.mxu1  ;;  %1004 = vmatprep.mubr.f32.mxu0 %v12315_v0  ;;  %1552 = vmatpush1.msra.mxu0 %v8787_v1  ;;  %v9300_v31 = vpop.f32.mrf.mxu0 }
 0x183   :  { %1553 = vmatprep.subr.mxu0 %v12315_v0 }
 0x184   :  { %v731_v32 = vpop.f32.mrf.mxu1  ;;  %1554 = vmatpush1.msra.mxu0 %v8789_v2  ;;  %v414_v33 = vpop.f32.mrf.mxu0 }
 0x185   :  { %7157 = vmatmul.mubr.msk.f32.gmra.mxu0 %vm854_vm2, %v731_v32  ;;  %1555 = vmatprep.subr.mxu0 %v12315_v0 }
 0x186   :  { %v733_v34 = vpop.f32.mrf.mxu1  ;;  %1010 = vmatprep.mubr.f32.mxu0 %v12315_v0  ;;  %1556 = vmatpush1.msra.mxu0 %v8794_v3  ;;  %v9308_v35 = vpop.f32.mrf.mxu0 }
 0x187   :  { %1557 = vmatprep.subr.mxu0 %v12315_v0 }
 0x188   :  { %v736_v1 = vpop.f32.mrf.mxu1  ;;  %1558 = vmatpush1.msra.mxu0 %v8800_v4  ;;  %v419_v36 = vpop.f32.mrf.mxu0 }
 0x189   :  { %7158 = vmatmul.mubr.msk.f32.gmra.mxu0 %vm854_vm2, %v736_v1  ;;  %1559 = vmatprep.subr.mxu0 %v12315_v0 }
 0x18a   :  { %v738_v2 = vpop.f32.mrf.mxu1  ;;  %1016 = vmatprep.mubr.f32.mxu0 %v12315_v0  ;;  %1560 = vmatpush1.msra.mxu0 %v8806_v5  ;;  %v9316_v37 = vpop.f32.mrf.mxu0 }
 0x18b   :  { %1561 = vmatprep.subr.mxu0 %v12315_v0 }
 0x18c   :  { %v741_v3 = vpop.f32.mrf.mxu1  ;;  %1562 = vmatpush1.msra.mxu0 %v8812_v6  ;;  %v424_v38 = vpop.f32.mrf.mxu0 }
 0x18d   :  { %7159 = vmatmul.mubr.msk.f32.gmra.mxu0 %vm854_vm2, %v741_v3  ;;  %1563 = vmatprep.subr.mxu0 %v12315_v0 }
 0x18e   :  { %v743_v4 = vpop.f32.mrf.mxu1  ;;  %1022 = vmatprep.mubr.f32.mxu0 %v12315_v0  ;;  %1564 = vmatpush1.msra.mxu0 %v8821_v8  ;;  %v9324_v39 = vpop.f32.mrf.mxu0 }
 0x18f   :  { %1565 = vmatprep.subr.mxu0 %v12315_v0 }
 0x190   :  { %v746_v5 = vpop.f32.mrf.mxu1  ;;  %1566 = vmatpush1.msra.mxu0 %v8827_v9  ;;  %v429_v40 = vpop.f32.mrf.mxu0 }
 0x191   :  { %7160 = vmatmul.mubr.msk.f32.gmra.mxu0 %vm854_vm2, %v746_v5  ;;  %1567 = vmatprep.subr.mxu0 %v12315_v0 }
 0x192   :  { %v748_v6 = vpop.f32.mrf.mxu1  ;;  %1028 = vmatprep.mubr.f32.mxu0 %v12315_v0  ;;  %1568 = vmatpush1.msra.mxu0 %v8833_v10  ;;  %v9332_v41 = vpop.f32.mrf.mxu0 }
 0x193   :  { %1569 = vmatprep.subr.mxu0 %v12315_v0 }
 0x194   :  { %v751_v8 = vpop.f32.mrf.mxu1  ;;  %1570 = vmatpush1.msra.mxu0 %v8839_v11  ;;  %v434_v42 = vpop.f32.mrf.mxu0 }
 0x195   :  { %7161 = vmatmul.mubr.msk.f32.gmra.mxu0 %vm854_vm2, %v751_v8  ;;  %1571 = vmatprep.subr.mxu0 %v12315_v0 }
 0x196   :  { %v753_v9 = vpop.f32.mrf.mxu1  ;;  %1034 = vmatprep.mubr.f32.mxu0 %v12315_v0  ;;  %1572 = vmatpush1.msra.mxu0 %v8845_v12  ;;  %v9340_v43 = vpop.f32.mrf.mxu0 }
 0x197   :  { %1573 = vmatprep.subr.mxu0 %v12315_v0  ;;  %v7207_v9 = vld [vmem:[%s12299_s1 + $0x308] sm:$0xff] }
 0x198   :  { %v756_v10 = vpop.f32.mrf.mxu1  ;;  %1574 = vmatpush1.msra.mxu0 %v8851_v13  ;;  %v439_v44 = vpop.f32.mrf.mxu0 }
 0x199   :  { %7162 = vmatmul.mubr.msk.f32.gmra.mxu0 %vm854_vm2, %v756_v10  ;;  %1575 = vmatprep.subr.mxu0 %v12315_v0 }
 0x19a   :  { %v758_v11 = vpop.f32.mrf.mxu1  ;;  %1040 = vmatprep.mubr.f32.mxu0 %v12315_v0  ;;  %1576 = vmatpush1.msra.mxu0 %v8857_v14  ;;  %v9348_v45 = vpop.f32.mrf.mxu0 }
 0x19b   :  { %1577 = vmatprep.subr.mxu0 %v12315_v0 }
 0x19c   :  { %v761_v12 = vpop.f32.mrf.mxu1  ;;  %1578 = vmatpush1.msra.mxu0 %v8863_v15  ;;  %v444_v46 = vpop.f32.mrf.mxu0 }
 0x19d   :  { %7163 = vmatmul.mubr.msk.f32.gmra.mxu0 %vm854_vm2, %v761_v12  ;;  %1579 = vmatprep.subr.mxu0 %v12315_v0  ;;  %v7206_v12 = vld [vmem:[%s12299_s1 + $0x300] sm:$0xff] }
 0x19e   :  { %v763_v13 = vpop.f32.mrf.mxu1  ;;  %1046 = vmatprep.mubr.f32.mxu0 %v12315_v0  ;;  %1580 = vmatpush1.msra.mxu0 %v8869_v16  ;;  %v9356_v47 = vpop.f32.mrf.mxu0 }
 0x19f   :  { %1581 = vmatprep.subr.mxu0 %v12315_v0  ;;  %v7209_v13 = vld [vmem:[%s12299_s1 + $0x318] sm:$0xff] }
 0x1a0   :  { %v766_v14 = vpop.f32.mrf.mxu1  ;;  %1582 = vmatpush1.msra.mxu0 %v8875_v17  ;;  %v449_v48 = vpop.f32.mrf.mxu0 }
 0x1a1   :  { %7164 = vmatmul.mubr.msk.f32.gmra.mxu0 %vm854_vm2, %v766_v14  ;;  %1591 = vmatprep.subr.mxu0 %v12315_v0  ;;  %v537_v48 = vld [vmem:[#allocation5 + $0x30] sm:$0xf] }
 0x1a2   :  { %v768_v15 = vpop.f32.mrf.mxu1  ;;  %1052 = vmatprep.mubr.f32.mxu0 %v12315_v0  ;;  %1592 = vmatpush2.msra.mxu0 %v8881_v18  ;;  %v9364_v49 = vpop.f32.mrf.mxu0 }
 0x1a3   :  { %1593 = vmatprep.subr.mxu0 %v12315_v0 }
 0x1a4   :  { %v771_v16 = vpop.f32.mrf.mxu1  ;;  %1594 = vmatpush2.msra.mxu0 %v8887_v19  ;;  %v454_v50 = vpop.f32.mrf.mxu0 }
 0x1a5   :  { %7165 = vmatmul.mubr.msk.f32.gmra.mxu0 %vm854_vm2, %v771_v16  ;;  %1595 = vmatprep.subr.mxu0 %v12315_v0  ;;  %v536_v16 = vld [vmem:[#allocation5 + $0x28] sm:$0xff] }
 0x1a6   :  { %v773_v17 = vpop.f32.mrf.mxu1  ;;  %1058 = vmatprep.mubr.f32.mxu0 %v12315_v0  ;;  %1596 = vmatpush2.msra.mxu0 %v8893_v20  ;;  %v9372_v51 = vpop.f32.mrf.mxu0 }
 0x1a7   :  { %1597 = vmatprep.subr.mxu0 %v12315_v0  ;;  %v7208_v17 = vld [vmem:[%s12299_s1 + $0x310] sm:$0xff] }
 0x1a8   :  { %v776_v18 = vpop.f32.mrf.mxu1  ;;  %1598 = vmatpush2.msra.mxu0 %v8899_v21  ;;  %v459_v52 = vpop.f32.mrf.mxu0 }
 0x1a9   :  { %7166 = vmatmul.mubr.msk.f32.gmra.mxu0 %vm854_vm2, %v776_v18  ;;  %1599 = vmatprep.subr.mxu0 %v12315_v0  ;;  %v535_v52 = vld [vmem:[#allocation5 + $0x20] sm:$0xff] }
 0x1aa   :  { %v778_v19 = vpop.f32.mrf.mxu1  ;;  %1064 = vmatprep.mubr.f32.mxu0 %v12315_v0  ;;  %1600 = vmatpush2.msra.mxu0 %v8905_v22  ;;  %v9380_v53 = vpop.f32.mrf.mxu0 }
 0x1ab   :  { %1601 = vmatprep.subr.mxu0 %v12315_v0  ;;  %v9455_v19 = vld [vmem:[#allocation2 + $0x78] sm:$0xff] }
 0x1ac   :  { %v781_v20 = vpop.f32.mrf.mxu1  ;;  %1602 = vmatpush2.msra.mxu0 %v8911_v23  ;;  %v464_v54 = vpop.f32.mrf.mxu0 }
 0x1ad   :  { %7167 = vmatmul.mubr.msk.f32.gmra.mxu0 %vm854_vm2, %v781_v20  ;;  %1603 = vmatprep.subr.mxu0 %v12315_v0  ;;  %v7211_v54 = vld [vmem:[%s12299_s1 + $0x328] sm:$0xff] }
 0x1ae   :  { %v783_v21 = vpop.f32.mrf.mxu1  ;;  %1070 = vmatprep.mubr.f32.mxu0 %v12315_v0  ;;  %1604 = vmatpush2.msra.mxu0 %v8917_v24  ;;  %v9388_v55 = vpop.f32.mrf.mxu0 }
 0x1af   :  { %1605 = vmatprep.subr.mxu0 %v12315_v0  ;;  %v534_v21 = vld [vmem:[#allocation5 + $0x18] sm:$0xff] }
 0x1b0   :  { %v786_v22 = vpop.f32.mrf.mxu1  ;;  %1606 = vmatpush2.msra.mxu0 %v8923_v25  ;;  %v469_v56 = vpop.f32.mrf.mxu0 }
 0x1b1   :  { %7168 = vmatmul.mubr.msk.f32.gmra.mxu0 %vm854_vm2, %v786_v22  ;;  %1607 = vmatprep.subr.mxu0 %v12315_v0  ;;  %v533_v56 = vld [vmem:[#allocation5 + $0x10] sm:$0xff] }
 0x1b2   :  { %v788_v23 = vpop.f32.mrf.mxu1  ;;  %1076 = vmatprep.mubr.f32.mxu0 %v12315_v0  ;;  %1608 = vmatpush2.msra.mxu0 %v8929_v26  ;;  %v9396_v57 = vpop.f32.mrf.mxu0 }
 0x1b3   :  { %1609 = vmatprep.subr.mxu0 %v12315_v0 }
 0x1b4   :  { %v791_v24 = vpop.f32.mrf.mxu1  ;;  %1610 = vmatpush2.msra.mxu0 %v8935_v27  ;;  %v474_v58 = vpop.f32.mrf.mxu0 }
 0x1b5   :  { %7169 = vmatmul.mubr.msk.f32.gmra.mxu0 %vm854_vm2, %v791_v24  ;;  %1611 = vmatprep.subr.mxu0 %v12315_v0  ;;  %v7210_v24 = vld [vmem:[%s12299_s1 + $0x320] sm:$0xff] }
 0x1b6   :  { %v793_v25 = vpop.f32.mrf.mxu1  ;;  %1082 = vmatprep.mubr.f32.mxu0 %v12315_v0  ;;  %1612 = vmatpush2.msra.mxu0 %v8941_v28  ;;  %v9404_v59 = vpop.f32.mrf.mxu0 }
 0x1b7   :  { %1613 = vmatprep.subr.mxu0 %v12315_v0  ;;  %v532_v25 = vld [vmem:[#allocation5 + $0x8] sm:$0xff] }
 0x1b8   :  { %v796_v26 = vpop.f32.mrf.mxu1  ;;  %1614 = vmatpush2.msra.mxu0 %v8947_v29  ;;  %v479_v60 = vpop.f32.mrf.mxu0 }
 0x1b9   :  { %7170 = vmatmul.mubr.msk.f32.gmra.mxu0 %vm854_vm2, %v796_v26  ;;  %2201 = vmatprep.subr.mxu0 %v12315_v0  ;;  %v531_v60 = vld [vmem:[#allocation5] sm:$0xff] }
 0x1ba   :  { %v798_v27 = vpop.f32.mrf.mxu1  ;;  %1088 = vmatprep.mubr.f32.mxu0 %v12315_v0  ;;  %v9411_v61 = vpop.f32.mrf.mxu0 }
 0x1bb   :  { %v7213_v27 = vld [vmem:[%s12299_s1 + $0x338] sm:$0xff] }
 0x1bc   :  { %v801_v62 = vpop.f32.mrf.mxu1  ;;  %v484_v63 = vpop.f32.mrf.mxu0 }
 0x1bd   :  { %7171 = vmatmul.mubr.msk.f32.gmra.mxu0 %vm854_vm2, %v801_v62  ;;  %v9473_v62 = vld [vmem:[#allocation2 + $0x70] sm:$0xff] }
 0x1be   :  { %v803_v28 = vpop.f32.mrf.mxu1  ;;  %1094 = vmatprep.mubr.f32.mxu0 %v12315_v0  ;;  %v9415_v7 = vpop.f32.mrf.mxu0 }
 0x1bf   :  { %v7212_v28 = vld [vmem:[%s12299_s1 + $0x330] sm:$0xff] }
 0x1c0   :  { %v806_v29 = vpop.f32.mrf.mxu1  ;;  %v489_v30 = vpop.f32.mrf.mxu0 }
 0x1c1   :  { %7172 = vmatmul.mubr.msk.f32.gmra.mxu0 %vm854_vm2, %v806_v29 }
 0x1c2   :  { %v808_v32 = vpop.f32.mrf.mxu1  ;;  %1100 = vmatprep.mubr.f32.mxu0 %v12315_v0  ;;  %v9419_v33 = vpop.f32.mrf.mxu0 }
 0x1c3   :  { %v7215_v32 = vld [vmem:[%s12299_s1 + $0x348] sm:$0xff] }
 0x1c4   :  { %v811_v34 = vpop.f32.mrf.mxu1  ;;  %v494_v1 = vpop.f32.mrf.mxu0 }
 0x1c5   :  { %7173 = vmatmul.mubr.msk.f32.gmra.mxu0 %vm854_vm2, %v811_v34  ;;  %v7214_v1 = vld [vmem:[%s12299_s1 + $0x340] sm:$0xff] }
 0x1c6   :  { %v813_v36 = vpop.f32.mrf.mxu1  ;;  %1106 = vmatprep.mubr.f32.mxu0 %v12315_v0  ;;  %v9423_v2 = vpop.f32.mrf.mxu0 }
 0x1c7   :  { %v7217_v36 = vld [vmem:[%s12299_s1 + $0x358] sm:$0xff] }
 0x1c8   :  { %v816_v3 = vpop.f32.mrf.mxu1  ;;  %v499_v38 = vpop.f32.mrf.mxu0 }
 0x1c9   :  { %7174 = vmatmul.mubr.msk.f32.gmra.mxu0 %vm854_vm2, %v816_v3  ;;  %v9498_v3 = vld [vmem:[#allocation2 + $0x68] sm:$0xff]  ;;  %v1744_v38 = vld [vmem:[#allocation5 + $0xb8] sm:$0xf] }
 0x1ca   :  { %v818_v4 = vpop.f32.mrf.mxu1  ;;  %1112 = vmatprep.mubr.f32.mxu0 %v12315_v0  ;;  %v9427_v5 = vpop.f32.mrf.mxu0 }
 0x1cb   :  { %v7219_v4 = vld [vmem:[%s12299_s1 + $0x368] sm:$0xff] }
 0x1cc   :  { %v821_v40 = vpop.f32.mrf.mxu1  ;;  %v504_v6 = vpop.f32.mrf.mxu0 }
 0x1cd   :  { %7175 = vmatmul.mubr.msk.f32.gmra.mxu0 %vm854_vm2, %v821_v40  ;;  %v9512_v40 = vld [vmem:[#allocation2 + $0x60] sm:$0xff] }
 0x1ce   :  { %v823_v8 = vpop.f32.mrf.mxu1  ;;  %1118 = vmatprep.mubr.f32.mxu0 %v12315_v0  ;;  %v9431_v42 = vpop.f32.mrf.mxu0  ;;  %v7218_v6 = vld [vmem:[%s12299_s1 + $0x360] sm:$0xff] }
 0x1cf   :  { %v7221_v8 = vld [vmem:[%s12299_s1 + $0x378] sm:$0xff] }
 0x1d0   :  { %v826_v10 = vpop.f32.mrf.mxu1  ;;  %v509_v44 = vpop.f32.mrf.mxu0 }
 0x1d1   :  { %7176 = vmatmul.mubr.msk.f32.gmra.mxu0 %vm854_vm2, %v826_v10  ;;  %v7223_v10 = vld [vmem:[%s12299_s1 + $0x388] sm:$0xff]  ;;  %v9542_v44 = vld [vmem:[#allocation2 + $0x50] sm:$0xff] }
 0x1d2   :  { %v828_v11 = vpop.f32.mrf.mxu1  ;;  %7254 = vmatprep.mubr.msk.f32.mxu0 %vm273_vm0, %v7207_v9  ;;  %v9441_v46 = vpop.f32.mrf.mxu0  ;;  %v9528_v9 = vld [vmem:[#allocation2 + $0x58] sm:$0xff] }
 0x1d3   :  { %v7225_v11 = vld [vmem:[%s12299_s1 + $0x398] sm:$0xff] }
 0x1d4   :  { %v831_v14 = vpop.f32.mrf.mxu1  ;;  %v514_v15 = vpop.f32.mrf.mxu0 }
 0x1d5   :  { %7177 = vmatmul.mubr.msk.f32.vlgmr.msra.gmra.mxu1 %vm854_vm2, %v831_v14  ;;  %1616 = vmatmul.mubr.f32.vlgmr.msra.gmra.mxu0 %v7206_v12  ;;  %v9556_v12 = vld [vmem:[#allocation2 + $0x48] sm:$0xff]  ;;  %v9570_v14 = vld [vmem:[#allocation2 + $0x40] sm:$0xff]  ;;  %v9584_v15 = vld [vmem:[#allocation2 + $0x38] sm:$0xff] }
 0x1d6   :  { %v833_v50 = vpop.f32.mrf.mxu1  ;;  %1130 = vmatprep.mubr.f32.mxu1 %v12315_v0  ;;  %7255 = vmatprep.mubr.msk.f32.mxu0 %vm273_vm0, %v7209_v13  ;;  %v9452_v18 = vpop.f32.mrf.mxu0  ;;  %v7227_v13 = vld [vmem:[%s12299_s1 + $0x3a8] sm:$0xff] }
 0x1d7   :  { %7181 = vmatpush1.msk.msra.mxu1 %vm927_vm1, %v537_v48  ;;  %2202 = vmatpush1.msra.mxu0 %v9455_v19  ;;  %v7229_v48 = vld [vmem:[%s12299_s1 + $0x3b8] sm:$0xff]  ;;  %v7231_v50 = vld [vmem:[%s12299_s1 + $0x3c8] sm:$0xff] }
 0x1d8   :  { %v836_v20 = vpop.f32.mrf.mxu1  ;;  %1247 = vmatprep.subr.mxu1 %v536_v16  ;;  %2203 = vmatprep.subr.mxu0 %v12315_v0  ;;  %v519_v22 = vpop.f32.mrf.mxu0  ;;  %v1742_v16 = vld [vmem:[#allocation5 + $0xa8] sm:$0xff] }
 0x1d9   :  { %7178 = vmatmul.mubr.msk.f32.gmra.mxu1 %vm854_vm2, %v836_v20  ;;  %1621 = vmatmul.mubr.f32.gmra.mxu0 %v7208_v17  ;;  %v9598_v17 = vld [vmem:[#allocation2 + $0x30] sm:$0xff]  ;;  %v7233_v20 = vld [vmem:[%s12299_s1 + $0x3d8] sm:$0xff]  ;;  %v9626_v22 = vld [vmem:[#allocation2 + $0x20] sm:$0xff] }
 0x1da   :  { %v838_v23 = vpop.f32.mrf.mxu1  ;;  %1136 = vmatprep.mubr.f32.mxu1 %v12315_v0  ;;  %1248 = vmatpush1.msra.mxu1 %v535_v52  ;;  %v9467_v58 = vpop.f32.mrf.mxu0  ;;  %v7230_v52 = vld [vmem:[%s12299_s1 + $0x3c0] sm:$0xff] }
 0x1db   :  { %7256 = vmatprep.mubr.msk.f32.mxu0 %vm273_vm0, %v7211_v54  ;;  %1249 = vmatprep.subr.mxu1 %v534_v21  ;;  %v9612_v54 = vld [vmem:[#allocation2 + $0x28] sm:$0xff]  ;;  %v9640_v23 = vld [vmem:[#allocation2 + $0x18] sm:$0xff] }
 0x1dc   :  { %v841_v26 = vpop.f32.mrf.mxu1  ;;  %1250 = vmatpush1.msra.mxu1 %v533_v56  ;;  %2204 = vmatpush1.msra.mxu0 %v9473_v62  ;;  %v524_v63 = vpop.f32.mrf.mxu0  ;;  %v7235_v21 = vld [vmem:[%s12299_s1 + $0x3e8] sm:$0xff]  ;;  %v7237_v56 = vld [vmem:[%s12299_s1 + $0x3f8] sm:$0xff] }
 0x1dd   :  { %7179 = vmatmul.mubr.msk.f32.gmra.mxu1 %vm854_vm2, %v841_v26  ;;  %1626 = vmatmul.mubr.f32.gmra.mxu0 %v7210_v24  ;;  %v7239_v24 = vld [vmem:[%s12299_s1 + $0x408] sm:$0xff]  ;;  %v1740_v26 = vld [vmem:[#allocation5 + $0x98] sm:$0xff] }
 0x1de   :  { %1251 = vmatprep.subr.mxu1 %v532_v25  ;;  %1285 = vmatprep.mubr.f32.mxu1 %v12315_v0  ;;  %v843_v29 = vpop.f32.mrf.mxu1  ;;  %v9481_v30 = vpop.f32.mrf.mxu0  ;;  %v9654_v25 = vld [vmem:[#allocation2 + $0x10] sm:$0xff]  ;;  %v1738_v63 = vld [vmem:[#allocation5 + $0x88] sm:$0xff] }
 0x1df   :  { %1252 = vmatpush1.msra.mxu1 %v531_v60  ;;  %7257 = vmatprep.mubr.msk.f32.mxu0 %vm273_vm0, %v7213_v27  ;;  %v7241_v60 = vld [vmem:[%s12299_s1 + $0x418] sm:$0xff]  ;;  %v9668_v27 = vld [vmem:[#allocation2 + $0x8] sm:$0xff]  ;;  %v7240_v29 = vld [vmem:[%s12299_s1 + $0x410] sm:$0xff] }
 0x1e0   :  { %2205 = vmatprep.subr.mxu0 %v12315_v0  ;;  %v529_v34 = vpop.f32.mrf.mxu0  ;;  %7278 = vmatprep.subr.msk.mxu1 %vm927_vm1, %v1744_v38  ;;  %v7247_v38 = vld [vmem:[%s12299_s1 + $0x448] sm:$0xff] }
 0x1e1   :  { %7182 = vmatmul.mubr.msk.f32.vlgmr.msra.gmra.mxu1 %vm854_vm2, %v9300_v31  ;;  %1631 = vmatmul.mubr.f32.gmra.mxu0 %v7212_v28  ;;  %v7216_v31 = vld [vmem:[%s12299_s1 + $0x350] sm:$0xff]  ;;  %v1737_v28 = vld [vmem:[#allocation5 + $0x80] sm:$0xff] }
 0x1e2   :  { %1291 = vmatprep.mubr.f32.mxu1 %v12315_v0  ;;  %7258 = vmatprep.mubr.msk.f32.mxu0 %vm273_vm0, %v7215_v32  ;;  %v7243_v32 = vld [vmem:[%s12299_s1 + $0x428] sm:$0xff]  ;;  %v9682_v34 = vld [vmem:[#allocation2] sm:$0xff] }
 0x1e3   :  { %2206 = vmatpush1.msra.mxu0 %v9498_v3 }
 0x1e4   :  { %2207 = vmatprep.subr.mxu0 %v12315_v0 }
 0x1e5   :  { %7183 = vmatmul.mubr.msk.f32.gmra.mxu1 %vm854_vm2, %v9308_v35  ;;  %1636 = vmatmul.mubr.f32.gmra.mxu0 %v7214_v1  ;;  %v1743_v35 = vld [vmem:[#allocation5 + $0xb0] sm:$0xf]  ;;  %v9693_v1 = vld [vmem:[#allocation2 + $0xd8] sm:$0xff] }
 0x1e6   :  { %1297 = vmatprep.mubr.f32.mxu1 %v12315_v0  ;;  %7259 = vmatprep.mubr.msk.f32.mxu0 %vm273_vm0, %v7217_v36  ;;  %v7245_v36 = vld [vmem:[%s12299_s1 + $0x438] sm:$0xff] }
 0x1e7   :  { %2208 = vmatpush1.msra.mxu0 %v9512_v40  ;;  %7279 = vmatpush1.msk.msra.mxu1 %vm927_vm1, %v1743_v35  ;;  %v9725_v35 = vld [vmem:[#allocation2 + $0xc0] sm:$0xff] }
 0x1e8   :  { %2209 = vmatprep.subr.mxu0 %v12315_v0  ;;  %1849 = vmatprep.subr.mxu1 %v1742_v16  ;;  %v9800_v16 = vld [vmem:[#allocation2 + $0x80] sm:$0xff] }
 0x1e9   :  { %7184 = vmatmul.mubr.msk.f32.gmra.mxu1 %vm854_vm2, %v9316_v37  ;;  %1641 = vmatmul.mubr.f32.gmra.mxu0 %v7216_v31  ;;  %v7220_v37 = vld [vmem:[%s12299_s1 + $0x370] sm:$0xff] }
 0x1ea   :  { %1303 = vmatprep.mubr.f32.mxu1 %v12315_v0  ;;  %7260 = vmatprep.mubr.msk.f32.mxu0 %vm273_vm0, %v7219_v4  ;;  %v9707_v31 = vld [vmem:[#allocation2 + $0xd0] sm:$0xff]  ;;  %v7246_v4 = vld [vmem:[%s12299_s1 + $0x440] sm:$0xff] }
 0x1eb   :  { %2210 = vmatpush1.msra.mxu0 %v9528_v9 }
 0x1ec   :  { %2211 = vmatprep.subr.mxu0 %v12315_v0 }
 0x1ed   :  { %7185 = vmatmul.mubr.msk.f32.gmra.mxu1 %vm854_vm2, %v9324_v39  ;;  %1646 = vmatmul.mubr.f32.gmra.mxu0 %v7218_v6  ;;  %v7222_v39 = vld [vmem:[%s12299_s1 + $0x380] sm:$0xff]  ;;  %v9735_v6 = vld [vmem:[#allocation2 + $0xb8] sm:$0xff] }
 0x1ee   :  { %1309 = vmatprep.mubr.f32.mxu1 %v12315_v0  ;;  %7261 = vmatprep.mubr.msk.f32.mxu0 %vm273_vm0, %v7221_v8  ;;  %v7248_v8 = vld [vmem:[%s12299_s1 + $0x450] sm:$0xff] }
 0x1ef   :  { %2212 = vmatpush1.msra.mxu0 %v9542_v44 }
 0x1f0   :  { %2213 = vmatprep.subr.mxu0 %v12315_v0 }
 0x1f1   :  { %7186 = vmatmul.mubr.msk.f32.gmra.mxu1 %vm854_vm2, %v9332_v41  ;;  %1651 = vmatmul.mubr.f32.gmra.mxu0 %v7220_v37  ;;  %v7224_v41 = vld [vmem:[%s12299_s1 + $0x390] sm:$0xff] }
 0x1f2   :  { %1315 = vmatprep.mubr.f32.mxu1 %v12315_v0  ;;  %7262 = vmatprep.mubr.msk.f32.mxu0 %vm273_vm0, %v7223_v10  ;;  %v9743_v37 = vld [vmem:[#allocation2 + $0xb0] sm:$0xff]  ;;  %v9752_v10 = vld [vmem:[#allocation2 + $0xa8] sm:$0xff] }
 0x1f3   :  { %2214 = vmatpush1.msra.mxu0 %v9556_v12 }
 0x1f4   :  { %2215 = vmatprep.subr.mxu0 %v12315_v0 }
 0x1f5   :  { %7187 = vmatmul.mubr.msk.f32.gmra.mxu1 %vm854_vm2, %v9340_v43  ;;  %1656 = vmatmul.mubr.f32.gmra.mxu0 %v7222_v39  ;;  %v7226_v43 = vld [vmem:[%s12299_s1 + $0x3a0] sm:$0xff] }
 0x1f6   :  { %1321 = vmatprep.mubr.f32.mxu1 %v12315_v0  ;;  %7263 = vmatprep.mubr.msk.f32.mxu0 %vm273_vm0, %v7225_v11  ;;  %v7250_v39 = vld [vmem:[%s12299_s1 + $0x460] sm:$0xff]  ;;  %v7253_v11 = vld [vmem:[%s12299_s1 + $0x478] sm:$0xff] }
 0x1f7   :  { %2216 = vmatpush1.msra.mxu0 %v9570_v14 }
 0x1f8   :  { %2217 = vmatprep.subr.mxu0 %v12315_v0 }
 0x1f9   :  { %7188 = vmatmul.mubr.msk.f32.gmra.mxu1 %vm854_vm2, %v9348_v45  ;;  %1661 = vmatmul.mubr.f32.gmra.mxu0 %v7224_v41  ;;  %v7228_v45 = vld [vmem:[%s12299_s1 + $0x3b0] sm:$0xff]  ;;  %v9770_v41 = vld [vmem:[#allocation2 + $0x98] sm:$0xff] }
 0x1fa   :  { %1327 = vmatprep.mubr.f32.mxu1 %v12315_v0  ;;  %7264 = vmatprep.mubr.msk.f32.mxu0 %vm273_vm0, %v7227_v13  ;;  %v7252_v13 = vld [vmem:[%s12299_s1 + $0x470] sm:$0xff] }
 0x1fb   :  { %2218 = vmatpush1.msra.mxu0 %v9584_v15 }
 0x1fc   :  { %2219 = vmatprep.subr.mxu0 %v12315_v0 }
 0x1fd   :  { %7189 = vmatmul.mubr.msk.f32.gmra.mxu1 %vm854_vm2, %v9356_v47  ;;  %1666 = vmatmul.mubr.f32.gmra.mxu0 %v7226_v43  ;;  %v1741_v47 = vld [vmem:[#allocation5 + $0xa0] sm:$0xff]  ;;  %v7305_v43 = vld [vmem:[%s12299_s1 + $0x488] sm:$0xff] }
 0x1fe   :  { %1333 = vmatprep.mubr.f32.mxu1 %v12315_v0  ;;  %7265 = vmatprep.mubr.msk.f32.mxu0 %vm273_vm0, %v7229_v48  ;;  %v9788_v48 = vld [vmem:[#allocation2 + $0x88] sm:$0xff] }
 0x1ff   :  { %2220 = vmatpush1.msra.mxu0 %v9598_v17  ;;  %1850 = vmatpush1.msra.mxu1 %v1741_v47  ;;  %v7309_v47 = vld [vmem:[%s12299_s1 + $0x4a8] sm:$0xff] }
 0x200   :  { %2221 = vmatprep.subr.mxu0 %v12315_v0  ;;  %1851 = vmatprep.subr.mxu1 %v1740_v26  ;;  %v7323_v26 = vld [vmem:[%s12299_s1 + $0x518] sm:$0xff] }
 0x201   :  { %7190 = vmatmul.mubr.msk.f32.gmra.mxu1 %vm854_vm2, %v9364_v49  ;;  %1671 = vmatmul.mubr.f32.gmra.mxu0 %v7228_v45  ;;  %v7232_v49 = vld [vmem:[%s12299_s1 + $0x3d0] sm:$0xff]  ;;  %v7304_v45 = vld [vmem:[%s12299_s1 + $0x480] sm:$0xff] }
 0x202   :  { %1339 = vmatprep.mubr.f32.mxu1 %v12315_v0  ;;  %7266 = vmatprep.mubr.msk.f32.mxu0 %vm273_vm0, %v7231_v50  ;;  %v7306_v50 = vld [vmem:[%s12299_s1 + $0x490] sm:$0xff] }
 0x203   :  { %2222 = vmatpush1.msra.mxu0 %v9612_v54 }
 0x204   :  { %2223 = vmatprep.subr.mxu0 %v12315_v0 }
 0x205   :  { %7191 = vmatmul.mubr.msk.f32.gmra.mxu1 %vm854_vm2, %v9372_v51  ;;  %1676 = vmatmul.mubr.f32.gmra.mxu0 %v7230_v52  ;;  %v7234_v51 = vld [vmem:[%s12299_s1 + $0x3e0] sm:$0xff]  ;;  %v7315_v52 = vld [vmem:[%s12299_s1 + $0x4d8] sm:$0xff] }
 0x206   :  { %1345 = vmatprep.mubr.f32.mxu1 %v12315_v0  ;;  %7267 = vmatprep.mubr.msk.f32.mxu0 %vm273_vm0, %v7233_v20  ;;  %v2394_v20 = vld [vmem:[#allocation5 + $0xf8] sm:$0xf] }
 0x207   :  { %2224 = vmatpush1.msra.mxu0 %v9626_v22 }
 0x208   :  { %2225 = vmatprep.subr.mxu0 %v12315_v0 }
 0x209   :  { %7192 = vmatmul.mubr.msk.f32.gmra.mxu1 %vm854_vm2, %v9380_v53  ;;  %1681 = vmatmul.mubr.f32.gmra.mxu0 %v7232_v49  ;;  %v7236_v53 = vld [vmem:[%s12299_s1 + $0x3f0] sm:$0xff] }
 0x20a   :  { %1351 = vmatprep.mubr.f32.mxu1 %v12315_v0  ;;  %7268 = vmatprep.mubr.msk.f32.mxu0 %vm273_vm0, %v7235_v21  ;;  %v7317_v21 = vld [vmem:[%s12299_s1 + $0x4e8] sm:$0xff] }
 0x20b   :  { %2226 = vmatpush1.msra.mxu0 %v9640_v23 }
 0x20c   :  { %2227 = vmatprep.subr.mxu0 %v12315_v0 }
 0x20d   :  { %7193 = vmatmul.mubr.msk.f32.gmra.mxu1 %vm854_vm2, %v9388_v55  ;;  %1686 = vmatmul.mubr.f32.gmra.mxu0 %v7234_v51  ;;  %v7238_v55 = vld [vmem:[%s12299_s1 + $0x400] sm:$0xff] }
 0x20e   :  { %1357 = vmatprep.mubr.f32.mxu1 %v12315_v0  ;;  %7269 = vmatprep.mubr.msk.f32.mxu0 %vm273_vm0, %v7237_v56  ;;  %v7319_v56 = vld [vmem:[%s12299_s1 + $0x4f8] sm:$0xff] }
 0x20f   :  { %2228 = vmatpush1.msra.mxu0 %v9654_v25 }
 0x210   :  { %2229 = vmatprep.subr.mxu0 %v12315_v0 }
 0x211   :  { %7194 = vmatmul.mubr.msk.f32.gmra.mxu1 %vm854_vm2, %v9396_v57  ;;  %1691 = vmatmul.mubr.f32.gmra.mxu0 %v7236_v53  ;;  %v1739_v57 = vld [vmem:[#allocation5 + $0x90] sm:$0xff] }
 0x212   :  { %1363 = vmatprep.mubr.f32.mxu1 %v12315_v0  ;;  %7270 = vmatprep.mubr.msk.f32.mxu0 %vm273_vm0, %v7239_v24  ;;  %v7321_v24 = vld [vmem:[%s12299_s1 + $0x508] sm:$0xff] }
 0x213   :  { %2230 = vmatpush1.msra.mxu0 %v9668_v27  ;;  %1852 = vmatpush1.msra.mxu1 %v1739_v57  ;;  %v7325_v57 = vld [vmem:[%s12299_s1 + $0x528] sm:$0xff] }
 0x214   :  { %2231 = vmatprep.subr.mxu0 %v12315_v0  ;;  %1853 = vmatprep.subr.mxu1 %v1738_v63 }
 0x215   :  { %7195 = vmatmul.mubr.msk.f32.gmra.mxu1 %vm854_vm2, %v9404_v59  ;;  %1696 = vmatmul.mubr.f32.gmra.mxu0 %v7238_v55  ;;  %v7242_v59 = vld [vmem:[%s12299_s1 + $0x420] sm:$0xff] }
 0x216   :  { %1369 = vmatprep.mubr.f32.mxu1 %v12315_v0  ;;  %7271 = vmatprep.mubr.msk.f32.mxu0 %vm273_vm0, %v7241_v60 }
 0x217   :  { %2232 = vmatpush1.msra.mxu0 %v9682_v34  ;;  %1854 = vmatpush1.msra.mxu1 %v1737_v28  ;;  %v7324_v28 = vld [vmem:[%s12299_s1 + $0x520] sm:$0xff] }
 0x218   :  { %2241 = vmatprep.subr.mxu0 %v12315_v0  ;;  %7376 = vmatprep.subr.msk.mxu1 %vm927_vm1, %v2394_v20 }
 0x219   :  { %7196 = vmatmul.mubr.msk.f32.gmra.mxu1 %vm854_vm2, %v9411_v61  ;;  %1701 = vmatmul.mubr.f32.gmra.mxu0 %v7240_v29  ;;  %v7244_v61 = vld [vmem:[%s12299_s1 + $0x430] sm:$0xff]  ;;  %v7327_v29 = vld [vmem:[%s12299_s1 + $0x538] sm:$0xff] }
 0x21a   :  { %1375 = vmatprep.mubr.f32.mxu1 %v12315_v0  ;;  %7272 = vmatprep.mubr.msk.f32.mxu0 %vm273_vm0, %v7243_v32 }
 0x21b   :  { %2242 = vmatpush2.msra.mxu0 %v9693_v1 }
 0x21c   :  { %2243 = vmatprep.subr.mxu0 %v12315_v0 }
 0x21d   :  { %7197 = vmatmul.mubr.msk.f32.gmra.mxu1 %vm854_vm2, %v9415_v7  ;;  %1706 = vmatmul.mubr.f32.gmra.mxu0 %v7242_v59  ;;  %v9716_v7 = vld [vmem:[#allocation2 + $0xc8] sm:$0xff]  ;;  %v7326_v59 = vld [vmem:[%s12299_s1 + $0x530] sm:$0xff] }
 0x21e   :  { %1381 = vmatprep.mubr.f32.mxu1 %v12315_v0  ;;  %7273 = vmatprep.mubr.msk.f32.mxu0 %vm273_vm0, %v7245_v36 }
 0x21f   :  { %2244 = vmatpush2.msra.mxu0 %v9707_v31 }
 0x220   :  { %2245 = vmatprep.subr.mxu0 %v12315_v0 }
 0x221   :  { %7198 = vmatmul.mubr.msk.f32.gmra.mxu1 %vm854_vm2, %v9419_v33  ;;  %1711 = vmatmul.mubr.f32.gmra.mxu0 %v7244_v61  ;;  %v7249_v33 = vld [vmem:[%s12299_s1 + $0x458] sm:$0xff] }
 0x222   :  { %2246 = vmatpush2.msra.mxu0 %v9716_v7  ;;  %1387 = vmatprep.mubr.f32.mxu1 %v12315_v0 }
 0x223   :  { %2247 = vmatprep.subr.mxu0 %v12315_v0  ;;  %7274 = vmatprep.mubr.msk.f32.mxu0 %vm273_vm0, %v7247_v38  ;;  %v7331_v38 = vld [vmem:[%s12299_s1 + $0x558] sm:$0xff] }
 0x224   :  { %2248 = vmatpush2.msra.mxu0 %v9725_v35 }
 0x225   :  { %7199 = vmatmul.mubr.msk.f32.gmra.mxu1 %vm854_vm2, %v9423_v2  ;;  %1716 = vmatmul.mubr.f32.gmra.mxu0 %v7246_v4  ;;  %v7251_v2 = vld [vmem:[%s12299_s1 + $0x468] sm:$0xff] }
 0x226   :  { %2249 = vmatprep.subr.mxu0 %v12315_v0  ;;  %1393 = vmatprep.mubr.f32.mxu1 %v12315_v0 }
 0x227   :  { %2250 = vmatpush2.msra.mxu0 %v9735_v6  ;;  %7275 = vmatprep.mubr.msk.f32.mxu0 %vm273_vm0, %v7249_v33  ;;  %v7333_v33 = vld [vmem:[%s12299_s1 + $0x568] sm:$0xff] }
 0x228   :  { %2251 = vmatprep.subr.mxu0 %v12315_v0 }
 0x229   :  { %2252 = vmatpush2.msra.mxu0 %v9743_v37  ;;  %7200 = vmatmul.mubr.msk.f32.gmra.mxu1 %vm854_vm2, %v9427_v5  ;;  %v9761_v5 = vld [vmem:[#allocation2 + $0xa0] sm:$0xff] }
 0x22a   :  { %1721 = vmatmul.mubr.f32.gmra.mxu0 %v7248_v8  ;;  %2253 = vmatprep.subr.mxu0 %v12315_v0 }
 0x22b   :  { %2254 = vmatpush2.msra.mxu0 %v9752_v10  ;;  %1399 = vmatprep.mubr.f32.mxu1 %v12315_v0 }
 0x22c   :  { %2255 = vmatprep.subr.mxu0 %v12315_v0  ;;  %7276 = vmatprep.mubr.msk.f32.mxu0 %vm273_vm0, %v7251_v2  ;;  %v7335_v2 = vld [vmem:[%s12299_s1 + $0x578] sm:$0xff] }
 0x22d   :  { %2256 = vmatpush2.msra.mxu0 %v9761_v5  ;;  %7201 = vmatmul.mubr.msk.f32.gmra.mxu1 %vm854_vm2, %v9431_v42  ;;  %v9779_v42 = vld [vmem:[#allocation2 + $0x90] sm:$0xff] }
 0x22e   :  { %1726 = vmatmul.mubr.f32.gmra.mxu0 %v7250_v39  ;;  %2257 = vmatprep.subr.mxu0 %v12315_v0 }
 0x22f   :  { %2258 = vmatpush2.msra.mxu0 %v9770_v41  ;;  %1405 = vmatprep.mubr.f32.mxu1 %v12315_v0 }
 0x230   :  { %2259 = vmatprep.subr.mxu0 %v12315_v0  ;;  %7277 = vmatprep.mubr.msk.f32.mxu0 %vm273_vm0, %v7253_v11  ;;  %v7337_v11 = vld [vmem:[%s12299_s1 + $0x588] sm:$0xff] }
 0x231   :  { %2260 = vmatpush2.msra.mxu0 %v9779_v42  ;;  %7202 = vmatmul.mubr.msk.f32.gmra.mxu1 %vm854_vm2, %v9441_v46  ;;  %v7307_v46 = vld [vmem:[%s12299_s1 + $0x498] sm:$0xff] }
 0x232   :  { %1731 = vmatmul.mubr.f32.gmra.mxu0 %v7252_v13  ;;  %2261 = vmatprep.subr.mxu0 %v12315_v0 }
 0x233   :  { %2262 = vmatpush2.msra.mxu0 %v9788_v48  ;;  %1411 = vmatprep.mubr.f32.mxu1 %v12315_v0 }
 0x234   :  { %2263 = vmatprep.subr.mxu0 %v12315_v0  ;;  %7352 = vmatprep.mubr.msk.f32.mxu0 %vm273_vm0, %v7305_v43  ;;  %v7339_v43 = vld [vmem:[%s12299_s1 + $0x598] sm:$0xff] }
 0x235   :  { %2264 = vmatpush2.msra.mxu0 %v9800_v16  ;;  %7203 = vmatmul.mubr.msk.f32.gmra.mxu1 %vm854_vm2, %v9452_v18  ;;  %v7308_v18 = vld [vmem:[%s12299_s1 + $0x4a0] sm:$0xff] }
 0x236   :  { %2266 = vmatmul.mubr.f32.vlgmr.msra.gmra.mxu0 %v7304_v45  ;;  %1417 = vmatprep.mubr.f32.mxu1 %v12315_v0 }
 0x237   :  { %7353 = vmatprep.mubr.msk.f32.mxu0 %vm273_vm0, %v7307_v46  ;;  %2851 = vmatprep.subr.mxu0 %v12315_v0  ;;  %v7338_v46 = vld [vmem:[%s12299_s1 + $0x590] sm:$0xff] }
 0x238   :  { %2852 = vmatpush1.msra.mxu0 %v9455_v19  ;;  %v7311_v19 = vld [vmem:[%s12299_s1 + $0x4b8] sm:$0xff] }
 0x239   :  { %7204 = vmatmul.mubr.msk.f32.gmra.mxu1 %vm854_vm2, %v9467_v58  ;;  %2853 = vmatprep.subr.mxu0 %v12315_v0  ;;  %v7310_v58 = vld [vmem:[%s12299_s1 + $0x4b0] sm:$0xff] }
 0x23a   :  { %2271 = vmatmul.mubr.f32.gmra.mxu0 %v7306_v50  ;;  %1423 = vmatprep.mubr.f32.mxu1 %v12315_v0 }
 0x23b   :  { %7354 = vmatprep.mubr.msk.f32.mxu0 %vm273_vm0, %v7309_v47  ;;  %2854 = vmatpush1.msra.mxu0 %v9473_v62  ;;  %v7313_v62 = vld [vmem:[%s12299_s1 + $0x4c8] sm:$0xff] }
 0x23c   :  { %2855 = vmatprep.subr.mxu0 %v12315_v0 }
 0x23d   :  { %7205 = vmatmul.mubr.msk.f32.gmra.mxu1 %vm854_vm2, %v9481_v30  ;;  %2856 = vmatpush1.msra.mxu0 %v9498_v3 }
 0x23e   :  { %2276 = vmatmul.mubr.f32.gmra.mxu0 %v7308_v18  ;;  %2857 = vmatprep.subr.mxu0 %v12315_v0  ;;  %v7340_v18 = vld [vmem:[%s12299_s1 + $0x5a0] sm:$0xff] }
 0x23f   :  { %7355 = vmatprep.mubr.msk.f32.mxu0 %vm273_vm0, %v7311_v19  ;;  %2858 = vmatpush1.msra.mxu0 %v9512_v40  ;;  %v7312_v40 = vld [vmem:[%s12299_s1 + $0x4c0] sm:$0xff]  ;;  %v7343_v19 = vld [vmem:[%s12299_s1 + $0x5b8] sm:$0xff] }
 0x240   :  { %2859 = vmatprep.subr.mxu0 %v12315_v0  ;;  %1887 = vmatprep.mubr.f32.mxu1 %v12315_v0 }
 0x241   :  { %v9842_v30 = vpop.f32.mrf.mxu0  ;;  %2860 = vmatpush1.msra.mxu0 %v9528_v9 }
 0x242   :  { %2281 = vmatmul.mubr.f32.gmra.mxu0 %v7310_v58  ;;  %2861 = vmatprep.subr.mxu0 %v12315_v0 }
 0x243   :  { %v9846_v3 = vpop.f32.mrf.mxu0  ;;  %7356 = vmatprep.mubr.msk.f32.mxu0 %vm273_vm0, %v7313_v62  ;;  %2862 = vmatpush1.msra.mxu0 %v9542_v44  ;;  %v7314_v44 = vld [vmem:[%s12299_s1 + $0x4d0] sm:$0xff] }
 0x244   :  { %2863 = vmatprep.subr.mxu0 %v12315_v0 }
 0x245   :  { %v9857_v9 = vpop.f32.mrf.mxu0  ;;  %2864 = vmatpush1.msra.mxu0 %v9556_v12 }
 0x246   :  { %2286 = vmatmul.mubr.f32.gmra.mxu0 %v7312_v40  ;;  %2865 = vmatprep.subr.mxu0 %v12315_v0  ;;  %v7342_v40 = vld [vmem:[%s12299_s1 + $0x5b0] sm:$0xff] }
 0x247   :  { %v9861_v49 = vpop.f32.mrf.mxu0  ;;  %7357 = vmatprep.mubr.msk.f32.mxu0 %vm273_vm0, %v7315_v52  ;;  %2866 = vmatpush1.msra.mxu0 %v9570_v14  ;;  %v7316_v14 = vld [vmem:[%s12299_s1 + $0x4e0] sm:$0xff]  ;;  %v7345_v52 = vld [vmem:[%s12299_s1 + $0x5c8] sm:$0xff] }
 0x248   :  { %2867 = vmatprep.subr.mxu0 %v12315_v0 }
 0x249   :  { %v9873_v12 = vpop.f32.mrf.mxu0  ;;  %2868 = vmatpush1.msra.mxu0 %v9584_v15 }
 0x24a   :  { %2291 = vmatmul.mubr.f32.gmra.mxu0 %v7314_v44  ;;  %2869 = vmatprep.subr.mxu0 %v12315_v0 }
 0x24b   :  { %v9877_v51 = vpop.f32.mrf.mxu0  ;;  %7358 = vmatprep.mubr.msk.f32.mxu0 %vm273_vm0, %v7317_v21  ;;  %2870 = vmatpush1.msra.mxu0 %v9598_v17  ;;  %v7318_v17 = vld [vmem:[%s12299_s1 + $0x4f0] sm:$0xff]  ;;  %v7344_v21 = vld [vmem:[%s12299_s1 + $0x5c0] sm:$0xff] }
 0x24c   :  { %2871 = vmatprep.subr.mxu0 %v12315_v0 }
 0x24d   :  { %v9888_v15 = vpop.f32.mrf.mxu0  ;;  %2872 = vmatpush1.msra.mxu0 %v9612_v54 }
 0x24e   :  { %2296 = vmatmul.mubr.f32.gmra.mxu0 %v7316_v14  ;;  %2873 = vmatprep.subr.mxu0 %v12315_v0  ;;  %v7347_v14 = vld [vmem:[%s12299_s1 + $0x5d8] sm:$0xff] }
 0x24f   :  { %v9892_v53 = vpop.f32.mrf.mxu0  ;;  %7359 = vmatprep.mubr.msk.f32.mxu0 %vm273_vm0, %v7319_v56  ;;  %2874 = vmatpush1.msra.mxu0 %v9626_v22  ;;  %v7320_v22 = vld [vmem:[%s12299_s1 + $0x500] sm:$0xff] }
 0x250   :  { %12319 = vst [vmem:[#allocation28_spill] sm:$0xff] %v9892_v53  ;;  %2875 = vmatprep.subr.mxu0 %v12315_v0 }
 0x251   :  { %v9903_v54 = vpop.f32.mrf.mxu0  ;;  %2876 = vmatpush1.msra.mxu0 %v9640_v23 }
 0x252   :  { %2301 = vmatmul.mubr.f32.gmra.mxu0 %v7318_v17  ;;  %2877 = vmatprep.subr.mxu0 %v12315_v0 }
 0x253   :  { %v9907_v55 = vpop.f32.mrf.mxu0  ;;  %7360 = vmatprep.mubr.msk.f32.mxu0 %vm273_vm0, %v7321_v24  ;;  %2878 = vmatpush1.msra.mxu0 %v9654_v25  ;;  %v7322_v25 = vld [vmem:[%s12299_s1 + $0x510] sm:$0xff] }
 0x254   :  { %12320 = vst [vmem:[#allocation29_spill] sm:$0xff] %v9907_v55  ;;  %2879 = vmatprep.subr.mxu0 %v12315_v0  ;;  %v7346_v24 = vld [vmem:[%s12299_s1 + $0x5d0] sm:$0xff] }
 0x255   :  { %v9918_v23 = vpop.f32.mrf.mxu0  ;;  %2880 = vmatpush1.msra.mxu0 %v9668_v27 }
 0x256   :  { %2306 = vmatmul.mubr.f32.gmra.mxu0 %v7320_v22  ;;  %2881 = vmatprep.subr.mxu0 %v12315_v0  ;;  %v7349_v22 = vld [vmem:[%s12299_s1 + $0x5e8] sm:$0xff] }
 0x257   :  { %v9922_v60 = vpop.f32.mrf.mxu0  ;;  %7361 = vmatprep.mubr.msk.f32.mxu0 %vm273_vm0, %v7323_v26  ;;  %2882 = vmatpush1.msra.mxu0 %v9682_v34 }
 0x258   :  { %12321 = vst [vmem:[#allocation30_spill] sm:$0xff] %v9922_v60  ;;  %2891 = vmatprep.subr.mxu0 %v12315_v0 }
 0x259   :  { %v9933_v27 = vpop.f32.mrf.mxu0  ;;  %2892 = vmatpush2.msra.mxu0 %v9693_v1  ;;  %v7329_v1 = vld [vmem:[%s12299_s1 + $0x548] sm:$0xff] }
 0x25a   :  { %2311 = vmatmul.mubr.f32.gmra.mxu0 %v7322_v25  ;;  %2893 = vmatprep.subr.mxu0 %v12315_v0 }
 0x25b   :  { %v9937_v63 = vpop.f32.mrf.mxu0  ;;  %7362 = vmatprep.mubr.msk.f32.mxu0 %vm273_vm0, %v7325_v57  ;;  %2894 = vmatpush2.msra.mxu0 %v9707_v31  ;;  %v7328_v31 = vld [vmem:[%s12299_s1 + $0x540] sm:$0xff] }
 0x25c   :  { %12322 = vst [vmem:[#allocation31_spill] sm:$0xff] %v9937_v63  ;;  %2895 = vmatprep.subr.mxu0 %v12315_v0  ;;  %v7348_v57 = vld [vmem:[%s12299_s1 + $0x5e0] sm:$0xff] }
 0x25d   :  { %v9948_v32 = vpop.f32.mrf.mxu0  ;;  %2896 = vmatpush2.msra.mxu0 %v9716_v7 }
 0x25e   :  { %2316 = vmatmul.mubr.f32.gmra.mxu0 %v7324_v28  ;;  %2897 = vmatprep.subr.mxu0 %v12315_v0  ;;  %v7351_v28 = vld [vmem:[%s12299_s1 + $0x5f8] sm:$0xff] }
 0x25f   :  { %v9952_v34 = vpop.f32.mrf.mxu0  ;;  %7363 = vmatprep.mubr.msk.f32.mxu0 %vm273_vm0, %v7327_v29  ;;  %2898 = vmatpush2.msra.mxu0 %v9725_v35  ;;  %v7330_v35 = vld [vmem:[%s12299_s1 + $0x550] sm:$0xff] }
 0x260   :  { %12323 = vst [vmem:[#allocation32_spill] sm:$0xff] %v9952_v34  ;;  %2899 = vmatprep.subr.mxu0 %v12315_v0 }
 0x261   :  { %v9963_v36 = vpop.f32.mrf.mxu0  ;;  %2900 = vmatpush2.msra.mxu0 %v9735_v6 }
 0x262   :  { %2321 = vmatmul.mubr.f32.gmra.mxu0 %v7326_v59  ;;  %2901 = vmatprep.subr.mxu0 %v12315_v0 }
 0x263   :  { %v9967_v61 = vpop.f32.mrf.mxu0  ;;  %7364 = vmatprep.mubr.msk.f32.mxu0 %vm273_vm0, %v7329_v1  ;;  %2902 = vmatpush2.msra.mxu0 %v9743_v37  ;;  %v7332_v37 = vld [vmem:[%s12299_s1 + $0x560] sm:$0xff]  ;;  %v7350_v1 = vld [vmem:[%s12299_s1 + $0x5f0] sm:$0xff] }
 0x264   :  { %12324 = vst [vmem:[#allocation33_spill] sm:$0xff] %v9967_v61  ;;  %2903 = vmatprep.subr.mxu0 %v12315_v0  ;;  %v3042_v61 = vld [vmem:[#allocation5 + $0x128] sm:$0xff] }
 0x265   :  { %v9978_v7 = vpop.f32.mrf.mxu0  ;;  %2904 = vmatpush2.msra.mxu0 %v9752_v10 }
 0x266   :  { %2326 = vmatmul.mubr.f32.gmra.mxu0 %v7328_v31  ;;  %2905 = vmatprep.subr.mxu0 %v12315_v0  ;;  %v7403_v31 = vld [vmem:[%s12299_s1 + $0x608] sm:$0xff] }
 0x267   :  { %v9982_v4 = vpop.f32.mrf.mxu0  ;;  %7365 = vmatprep.mubr.msk.f32.mxu0 %vm273_vm0, %v7331_v38  ;;  %2906 = vmatpush2.msra.mxu0 %v9761_v5  ;;  %v7334_v5 = vld [vmem:[%s12299_s1 + $0x570] sm:$0xff] }
 0x268   :  { %12325 = vst [vmem:[#allocation34_spill] sm:$0xff] %v9982_v4  ;;  %2907 = vmatprep.subr.mxu0 %v12315_v0 }
 0x269   :  { %v9993_v6 = vpop.f32.mrf.mxu0  ;;  %2908 = vmatpush2.msra.mxu0 %v9770_v41 }
 0x26a   :  { %2331 = vmatmul.mubr.f32.gmra.mxu0 %v7330_v35  ;;  %2909 = vmatprep.subr.mxu0 %v12315_v0 }
 0x26b   :  { %v9997_v8 = vpop.f32.mrf.mxu0  ;;  %7366 = vmatprep.mubr.msk.f32.mxu0 %vm273_vm0, %v7333_v33  ;;  %2910 = vmatpush2.msra.mxu0 %v9779_v42  ;;  %v7336_v42 = vld [vmem:[%s12299_s1 + $0x580] sm:$0xff] }
 0x26c   :  { %12326 = vst [vmem:[#allocation35_spill] sm:$0xff] %v9997_v8  ;;  %2911 = vmatprep.subr.mxu0 %v12315_v0  ;;  %v7402_v33 = vld [vmem:[%s12299_s1 + $0x600] sm:$0xff] }
 0x26d   :  { %v10008_v10 = vpop.f32.mrf.mxu0  ;;  %2912 = vmatpush2.msra.mxu0 %v9788_v48 }
 0x26e   :  { %2336 = vmatmul.mubr.f32.gmra.mxu0 %v7332_v37  ;;  %2913 = vmatprep.subr.mxu0 %v12315_v0  ;;  %v7405_v37 = vld [vmem:[%s12299_s1 + $0x618] sm:$0xff] }
 0x26f   :  { %v10012_v39 = vpop.f32.mrf.mxu0  ;;  %7367 = vmatprep.mubr.msk.f32.mxu0 %vm273_vm0, %v7335_v2  ;;  %2914 = vmatpush2.msra.mxu0 %v9800_v16  ;;  %v7341_v16 = vld [vmem:[%s12299_s1 + $0x5a8] sm:$0xff] }
 0x270   :  { %12327 = vst [vmem:[#allocation36_spill] sm:$0xff] %v10012_v39 }
 0x271   :  { %v10022_v41 = vpop.f32.mrf.mxu0 }
 0x272   :  { %2341 = vmatmul.mubr.f32.gmra.mxu0 %v7334_v5 }
 0x273   :  { %v10024_v13 = vpop.f32.mrf.mxu0  ;;  %7368 = vmatprep.mubr.msk.f32.mxu0 %vm273_vm0, %v7337_v11  ;;  %v2393_v11 = vld [vmem:[#allocation5 + $0xf0] sm:$0xf] }
 0x274   :  { %12328 = vst [vmem:[#allocation37_spill] sm:$0xff] %v10024_v13 }
 0x275   :  { %v10033_v48 = vpop.f32.mrf.mxu0 }
 0x276   :  { %2346 = vmatmul.mubr.f32.gmra.mxu0 %v7336_v42  ;;  %v2392_v42 = vld [vmem:[#allocation5 + $0xe8] sm:$0xff] }
 0x277   :  { %v10035_v45 = vpop.f32.mrf.mxu0  ;;  %7369 = vmatprep.mubr.msk.f32.mxu0 %vm273_vm0, %v7339_v43 }
 0x278   :  { %12329 = vst [vmem:[#allocation38_spill] sm:$0xff] %v10035_v45  ;;  %v3037_v45 = vld [vmem:[#allocation5 + $0x100] sm:$0xff] }
 0x279   :  { %v10044_v50 = vpop.f32.mrf.mxu0 }
 0x27a   :  { %2351 = vmatmul.mubr.f32.gmra.mxu0 %v7338_v46 }
 0x27b   :  { %v10046_v47 = vpop.f32.mrf.mxu0  ;;  %7370 = vmatprep.mubr.msk.f32.mxu0 %vm273_vm0, %v7341_v16  ;;  %v7404_v16 = vld [vmem:[%s12299_s1 + $0x610] sm:$0xff] }
 0x27c   :  { %12330 = vst [vmem:[#allocation39_spill] sm:$0xff] %v10046_v47 }
 0x27d   :  { %v10055_v58 = vpop.f32.mrf.mxu0 }
 0x27e   :  { %2356 = vmatmul.mubr.f32.gmra.mxu0 %v7340_v18  ;;  %v7407_v18 = vld [vmem:[%s12299_s1 + $0x628] sm:$0xff] }
 0x27f   :  { %v10057_v62 = vpop.f32.mrf.mxu0  ;;  %7371 = vmatprep.mubr.msk.f32.mxu0 %vm273_vm0, %v7343_v19 }
 0x280   :  { %12331 = vst [vmem:[#allocation40_spill] sm:$0xff] %v10057_v62 }
 0x281   :  { %v10066_v20 = vpop.f32.mrf.mxu0 }
 0x282   :  { %2361 = vmatmul.mubr.f32.gmra.mxu0 %v7342_v40 }
 0x283   :  { %v10068_v44 = vpop.f32.mrf.mxu0  ;;  %7372 = vmatprep.mubr.msk.f32.mxu0 %vm273_vm0, %v7345_v52  ;;  %v2391_v52 = vld [vmem:[#allocation5 + $0xe0] sm:$0xff] }
 0x284   :  { %12332 = vst [vmem:[#allocation41_spill] sm:$0xff] %v10068_v44 }
 0x285   :  { %v10077_v56 = vpop.f32.mrf.mxu0 }
 0x286   :  { %2366 = vmatmul.mubr.f32.gmra.mxu0 %v7344_v21  ;;  %v2390_v21 = vld [vmem:[#allocation5 + $0xd8] sm:$0xff] }
 0x287   :  { %v10079_v17 = vpop.f32.mrf.mxu0  ;;  %7373 = vmatprep.mubr.msk.f32.mxu0 %vm273_vm0, %v7347_v14 }
 0x288   :  { %12333 = vst [vmem:[#allocation42_spill] sm:$0xff] %v10079_v17 }
 0x289   :  { %v10088_v26 = vpop.f32.mrf.mxu0 }
 0x28a   :  { %2371 = vmatmul.mubr.f32.gmra.mxu0 %v7346_v24 }
 0x28b   :  { %v10090_v25 = vpop.f32.mrf.mxu0  ;;  %7374 = vmatprep.mubr.msk.f32.mxu0 %vm273_vm0, %v7349_v22  ;;  %v7406_v22 = vld [vmem:[%s12299_s1 + $0x620] sm:$0xff] }
 0x28c   :  { %12334 = vst [vmem:[#allocation43_spill] sm:$0xff] %v10090_v25 }
 0x28d   :  { %v10099_v29 = vpop.f32.mrf.mxu0 }
 0x28e   :  { %2376 = vmatmul.mubr.f32.gmra.mxu0 %v7348_v57  ;;  %v7409_v57 = vld [vmem:[%s12299_s1 + $0x638] sm:$0xff] }
 0x28f   :  { %v10101_v59 = vpop.f32.mrf.mxu0  ;;  %7375 = vmatprep.mubr.msk.f32.mxu0 %vm273_vm0, %v7351_v28 }
 0x290   :  { %12335 = vst [vmem:[#allocation44_spill] sm:$0xff] %v10101_v59 }
 0x291   :  { %v10110_v38 = vpop.f32.mrf.mxu0 }
 0x292   :  { %2381 = vmatmul.mubr.f32.gmra.mxu0 %v7350_v1 }
 0x293   :  { %v10112_v35 = vpop.f32.mrf.mxu0  ;;  %7450 = vmatprep.mubr.msk.f32.mxu0 %vm273_vm0, %v7403_v31  ;;  %v2389_v31 = vld [vmem:[#allocation5 + $0xd0] sm:$0xff] }
 0x294   :  { %12336 = vst [vmem:[#allocation45_spill] sm:$0xff] %v10112_v35 }
 0x295   :  { %v10121_v2 = vpop.f32.mrf.mxu1  ;;  %v1617_v5 = vpop.f32.mrf.mxu0 }
 0x296   :  { %2916 = vmatmul.mubr.f32.vlgmr.msra.gmra.mxu0 %v7402_v33  ;;  %7280 = vmatmul.mubr.msk.f32.vlgmr.msra.gmra.mxu1 %vm854_vm2, %v1617_v5  ;;  %v2388_v33 = vld [vmem:[#allocation5 + $0xc8] sm:$0xff] }
 0x297   :  { %v10124_v43 = vpop.f32.mrf.mxu1  ;;  %v1619_v46 = vpop.f32.mrf.mxu0  ;;  %7451 = vmatprep.mubr.msk.f32.mxu0 %vm273_vm0, %v7405_v37  ;;  %1893 = vmatprep.mubr.f32.mxu1 %v12315_v0 }
 0x298   :  { %12337 = vst [vmem:[#allocation46_spill] sm:$0xff] %v10124_v43  ;;  %7377 = vmatpush1.msk.msra.mxu1 %vm927_vm1, %v2393_v11  ;;  %v7408_v11 = vld [vmem:[%s12299_s1 + $0x630] sm:$0xff] }
 0x299   :  { %v10135_v19 = vpop.f32.mrf.mxu1  ;;  %v1622_v40 = vpop.f32.mrf.mxu0  ;;  %2499 = vmatprep.subr.mxu1 %v2392_v42  ;;  %v7411_v42 = vld [vmem:[%s12299_s1 + $0x648] sm:$0xff] }
 0x29a   :  { %2921 = vmatmul.mubr.f32.gmra.mxu0 %v7404_v16  ;;  %7281 = vmatmul.mubr.msk.f32.gmra.mxu1 %vm854_vm2, %v1622_v40 }
 0x29b   :  { %v10138_v14 = vpop.f32.mrf.mxu1  ;;  %v1624_v24 = vpop.f32.mrf.mxu0  ;;  %7452 = vmatprep.mubr.msk.f32.mxu0 %vm273_vm0, %v7407_v18  ;;  %1899 = vmatprep.mubr.f32.mxu1 %v12315_v0  ;;  %v2387_v18 = vld [vmem:[#allocation5 + $0xc0] sm:$0xff] }
 0x29c   :  { %12338 = vst [vmem:[#allocation47_spill] sm:$0xff] %v10138_v14  ;;  %2500 = vmatpush1.msra.mxu1 %v2391_v52  ;;  %v7413_v24 = vld [vmem:[%s12299_s1 + $0x658] sm:$0xff] }
 0x29d   :  { %v10148_v28 = vpop.f32.mrf.mxu1  ;;  %v1627_v1 = vpop.f32.mrf.mxu0  ;;  %2501 = vmatprep.subr.mxu1 %v2390_v21  ;;  %v7410_v21 = vld [vmem:[%s12299_s1 + $0x640] sm:$0xff] }
 0x29e   :  { %2926 = vmatmul.mubr.f32.gmra.mxu0 %v7406_v22  ;;  %7282 = vmatmul.mubr.msk.f32.gmra.mxu1 %vm854_vm2, %v1627_v1 }
 0x29f   :  { %v10151_v37 = vpop.f32.mrf.mxu1  ;;  %v1629_v5 = vpop.f32.mrf.mxu0  ;;  %7453 = vmatprep.mubr.msk.f32.mxu0 %vm273_vm0, %v7409_v57  ;;  %1905 = vmatprep.mubr.f32.mxu1 %v12315_v0 }
 0x2a0   :  { %12339 = vst [vmem:[#allocation48_spill] sm:$0xff] %v10151_v37  ;;  %2502 = vmatpush1.msra.mxu1 %v2389_v31  ;;  %v3044_v5 = vld [vmem:[#allocation5 + $0x138] sm:$0xf] }
 0x2a1   :  { %v10161_v46 = vpop.f32.mrf.mxu1  ;;  %v1632_v16 = vpop.f32.mrf.mxu0  ;;  %2503 = vmatprep.subr.mxu1 %v2388_v33  ;;  %v7412_v33 = vld [vmem:[%s12299_s1 + $0x650] sm:$0xff] }
 0x2a2   :  { %2931 = vmatmul.mubr.f32.gmra.mxu0 %v7408_v11  ;;  %7283 = vmatmul.mubr.msk.f32.gmra.mxu1 %vm854_vm2, %v1632_v16  ;;  %v7415_v11 = vld [vmem:[%s12299_s1 + $0x668] sm:$0xff] }
 0x2a3   :  { %v10164_v40 = vpop.f32.mrf.mxu1  ;;  %v1634_v52 = vpop.f32.mrf.mxu0  ;;  %7454 = vmatprep.mubr.msk.f32.mxu0 %vm273_vm0, %v7411_v42  ;;  %1911 = vmatprep.mubr.f32.mxu1 %v12315_v0 }
 0x2a4   :  { %2504 = vmatpush1.msra.mxu1 %v2387_v18  ;;  %v7414_v52 = vld [vmem:[%s12299_s1 + $0x660] sm:$0xff] }
 0x2a5   :  { %v10174_v22 = vpop.f32.mrf.mxu1  ;;  %v1637_v57 = vpop.f32.mrf.mxu0  ;;  %7474 = vmatprep.subr.msk.mxu1 %vm927_vm1, %v3044_v5 }
 0x2a6   :  { %2936 = vmatmul.mubr.f32.gmra.mxu0 %v7410_v21  ;;  %7284 = vmatmul.mubr.msk.f32.gmra.mxu1 %vm854_vm2, %v1637_v57 }
 0x2a7   :  { %v10177_v1 = vpop.f32.mrf.mxu1  ;;  %v1639_v31 = vpop.f32.mrf.mxu0  ;;  %7455 = vmatprep.mubr.msk.f32.mxu0 %vm273_vm0, %v7413_v24  ;;  %1917 = vmatprep.mubr.f32.mxu1 %v12315_v0  ;;  %v7417_v24 = vld [vmem:[%s12299_s1 + $0x678] sm:$0xff] }
 0x2a9   :  { %v10188_v42 = vpop.f32.mrf.mxu1  ;;  %v1642_v16 = vpop.f32.mrf.mxu0 }
 0x2aa   :  { %2941 = vmatmul.mubr.f32.gmra.mxu0 %v7412_v33  ;;  %7285 = vmatmul.mubr.msk.f32.gmra.mxu1 %vm854_vm2, %v1642_v16  ;;  %v7416_v33 = vld [vmem:[%s12299_s1 + $0x670] sm:$0xff] }
 0x2ab   :  { %v1644_v18 = vpop.f32.mrf.mxu0  ;;  %7456 = vmatprep.mubr.msk.f32.mxu0 %vm273_vm0, %v7415_v11  ;;  %1923 = vmatprep.mubr.f32.mxu1 %v12315_v0  ;;  %v10196_v21 = vpop.f32.mrf.mxu1  ;;  %v7419_v11 = vld [vmem:[%s12299_s1 + $0x688] sm:$0xff] }
 0x2ac   :  { %12340 = vst [vmem:[#allocation49_spill] sm:$0xff] %v10196_v21 }
 0x2ad   :  { %v1647_v57 = vpop.f32.mrf.mxu0  ;;  %v10207_v5 = vpop.f32.mrf.mxu1 }
 0x2ae   :  { %2946 = vmatmul.mubr.f32.gmra.mxu0 %v7414_v52  ;;  %7286 = vmatmul.mubr.msk.f32.gmra.mxu1 %vm854_vm2, %v1647_v57  ;;  %v7418_v52 = vld [vmem:[%s12299_s1 + $0x680] sm:$0xff]  ;;  %v7421_v57 = vld [vmem:[%s12299_s1 + $0x698] sm:$0xff] }
 0x2af   :  { %v1649_v31 = vpop.f32.mrf.mxu0  ;;  %7457 = vmatprep.mubr.msk.f32.mxu0 %vm273_vm0, %v7417_v24  ;;  %1929 = vmatprep.mubr.f32.mxu1 %v12315_v0  ;;  %v10218_v24 = vpop.f32.mrf.mxu1 }
 0x2b0   :  { %12341 = vst [vmem:[#allocation50_spill] sm:$0xff] %v10218_v24 }
 0x2b1   :  { %v1652_v16 = vpop.f32.mrf.mxu0 }
 0x2b2   :  { %2951 = vmatmul.mubr.f32.gmra.mxu0 %v7416_v33  ;;  %7287 = vmatmul.mubr.msk.f32.gmra.mxu1 %vm854_vm2, %v1652_v16  ;;  %v10229_v16 = vpop.f32.mrf.mxu1 }
 0x2b3   :  { %v1654_v18 = vpop.f32.mrf.mxu0  ;;  %7458 = vmatprep.mubr.msk.f32.mxu0 %vm273_vm0, %v7419_v11  ;;  %1935 = vmatprep.mubr.f32.mxu1 %v12315_v0  ;;  %v7420_v11 = vld [vmem:[%s12299_s1 + $0x690] sm:$0xff] }
 0x2b4   :  { %v7423_v18 = vld [vmem:[%s12299_s1 + $0x6a8] sm:$0xff] }
 0x2b5   :  { %v1657_v31 = vpop.f32.mrf.mxu0 }
 0x2b6   :  { %2956 = vmatmul.mubr.f32.gmra.mxu0 %v7418_v52  ;;  %7288 = vmatmul.mubr.msk.f32.gmra.mxu1 %vm854_vm2, %v1657_v31  ;;  %v10240_v31 = vpop.f32.mrf.mxu1 }
 0x2b7   :  { %v1659_v33 = vpop.f32.mrf.mxu0  ;;  %7459 = vmatprep.mubr.msk.f32.mxu0 %vm273_vm0, %v7421_v57  ;;  %1941 = vmatprep.mubr.f32.mxu1 %v12315_v0  ;;  %v7422_v57 = vld [vmem:[%s12299_s1 + $0x6a0] sm:$0xff]  ;;  %12342 = vst [vmem:[#allocation51_spill] sm:$0xff] %v10240_v31 }
 0x2b8   :  { %v7425_v33 = vld [vmem:[%s12299_s1 + $0x6b8] sm:$0xff] }
 0x2b9   :  { %v1662_v43 = vpop.f32.mrf.mxu0 }
 0x2ba   :  { %2961 = vmatmul.mubr.f32.gmra.mxu0 %v7420_v11  ;;  %7289 = vmatmul.mubr.msk.f32.gmra.mxu1 %vm854_vm2, %v1662_v43  ;;  %v7424_v11 = vld [vmem:[%s12299_s1 + $0x6b0] sm:$0xff] }
 0x2bb   :  { %v1664_v52 = vpop.f32.mrf.mxu0  ;;  %7460 = vmatprep.mubr.msk.f32.mxu0 %vm273_vm0, %v7423_v18  ;;  %1947 = vmatprep.mubr.f32.mxu1 %v12315_v0  ;;  %v10251_v18 = vpop.f32.mrf.mxu1 }
 0x2bc   :  { %v7427_v52 = vld [vmem:[%s12299_s1 + $0x6c8] sm:$0xff] }
 0x2bd   :  { %v1667_v37 = vpop.f32.mrf.mxu0 }
 0x2be   :  { %2966 = vmatmul.mubr.f32.gmra.mxu0 %v7422_v57  ;;  %7290 = vmatmul.mubr.msk.f32.gmra.mxu1 %vm854_vm2, %v1667_v37  ;;  %v7426_v57 = vld [vmem:[%s12299_s1 + $0x6c0] sm:$0xff] }
 0x2bf   :  { %v1669_v43 = vpop.f32.mrf.mxu0  ;;  %7461 = vmatprep.mubr.msk.f32.mxu0 %vm273_vm0, %v7425_v33  ;;  %1953 = vmatprep.mubr.f32.mxu1 %v12315_v0  ;;  %v10262_v33 = vpop.f32.mrf.mxu1 }
 0x2c0   :  { %12343 = vst [vmem:[#allocation52_spill] sm:$0xff] %v10262_v33  ;;  %v7429_v43 = vld [vmem:[%s12299_s1 + $0x6d8] sm:$0xff] }
 0x2c1   :  { %v1672_v14 = vpop.f32.mrf.mxu0 }
 0x2c2   :  { %2971 = vmatmul.mubr.f32.gmra.mxu0 %v7424_v11  ;;  %7291 = vmatmul.mubr.msk.f32.gmra.mxu1 %vm854_vm2, %v1672_v14  ;;  %v7428_v11 = vld [vmem:[%s12299_s1 + $0x6d0] sm:$0xff] }
 0x2c3   :  { %v1674_v37 = vpop.f32.mrf.mxu0  ;;  %7462 = vmatprep.mubr.msk.f32.mxu0 %vm273_vm0, %v7427_v52  ;;  %1959 = vmatprep.mubr.f32.mxu1 %v12315_v0  ;;  %v10273_v52 = vpop.f32.mrf.mxu1 }
 0x2c4   :  { %v7431_v37 = vld [vmem:[%s12299_s1 + $0x6e8] sm:$0xff] }
 0x2c5   :  { %v1677_v35 = vpop.f32.mrf.mxu0 }
 0x2c6   :  { %2976 = vmatmul.mubr.f32.gmra.mxu0 %v7426_v57  ;;  %7292 = vmatmul.mubr.msk.f32.gmra.mxu1 %vm854_vm2, %v1677_v35  ;;  %v7430_v57 = vld [vmem:[%s12299_s1 + $0x6e0] sm:$0xff] }
 0x2c7   :  { %v1679_v14 = vpop.f32.mrf.mxu0  ;;  %7463 = vmatprep.mubr.msk.f32.mxu0 %vm273_vm0, %v7429_v43  ;;  %1965 = vmatprep.mubr.f32.mxu1 %v12315_v0  ;;  %v10284_v43 = vpop.f32.mrf.mxu1 }
 0x2c8   :  { %12344 = vst [vmem:[#allocation53_spill] sm:$0xff] %v10284_v43  ;;  %v7433_v14 = vld [vmem:[%s12299_s1 + $0x6f8] sm:$0xff] }
 0x2c9   :  { %v1682_v59 = vpop.f32.mrf.mxu0 }
 0x2ca   :  { %2981 = vmatmul.mubr.f32.gmra.mxu0 %v7428_v11  ;;  %7293 = vmatmul.mubr.msk.f32.gmra.mxu1 %vm854_vm2, %v1682_v59  ;;  %v7432_v11 = vld [vmem:[%s12299_s1 + $0x6f0] sm:$0xff] }
 0x2cb   :  { %v1684_v35 = vpop.f32.mrf.mxu0  ;;  %7464 = vmatprep.mubr.msk.f32.mxu0 %vm273_vm0, %v7431_v37  ;;  %1971 = vmatprep.mubr.f32.mxu1 %v12315_v0  ;;  %v10295_v37 = vpop.f32.mrf.mxu1 }
 0x2cc   :  { %v7435_v35 = vld [vmem:[%s12299_s1 + $0x708] sm:$0xff] }
 0x2cd   :  { %v1687_v25 = vpop.f32.mrf.mxu0 }
 0x2ce   :  { %2986 = vmatmul.mubr.f32.gmra.mxu0 %v7430_v57  ;;  %7294 = vmatmul.mubr.msk.f32.gmra.mxu1 %vm854_vm2, %v1687_v25  ;;  %v7434_v57 = vld [vmem:[%s12299_s1 + $0x700] sm:$0xff] }
 0x2cf   :  { %v1689_v59 = vpop.f32.mrf.mxu0  ;;  %7465 = vmatprep.mubr.msk.f32.mxu0 %vm273_vm0, %v7433_v14  ;;  %1977 = vmatprep.mubr.f32.mxu1 %v12315_v0  ;;  %v10306_v14 = vpop.f32.mrf.mxu1 }
 0x2d0   :  { %12345 = vst [vmem:[#allocation54_spill] sm:$0xff] %v10306_v14  ;;  %v7437_v59 = vld [vmem:[%s12299_s1 + $0x718] sm:$0xff]  ;;  %v3041_v14 = vld [vmem:[#allocation5 + $0x120] sm:$0xff] }
 0x2d1   :  { %v1692_v17 = vpop.f32.mrf.mxu0 }
 0x2d2   :  { %2991 = vmatmul.mubr.f32.gmra.mxu0 %v7432_v11  ;;  %7295 = vmatmul.mubr.msk.f32.gmra.mxu1 %vm854_vm2, %v1692_v17  ;;  %v7436_v11 = vld [vmem:[%s12299_s1 + $0x710] sm:$0xff] }
 0x2d3   :  { %v1694_v25 = vpop.f32.mrf.mxu0  ;;  %7466 = vmatprep.mubr.msk.f32.mxu0 %vm273_vm0, %v7435_v35  ;;  %1983 = vmatprep.mubr.f32.mxu1 %v12315_v0  ;;  %v10317_v35 = vpop.f32.mrf.mxu1 }
 0x2d4   :  { %v7439_v25 = vld [vmem:[%s12299_s1 + $0x728] sm:$0xff] }
 0x2d5   :  { %v1697_v44 = vpop.f32.mrf.mxu0 }
 0x2d6   :  { %2996 = vmatmul.mubr.f32.gmra.mxu0 %v7434_v57  ;;  %7296 = vmatmul.mubr.msk.f32.gmra.mxu1 %vm854_vm2, %v1697_v44  ;;  %v7438_v57 = vld [vmem:[%s12299_s1 + $0x720] sm:$0xff] }
 0x2d7   :  { %v1699_v17 = vpop.f32.mrf.mxu0  ;;  %7467 = vmatprep.mubr.msk.f32.mxu0 %vm273_vm0, %v7437_v59  ;;  %1989 = vmatprep.mubr.f32.mxu1 %v12315_v0  ;;  %v10328_v59 = vpop.f32.mrf.mxu1 }
 0x2d8   :  { %12346 = vst [vmem:[#allocation55_spill] sm:$0xff] %v10328_v59  ;;  %v7441_v17 = vld [vmem:[%s12299_s1 + $0x738] sm:$0xff] }
 0x2d9   :  { %v1702_v39 = vpop.f32.mrf.mxu0 }
 0x2da   :  { %3001 = vmatmul.mubr.f32.gmra.mxu0 %v7436_v11  ;;  %7297 = vmatmul.mubr.msk.f32.gmra.mxu1 %vm854_vm2, %v1702_v39  ;;  %v7440_v11 = vld [vmem:[%s12299_s1 + $0x730] sm:$0xff] }
 0x2db   :  { %v1704_v44 = vpop.f32.mrf.mxu0  ;;  %7468 = vmatprep.mubr.msk.f32.mxu0 %vm273_vm0, %v7439_v25  ;;  %1995 = vmatprep.mubr.f32.mxu1 %v12315_v0  ;;  %v10339_v25 = vpop.f32.mrf.mxu1 }
 0x2dc   :  { %v7443_v44 = vld [vmem:[%s12299_s1 + $0x748] sm:$0xff] }
 0x2dd   :  { %v1707_v8 = vpop.f32.mrf.mxu0 }
 0x2de   :  { %3006 = vmatmul.mubr.f32.gmra.mxu0 %v7438_v57  ;;  %7298 = vmatmul.mubr.msk.f32.gmra.mxu1 %vm854_vm2, %v1707_v8  ;;  %v7442_v57 = vld [vmem:[%s12299_s1 + $0x740] sm:$0xff] }
 0x2df   :  { %v1709_v39 = vpop.f32.mrf.mxu0  ;;  %7469 = vmatprep.mubr.msk.f32.mxu0 %vm273_vm0, %v7441_v17  ;;  %2001 = vmatprep.mubr.f32.mxu1 %v12315_v0  ;;  %v10350_v17 = vpop.f32.mrf.mxu1 }
 0x2e0   :  { %12347 = vst [vmem:[#allocation56_spill] sm:$0xff] %v10350_v17  ;;  %v7445_v39 = vld [vmem:[%s12299_s1 + $0x758] sm:$0xff] }
 0x2e1   :  { %v1712_v4 = vpop.f32.mrf.mxu0 }
 0x2e2   :  { %3011 = vmatmul.mubr.f32.gmra.mxu0 %v7440_v11  ;;  %7299 = vmatmul.mubr.msk.f32.gmra.mxu1 %vm854_vm2, %v1712_v4  ;;  %v7444_v11 = vld [vmem:[%s12299_s1 + $0x750] sm:$0xff] }
 0x2e3   :  { %v1714_v8 = vpop.f32.mrf.mxu0  ;;  %7470 = vmatprep.mubr.msk.f32.mxu0 %vm273_vm0, %v7443_v44  ;;  %2007 = vmatprep.mubr.f32.mxu1 %v12315_v0  ;;  %v10361_v44 = vpop.f32.mrf.mxu1 }
 0x2e4   :  { %v7447_v8 = vld [vmem:[%s12299_s1 + $0x768] sm:$0xff] }
 0x2e5   :  { %v1717_v13 = vpop.f32.mrf.mxu0 }
 0x2e6   :  { %3016 = vmatmul.mubr.f32.gmra.mxu0 %v7442_v57  ;;  %7300 = vmatmul.mubr.msk.f32.gmra.mxu1 %vm854_vm2, %v1717_v13  ;;  %v7446_v13 = vld [vmem:[%s12299_s1 + $0x760] sm:$0xff]  ;;  %v10371_v57 = vpop.f32.mrf.mxu1 }
 0x2e7   :  { %v1719_v4 = vpop.f32.mrf.mxu0  ;;  %7471 = vmatprep.mubr.msk.f32.mxu0 %vm273_vm0, %v7445_v39  ;;  %2013 = vmatprep.mubr.f32.mxu1 %v12315_v0  ;;  %12348 = vst [vmem:[#allocation57_spill] sm:$0xff] %v10371_v57 }
 0x2e8   :  { %v7449_v4 = vld [vmem:[%s12299_s1 + $0x778] sm:$0xff] }
 0x2ea   :  { %v1722_v17 = vpop.f32.mrf.mxu0  ;;  %3021 = vmatmul.mubr.f32.gmra.mxu0 %v7444_v11  ;;  %v10382_v11 = vpop.f32.mrf.mxu1 }
 0x2eb   :  { %7301 = vmatmul.mubr.msk.f32.gmra.mxu1 %vm854_vm2, %v1722_v17  ;;  %7472 = vmatprep.mubr.msk.f32.mxu0 %vm273_vm0, %v7447_v8  ;;  %v7448_v17 = vld [vmem:[%s12299_s1 + $0x770] sm:$0xff] }
 0x2ec   :  { %v1724_v39 = vpop.f32.mrf.mxu0  ;;  %2019 = vmatprep.mubr.f32.mxu1 %v12315_v0  ;;  %v10386_v57 = vpop.f32.mrf.mxu1 }
 0x2ed   :  { %12349 = vst [vmem:[#allocation58_spill] sm:$0xff] %v10386_v57 }
 0x2ee   :  { %v1727_v59 = vpop.f32.mrf.mxu0  ;;  %3026 = vmatmul.mubr.f32.gmra.mxu0 %v7446_v13  ;;  %v10390_v34 = vpop.f32.mrf.mxu1 }
 0x2ef   :  { %7302 = vmatmul.mubr.msk.f32.gmra.mxu1 %vm854_vm2, %v1727_v59  ;;  %7473 = vmatprep.mubr.msk.f32.mxu0 %vm273_vm0, %v7449_v4  ;;  %v3043_v59 = vld [vmem:[#allocation5 + $0x130] sm:$0xf] }
 0x2f0   :  { %v1729_v8 = vpop.f32.mrf.mxu0  ;;  %2025 = vmatprep.mubr.f32.mxu1 %v12315_v0  ;;  %v10395_v43 = vpop.f32.mrf.mxu1 }
 0x2f1   :  { %12350 = vst [vmem:[#allocation59_spill] sm:$0xff] %v10395_v43 }
 0x2f2   :  { %v1732_v39 = vpop.f32.mrf.mxu0  ;;  %3031 = vmatmul.mubr.f32.gmra.mxu0 %v7448_v17  ;;  %v3040_v17 = vld [vmem:[#allocation5 + $0x118] sm:$0xff] }
 0x2f3   :  { %7303 = vmatmul.mubr.msk.f32.gmra.mxu1 %vm854_vm2, %v1732_v39  ;;  %v3039_v39 = vld [vmem:[#allocation5 + $0x110] sm:$0xff] }
 0x2f4   :  { %v1734_v13 = vpop.f32.mrf.mxu0  ;;  %2537 = vmatprep.mubr.f32.mxu1 %v12315_v0 }
 0x2f5   :  { %v3038_v13 = vld [vmem:[#allocation5 + $0x108] sm:$0xff] }
 0x2f6   :  { %v2267_v4 = vpop.f32.mrf.mxu0 }
 0x2f7   :  { %7378 = vmatmul.mubr.msk.f32.vlgmr.msra.gmra.mxu1 %vm854_vm2, %v2267_v4 }
 0x2f8   :  { %v2269_v8 = vpop.f32.mrf.mxu0  ;;  %2543 = vmatprep.mubr.f32.mxu1 %v12315_v0  ;;  %7475 = vmatpush1.msk.msra.mxu1 %vm927_vm1, %v3043_v59 }
 0x2f9   :  { %3149 = vmatprep.subr.mxu1 %v3042_v61  ;;  %v10399_v61 = vpop.f32.mrf.mxu1 }
 0x2fa   :  { %v2272_v57 = vpop.f32.mrf.mxu0  ;;  %3150 = vmatpush1.msra.mxu1 %v3041_v14 }
 0x2fb   :  { %7379 = vmatmul.mubr.msk.f32.gmra.mxu1 %vm854_vm2, %v2272_v57  ;;  %3151 = vmatprep.subr.mxu1 %v3040_v17  ;;  %v10403_v57 = vpop.f32.mrf.mxu1 }
 0x2fc   :  { %v2274_v4 = vpop.f32.mrf.mxu0  ;;  %2549 = vmatprep.mubr.f32.mxu1 %v12315_v0  ;;  %3152 = vmatpush1.msra.mxu1 %v3039_v39  ;;  %12351 = vst [vmem:[#allocation60_spill] sm:$0xff] %v10403_v57 }
 0x2fd   :  { %3153 = vmatprep.subr.mxu1 %v3038_v13  ;;  %v10407_v39 = vpop.f32.mrf.mxu1 }
 0x2fe   :  { %v2277_v8 = vpop.f32.mrf.mxu0  ;;  %3154 = vmatpush1.msra.mxu1 %v3037_v45 }
 0x2ff   :  { %7380 = vmatmul.mubr.msk.f32.gmra.mxu1 %vm854_vm2, %v2277_v8  ;;  %v10411_v8 = vpop.f32.mrf.mxu1 }
 0x300   :  { %v2279_v59 = vpop.f32.mrf.mxu0  ;;  %2555 = vmatprep.mubr.f32.mxu1 %v12315_v0  ;;  %12352 = vst [vmem:[#allocation61_spill] sm:$0xff] %v10411_v8 }
 0x302   :  { %v2282_v14 = vpop.f32.mrf.mxu0 }
 0x303   :  { %7381 = vmatmul.mubr.msk.f32.gmra.mxu1 %vm854_vm2, %v2282_v14 }
 0x304   :  { %v2284_v17 = vpop.f32.mrf.mxu0  ;;  %2561 = vmatprep.mubr.f32.mxu1 %v12315_v0 }
 0x305   :  { %v10415_v17 = vpop.f32.mrf.mxu1 }
 0x306   :  { %v2287_v4 = vpop.f32.mrf.mxu0 }
 0x307   :  { %7382 = vmatmul.mubr.msk.f32.gmra.mxu1 %vm854_vm2, %v2287_v4 }
 0x308   :  { %v2289_v45 = vpop.f32.mrf.mxu0  ;;  %2567 = vmatprep.mubr.f32.mxu1 %v12315_v0 }
 0x309   :  { %v10419_v45 = vpop.f32.mrf.mxu1 }
 0x30a   :  { %v2292_v13 = vpop.f32.mrf.mxu0  ;;  %12353 = vst [vmem:[#allocation62_spill] sm:$0xff] %v10419_v45 }
 0x30b   :  { %7383 = vmatmul.mubr.msk.f32.gmra.mxu1 %vm854_vm2, %v2292_v13 }
 0x30c   :  { %v2294_v59 = vpop.f32.mrf.mxu0  ;;  %2573 = vmatprep.mubr.f32.mxu1 %v12315_v0 }
 0x30d   :  { %v10423_v59 = vpop.f32.mrf.mxu1 }
 0x30e   :  { %v2297_v14 = vpop.f32.mrf.mxu0 }
 0x30f   :  { %7384 = vmatmul.mubr.msk.f32.gmra.mxu1 %vm854_vm2, %v2297_v14 }
 0x310   :  { %v2299_v43 = vpop.f32.mrf.mxu0  ;;  %2579 = vmatprep.mubr.f32.mxu1 %v12315_v0 }
 0x311   :  { %v10427_v43 = vpop.f32.mrf.mxu1 }
 0x312   :  { %v2302_v4 = vpop.f32.mrf.mxu0  ;;  %12354 = vst [vmem:[#allocation63_spill] sm:$0xff] %v10427_v43 }
 0x313   :  { %7385 = vmatmul.mubr.msk.f32.gmra.mxu1 %vm854_vm2, %v2302_v4 }
 0x314   :  { %v2304_v57 = vpop.f32.mrf.mxu0  ;;  %2585 = vmatprep.mubr.f32.mxu1 %v12315_v0 }
 0x315   :  { %v10431_v57 = vpop.f32.mrf.mxu1 }
 0x316   :  { %v2307_v13 = vpop.f32.mrf.mxu0 }
 0x317   :  { %7386 = vmatmul.mubr.msk.f32.gmra.mxu1 %vm854_vm2, %v2307_v13 }
 0x318   :  { %v2309_v63 = vpop.f32.mrf.mxu0  ;;  %2591 = vmatprep.mubr.f32.mxu1 %v12315_v0 }
 0x319   :  { %v10435_v63 = vpop.f32.mrf.mxu1 }
 0x31a   :  { %v2312_v14 = vpop.f32.mrf.mxu0  ;;  %12355 = vst [vmem:[#allocation64_spill] sm:$0xff] %v10435_v63 }
 0x31b   :  { %7387 = vmatmul.mubr.msk.f32.gmra.mxu1 %vm854_vm2, %v2312_v14 }
 0x31c   :  { %v2314_v33 = vpop.f32.mrf.mxu0  ;;  %2597 = vmatprep.mubr.f32.mxu1 %v12315_v0 }
 0x31d   :  { %v10439_v33 = vpop.f32.mrf.mxu1 }
 0x31e   :  { %v2317_v4 = vpop.f32.mrf.mxu0 }
 0x31f   :  { %7388 = vmatmul.mubr.msk.f32.gmra.mxu1 %vm854_vm2, %v2317_v4 }
 0x320   :  { %v2319_v60 = vpop.f32.mrf.mxu0  ;;  %2603 = vmatprep.mubr.f32.mxu1 %v12315_v0 }
 0x321   :  { %v10443_v60 = vpop.f32.mrf.mxu1 }
 0x322   :  { %v2322_v13 = vpop.f32.mrf.mxu0  ;;  %12356 = vst [vmem:[#allocation65_spill] sm:$0xff] %v10443_v60 }
 0x323   :  { %7389 = vmatmul.mubr.msk.f32.gmra.mxu1 %vm854_vm2, %v2322_v13 }
 0x324   :  { %v2324_v31 = vpop.f32.mrf.mxu0  ;;  %2609 = vmatprep.mubr.f32.mxu1 %v12315_v0 }
 0x325   :  { %v10447_v31 = vpop.f32.mrf.mxu1 }
 0x326   :  { %v2327_v14 = vpop.f32.mrf.mxu0 }
 0x327   :  { %7390 = vmatmul.mubr.msk.f32.gmra.mxu1 %vm854_vm2, %v2327_v14 }
 0x328   :  { %v2329_v43 = vpop.f32.mrf.mxu0  ;;  %2615 = vmatprep.mubr.f32.mxu1 %v12315_v0 }
 0x329   :  { %v10451_v43 = vpop.f32.mrf.mxu1 }
 0x32a   :  { %v2332_v4 = vpop.f32.mrf.mxu0  ;;  %12357 = vst [vmem:[#allocation66_spill] sm:$0xff] %v10451_v43 }
 0x32b   :  { %7391 = vmatmul.mubr.msk.f32.gmra.mxu1 %vm854_vm2, %v2332_v4 }
 0x32c   :  { %v2334_v55 = vpop.f32.mrf.mxu0  ;;  %2621 = vmatprep.mubr.f32.mxu1 %v12315_v0 }
 0x32d   :  { %v10455_v55 = vpop.f32.mrf.mxu1 }
 0x32e   :  { %v2337_v13 = vpop.f32.mrf.mxu0 }
 0x32f   :  { %7392 = vmatmul.mubr.msk.f32.gmra.mxu1 %vm854_vm2, %v2337_v13 }
 0x330   :  { %v2339_v63 = vpop.f32.mrf.mxu0  ;;  %2627 = vmatprep.mubr.f32.mxu1 %v12315_v0 }
 0x331   :  { %v10459_v63 = vpop.f32.mrf.mxu1 }
 0x332   :  { %v2342_v14 = vpop.f32.mrf.mxu0  ;;  %12358 = vst [vmem:[#allocation67_spill] sm:$0xff] %v10459_v63 }
 0x333   :  { %7393 = vmatmul.mubr.msk.f32.gmra.mxu1 %vm854_vm2, %v2342_v14 }
 0x334   :  { %v2344_v24 = vpop.f32.mrf.mxu0  ;;  %2633 = vmatprep.mubr.f32.mxu1 %v12315_v0 }
 0x335   :  { %v10463_v24 = vpop.f32.mrf.mxu1 }
 0x336   :  { %v2347_v4 = vpop.f32.mrf.mxu0 }
 0x337   :  { %7394 = vmatmul.mubr.msk.f32.gmra.mxu1 %vm854_vm2, %v2347_v4 }
 0x338   :  { %v2349_v60 = vpop.f32.mrf.mxu0  ;;  %2639 = vmatprep.mubr.f32.mxu1 %v12315_v0 }
 0x339   :  { %v10467_v60 = vpop.f32.mrf.mxu1 }
 0x33a   :  { %v2352_v13 = vpop.f32.mrf.mxu0  ;;  %12359 = vst [vmem:[#allocation68_spill] sm:$0xff] %v10467_v60 }
 0x33b   :  { %7395 = vmatmul.mubr.msk.f32.gmra.mxu1 %vm854_vm2, %v2352_v13 }
 0x33c   :  { %v2354_v53 = vpop.f32.mrf.mxu0  ;;  %2645 = vmatprep.mubr.f32.mxu1 %v12315_v0 }
 0x33d   :  { %v10471_v53 = vpop.f32.mrf.mxu1 }
 0x33e   :  { %v2357_v14 = vpop.f32.mrf.mxu0 }
 0x33f   :  { %7396 = vmatmul.mubr.msk.f32.gmra.mxu1 %vm854_vm2, %v2357_v14 }
 0x340   :  { %v2359_v43 = vpop.f32.mrf.mxu0  ;;  %2651 = vmatprep.mubr.f32.mxu1 %v12315_v0 }
 0x341   :  { %v10475_v43 = vpop.f32.mrf.mxu1 }
 0x342   :  { %v2362_v4 = vpop.f32.mrf.mxu0  ;;  %12360 = vst [vmem:[#allocation69_spill] sm:$0xff] %v10475_v43 }
 0x343   :  { %7397 = vmatmul.mubr.msk.f32.gmra.mxu1 %vm854_vm2, %v2362_v4 }
 0x344   :  { %v2364_v45 = vpop.f32.mrf.mxu0  ;;  %2657 = vmatprep.mubr.f32.mxu1 %v12315_v0 }
 0x345   :  { %v10479_v45 = vpop.f32.mrf.mxu1 }
 0x346   :  { %v2367_v13 = vpop.f32.mrf.mxu0 }
 0x347   :  { %7398 = vmatmul.mubr.msk.f32.gmra.mxu1 %vm854_vm2, %v2367_v13 }
 0x348   :  { %v2369_v63 = vpop.f32.mrf.mxu0  ;;  %2663 = vmatprep.mubr.f32.mxu1 %v12315_v0 }
 0x349   :  { %v10483_v63 = vpop.f32.mrf.mxu1 }
 0x34a   :  { %v2372_v14 = vpop.f32.mrf.mxu0  ;;  %12361 = vst [vmem:[#allocation70_spill] sm:$0xff] %v10483_v63 }
 0x34b   :  { %7399 = vmatmul.mubr.msk.f32.gmra.mxu1 %vm854_vm2, %v2372_v14 }
 0x34c   :  { %v2374_v62 = vpop.f32.mrf.mxu0  ;;  %2669 = vmatprep.mubr.f32.mxu1 %v12315_v0 }
 0x34d   :  { %v1288_v62 = vadd.f32 %v10161_v46, %v9842_v30 }
 0x34e   :  { %v2377_v4 = vpop.f32.mrf.mxu0 }
 0x34f   :  { %7400 = vmatmul.mubr.msk.f32.gmra.mxu1 %vm854_vm2, %v2377_v4 }
 0x350   :  { %v2379_v60 = vpop.f32.mrf.mxu0  ;;  %2675 = vmatprep.mubr.f32.mxu1 %v12315_v0 }
 0x352   :  { %v2382_v13 = vpop.f32.mrf.mxu0 }
 0x353   :  { %7401 = vmatmul.mubr.msk.f32.gmra.mxu1 %vm854_vm2, %v2382_v13  ;;  %v1294_v13 = vadd.f32 %v10174_v22, %v9857_v9 }
 0x354   :  { %v2384_v8 = vpop.f32.mrf.mxu0  ;;  %3187 = vmatprep.mubr.f32.mxu1 %v12315_v0 }
 0x356   :  { %v2917_v14 = vpop.f32.mrf.mxu0  ;;  %v1889_v43 = vpop.f32.mrf.mxu1 }
 0x357   :  { %v10488_v47 = vadd.f32 %v1889_v43, %v1288_v62  ;;  %7476 = vmatmul.mubr.msk.f32.vlgmr.msra.gmra.mxu1 %vm854_vm2, %v2917_v14  ;;  %v1300_v43 = vadd.f32 %v10188_v42, %v9873_v12 }
 0x358   :  { %v2919_v60 = vpop.f32.mrf.mxu0  ;;  %v10491_v4 = vpop.f32.mrf.mxu1  ;;  %3193 = vmatprep.mubr.f32.mxu1 %v12315_v0 }
 0x359   :  { %12362 = vst [vmem:[#allocation71_spill] sm:$0xff] %v10491_v4 }
 0x35a   :  { %v2922_v8 = vpop.f32.mrf.mxu0  ;;  %v1895_v63 = vpop.f32.mrf.mxu1 }
 0x35b   :  { %v10496_v21 = vadd.f32 %v1895_v63, %v1294_v13  ;;  %7477 = vmatmul.mubr.msk.f32.gmra.mxu1 %vm854_vm2, %v2922_v8  ;;  %v1306_v63 = vadd.f32 %v10207_v5, %v9888_v15 }
 0x35c   :  { %v2924_v30 = vpop.f32.mrf.mxu0  ;;  %v10499_v46 = vpop.f32.mrf.mxu1  ;;  %3199 = vmatprep.mubr.f32.mxu1 %v12315_v0 }
 0x35d   :  { %12363 = vst [vmem:[#allocation72_spill] sm:$0xff] %v10499_v46 }
 0x35e   :  { %v2927_v62 = vpop.f32.mrf.mxu0  ;;  %v1901_v14 = vpop.f32.mrf.mxu1 }
 0x35f   :  { %v10504_v60 = vadd.f32 %v1901_v14, %v1300_v43  ;;  %7478 = vmatmul.mubr.msk.f32.gmra.mxu1 %vm854_vm2, %v2927_v62  ;;  %v1312_v43 = vadd.f32 %v10229_v16, %v9903_v54 }
 0x360   :  { %v2929_v9 = vpop.f32.mrf.mxu0  ;;  %v10507_v22 = vpop.f32.mrf.mxu1  ;;  %3205 = vmatprep.mubr.f32.mxu1 %v12315_v0 }
 0x361   :  { %12364 = vst [vmem:[#allocation73_spill] sm:$0xff] %v10507_v22 }
 0x362   :  { %v2932_v13 = vpop.f32.mrf.mxu0  ;;  %v1907_v8 = vpop.f32.mrf.mxu1 }
 0x363   :  { %v10512_v30 = vadd.f32 %v1907_v8, %v1306_v63  ;;  %7479 = vmatmul.mubr.msk.f32.gmra.mxu1 %vm854_vm2, %v2932_v13  ;;  %v1318_v63 = vadd.f32 %v10251_v18, %v9918_v23 }
 0x364   :  { %v2934_v12 = vpop.f32.mrf.mxu0  ;;  %v10515_v42 = vpop.f32.mrf.mxu1  ;;  %3211 = vmatprep.mubr.f32.mxu1 %v12315_v0 }
 0x365   :  { %12365 = vst [vmem:[#allocation74_spill] sm:$0xff] %v10515_v42  ;;  %v12426_v42 = vld [vmem:[#allocation62_spill] sm:$0xff] }
 0x366   :  { %v2937_v62 = vpop.f32.mrf.mxu0  ;;  %v1913_v14 = vpop.f32.mrf.mxu1 }
 0x367   :  { %v10520_v9 = vadd.f32 %v1913_v14, %v1312_v43  ;;  %7480 = vmatmul.mubr.msk.f32.gmra.mxu1 %vm854_vm2, %v2937_v62  ;;  %v1324_v43 = vadd.f32 %v10273_v52, %v9933_v27 }
 0x368   :  { %v2939_v15 = vpop.f32.mrf.mxu0  ;;  %v10523_v5 = vpop.f32.mrf.mxu1  ;;  %3217 = vmatprep.mubr.f32.mxu1 %v12315_v0 }
 0x369   :  { %12366 = vst [vmem:[#allocation75_spill] sm:$0xff] %v10523_v5  ;;  %v12441_v5 = vld [vmem:[#allocation33_spill] sm:$0xff] }
 0x36a   :  { %v2942_v13 = vpop.f32.mrf.mxu0  ;;  %v1919_v8 = vpop.f32.mrf.mxu1 }
 0x36b   :  { %v10528_v12 = vadd.f32 %v1919_v8, %v1318_v63  ;;  %7481 = vmatmul.mubr.msk.f32.gmra.mxu1 %vm854_vm2, %v2942_v13  ;;  %v1330_v63 = vadd.f32 %v10295_v37, %v9948_v32 }
 0x36c   :  { %v2944_v54 = vpop.f32.mrf.mxu0  ;;  %v10531_v16 = vpop.f32.mrf.mxu1  ;;  %3223 = vmatprep.mubr.f32.mxu1 %v12315_v0 }
 0x36e   :  { %v2947_v62 = vpop.f32.mrf.mxu0  ;;  %v1925_v14 = vpop.f32.mrf.mxu1 }
 0x36f   :  { %v10536_v15 = vadd.f32 %v1925_v14, %v1324_v43  ;;  %7482 = vmatmul.mubr.msk.f32.gmra.mxu1 %vm854_vm2, %v2947_v62  ;;  %v1336_v43 = vadd.f32 %v10317_v35, %v9963_v36 }
 0x370   :  { %v2949_v23 = vpop.f32.mrf.mxu0  ;;  %v10539_v18 = vpop.f32.mrf.mxu1  ;;  %3229 = vmatprep.mubr.f32.mxu1 %v12315_v0 }
 0x372   :  { %v2952_v13 = vpop.f32.mrf.mxu0  ;;  %v1931_v8 = vpop.f32.mrf.mxu1 }
 0x373   :  { %v10544_v54 = vadd.f32 %v1931_v8, %v1330_v63  ;;  %7483 = vmatmul.mubr.msk.f32.gmra.mxu1 %vm854_vm2, %v2952_v13  ;;  %v1342_v63 = vadd.f32 %v10339_v25, %v9978_v7 }
 0x374   :  { %v2954_v27 = vpop.f32.mrf.mxu0  ;;  %v10547_v52 = vpop.f32.mrf.mxu1  ;;  %3235 = vmatprep.mubr.f32.mxu1 %v12315_v0 }
 0x376   :  { %v2957_v62 = vpop.f32.mrf.mxu0  ;;  %v1937_v14 = vpop.f32.mrf.mxu1 }
 0x377   :  { %v10552_v23 = vadd.f32 %v1937_v14, %v1336_v43  ;;  %7484 = vmatmul.mubr.msk.f32.gmra.mxu1 %vm854_vm2, %v2957_v62  ;;  %v1348_v43 = vadd.f32 %v10361_v44, %v9993_v6 }
 0x378   :  { %v2959_v32 = vpop.f32.mrf.mxu0  ;;  %v10555_v37 = vpop.f32.mrf.mxu1  ;;  %3241 = vmatprep.mubr.f32.mxu1 %v12315_v0 }
 0x37a   :  { %v2962_v13 = vpop.f32.mrf.mxu0  ;;  %v1943_v8 = vpop.f32.mrf.mxu1 }
 0x37b   :  { %v10560_v27 = vadd.f32 %v1943_v8, %v1342_v63  ;;  %7485 = vmatmul.mubr.msk.f32.gmra.mxu1 %vm854_vm2, %v2962_v13  ;;  %v1354_v63 = vadd.f32 %v10382_v11, %v10008_v10 }
 0x37c   :  { %v2964_v36 = vpop.f32.mrf.mxu0  ;;  %v10563_v35 = vpop.f32.mrf.mxu1  ;;  %3247 = vmatprep.mubr.f32.mxu1 %v12315_v0 }
 0x37e   :  { %v2967_v62 = vpop.f32.mrf.mxu0  ;;  %v1949_v14 = vpop.f32.mrf.mxu1 }
 0x37f   :  { %v10568_v32 = vadd.f32 %v1949_v14, %v1348_v43  ;;  %7486 = vmatmul.mubr.msk.f32.gmra.mxu1 %vm854_vm2, %v2967_v62  ;;  %v1360_v43 = vadd.f32 %v10390_v34, %v10022_v41 }
 0x380   :  { %v2969_v7 = vpop.f32.mrf.mxu0  ;;  %v10571_v25 = vpop.f32.mrf.mxu1  ;;  %3253 = vmatprep.mubr.f32.mxu1 %v12315_v0 }
 0x382   :  { %v2972_v13 = vpop.f32.mrf.mxu0  ;;  %v1955_v8 = vpop.f32.mrf.mxu1 }
 0x383   :  { %v10576_v36 = vadd.f32 %v1955_v8, %v1354_v63  ;;  %7487 = vmatmul.mubr.msk.f32.gmra.mxu1 %vm854_vm2, %v2972_v13  ;;  %v1366_v63 = vadd.f32 %v10399_v61, %v10033_v48 }
 0x384   :  { %v2974_v6 = vpop.f32.mrf.mxu0  ;;  %v10579_v44 = vpop.f32.mrf.mxu1  ;;  %3259 = vmatprep.mubr.f32.mxu1 %v12315_v0 }
 0x386   :  { %v2977_v62 = vpop.f32.mrf.mxu0  ;;  %v1961_v14 = vpop.f32.mrf.mxu1 }
 0x387   :  { %v10584_v7 = vadd.f32 %v1961_v14, %v1360_v43  ;;  %7488 = vmatmul.mubr.msk.f32.gmra.mxu1 %vm854_vm2, %v2977_v62  ;;  %v1372_v43 = vadd.f32 %v10407_v39, %v10044_v50 }
 0x388   :  { %v2979_v10 = vpop.f32.mrf.mxu0  ;;  %v10587_v11 = vpop.f32.mrf.mxu1  ;;  %3265 = vmatprep.mubr.f32.mxu1 %v12315_v0 }
 0x38a   :  { %v2982_v13 = vpop.f32.mrf.mxu0  ;;  %v1967_v8 = vpop.f32.mrf.mxu1 }
 0x38b   :  { %v10592_v6 = vadd.f32 %v1967_v8, %v1366_v63  ;;  %7489 = vmatmul.mubr.msk.f32.gmra.mxu1 %vm854_vm2, %v2982_v13  ;;  %v1378_v63 = vadd.f32 %v10415_v17, %v10055_v58 }
 0x38c   :  { %v2984_v34 = vpop.f32.mrf.mxu0  ;;  %v10595_v41 = vpop.f32.mrf.mxu1  ;;  %3271 = vmatprep.mubr.f32.mxu1 %v12315_v0 }
 0x38e   :  { %v2987_v62 = vpop.f32.mrf.mxu0  ;;  %v1973_v14 = vpop.f32.mrf.mxu1 }
 0x38f   :  { %v10600_v10 = vadd.f32 %v1973_v14, %v1372_v43  ;;  %7490 = vmatmul.mubr.msk.f32.gmra.mxu1 %vm854_vm2, %v2987_v62  ;;  %v1384_v43 = vadd.f32 %v10423_v59, %v10066_v20 }
 0x390   :  { %v2989_v48 = vpop.f32.mrf.mxu0  ;;  %v10603_v61 = vpop.f32.mrf.mxu1  ;;  %3277 = vmatprep.mubr.f32.mxu1 %v12315_v0 }
 0x392   :  { %v2992_v13 = vpop.f32.mrf.mxu0  ;;  %v1979_v8 = vpop.f32.mrf.mxu1 }
 0x393   :  { %v10608_v34 = vadd.f32 %v1979_v8, %v1378_v63  ;;  %7491 = vmatmul.mubr.msk.f32.gmra.mxu1 %vm854_vm2, %v2992_v13  ;;  %v1390_v63 = vadd.f32 %v10431_v57, %v10077_v56 }
 0x394   :  { %v2994_v50 = vpop.f32.mrf.mxu0  ;;  %v10611_v39 = vpop.f32.mrf.mxu1  ;;  %3283 = vmatprep.mubr.f32.mxu1 %v12315_v0 }
 0x396   :  { %v2997_v62 = vpop.f32.mrf.mxu0  ;;  %v1985_v14 = vpop.f32.mrf.mxu1 }
 0x397   :  { %v10616_v48 = vadd.f32 %v1985_v14, %v1384_v43  ;;  %7492 = vmatmul.mubr.msk.f32.gmra.mxu1 %vm854_vm2, %v2997_v62  ;;  %v1396_v43 = vadd.f32 %v10439_v33, %v10088_v26 }
 0x398   :  { %v2999_v58 = vpop.f32.mrf.mxu0  ;;  %v10619_v17 = vpop.f32.mrf.mxu1  ;;  %3289 = vmatprep.mubr.f32.mxu1 %v12315_v0 }
 0x399   :  { %12367 = vst [vmem:[#allocation76_spill] sm:$0xff] %v10619_v17 }
 0x39a   :  { %v3002_v13 = vpop.f32.mrf.mxu0  ;;  %v1991_v8 = vpop.f32.mrf.mxu1 }
 0x39b   :  { %v10624_v50 = vadd.f32 %v1991_v8, %v1390_v63  ;;  %7493 = vmatmul.mubr.msk.f32.gmra.mxu1 %vm854_vm2, %v3002_v13  ;;  %v1402_v63 = vadd.f32 %v10447_v31, %v10099_v29 }
 0x39c   :  { %v3004_v20 = vpop.f32.mrf.mxu0  ;;  %v10627_v59 = vpop.f32.mrf.mxu1  ;;  %3295 = vmatprep.mubr.f32.mxu1 %v12315_v0 }
 0x39d   :  { %12368 = vst [vmem:[#allocation77_spill] sm:$0xff] %v10627_v59 }
 0x39e   :  { %v3007_v62 = vpop.f32.mrf.mxu0  ;;  %v1997_v14 = vpop.f32.mrf.mxu1 }
 0x39f   :  { %v10632_v58 = vadd.f32 %v1997_v14, %v1396_v43  ;;  %7494 = vmatmul.mubr.msk.f32.gmra.mxu1 %vm854_vm2, %v3007_v62  ;;  %v1408_v43 = vadd.f32 %v10455_v55, %v10110_v38 }
 0x3a0   :  { %v3009_v56 = vpop.f32.mrf.mxu0  ;;  %v10635_v57 = vpop.f32.mrf.mxu1  ;;  %3301 = vmatprep.mubr.f32.mxu1 %v12315_v0 }
 0x3a1   :  { %12369 = vst [vmem:[#allocation78_spill] sm:$0xff] %v10635_v57 }
 0x3a2   :  { %v3012_v13 = vpop.f32.mrf.mxu0  ;;  %v2003_v8 = vpop.f32.mrf.mxu1 }
 0x3a3   :  { %v10640_v20 = vadd.f32 %v2003_v8, %v1402_v63  ;;  %7495 = vmatmul.mubr.msk.f32.gmra.mxu1 %vm854_vm2, %v3012_v13  ;;  %v1414_v63 = vadd.f32 %v10463_v24, %v10121_v2 }
 0x3a4   :  { %v3014_v26 = vpop.f32.mrf.mxu0  ;;  %v10643_v33 = vpop.f32.mrf.mxu1  ;;  %3307 = vmatprep.mubr.f32.mxu1 %v12315_v0 }
 0x3a5   :  { %12370 = vst [vmem:[#allocation79_spill] sm:$0xff] %v10643_v33 }
 0x3a6   :  { %v3017_v62 = vpop.f32.mrf.mxu0  ;;  %v2009_v14 = vpop.f32.mrf.mxu1 }
 0x3a7   :  { %v10648_v56 = vadd.f32 %v2009_v14, %v1408_v43  ;;  %7496 = vmatmul.mubr.msk.f32.gmra.mxu1 %vm854_vm2, %v3017_v62  ;;  %v1420_v43 = vadd.f32 %v10471_v53, %v10135_v19 }
 0x3a8   :  { %v3019_v29 = vpop.f32.mrf.mxu0  ;;  %v10651_v31 = vpop.f32.mrf.mxu1  ;;  %3313 = vmatprep.mubr.f32.mxu1 %v12315_v0 }
 0x3a9   :  { %12371 = vst [vmem:[#allocation80_spill] sm:$0xff] %v10651_v31 }
 0x3aa   :  { %v3022_v13 = vpop.f32.mrf.mxu0 }
 0x3ab   :  { %v2015_v8 = vpop.f32.mrf.mxu1  ;;  %7497 = vmatmul.mubr.msk.f32.gmra.mxu1 %vm854_vm2, %v3022_v13 }
 0x3ac   :  { %v10657_v26 = vadd.f32 %v2015_v8, %v1414_v63  ;;  %v3024_v38 = vpop.f32.mrf.mxu0  ;;  %3319 = vmatprep.mubr.f32.mxu1 %v12315_v0  ;;  %v1426_v63 = vadd.f32 %v10479_v45, %v10148_v28 }
 0x3ad   :  { %v10660_v55 = vpop.f32.mrf.mxu1 }
 0x3ae   :  { %12372 = vst [vmem:[#allocation81_spill] sm:$0xff] %v10660_v55  ;;  %v3027_v62 = vpop.f32.mrf.mxu0 }
 0x3af   :  { %v2021_v14 = vpop.f32.mrf.mxu1  ;;  %7498 = vmatmul.mubr.msk.f32.gmra.mxu1 %vm854_vm2, %v3027_v62 }
 0x3b0   :  { %v10665_v29 = vadd.f32 %v2021_v14, %v1420_v43  ;;  %v3029_v2 = vpop.f32.mrf.mxu0  ;;  %3325 = vmatprep.mubr.f32.mxu1 %v12315_v0 }
 0x3b1   :  { %v10668_v24 = vpop.f32.mrf.mxu1 }
 0x3b2   :  { %12373 = vst [vmem:[#allocation82_spill] sm:$0xff] %v10668_v24  ;;  %v3032_v13 = vpop.f32.mrf.mxu0 }
 0x3b3   :  { %v2027_v8 = vpop.f32.mrf.mxu1  ;;  %7499 = vmatmul.mubr.msk.f32.gmra.mxu1 %vm854_vm2, %v3032_v13 }
 0x3b4   :  { %v10673_v38 = vadd.f32 %v2027_v8, %v1426_v63  ;;  %v3034_v19 = vpop.f32.mrf.mxu0 }
 0x3b5   :  { %v10675_v53 = vpop.f32.mrf.mxu1 }
 0x3b6   :  { %12374 = vst [vmem:[#allocation83_spill] sm:$0xff] %v10675_v53 }
 0x3b7   :  { %v2539_v62 = vpop.f32.mrf.mxu1 }
 0x3b8   :  { %v10678_v43 = vadd.f32 %v2539_v62, %v10488_v47 }
 0x3b9   :  { %v10680_v14 = vpop.f32.mrf.mxu1 }
 0x3ba   :  { %12375 = vst [vmem:[#allocation84_spill] sm:$0xff] %v10680_v14 }
 0x3bb   :  { %v2545_v2 = vpop.f32.mrf.mxu1 }
 0x3bc   :  { %v10683_v0 = vadd.f32 %v2545_v2, %v10496_v21 }
 0x3bd   :  { %v10685_v28 = vpop.f32.mrf.mxu1 }
 0x3be   :  { %12376 = vst [vmem:[#allocation85_spill] sm:$0xff] %v10685_v28 }
 0x3bf   :  { %v2551_v45 = vpop.f32.mrf.mxu1 }
 0x3c0   :  { %v10688_v13 = vadd.f32 %v2551_v45, %v10504_v60 }
 0x3c1   :  { %v10690_v63 = vpop.f32.mrf.mxu1 }
 0x3c2   :  { %12377 = vst [vmem:[#allocation86_spill] sm:$0xff] %v10690_v63 }
 0x3c3   :  { %v2557_v8 = vpop.f32.mrf.mxu1 }
 0x3c4   :  { %v10693_v19 = vadd.f32 %v2557_v8, %v10512_v30 }
 0x3c5   :  { %v10695_v47 = vpop.f32.mrf.mxu1 }
 0x3c6   :  { %12378 = vst [vmem:[#allocation87_spill] sm:$0xff] %v10695_v47 }
 0x3c7   :  { %v2563_v62 = vpop.f32.mrf.mxu1 }
 0x3c8   :  { %v10698_v17 = vadd.f32 %v2563_v62, %v10520_v9 }
 0x3c9   :  { %v10700_v21 = vpop.f32.mrf.mxu1 }
 0x3ca   :  { %12379 = vst [vmem:[#allocation88_spill] sm:$0xff] %v10700_v21  ;;  %v12424_v21 = vld [vmem:[#allocation61_spill] sm:$0xff] }
 0x3cb   :  { %v2569_v2 = vpop.f32.mrf.mxu1 }
 0x3cc   :  { %v10703_v59 = vadd.f32 %v2569_v2, %v10528_v12 }
 0x3cd   :  { %v10705_v60 = vpop.f32.mrf.mxu1 }
 0x3ce   :  { %12380 = vst [vmem:[#allocation89_spill] sm:$0xff] %v10703_v59  ;;  %12381 = vst [vmem:[#allocation90_spill] sm:$0xff] %v10705_v60  ;;  %v12427_v60 = vld [vmem:[#allocation28_spill] sm:$0xff] }
 0x3cf   :  { %v2575_v45 = vpop.f32.mrf.mxu1 }
 0x3d0   :  { %v10708_v57 = vadd.f32 %v2575_v45, %v10536_v15 }
 0x3d1   :  { %v10710_v30 = vpop.f32.mrf.mxu1 }
 0x3d2   :  { %12382 = vst [vmem:[#allocation91_spill] sm:$0xff] %v10708_v57  ;;  %12383 = vst [vmem:[#allocation92_spill] sm:$0xff] %v10710_v30  ;;  %v12425_v57 = vld [vmem:[#allocation40_spill] sm:$0xff] }
 0x3d3   :  { %v2581_v8 = vpop.f32.mrf.mxu1 }
 0x3d4   :  { %v10713_v33 = vadd.f32 %v2581_v8, %v10544_v54 }
 0x3d5   :  { %v10715_v9 = vpop.f32.mrf.mxu1 }
 0x3d6   :  { %12384 = vst [vmem:[#allocation93_spill] sm:$0xff] %v10713_v33  ;;  %v12438_v33 = vld [vmem:[#allocation60_spill] sm:$0xff] }
 0x3d7   :  { %v2587_v62 = vpop.f32.mrf.mxu1 }
 0x3d8   :  { %v10718_v55 = vadd.f32 %v2587_v62, %v10552_v23 }
 0x3d9   :  { %v10720_v12 = vpop.f32.mrf.mxu1 }
 0x3da   :  { %12385 = vst [vmem:[#allocation94_spill] sm:$0xff] %v10718_v55 }
 0x3db   :  { %v2593_v2 = vpop.f32.mrf.mxu1 }
 0x3dc   :  { %v10723_v31 = vadd.f32 %v2593_v2, %v10560_v27 }
 0x3dd   :  { %v10725_v15 = vpop.f32.mrf.mxu1 }
 0x3df   :  { %v2599_v45 = vpop.f32.mrf.mxu1 }
 0x3e0   :  { %v10728_v53 = vadd.f32 %v2599_v45, %v10568_v32 }
 0x3e1   :  { %v10730_v54 = vpop.f32.mrf.mxu1 }
 0x3e3   :  { %v2605_v8 = vpop.f32.mrf.mxu1 }
 0x3e4   :  { %v10733_v24 = vadd.f32 %v2605_v8, %v10576_v36 }
 0x3e5   :  { %v10735_v23 = vpop.f32.mrf.mxu1 }
 0x3e7   :  { %v2611_v62 = vpop.f32.mrf.mxu1 }
 0x3e8   :  { %v10738_v14 = vadd.f32 %v2611_v62, %v10584_v7 }
 0x3e9   :  { %v10740_v27 = vpop.f32.mrf.mxu1 }
 0x3eb   :  { %v2617_v2 = vpop.f32.mrf.mxu1 }
 0x3ec   :  { %v10743_v28 = vadd.f32 %v2617_v2, %v10592_v6 }
 0x3ed   :  { %v10745_v32 = vpop.f32.mrf.mxu1 }
 0x3ef   :  { %v2623_v45 = vpop.f32.mrf.mxu1 }
 0x3f0   :  { %v10748_v4 = vadd.f32 %v2623_v45, %v10600_v10 }
 0x3f1   :  { %v10750_v36 = vpop.f32.mrf.mxu1 }
 0x3f3   :  { %v2629_v8 = vpop.f32.mrf.mxu1 }
 0x3f4   :  { %v10753_v63 = vadd.f32 %v2629_v8, %v10608_v34 }
 0x3f5   :  { %v10755_v7 = vpop.f32.mrf.mxu1 }
 0x3f7   :  { %v2635_v62 = vpop.f32.mrf.mxu1 }
 0x3f8   :  { %v10758_v46 = vadd.f32 %v2635_v62, %v10616_v48 }
 0x3f9   :  { %v10760_v6 = vpop.f32.mrf.mxu1 }
 0x3fa   :  { %12386 = vst [vmem:[#allocation95_spill] sm:$0xff] %v10758_v46  ;;  %12387 = vst [vmem:[#allocation96_spill] sm:$0xff] %v10760_v6 }
 0x3fb   :  { %v2641_v2 = vpop.f32.mrf.mxu1 }
 0x3fc   :  { %v10763_v47 = vadd.f32 %v2641_v2, %v10624_v50  ;;  %v3441_v50 = vld [vmem:[#allocation7 + $0x8] sm:$0xff] }
 0x3fd   :  { %v10765_v10 = vpop.f32.mrf.mxu1  ;;  %v3640_v2 = vld [vmem:[#allocation7 + $0xc8] sm:$0xff]  ;;  %7500 = vmatprep.mubr.msk.f32.mxu0 %vm3464_vm3, %v3441_v50 }
 0x3fe   :  { %12388 = vst [vmem:[#allocation97_spill] sm:$0xff] %v10763_v47  ;;  %12389 = vst [vmem:[#allocation98_spill] sm:$0xff] %v10765_v10  ;;  %7512 = vmatprep.mubr.msk.f32.mxu1 %vm3464_vm3, %v3640_v2 }
 0x3ff   :  { %v2647_v45 = vpop.f32.mrf.mxu1 }
 0x400   :  { %v10768_v59 = vadd.f32 %v2647_v45, %v10632_v58 }
 0x401   :  { %v10770_v34 = vpop.f32.mrf.mxu1 }
 0x402   :  { %12390 = vst [vmem:[#allocation99_spill] sm:$0xff] %v10768_v59  ;;  %12391 = vst [vmem:[#allocation100_spill] sm:$0xff] %v10770_v34 }
 0x403   :  { %v2653_v8 = vpop.f32.mrf.mxu1 }
 0x404   :  { %v10773_v22 = vadd.f32 %v2653_v8, %v10640_v20 }
 0x405   :  { %v10775_v48 = vpop.f32.mrf.mxu1 }
 0x406   :  { %12392 = vst [vmem:[#allocation101_spill] sm:$0xff] %v10773_v22  ;;  %12393 = vst [vmem:[#allocation102_spill] sm:$0xff] %v10775_v48 }
 0x407   :  { %v2659_v62 = vpop.f32.mrf.mxu1 }
 0x408   :  { %v10778_v46 = vadd.f32 %v2659_v62, %v10648_v56 }
 0x409   :  { %v10780_v47 = vpop.f32.mrf.mxu1 }
 0x40a   :  { %12394 = vst [vmem:[#allocation103_spill] sm:$0xff] %v10778_v46  ;;  %12395 = vst [vmem:[#allocation104_spill] sm:$0xff] %v10780_v47 }
 0x40b   :  { %v2665_v58 = vpop.f32.mrf.mxu1 }
 0x40c   :  { %v10785_v45 = vadd.f32 %v2665_v58, %v10657_v26 }
 0x40d   :  { %v10787_v20 = vpop.f32.mrf.mxu1 }
 0x40e   :  { %12396 = vst [vmem:[#allocation105_spill] sm:$0xff] %v10785_v45  ;;  %12397 = vst [vmem:[#allocation106_spill] sm:$0xff] %v10787_v20 }
 0x40f   :  { %v2671_v8 = vpop.f32.mrf.mxu1 }
 0x410   :  { %v10790_v6 = vadd.f32 %v2671_v8, %v10665_v29 }
 0x411   :  { %v10792_v56 = vpop.f32.mrf.mxu1 }
 0x412   :  { %12398 = vst [vmem:[#allocation107_spill] sm:$0xff] %v10790_v6  ;;  %12399 = vst [vmem:[#allocation108_spill] sm:$0xff] %v10792_v56 }
 0x413   :  { %v2677_v62 = vpop.f32.mrf.mxu1 }
 0x414   :  { %v10795_v59 = vadd.f32 %v2677_v62, %v10673_v38 }
 0x415   :  { %v10797_v10 = vpop.f32.mrf.mxu1 }
 0x416   :  { %12400 = vst [vmem:[#allocation109_spill] sm:$0xff] %v10795_v59  ;;  %12401 = vst [vmem:[#allocation110_spill] sm:$0xff] %v10797_v10 }
 0x417   :  { %v3189_v50 = vpop.f32.mrf.mxu1 }
 0x418   :  { %v10800_v2 = vadd.f32 %v3189_v50, %v10678_v43 }
 0x419   :  { %v10802_v26 = vpop.f32.mrf.mxu1 }
 0x41a   :  { %12402 = vst [vmem:[#allocation111_spill] sm:$0xff] %v10800_v2  ;;  %12403 = vst [vmem:[#allocation112_spill] sm:$0xff] %v10802_v26 }
 0x41b   :  { %v3195_v58 = vpop.f32.mrf.mxu1 }
 0x41c   :  { %v10805_v22 = vadd.f32 %v3195_v58, %v10683_v0 }
 0x41d   :  { %v10807_v29 = vpop.f32.mrf.mxu1 }
 0x41e   :  { %12404 = vst [vmem:[#allocation113_spill] sm:$0xff] %v10805_v22  ;;  %12405 = vst [vmem:[#allocation114_spill] sm:$0xff] %v10807_v29  ;;  %v10854_v29 = vadd.f32 %v10164_v40, %v9846_v3  ;;  %v12428_v3 = vld [vmem:[#allocation50_spill] sm:$0xff] }
 0x41f   :  { %v3201_v8 = vpop.f32.mrf.mxu1  ;;  %v10872_v40 = vadd.f32 %v12428_v3, %v12427_v60 }
 0x420   :  { %v10810_v34 = vadd.f32 %v3201_v8, %v10688_v13  ;;  %12419 = vst [vmem:[#allocation128_spill] sm:$0xff] %v10854_v29  ;;  %v12431_v29 = vld [vmem:[#allocation51_spill] sm:$0xff] }
 0x421   :  { %v10812_v38 = vpop.f32.mrf.mxu1 }
 0x422   :  { %12406 = vst [vmem:[#allocation115_spill] sm:$0xff] %v10810_v34  ;;  %12407 = vst [vmem:[#allocation116_spill] sm:$0xff] %v10812_v38  ;;  %v3382_v34 = vlaneseq }
 0x423   :  { %v3207_v62 = vpop.f32.mrf.mxu1 }
 0x424   :  { %v10815_v46 = vadd.f32 %v3207_v62, %v10693_v19 }
 0x425   :  { %v10817_v43 = vpop.f32.mrf.mxu1 }
 0x426   :  { %12408 = vst [vmem:[#allocation117_spill] sm:$0xff] %v10815_v46  ;;  %12409 = vst [vmem:[#allocation118_spill] sm:$0xff] %v10817_v43  ;;  %v10860_v43 = vadd.f32 %v10177_v1, %v9861_v49  ;;  %v12433_v49 = vld [vmem:[#allocation30_spill] sm:$0xff]  ;;  %v12434_v1 = vld [vmem:[#allocation52_spill] sm:$0xff] }
 0x427   :  { %v3213_v50 = vpop.f32.mrf.mxu1 }
 0x428   :  { %v10820_v48 = vadd.f32 %v3213_v50, %v10698_v17  ;;  %12420 = vst [vmem:[#allocation129_spill] sm:$0xff] %v10860_v43  ;;  %v10880_v43 = vadd.f32 %v12434_v1, %v12433_v49  ;;  %v12442_v49 = vld [vmem:[#allocation55_spill] sm:$0xff] }
 0x429   :  { %v10822_v0 = vpop.f32.mrf.mxu1  ;;  %v1338_v1 = vadd.f32 %v12442_v49, %v12441_v5  ;;  %v12447_v5 = vld [vmem:[#allocation35_spill] sm:$0xff] }
 0x42a   :  { %12410 = vst [vmem:[#allocation119_spill] sm:$0xff] %v10820_v48  ;;  %12411 = vst [vmem:[#allocation120_spill] sm:$0xff] %v10822_v0  ;;  %v10856_v48 = vshrl.u32 %v3382_v34, 7  ;;  %v12421_v0 = vld [vmem:[#allocation49_spill] sm:$0xff] }
 0x42b   :  { %v10824_v58 = vpop.f32.mrf.mxu1  ;;  %v12430_v34 = vld [vmem:[#allocation29_spill] sm:$0xff] }
 0x42c   :  { %12412 = vst [vmem:[#allocation121_spill] sm:$0xff] %v10824_v58  ;;  %v10864_v58 = vadd.f32 %v12421_v0, %v9877_v51  ;;  %v12435_v51 = vld [vmem:[#allocation31_spill] sm:$0xff]  ;;  %v12436_v0 = vld [vmem:[#allocation53_spill] sm:$0xff]  ;;  %v3388_v3 = vsub.s32 1, %v10856_v48 }
 0x42d   :  { %v10826_v45 = vpop.f32.mrf.mxu1 }
 0x42e   :  { %12413 = vst [vmem:[#allocation122_spill] sm:$0xff] %v10826_v45  ;;  %12422 = vst [vmem:[#allocation49_spill] sm:$0xff] %v10864_v58  ;;  %v12423_v45 = vld [vmem:[#allocation39_spill] sm:$0xff]  ;;  %v10884_v58 = vadd.f32 %v12436_v0, %v12435_v51 }
 0x42f   :  { %v10828_v13 = vpop.f32.mrf.mxu1  ;;  %12429 = vst [vmem:[#allocation39_spill] sm:$0xff] %v10872_v40 }
 0x430   :  { %12414 = vst [vmem:[#allocation123_spill] sm:$0xff] %v10828_v13  ;;  %v1374_v13 = vadd.f32 %v12424_v21, %v12423_v45  ;;  %v12437_v45 = vld [vmem:[#allocation38_spill] sm:$0xff] }
 0x431   :  { %v10830_v8 = vpop.f32.mrf.mxu1 }
 0x432   :  { %12415 = vst [vmem:[#allocation124_spill] sm:$0xff] %v10830_v8  ;;  %v1380_v8 = vadd.f32 %v12426_v42, %v12425_v57  ;;  %v1368_v42 = vadd.f32 %v12438_v33, %v12437_v45  ;;  %v2061_v57 = vadd.f32 %v10603_v61, %v1374_v13  ;;  %v12446_v33 = vld [vmem:[#allocation56_spill] sm:$0xff] }
 0x433   :  { %v10832_v47 = vpop.f32.mrf.mxu1 }
 0x434   :  { %12416 = vst [vmem:[#allocation125_spill] sm:$0xff] %v10832_v47  ;;  %v10876_v47 = vadd.f32 %v12431_v29, %v12430_v34  ;;  %v2063_v60 = vadd.f32 %v10611_v39, %v1380_v8  ;;  %v12439_v29 = vld [vmem:[#allocation32_spill] sm:$0xff]  ;;  %v12440_v34 = vld [vmem:[#allocation54_spill] sm:$0xff]  ;;  %v2059_v61 = vadd.f32 %v10595_v41, %v1368_v42  ;;  %v2711_v39 = vadd.f32 %v10750_v36, %v2061_v57  ;;  %v12451_v57 = vld [vmem:[#allocation41_spill] sm:$0xff] }
 0x435   :  { %v10834_v19 = vpop.f32.mrf.mxu1  ;;  %v1332_v40 = vadd.f32 %v12440_v34, %v12439_v29  ;;  %v3380_v8 = vld [vmem:[%s12301_s3] sm:$0x3]  ;;  %v12448_v29 = vld [vmem:[#allocation57_spill] sm:$0xff] }
 0x436   :  { %12417 = vst [vmem:[#allocation126_spill] sm:$0xff] %v10834_v19  ;;  %12432 = vst [vmem:[#allocation61_spill] sm:$0xff] %v10876_v47  ;;  %v12443_v47 = vld [vmem:[#allocation37_spill] sm:$0xff]  ;;  %v12444_v19 = vld [vmem:[#allocation59_spill] sm:$0xff]  ;;  %v2713_v13 = vadd.f32 %v10755_v7, %v2063_v60  ;;  %v1350_v34 = vadd.f32 %v12448_v29, %v12447_v5  ;;  %v2709_v41 = vadd.f32 %v10745_v32, %v2059_v61 }
 0x437   :  { %v10836_v62 = vpop.f32.mrf.mxu1  ;;  %v1362_v51 = vadd.f32 %v12444_v19, %v12443_v47  ;;  %v12449_v47 = vld [vmem:[#allocation36_spill] sm:$0xff]  ;;  %v12450_v19 = vld [vmem:[#allocation58_spill] sm:$0xff]  ;;  %v10915_v36 = vrot.slane %v3380_v8, %v3388_v3  ;;  %v12452_v60 = vld [vmem:[#allocation63_spill] sm:$0xff] }
 0x438   :  { %12418 = vst [vmem:[#allocation127_spill] sm:$0xff] %v10836_v62  ;;  %v12445_v62 = vld [vmem:[#allocation34_spill] sm:$0xff]  ;;  %v1356_v49 = vadd.f32 %v12450_v19, %v12449_v47  ;;  %v10919_v55 = vadd.f32 %v12452_v60, %v12451_v57  ;;  %v12454_v29 = vld [vmem:[#allocation64_spill] sm:$0xff]  ;;  %v12457_v19 = vld [vmem:[#allocation65_spill] sm:$0xff]  ;;  %v2053_v57 = vadd.f32 %v10571_v25, %v1350_v34  ;;  %v2047_v34 = vadd.f32 %v10547_v52, %v1332_v40 }
 0x439   :  { %v10838_v6 = vpop.f32.mrf.mxu1  ;;  %v1344_v45 = vadd.f32 %v12446_v33, %v12445_v62  ;;  %v2057_v0 = vadd.f32 %v10587_v11, %v1362_v51  ;;  %v12453_v5 = vld [vmem:[#allocation42_spill] sm:$0xff]  ;;  %v12455_v11 = vsub.s32 0, %v10856_v48  ;;  %v2045_v52 = vadd.f32 %v10539_v18, %v10884_v58 }
 0x43a   :  { %v10923_v47 = vadd.f32 %v12454_v29, %v12453_v5  ;;  %v2055_v51 = vadd.f32 %v10579_v44, %v1356_v49  ;;  %v2043_v18 = vadd.f32 %v10531_v16, %v10880_v43  ;;  %v12458_v58 = vld [vmem:[#allocation94_spill] sm:$0xff]  ;;  %v12464_v43 = vld [vmem:[#allocation93_spill] sm:$0xff] }
 0x43b   :  { %v10840_v17 = vpop.f32.mrf.mxu1 }
 0x43d   :  { %v10842_v50 = vpop.f32.mrf.mxu1  ;;  %v12461_v5 = vld [vmem:[#allocation126_spill] sm:$0xff] }
 0x43f   :  { %v10844_v2 = vpop.f32.mrf.mxu1 }
 0x441   :  { %v10846_v59 = vpop.f32.mrf.mxu1 }
 0x443   :  { %v10848_v22 = vpop.f32.mrf.mxu1 }
 0x445   :  { %v10850_v20 = vpop.f32.mrf.mxu1 }
 0x447   :  { %v3261_v10 = vpop.f32.mrf.mxu1 }
 0x449   :  { %v3263_v56 = vpop.f32.mrf.mxu1 }
 0x44b   :  { %v3267_v26 = vpop.f32.mrf.mxu1 }
 0x44d   :  { %v3269_v46 = vpop.f32.mrf.mxu1 }
 0x44e   :  { %v3359_v61 = vadd.f32 %v3269_v46, %v2709_v41  ;;  %v2051_v46 = vadd.f32 %v10563_v35, %v1344_v45  ;;  %v3354_v35 = vadd.f32 %v10848_v22, %v10733_v24  ;;  %v12459_v41 = vld [vmem:[#allocation127_spill] sm:$0xff] }
 0x44f   :  { %v3273_v38 = vpop.f32.mrf.mxu1 }
 0x450   :  { %v2701_v45 = vadd.f32 %v10725_v15, %v2051_v46  ;;  %v12470_v46 = vld [vmem:[#allocation91_spill] sm:$0xff] }
 0x451   :  { %v3275_v21 = vpop.f32.mrf.mxu1 }
 0x452   :  { %v3361_v7 = vadd.f32 %v3275_v21, %v2711_v39  ;;  %v2707_v21 = vadd.f32 %v10740_v27, %v2057_v0  ;;  %v3356_v0 = vadd.f32 %v3261_v10, %v10738_v14  ;;  %v3351_v15 = vadd.f32 %v10842_v50, %v2701_v45 }
 0x453   :  { %v3279_v30 = vpop.f32.mrf.mxu1 }
 0x454   :  { %v3362_v62 = vadd.f32 %v3279_v30, %v10753_v63  ;;  %v10927_v63 = vrot.slane %v3380_v8, %v12455_v11  ;;  %v3360_v30 = vadd.f32 %v3273_v38, %v10748_v4  ;;  %v3358_v8 = vadd.f32 %v3267_v26, %v10743_v28  ;;  %v12462_v11 = vld [vmem:[#allocation61_spill] sm:$0xff] }
 0x455   :  { %v3281_v33 = vpop.f32.mrf.mxu1  ;;  %v2705_v38 = vadd.f32 %v10735_v23, %v2055_v51  ;;  %v3357_v44 = vadd.f32 %v3263_v56, %v2707_v21  ;;  %v3421_v27 = vadd.f32 %v10915_v36, %v3361_v7  ;;  %v2703_v28 = vadd.f32 %v10730_v54, %v2053_v57  ;;  %v12465_v51 = vld [vmem:[#allocation125_spill] sm:$0xff]  ;;  %v12467_v57 = vld [vmem:[#allocation124_spill] sm:$0xff] }
 0x456   :  { %v3363_v42 = vadd.f32 %v3281_v33, %v2713_v13  ;;  %v12456_v13 = vld [vmem:[#allocation43_spill] sm:$0xff]  ;;  %v3422_v60 = vadd.f32 %v10927_v63, %v3362_v62  ;;  %v3420_v49 = vadd.f32 %v10927_v63, %v3360_v30  ;;  %v3419_v23 = vadd.f32 %v10915_v36, %v3359_v61 }
 0x457   :  { %v10930_v32 = vpop.f32.mrf.mxu1  ;;  %v10937_v33 = vadd.f32 %v12457_v19, %v12456_v13  ;;  %v3355_v26 = vadd.f32 %v10850_v20, %v2705_v38  ;;  %v2049_v56 = vadd.f32 %v10555_v37, %v1338_v1  ;;  %v3418_v14 = vadd.f32 %v10927_v63, %v3358_v8  ;;  %v12463_v30 = vld [vmem:[#allocation75_spill] sm:$0xff]  ;;  %v12466_v13 = vld [vmem:[#allocation90_spill] sm:$0xff] }
 0x458   :  { %v3423_v39 = vadd.f32 %v10915_v36, %v3363_v42  ;;  %v3353_v54 = vadd.f32 %v10846_v59, %v2703_v28  ;;  %v3417_v20 = vadd.f32 %v10915_v36, %v3357_v44  ;;  %v3352_v37 = vadd.f32 %v10844_v2, %v10728_v53  ;;  %v12460_v42 = vld [vmem:[#allocation92_spill] sm:$0xff]  ;;  %v12468_v38 = vld [vmem:[#allocation39_spill] sm:$0xff]  ;;  %v12469_v44 = vld [vmem:[#allocation74_spill] sm:$0xff] }
 0x459   :  { %v10942_v4 = vpop.f32.mrf.mxu1  ;;  %v3416_v22 = vadd.f32 %v10927_v63, %v3356_v0  ;;  %v2699_v1 = vadd.f32 %v10720_v12, %v2049_v56  ;;  %v3415_v59 = vadd.f32 %v10915_v36, %v3355_v26  ;;  %v3350_v53 = vadd.f32 %v10840_v17, %v10723_v31  ;;  %v12471_v0 = vld [vmem:[#allocation123_spill] sm:$0xff] }
 0x45a   :  { %3501 = vmatprep.subr.mxu0 %v3423_v39  ;;  %3699 = vmatprep.subr.mxu1 %v3423_v39  ;;  %v3414_v2 = vadd.f32 %v10927_v63, %v3354_v35  ;;  %v2697_v12 = vadd.f32 %v10715_v9, %v2047_v34  ;;  %v3413_v62 = vadd.f32 %v10915_v36, %v3353_v54  ;;  %v12473_v35 = vld [vmem:[#allocation122_spill] sm:$0xff]  ;;  %v12474_v54 = vld [vmem:[#allocation49_spill] sm:$0xff] }
 0x45b   :  { %v10949_v25 = vpop.f32.mrf.mxu1  ;;  %3502 = vmatpush1.msra.mxu0 %v3422_v60  ;;  %3700 = vmatpush1.msra.mxu1 %v3422_v60  ;;  %v3349_v50 = vadd.f32 %v10838_v6, %v2699_v1  ;;  %v3348_v31 = vadd.f32 %v12459_v41, %v12458_v58  ;;  %v3412_v17 = vadd.f32 %v10927_v63, %v3352_v37  ;;  %v12476_v37 = vld [vmem:[#allocation89_spill] sm:$0xff] }
 0x45c   :  { %3503 = vmatprep.subr.mxu0 %v3421_v27  ;;  %3701 = vmatprep.subr.mxu1 %v3421_v27  ;;  %v2695_v9 = vadd.f32 %v12460_v42, %v2045_v52  ;;  %v3347_v6 = vadd.f32 %v12461_v5, %v2697_v12  ;;  %v3411_v29 = vadd.f32 %v10915_v36, %v3351_v15  ;;  %v12478_v52 = vld [vmem:[#allocation87_spill] sm:$0xff]  ;;  %v12482_v41 = vld [vmem:[#allocation129_spill] sm:$0xff]  ;;  %v12484_v5 = vld [vmem:[#allocation86_spill] sm:$0xff] }
 0x45d   :  { %v10958_v10 = vpop.f32.mrf.mxu1  ;;  %3504 = vmatpush1.msra.mxu0 %v3420_v49  ;;  %3702 = vmatpush1.msra.mxu1 %v3420_v49  ;;  %v2041_v16 = vadd.f32 %v12463_v30, %v12462_v11  ;;  %v3346_v21 = vadd.f32 %v12465_v51, %v12464_v43  ;;  %v3410_v61 = vadd.f32 %v10927_v63, %v3350_v53  ;;  %v12487_v43 = vld [vmem:[#allocation67_spill] sm:$0xff] }
 0x45e   :  { %3505 = vmatprep.subr.mxu0 %v3419_v23  ;;  %3703 = vmatprep.subr.mxu1 %v3419_v23  ;;  %v2693_v19 = vadd.f32 %v12466_v13, %v2043_v18  ;;  %v3345_v8 = vadd.f32 %v12467_v57, %v2695_v9  ;;  %v3409_v60 = vadd.f32 %v10915_v36, %v3349_v50  ;;  %v12472_v23 = vld [vmem:[#allocation88_spill] sm:$0xff]  ;;  %v12481_v18 = vld [vmem:[#allocation66_spill] sm:$0xff] }
 0x45f   :  { %v10967_v24 = vpop.f32.mrf.mxu1  ;;  %3506 = vmatpush1.msra.mxu0 %v3418_v14  ;;  %3704 = vmatpush1.msra.mxu1 %v3418_v14  ;;  %v2039_v27 = vadd.f32 %v12469_v44, %v12468_v38  ;;  %v3344_v49 = vadd.f32 %v12471_v0, %v12470_v46  ;;  %v3408_v28 = vadd.f32 %v10927_v63, %v3348_v31  ;;  %v12483_v31 = vld [vmem:[#allocation72_spill] sm:$0xff]  ;;  %v12492_v46 = vld [vmem:[#allocation47_spill] sm:$0xff]  ;;  %v12493_v0 = vld [vmem:[#allocation69_spill] sm:$0xff] }
 0x460   :  { %3507 = vmatprep.subr.mxu0 %v3417_v20  ;;  %3705 = vmatprep.subr.mxu1 %v3417_v20  ;;  %v2691_v56 = vadd.f32 %v12472_v23, %v2041_v16  ;;  %v3343_v14 = vadd.f32 %v12473_v35, %v2693_v19  ;;  %v3407_v45 = vadd.f32 %v10915_v36, %v3347_v6  ;;  %v12475_v20 = vld [vmem:[#allocation73_spill] sm:$0xff]  ;;  %v12491_v38 = vld [vmem:[#allocation116_spill] sm:$0xff]  ;;  %v12495_v23 = vld [vmem:[#allocation70_spill] sm:$0xff] }
 0x461   :  { %v10977_v40 = vpop.f32.mrf.mxu1  ;;  %3508 = vmatpush1.msra.mxu0 %v3416_v22  ;;  %3706 = vmatpush1.msra.mxu1 %v3416_v22  ;;  %v2037_v34 = vadd.f32 %v12475_v20, %v12474_v54  ;;  %v12477_v22 = vld [vmem:[#allocation121_spill] sm:$0xff]  ;;  %v3406_v15 = vadd.f32 %v10927_v63, %v3346_v21  ;;  %v2689_v53 = vadd.f32 %v12478_v52, %v2039_v27  ;;  %v12488_v21 = vld [vmem:[#allocation128_spill] sm:$0xff]  ;;  %v12496_v35 = vld [vmem:[#allocation119_spill] sm:$0xff] }
 0x462   :  { %3509 = vmatprep.subr.mxu0 %v3415_v59  ;;  %3707 = vmatprep.subr.mxu1 %v3415_v59  ;;  %v3342_v1 = vadd.f32 %v12477_v22, %v12476_v37  ;;  %v3405_v50 = vadd.f32 %v10915_v36, %v3345_v8  ;;  %v3404_v42 = vadd.f32 %v10927_v63, %v3344_v49  ;;  %v12486_v16 = vld [vmem:[#allocation45_spill] sm:$0xff]  ;;  %v12497_v54 = vld [vmem:[#allocation84_spill] sm:$0xff] }
 0x463   :  { %v10987_v7 = vpop.f32.mrf.mxu1  ;;  %3510 = vmatpush1.msra.mxu0 %v3414_v2  ;;  %3708 = vmatpush1.msra.mxu1 %v3414_v2  ;;  %v12479_v2 = vld [vmem:[#allocation120_spill] sm:$0xff]  ;;  %v2687_v6 = vadd.f32 %v12484_v5, %v2037_v34  ;;  %v3403_v30 = vadd.f32 %v10915_v36, %v3343_v14  ;;  %v1410_v51 = vadd.f32 %v12487_v43, %v12486_v16  ;;  %v12490_v8 = vld [vmem:[#allocation85_spill] sm:$0xff]  ;;  %v12498_v34 = vld [vmem:[#allocation114_spill] sm:$0xff] }
 0x464   :  { %3511 = vmatprep.subr.mxu0 %v3413_v62  ;;  %3709 = vmatprep.subr.mxu1 %v3413_v62  ;;  %v3341_v12 = vadd.f32 %v12479_v2, %v2691_v56  ;;  %v12480_v62 = vld [vmem:[#allocation44_spill] sm:$0xff]  ;;  %v3402_v19 = vadd.f32 %v10927_v63, %v3342_v1  ;;  %v1422_v49 = vadd.f32 %v12493_v0, %v12492_v46  ;;  %v12499_v1 = vld [vmem:[#allocation46_spill] sm:$0xff] }
 0x465   :  { %v10997_v39 = vpop.f32.mrf.mxu1  ;;  %3512 = vmatpush1.msra.mxu0 %v3412_v17  ;;  %3710 = vmatpush1.msra.mxu1 %v3412_v17  ;;  %v11024_v58 = vadd.f32 %v12481_v18, %v12480_v62  ;;  %v2035_v17 = vadd.f32 %v12483_v31, %v12482_v41  ;;  %v3337_v44 = vadd.f32 %v12491_v38, %v2687_v6  ;;  %v12503_v18 = vld [vmem:[#allocation83_spill] sm:$0xff]  ;;  %v12504_v31 = vld [vmem:[#allocation112_spill] sm:$0xff] }
 0x466   :  { %3513 = vmatprep.subr.mxu0 %v3411_v29  ;;  %3711 = vmatprep.subr.mxu1 %v3411_v29  ;;  %v12485_v29 = vld [vmem:[#allocation118_spill] sm:$0xff]  ;;  %v3401_v27 = vadd.f32 %v10915_v36, %v3341_v12  ;;  %v3400_v14 = vadd.f32 %v10927_v63, %v12496_v35  ;;  %v12502_v12 = vld [vmem:[#allocation117_spill] sm:$0xff]  ;;  %v12505_v5 = vld [vmem:[#allocation80_spill] sm:$0xff] }
 0x467   :  { %v11007_v26 = vpop.f32.mrf.mxu1  ;;  %3514 = vmatpush1.msra.mxu0 %v3410_v61  ;;  %3712 = vmatpush1.msra.mxu1 %v3410_v61  ;;  %v3339_v11 = vadd.f32 %v12485_v29, %v2689_v53  ;;  %v12489_v61 = vld [vmem:[#allocation71_spill] sm:$0xff]  ;;  %v12501_v53 = vld [vmem:[#allocation82_spill] sm:$0xff]  ;;  %v2073_v6 = vadd.f32 %v12505_v5, %v1410_v51  ;;  %v12506_v29 = vld [vmem:[#allocation81_spill] sm:$0xff] }
 0x468   :  { %3515 = vmatprep.subr.mxu0 %v3409_v60  ;;  %3713 = vmatprep.subr.mxu1 %v3409_v60  ;;  %v2033_v13 = vadd.f32 %v12489_v61, %v12488_v21  ;;  %v2685_v60 = vadd.f32 %v12490_v8, %v2035_v17  ;;  %v2077_v2 = vadd.f32 %v12501_v53, %v1422_v49  ;;  %v12508_v21 = vld [vmem:[#allocation108_spill] sm:$0xff] }
 0x469   :  { %v11017_v59 = vpop.f32.mrf.mxu1  ;;  %3516 = vmatpush1.msra.mxu0 %v3408_v28  ;;  %3714 = vmatpush1.msra.mxu1 %v3408_v28  ;;  %v12494_v28 = vld [vmem:[#allocation48_spill] sm:$0xff]  ;;  %v3399_v22 = vadd.f32 %v10915_v36, %v3339_v11 }
 0x46a   :  { %3517 = vmatprep.subr.mxu0 %v3407_v45  ;;  %3715 = vmatprep.subr.mxu1 %v3407_v45  ;;  %v1428_v56 = vadd.f32 %v12495_v23, %v12494_v28  ;;  %v2683_v20 = vadd.f32 %v12497_v54, %v2033_v13  ;;  %v3335_v37 = vadd.f32 %v12498_v34, %v2685_v60  ;;  %v12509_v13 = vld [vmem:[#allocation110_spill] sm:$0xff] }
 0x46b   :  { %v11029_v9 = vpop.f32.mrf.mxu1  ;;  %3518 = vmatpush1.msra.mxu0 %v3406_v15  ;;  %3716 = vmatpush1.msra.mxu1 %v3406_v15  ;;  %v12500_v15 = vld [vmem:[#allocation68_spill] sm:$0xff]  ;;  %v2727_v61 = vadd.f32 %v12508_v21, %v2077_v2  ;;  %v12510_v60 = vld [vmem:[#allocation106_spill] sm:$0xff]  ;;  %v12518_v2 = vld [vmem:[#allocation105_spill] sm:$0xff] }
 0x46c   :  { %3519 = vmatprep.subr.mxu0 %v3405_v50  ;;  %3717 = vmatprep.subr.mxu1 %v3405_v50  ;;  %v1416_v52 = vadd.f32 %v12500_v15, %v12499_v1  ;;  %v3398_v50 = vadd.f32 %v10927_v63, %v12502_v12  ;;  %v2079_v41 = vadd.f32 %v12503_v18, %v1428_v56  ;;  %v12513_v56 = vld [vmem:[#allocation79_spill] sm:$0xff]  ;;  %v12520_v18 = vld [vmem:[#allocation77_spill] sm:$0xff] }
 0x46d   :  { %v3317_v57 = vpop.f32.mrf.mxu1  ;;  %3520 = vmatpush1.msra.mxu0 %v3404_v42  ;;  %3718 = vmatpush1.msra.mxu1 %v3404_v42  ;;  %v3333_v17 = vadd.f32 %v12504_v31, %v2683_v20  ;;  %v3397_v42 = vadd.f32 %v10915_v36, %v3337_v44  ;;  %v3395_v8 = vadd.f32 %v10915_v36, %v3335_v37  ;;  %v12511_v44 = vld [vmem:[#allocation113_spill] sm:$0xff]  ;;  %v12515_v20 = vld [vmem:[#allocation107_spill] sm:$0xff]  ;;  %v12516_v37 = vld [vmem:[#allocation104_spill] sm:$0xff] }
 0x46e   :  { %3521 = vmatprep.subr.mxu0 %v3403_v30  ;;  %3719 = vmatprep.subr.mxu1 %v3403_v30  ;;  %v2075_v11 = vadd.f32 %v12506_v29, %v1416_v52  ;;  %v12507_v30 = vld [vmem:[#allocation115_spill] sm:$0xff]  ;;  %v3394_v51 = vadd.f32 %v10927_v63, %v12511_v44  ;;  %v2071_v35 = vadd.f32 %v12513_v56, %v11024_v58  ;;  %v12517_v52 = vld [vmem:[#allocation78_spill] sm:$0xff] }
 0x46f   :  { %v3321_v45 = vpop.f32.mrf.mxu1  ;;  %3522 = vmatpush1.msra.mxu0 %v3402_v19  ;;  %3720 = vmatpush1.msra.mxu1 %v3402_v19  ;;  %v3396_v16 = vadd.f32 %v10927_v63, %v12507_v30  ;;  %v2729_v19 = vadd.f32 %v12509_v13, %v2079_v41  ;;  %v3393_v49 = vadd.f32 %v10915_v36, %v3333_v17  ;;  %v12521_v31 = vld [vmem:[#allocation103_spill] sm:$0xff]  ;;  %v12522_v17 = vld [vmem:[#allocation100_spill] sm:$0xff]  ;;  %v12525_v30 = vld [vmem:[#allocation98_spill] sm:$0xff] }
 0x470   :  { %3523 = vmatprep.subr.mxu0 %v3401_v27  ;;  %3721 = vmatprep.subr.mxu1 %v3401_v27  ;;  %v2725_v38 = vadd.f32 %v12510_v60, %v2075_v11  ;;  %v12512_v27 = vld [vmem:[#allocation109_spill] sm:$0xff]  ;;  %v3376_v34 = vadd.f32 %v3321_v45, %v12515_v20  ;;  %v2069_v53 = vadd.f32 %v12517_v52, %v10937_v33  ;;  %v12519_v45 = vld [vmem:[#allocation102_spill] sm:$0xff]  ;;  %v12526_v21 = vld [vmem:[#allocation99_spill] sm:$0xff]  ;;  %v12530_v20 = vmov 0.0  }
 0x471   :  { %v3323_v62 = vpop.f32.mrf.mxu1  ;;  %3524 = vmatpush1.msra.mxu0 %v3400_v14  ;;  %3722 = vmatpush1.msra.mxu1 %v3400_v14  ;;  %v12514_v14 = vld [vmem:[#allocation111_spill] sm:$0xff]  ;;  %v3374_v58 = vadd.f32 %v11029_v9, %v12518_v2  ;;  %v2067_v41 = vadd.f32 %v12520_v18, %v10923_v47  ;;  %v3372_v33 = vadd.f32 %v11007_v26, %v12521_v31  ;;  %v12524_v11 = vld [vmem:[#allocation101_spill] sm:$0xff] }
 0x472   :  { %3525 = vmatprep.subr.mxu0 %v3399_v22  ;;  %3723 = vmatprep.subr.mxu1 %v3399_v22  ;;  %v3377_v28 = vadd.f32 %v3323_v62, %v2727_v61  ;;  %v3392_v54 = vadd.f32 %v10927_v63, %v12514_v14  ;;  %v2723_v22 = vadd.f32 %v12516_v37, %v2073_v6  ;;  %v12523_v6 = vld [vmem:[#allocation76_spill] sm:$0xff]  ;;  %v3875_v56 = vld [vmem:[#allocation8 + $0x78] sm:$0xff]  ;;  %v4067_v37 = vld [vmem:[#allocation8 + $0x160] sm:$0xff] }
 0x473   :  { %v3327_v43 = vpop.f32.mrf.mxu1  ;;  %3526 = vmatpush1.msra.mxu0 %v3398_v50  ;;  %3724 = vmatpush1.msra.mxu1 %v3398_v50  ;;  %v3375_v1 = vadd.f32 %v3317_v57, %v2725_v38  ;;  %v2721_v50 = vadd.f32 %v12519_v45, %v2071_v35  ;;  %v3436_v9 = vadd.f32 %v10927_v63, %v3376_v34  ;;  %v4068_v35 = vld [vmem:[#allocation8 + $0x168] sm:$0xff]  ;;  %v3874_v34 = vld [vmem:[#allocation8 + $0x70] sm:$0xff]  ;;  %v3646_v52 = vld [vmem:[#allocation7 + $0xf8] sm:$0xff] }
 0x474   :  { %3527 = vmatprep.subr.mxu0 %v3397_v42  ;;  %3725 = vmatprep.subr.mxu1 %v3397_v42  ;;  %v3378_v46 = vadd.f32 %v3327_v43, %v12512_v27  ;;  %v3373_v62 = vadd.f32 %v11017_v59, %v2723_v22  ;;  %v3437_v57 = vadd.f32 %v10915_v36, %v3377_v28  ;;  %v3443_v28 = vld [vmem:[#allocation7 + $0x18] sm:$0xff]  ;;  %v3445_v14 = vld [vmem:[#allocation7 + $0x28] sm:$0xff]  ;;  %v3444_v22 = vld [vmem:[#allocation7 + $0x20] sm:$0xff] }
 0x475   :  { %v3329_v0 = vpop.f32.mrf.mxu1  ;;  %3528 = vmatpush1.msra.mxu0 %v3396_v16  ;;  %3726 = vmatpush1.msra.mxu1 %v3396_v16  ;;  %v2719_v42 = vadd.f32 %v12522_v17, %v2069_v53  ;;  %v3371_v5 = vadd.f32 %v10997_v39, %v2721_v50  ;;  %v3435_v59 = vadd.f32 %v10915_v36, %v3375_v1  ;;  %v3643_v1 = vld [vmem:[#allocation7 + $0xe0] sm:$0xff]  ;;  %v3873_v53 = vld [vmem:[#allocation8 + $0x68] sm:$0xff]  ;;  %v4066_v2 = vld [vmem:[#allocation8 + $0x158] sm:$0xff] }
 0x476   :  { %v3379_v23 = vadd.f32 %v3329_v0, %v2729_v19  ;;  %3529 = vmatprep.subr.mxu0 %v3395_v8  ;;  %3727 = vmatprep.subr.mxu1 %v3395_v8  ;;  %v3438_v12 = vadd.f32 %v10927_v63, %v3378_v46  ;;  %v2065_v29 = vadd.f32 %v12523_v6, %v10919_v55  ;;  %v3449_v45 = vld [vmem:[#allocation7 + $0x48] sm:$0xff]  ;;  %v3448_v18 = vld [vmem:[#allocation7 + $0x40] sm:$0xff]  ;;  %v3451_v31 = vld [vmem:[#allocation7 + $0x58] sm:$0xff] }
 0x477   :  { %3530 = vmatpush1.msra.mxu0 %v3394_v51  ;;  %3728 = vmatpush1.msra.mxu1 %v3394_v51  ;;  %v3370_v47 = vadd.f32 %v10987_v7, %v12524_v11  ;;  %v3434_v26 = vadd.f32 %v10927_v63, %v3374_v58  ;;  %v2717_v16 = vadd.f32 %v12525_v30, %v2067_v41  ;;  %v12527_v7 = vld [vmem:[#allocation96_spill] sm:$0xff]  ;;  %v12529_v51 = vld [vmem:[#allocation95_spill] sm:$0xff]  ;;  %v3455_v30 = vld [vmem:[#allocation7 + $0x78] sm:$0xff] }
 0x478   :  { %v3439_v15 = vadd.f32 %v10915_v36, %v3379_v23  ;;  %3531 = vmatprep.subr.mxu0 %v3393_v49  ;;  %3729 = vmatprep.subr.mxu1 %v3393_v49  ;;  %v3369_v43 = vadd.f32 %v10977_v40, %v2719_v42  ;;  %v3433_v39 = vadd.f32 %v10915_v36, %v3373_v62  ;;  %v12528_v40 = vld [vmem:[#allocation97_spill] sm:$0xff]  ;;  %v3639_v49 = vld [vmem:[#allocation7 + $0xc0] sm:$0xff]  ;;  %v3648_v50 = vld [vmem:[#allocation7 + $0x108] sm:$0xff] }
 0x479   :  { %3532 = vmatpush1.msra.mxu0 %v3392_v54  ;;  %3730 = vmatpush1.msra.mxu1 %v3392_v54  ;;  %v3368_v61 = vadd.f32 %v10967_v24, %v12526_v21  ;;  %v3432_v55 = vadd.f32 %v10927_v63, %v3372_v33  ;;  %v2715_v13 = vadd.f32 %v12527_v7, %v2065_v29  ;;  %v3642_v23 = vld [vmem:[#allocation7 + $0xd8] sm:$0xff]  ;;  %v3644_v54 = vld [vmem:[#allocation7 + $0xe8] sm:$0xff]  ;;  %v3446_v58 = vld [vmem:[#allocation7 + $0x30] sm:$0xff] }
 0x47a   :  { %3549 = vmatprep.subr.mxu0 %v3439_v15  ;;  %3747 = vmatprep.subr.mxu1 %v3439_v15  ;;  %v3367_v19 = vadd.f32 %v10958_v10, %v2717_v16  ;;  %v3431_v8 = vadd.f32 %v10915_v36, %v3371_v5  ;;  %v3366_v60 = vadd.f32 %v10949_v25, %v12528_v40  ;;  %v3447_v15 = vld [vmem:[#allocation7 + $0x38] sm:$0xff]  ;;  %v3872_v62 = vld [vmem:[#allocation8 + $0x60] sm:$0xff]  ;;  %v4064_v17 = vld [vmem:[#allocation8 + $0x148] sm:$0xff] }
 0x47b   :  { %3550 = vmatpush2.msra.mxu0 %v3438_v12  ;;  %3748 = vmatpush2.msra.mxu1 %v3438_v12  ;;  %v3430_v38 = vadd.f32 %v10927_v63, %v3370_v47  ;;  %v3365_v24 = vadd.f32 %v10942_v4, %v2715_v13  ;;  %v3429_v44 = vadd.f32 %v10915_v36, %v3369_v43  ;;  %v3645_v12 = vld [vmem:[#allocation7 + $0xf0] sm:$0xff]  ;;  %v3647_v41 = vld [vmem:[#allocation7 + $0x100] sm:$0xff]  ;;  %v3650_v33 = vld [vmem:[#allocation7 + $0x118] sm:$0xff] }
 0x47c   :  { %3551 = vmatprep.subr.mxu0 %v3437_v57  ;;  %3749 = vmatprep.subr.mxu1 %v3437_v57  ;;  %v3364_v10 = vadd.f32 %v10930_v32, %v12529_v51  ;;  %v3428_v27 = vadd.f32 %v10927_v63, %v3368_v61  ;;  %v3427_v46 = vadd.f32 %v10915_v36, %v3367_v19  ;;  %v3440_v32 = vld [vmem:[#allocation7] sm:$0xff]  ;;  %v4065_v57 = vld [vmem:[#allocation8 + $0x150] sm:$0xff]  ;;  %v3652_v6 = vld [vmem:[#allocation7 + $0x128] sm:$0xff] }
 0x47d   :  { %3552 = vmatpush2.msra.mxu0 %v3436_v9  ;;  %3750 = vmatpush2.msra.mxu1 %v3436_v9  ;;  %v3426_v25 = vadd.f32 %v10927_v63, %v3366_v60  ;;  %v3425_v4 = vadd.f32 %v10915_v36, %v3365_v24  ;;  %v3442_v36 = vld [vmem:[#allocation7 + $0x10] sm:$0xff]  ;;  %v3871_v9 = vld [vmem:[#allocation8 + $0x58] sm:$0xff]  ;;  %v4063_v11 = vld [vmem:[#allocation8 + $0x140] sm:$0xff] }
 0x47e   :  { %3553 = vmatprep.subr.mxu0 %v3435_v59  ;;  %3751 = vmatprep.subr.mxu1 %v3435_v59  ;;  %v3424_v0 = vadd.f32 %v10927_v63, %v3364_v10  ;;  %v3641_v63 = vld [vmem:[#allocation7 + $0xd0] sm:$0xff]  ;;  %v3453_v59 = vld [vmem:[#allocation7 + $0x68] sm:$0xff]  ;;  %v3452_v47 = vld [vmem:[#allocation7 + $0x60] sm:$0xff] }
 0x47f   :  { %3554 = vmatpush2.msra.mxu0 %v3434_v26  ;;  %3752 = vmatpush2.msra.mxu1 %v3434_v26  ;;  %v3450_v42 = vld [vmem:[#allocation7 + $0x50] sm:$0xff]  ;;  %v3651_v26 = vld [vmem:[#allocation7 + $0x120] sm:$0xff]  ;;  %v3654_v16 = vld [vmem:[#allocation7 + $0x138] sm:$0xff] }
 0x480   :  { %3555 = vmatprep.subr.mxu0 %v3433_v39  ;;  %3753 = vmatprep.subr.mxu1 %v3433_v39  ;;  %v3649_v5 = vld [vmem:[#allocation7 + $0x110] sm:$0xff]  ;;  %v3869_v43 = vld [vmem:[#allocation8 + $0x48] sm:$0xff]  ;;  %v4062_v39 = vld [vmem:[#allocation8 + $0x138] sm:$0xff] }
 0x481   :  { %3556 = vmatpush2.msra.mxu0 %v3432_v55  ;;  %3754 = vmatpush2.msra.mxu1 %v3432_v55  ;;  %v3870_v29 = vld [vmem:[#allocation8 + $0x50] sm:$0xff]  ;;  %v3457_v55 = vld [vmem:[#allocation7 + $0x88] sm:$0xff]  ;;  %v3868_v13 = vld [vmem:[#allocation8 + $0x40] sm:$0xff] }
 0x482   :  { %3557 = vmatprep.subr.mxu0 %v3431_v8  ;;  %3755 = vmatprep.subr.mxu1 %v3431_v8  ;;  %v3454_v21 = vld [vmem:[#allocation7 + $0x70] sm:$0xff]  ;;  %v3656_v7 = vld [vmem:[#allocation7 + $0x148] sm:$0xff]  ;;  %v3456_v8 = vld [vmem:[#allocation7 + $0x80] sm:$0xff] }
 0x483   :  { %3558 = vmatpush2.msra.mxu0 %v3430_v38  ;;  %3756 = vmatpush2.msra.mxu1 %v3430_v38  ;;  %v3653_v61 = vld [vmem:[#allocation7 + $0x130] sm:$0xff]  ;;  %v3655_v40 = vld [vmem:[#allocation7 + $0x140] sm:$0xff]  ;;  %v3459_v60 = vld [vmem:[#allocation7 + $0x98] sm:$0xff] }
 0x484   :  { %3559 = vmatprep.subr.mxu0 %v3429_v44  ;;  %3757 = vmatprep.subr.mxu1 %v3429_v44  ;;  %v4061_v19 = vld [vmem:[#allocation8 + $0x130] sm:$0xff]  ;;  %v3658_v38 = vld [vmem:[#allocation7 + $0x158] sm:$0xff]  ;;  %v4060_v44 = vld [vmem:[#allocation8 + $0x128] sm:$0xff] }
 0x485   :  { %3560 = vmatpush2.msra.mxu0 %v3428_v27  ;;  %3758 = vmatpush2.msra.mxu1 %v3428_v27  ;;  %v3867_v24 = vld [vmem:[#allocation8 + $0x38] sm:$0xff]  ;;  %v3458_v51 = vld [vmem:[#allocation7 + $0x90] sm:$0xff]  ;;  %v3461_v27 = vld [vmem:[#allocation7 + $0xa8] sm:$0xff] }
 0x486   :  { %3561 = vmatprep.subr.mxu0 %v3427_v46  ;;  %3759 = vmatprep.subr.mxu1 %v3427_v46  ;;  %v3657_v10 = vld [vmem:[#allocation7 + $0x150] sm:$0xff]  ;;  %v3660_v46 = vld [vmem:[#allocation7 + $0x168] sm:$0xff] }
 0x487   :  { %3562 = vmatpush2.msra.mxu0 %v3426_v25  ;;  %3760 = vmatpush2.msra.mxu1 %v3426_v25  ;;  %v3866_v25 = vld [vmem:[#allocation8 + $0x30] sm:$0xff] }
 0x488   :  { %3563 = vmatprep.subr.mxu0 %v3425_v4  ;;  %3761 = vmatprep.subr.mxu1 %v3425_v4  ;;  %v4059_v4 = vld [vmem:[#allocation8 + $0x120] sm:$0xff] }
 0x489   :  { %3564 = vmatpush2.msra.mxu0 %v3424_v0  ;;  %3762 = vmatpush2.msra.mxu1 %v3424_v0  ;;  %v3460_v0 = vld [vmem:[#allocation7 + $0xa0] sm:$0xff] }
 0x48a   :  { %3566 = vmatmul.mubr.f32.vlgmr.msra.gmra.mxu0 %v3440_v32  ;;  %3764 = vmatmul.mubr.f32.vlgmr.msra.gmra.mxu1 %v3639_v49  ;;  %v3659_v32 = vld [vmem:[#allocation7 + $0x160] sm:$0xff]  ;;  %v3463_v49 = vld [vmem:[#allocation7 + $0xb8] sm:$0xff] }
 0x48b   :  { %7501 = vmatprep.mubr.msk.f32.mxu0 %vm3464_vm3, %v3443_v28  ;;  %7513 = vmatprep.mubr.msk.f32.mxu1 %vm3464_vm3, %v3642_v23  ;;  %v3662_v28 = vld [vmem:[#allocation7 + $0x178] sm:$0xff]  ;;  %v3865_v23 = vld [vmem:[#allocation8 + $0x28] sm:$0xff] }
 0x48c   :  { %3927 = vmatprep.subr.mxu0 %v12530_v20  ;;  %4083 = vmatprep.subr.mxu1 %v12530_v20 }
 0x48d   :  { %3928 = vmatpush1.msra.mxu0 %v3875_v56  ;;  %4084 = vmatpush1.msra.mxu1 %v4068_v35  ;;  %v4058_v56 = vld [vmem:[#allocation8 + $0x118] sm:$0xff]  ;;  %v3462_v35 = vld [vmem:[#allocation7 + $0xb0] sm:$0xff] }
 0x48e   :  { %3572 = vmatmul.mubr.f32.gmra.mxu0 %v3442_v36  ;;  %3770 = vmatmul.mubr.f32.gmra.mxu1 %v3641_v63  ;;  %v3661_v36 = vld [vmem:[#allocation7 + $0x170] sm:$0xff]  ;;  %v3864_v63 = vld [vmem:[#allocation8 + $0x20] sm:$0xff] }
 0x48f   :  { %7502 = vmatprep.mubr.msk.f32.mxu0 %vm3464_vm3, %v3445_v14  ;;  %7514 = vmatprep.mubr.msk.f32.mxu1 %vm3464_vm3, %v3644_v54  ;;  %v4057_v14 = vld [vmem:[#allocation8 + $0x110] sm:$0xff]  ;;  %v3863_v54 = vld [vmem:[#allocation8 + $0x18] sm:$0xff] }
 0x490   :  { %3929 = vmatprep.subr.mxu0 %v12530_v20  ;;  %4085 = vmatprep.subr.mxu1 %v12530_v20 }
 0x491   :  { %3930 = vmatpush1.msra.mxu0 %v3874_v34  ;;  %4086 = vmatpush1.msra.mxu1 %v4067_v37  ;;  %v4056_v34 = vld [vmem:[#allocation8 + $0x108] sm:$0xff]  ;;  %v3862_v37 = vld [vmem:[#allocation8 + $0x10] sm:$0xff] }
 0x492   :  { %3578 = vmatmul.mubr.f32.gmra.mxu0 %v3444_v22  ;;  %3776 = vmatmul.mubr.f32.gmra.mxu1 %v3643_v1  ;;  %v4055_v22 = vld [vmem:[#allocation8 + $0x100] sm:$0xff]  ;;  %v3861_v1 = vld [vmem:[#allocation8 + $0x8] sm:$0xff] }
 0x493   :  { %7503 = vmatprep.mubr.msk.f32.mxu0 %vm3464_vm3, %v3447_v15  ;;  %7515 = vmatprep.mubr.msk.f32.mxu1 %vm3464_vm3, %v3646_v52  ;;  %v4054_v15 = vld [vmem:[#allocation8 + $0xf8] sm:$0xff]  ;;  %v3860_v52 = vld [vmem:[#allocation8] sm:$0xff] }
 0x494   :  { %3931 = vmatprep.subr.mxu0 %v12530_v20  ;;  %4087 = vmatprep.subr.mxu1 %v12530_v20 }
 0x495   :  { %3932 = vmatpush1.msra.mxu0 %v3873_v53  ;;  %4088 = vmatpush1.msra.mxu1 %v4066_v2  ;;  %v4053_v53 = vld [vmem:[#allocation8 + $0xf0] sm:$0xff]  ;;  %v3889_v2 = vld [vmem:[#allocation8 + $0xe8] sm:$0xff] }
 0x496   :  { %3584 = vmatmul.mubr.f32.gmra.mxu0 %v3446_v58  ;;  %3782 = vmatmul.mubr.f32.gmra.mxu1 %v3645_v12  ;;  %v4082_v58 = vld [vmem:[#allocation8 + $0x1d8] sm:$0xff]  ;;  %v3888_v12 = vld [vmem:[#allocation8 + $0xe0] sm:$0xff] }
 0x497   :  { %7504 = vmatprep.mubr.msk.f32.mxu0 %vm3464_vm3, %v3449_v45  ;;  %7516 = vmatprep.mubr.msk.f32.mxu1 %vm3464_vm3, %v3648_v50  ;;  %v4081_v45 = vld [vmem:[#allocation8 + $0x1d0] sm:$0xff]  ;;  %v3887_v50 = vld [vmem:[#allocation8 + $0xd8] sm:$0xff] }
 0x498   :  { %3933 = vmatprep.subr.mxu0 %v12530_v20  ;;  %4089 = vmatprep.subr.mxu1 %v12530_v20 }
 0x499   :  { %3934 = vmatpush1.msra.mxu0 %v3872_v62  ;;  %4090 = vmatpush1.msra.mxu1 %v4065_v57  ;;  %v4080_v62 = vld [vmem:[#allocation8 + $0x1c8] sm:$0xff]  ;;  %v3886_v57 = vld [vmem:[#allocation8 + $0xd0] sm:$0xff] }
 0x49a   :  { %3590 = vmatmul.mubr.f32.gmra.mxu0 %v3448_v18  ;;  %3788 = vmatmul.mubr.f32.gmra.mxu1 %v3647_v41  ;;  %v4079_v18 = vld [vmem:[#allocation8 + $0x1c0] sm:$0xff]  ;;  %v3885_v41 = vld [vmem:[#allocation8 + $0xc8] sm:$0xff] }
 0x49b   :  { %7505 = vmatprep.mubr.msk.f32.mxu0 %vm3464_vm3, %v3451_v31  ;;  %7517 = vmatprep.mubr.msk.f32.mxu1 %vm3464_vm3, %v3650_v33  ;;  %v4078_v31 = vld [vmem:[#allocation8 + $0x1b8] sm:$0xff]  ;;  %v3884_v33 = vld [vmem:[#allocation8 + $0xc0] sm:$0xff] }
 0x49c   :  { %3935 = vmatprep.subr.mxu0 %v12530_v20  ;;  %4091 = vmatprep.subr.mxu1 %v12530_v20 }
 0x49d   :  { %3936 = vmatpush1.msra.mxu0 %v3871_v9  ;;  %4092 = vmatpush1.msra.mxu1 %v4064_v17  ;;  %v4077_v9 = vld [vmem:[#allocation8 + $0x1b0] sm:$0xff]  ;;  %v3883_v17 = vld [vmem:[#allocation8 + $0xb8] sm:$0xff] }
 0x49e   :  { %3596 = vmatmul.mubr.f32.gmra.mxu0 %v3450_v42  ;;  %3794 = vmatmul.mubr.f32.gmra.mxu1 %v3649_v5  ;;  %v4076_v42 = vld [vmem:[#allocation8 + $0x1a8] sm:$0xff]  ;;  %v3882_v5 = vld [vmem:[#allocation8 + $0xb0] sm:$0xff] }
 0x49f   :  { %7506 = vmatprep.mubr.msk.f32.mxu0 %vm3464_vm3, %v3453_v59  ;;  %7518 = vmatprep.mubr.msk.f32.mxu1 %vm3464_vm3, %v3652_v6  ;;  %v4075_v59 = vld [vmem:[#allocation8 + $0x1a0] sm:$0xff]  ;;  %v3881_v6 = vld [vmem:[#allocation8 + $0xa8] sm:$0xff] }
 0x4a0   :  { %3937 = vmatprep.subr.mxu0 %v12530_v20  ;;  %4093 = vmatprep.subr.mxu1 %v12530_v20 }
 0x4a1   :  { %3938 = vmatpush1.msra.mxu0 %v3870_v29  ;;  %4094 = vmatpush1.msra.mxu1 %v4063_v11  ;;  %v4074_v29 = vld [vmem:[#allocation8 + $0x198] sm:$0xff]  ;;  %v3880_v11 = vld [vmem:[#allocation8 + $0xa0] sm:$0xff] }
 0x4a2   :  { %3602 = vmatmul.mubr.f32.gmra.mxu0 %v3452_v47  ;;  %3800 = vmatmul.mubr.f32.gmra.mxu1 %v3651_v26  ;;  %v4073_v47 = vld [vmem:[#allocation8 + $0x190] sm:$0xff]  ;;  %v3879_v26 = vld [vmem:[#allocation8 + $0x98] sm:$0xff] }
 0x4a3   :  { %7507 = vmatprep.mubr.msk.f32.mxu0 %vm3464_vm3, %v3455_v30  ;;  %7519 = vmatprep.mubr.msk.f32.mxu1 %vm3464_vm3, %v3654_v16  ;;  %v4072_v30 = vld [vmem:[#allocation8 + $0x188] sm:$0xff]  ;;  %v3878_v16 = vld [vmem:[#allocation8 + $0x90] sm:$0xff] }
 0x4a4   :  { %3939 = vmatprep.subr.mxu0 %v12530_v20  ;;  %4095 = vmatprep.subr.mxu1 %v12530_v20 }
 0x4a5   :  { %3940 = vmatpush1.msra.mxu0 %v3869_v43  ;;  %4096 = vmatpush1.msra.mxu1 %v4062_v39  ;;  %v4071_v43 = vld [vmem:[#allocation8 + $0x180] sm:$0xff]  ;;  %v3877_v39 = vld [vmem:[#allocation8 + $0x88] sm:$0xff] }
 0x4a6   :  { %3608 = vmatmul.mubr.f32.gmra.mxu0 %v3454_v21  ;;  %3806 = vmatmul.mubr.f32.gmra.mxu1 %v3653_v61  ;;  %v4070_v21 = vld [vmem:[#allocation8 + $0x178] sm:$0xff]  ;;  %v3876_v61 = vld [vmem:[#allocation8 + $0x80] sm:$0xff] }
 0x4a7   :  { %7508 = vmatprep.mubr.msk.f32.mxu0 %vm3464_vm3, %v3457_v55  ;;  %7520 = vmatprep.mubr.msk.f32.mxu1 %vm3464_vm3, %v3656_v7  ;;  %v4069_v55 = vld [vmem:[#allocation8 + $0x170] sm:$0xff] }
 0x4a8   :  { %3941 = vmatprep.subr.mxu0 %v12530_v20  ;;  %4097 = vmatprep.subr.mxu1 %v12530_v20 }
 0x4a9   :  { %3942 = vmatpush1.msra.mxu0 %v3868_v13  ;;  %4098 = vmatpush1.msra.mxu1 %v4061_v19 }
 0x4aa   :  { %3614 = vmatmul.mubr.f32.gmra.mxu0 %v3456_v8  ;;  %3812 = vmatmul.mubr.f32.gmra.mxu1 %v3655_v40 }
 0x4ab   :  { %7509 = vmatprep.mubr.msk.f32.mxu0 %vm3464_vm3, %v3459_v60  ;;  %7521 = vmatprep.mubr.msk.f32.mxu1 %vm3464_vm3, %v3658_v38 }
 0x4ac   :  { %3943 = vmatprep.subr.mxu0 %v12530_v20  ;;  %4099 = vmatprep.subr.mxu1 %v12530_v20 }
 0x4ad   :  { %3944 = vmatpush1.msra.mxu0 %v3867_v24  ;;  %4100 = vmatpush1.msra.mxu1 %v4060_v44 }
 0x4ae   :  { %3620 = vmatmul.mubr.f32.gmra.mxu0 %v3458_v51  ;;  %3818 = vmatmul.mubr.f32.gmra.mxu1 %v3657_v10 }
 0x4af   :  { %7510 = vmatprep.mubr.msk.f32.mxu0 %vm3464_vm3, %v3461_v27  ;;  %7522 = vmatprep.mubr.msk.f32.mxu1 %vm3464_vm3, %v3660_v46 }
 0x4b0   :  { %3945 = vmatprep.subr.mxu0 %v12530_v20  ;;  %4101 = vmatprep.subr.mxu1 %v12530_v20 }
 0x4b1   :  { %3946 = vmatpush1.msra.mxu0 %v3866_v25  ;;  %4102 = vmatpush1.msra.mxu1 %v4059_v4 }
 0x4b2   :  { %3626 = vmatmul.mubr.f32.gmra.mxu0 %v3460_v0  ;;  %3824 = vmatmul.mubr.f32.gmra.mxu1 %v3659_v32 }
 0x4b3   :  { %7511 = vmatprep.mubr.msk.f32.mxu0 %vm3464_vm3, %v3463_v49  ;;  %7523 = vmatprep.mubr.msk.f32.mxu1 %vm3464_vm3, %v3662_v28 }
 0x4b4   :  { %3947 = vmatprep.subr.mxu0 %v12530_v20  ;;  %4103 = vmatprep.subr.mxu1 %v12530_v20 }
 0x4b5   :  { %3948 = vmatpush1.msra.mxu0 %v3865_v23  ;;  %4104 = vmatpush1.msra.mxu1 %v4058_v56 }
 0x4b6   :  { %3632 = vmatmul.mubr.f32.gmra.mxu0 %v3462_v35  ;;  %3830 = vmatmul.mubr.f32.gmra.mxu1 %v3661_v36 }
 0x4b7   :  { %3949 = vmatprep.subr.mxu0 %v12530_v20  ;;  %4105 = vmatprep.subr.mxu1 %v12530_v20 }
 0x4b8   :  { %3950 = vmatpush1.msra.mxu0 %v3864_v63  ;;  %4106 = vmatpush1.msra.mxu1 %v4057_v14 }
 0x4b9   :  { %3951 = vmatprep.subr.mxu0 %v12530_v20  ;;  %4107 = vmatprep.subr.mxu1 %v12530_v20 }
 0x4ba   :  { %3952 = vmatpush1.msra.mxu0 %v3863_v54  ;;  %4108 = vmatpush1.msra.mxu1 %v4056_v34 }
 0x4bb   :  { %3953 = vmatprep.subr.mxu0 %v12530_v20  ;;  %4109 = vmatprep.subr.mxu1 %v12530_v20 }
 0x4bc   :  { %3954 = vmatpush1.msra.mxu0 %v3862_v37  ;;  %4110 = vmatpush1.msra.mxu1 %v4055_v22 }
 0x4bd   :  { %3955 = vmatprep.subr.mxu0 %v12530_v20  ;;  %4111 = vmatprep.subr.mxu1 %v12530_v20 }
 0x4be   :  { %3956 = vmatpush1.msra.mxu0 %v3861_v1  ;;  %4112 = vmatpush1.msra.mxu1 %v4054_v15 }
 0x4bf   :  { %3957 = vmatprep.subr.mxu0 %v12530_v20  ;;  %4113 = vmatprep.subr.mxu1 %v12530_v20 }
 0x4c0   :  { %3958 = vmatpush1.msra.mxu0 %v3860_v52  ;;  %4114 = vmatpush1.msra.mxu1 %v4053_v53 }
 0x4c1   :  { %3963 = vmatprep.subr.mxu0 %v12530_v20  ;;  %4119 = vmatprep.subr.mxu1 %v12530_v20 }
 0x4c2   :  { %3964 = vmatpush2.msra.mxu0 %v3889_v2  ;;  %4120 = vmatpush2.msra.mxu1 %v4082_v58 }
 0x4c3   :  { %3965 = vmatprep.subr.mxu0 %v12530_v20  ;;  %4121 = vmatprep.subr.mxu1 %v12530_v20 }
 0x4c4   :  { %3966 = vmatpush2.msra.mxu0 %v3888_v12  ;;  %4122 = vmatpush2.msra.mxu1 %v4081_v45 }
 0x4c5   :  { %3967 = vmatprep.subr.mxu0 %v12530_v20  ;;  %4123 = vmatprep.subr.mxu1 %v12530_v20 }
 0x4c6   :  { %3968 = vmatpush2.msra.mxu0 %v3887_v50  ;;  %4124 = vmatpush2.msra.mxu1 %v4080_v62 }
 0x4c7   :  { %3969 = vmatprep.subr.mxu0 %v12530_v20  ;;  %4125 = vmatprep.subr.mxu1 %v12530_v20 }
 0x4c8   :  { %3970 = vmatpush2.msra.mxu0 %v3886_v57  ;;  %4126 = vmatpush2.msra.mxu1 %v4079_v18 }
 0x4c9   :  { %3971 = vmatprep.subr.mxu0 %v12530_v20  ;;  %4127 = vmatprep.subr.mxu1 %v12530_v20 }
 0x4ca   :  { %3972 = vmatpush2.msra.mxu0 %v3885_v41  ;;  %4128 = vmatpush2.msra.mxu1 %v4078_v31 }
 0x4cb   :  { %3973 = vmatprep.subr.mxu0 %v12530_v20  ;;  %4129 = vmatprep.subr.mxu1 %v12530_v20 }
 0x4cc   :  { %3974 = vmatpush2.msra.mxu0 %v3884_v33  ;;  %4130 = vmatpush2.msra.mxu1 %v4077_v9 }
 0x4cd   :  { %3975 = vmatprep.subr.mxu0 %v12530_v20  ;;  %4131 = vmatprep.subr.mxu1 %v12530_v20 }
 0x4ce   :  { %3976 = vmatpush2.msra.mxu0 %v3883_v17  ;;  %4132 = vmatpush2.msra.mxu1 %v4076_v42 }
 0x4cf   :  { %3977 = vmatprep.subr.mxu0 %v12530_v20  ;;  %4133 = vmatprep.subr.mxu1 %v12530_v20 }
 0x4d0   :  { %3978 = vmatpush2.msra.mxu0 %v3882_v5  ;;  %4134 = vmatpush2.msra.mxu1 %v4075_v59 }
 0x4d1   :  { %3979 = vmatprep.subr.mxu0 %v12530_v20  ;;  %4135 = vmatprep.subr.mxu1 %v12530_v20 }
 0x4d2   :  { %3980 = vmatpush2.msra.mxu0 %v3881_v6  ;;  %4136 = vmatpush2.msra.mxu1 %v4074_v29 }
 0x4d3   :  { %3981 = vmatprep.subr.mxu0 %v12530_v20  ;;  %4137 = vmatprep.subr.mxu1 %v12530_v20 }
 0x4d4   :  { %3982 = vmatpush2.msra.mxu0 %v3880_v11  ;;  %4138 = vmatpush2.msra.mxu1 %v4073_v47 }
 0x4d5   :  { %3983 = vmatprep.subr.mxu0 %v12530_v20  ;;  %4139 = vmatprep.subr.mxu1 %v12530_v20 }
 0x4d6   :  { %3984 = vmatpush2.msra.mxu0 %v3879_v26  ;;  %4140 = vmatpush2.msra.mxu1 %v4072_v30 }
 0x4d7   :  { %3985 = vmatprep.subr.mxu0 %v12530_v20  ;;  %4141 = vmatprep.subr.mxu1 %v12530_v20 }
 0x4d8   :  { %3986 = vmatpush2.msra.mxu0 %v3878_v16  ;;  %4142 = vmatpush2.msra.mxu1 %v4071_v43 }
 0x4d9   :  { %3987 = vmatprep.subr.mxu0 %v12530_v20  ;;  %4143 = vmatprep.subr.mxu1 %v12530_v20 }
 0x4da   :  { %3988 = vmatpush2.msra.mxu0 %v3877_v39  ;;  %4144 = vmatpush2.msra.mxu1 %v4070_v21 }
 0x4db   :  { %3989 = vmatprep.subr.mxu0 %v12530_v20  ;;  %4145 = vmatprep.subr.mxu1 %v12530_v20 }
 0x4dc   :  { %3990 = vmatpush2.msra.mxu0 %v3876_v61  ;;  %4146 = vmatpush2.msra.mxu1 %v4069_v55 }
 0x54a   :  { %v3567_v7 = vpop.f32.mrf.mxu0  ;;  %v3765_v13 = vpop.f32.mrf.mxu1 }
 0x54b   :  { %v3836_v60 = vmax.f32 %v3567_v7, %v3765_v13 }
 0x54c   :  { %v3569_v19 = vpop.f32.mrf.mxu0  ;;  %v3767_v8 = vpop.f32.mrf.mxu1 }
 0x54d   :  { %v3837_v40 = vmax.f32 %v3569_v19, %v3767_v8 }
 0x54e   :  { %v3573_v38 = vpop.f32.mrf.mxu0  ;;  %v3771_v24 = vpop.f32.mrf.mxu1 }
 0x54f   :  { %7524 = vmatprep.mubr.msk.f32.mxu0 %vm3890_vm4, %v3837_v40  ;;  %7536 = vmatprep.mubr.msk.f32.mxu1 %vm3890_vm4, %v3837_v40  ;;  %v3838_v27 = vmax.f32 %v3573_v38, %v3771_v24 }
 0x550   :  { %v3575_v44 = vpop.f32.mrf.mxu0  ;;  %v3773_v51 = vpop.f32.mrf.mxu1  ;;  %3992 = vmatmul.mubr.f32.vlgmr.msra.gmra.mxu0 %v3836_v60  ;;  %4148 = vmatmul.mubr.f32.vlgmr.msra.gmra.mxu1 %v3836_v60 }
 0x551   :  { %v3839_v10 = vmax.f32 %v3575_v44, %v3773_v51 }
 0x552   :  { %v3579_v46 = vpop.f32.mrf.mxu0  ;;  %v3777_v25 = vpop.f32.mrf.mxu1 }
 0x553   :  { %7525 = vmatprep.mubr.msk.f32.mxu0 %vm3890_vm4, %v3839_v10  ;;  %7537 = vmatprep.mubr.msk.f32.mxu1 %vm3890_vm4, %v3839_v10  ;;  %v3840_v49 = vmax.f32 %v3579_v46, %v3777_v25  ;;  %v4232_v46 = vld [vmem:[#allocation10] sm:$0xff] }
 0x554   :  { %v3581_v4 = vpop.f32.mrf.mxu0  ;;  %v3779_v0 = vpop.f32.mrf.mxu1  ;;  %3997 = vmatmul.mubr.f32.gmra.mxu0 %v3838_v27  ;;  %4153 = vmatmul.mubr.f32.gmra.mxu1 %v3838_v27  ;;  %v4400_v27 = vld [vmem:[#allocation10 + $0x40] sm:$0xff] }
 0x555   :  { %v3841_v32 = vmax.f32 %v3581_v4, %v3779_v0 }
 0x556   :  { %v3585_v28 = vpop.f32.mrf.mxu0  ;;  %v3783_v23 = vpop.f32.mrf.mxu1 }
 0x557   :  { %7526 = vmatprep.mubr.msk.f32.mxu0 %vm3890_vm4, %v3841_v32  ;;  %7538 = vmatprep.mubr.msk.f32.mxu1 %vm3890_vm4, %v3841_v32  ;;  %v3842_v63 = vmax.f32 %v3585_v28, %v3783_v23 }
 0x558   :  { %v3587_v56 = vpop.f32.mrf.mxu0  ;;  %v3785_v35 = vpop.f32.mrf.mxu1  ;;  %4002 = vmatmul.mubr.f32.gmra.mxu0 %v3840_v49  ;;  %4158 = vmatmul.mubr.f32.gmra.mxu1 %v3840_v49 }
 0x559   :  { %v3843_v36 = vmax.f32 %v3587_v56, %v3785_v35 }
 0x55a   :  { %v3591_v14 = vpop.f32.mrf.mxu0  ;;  %v3789_v54 = vpop.f32.mrf.mxu1 }
 0x55b   :  { %7527 = vmatprep.mubr.msk.f32.mxu0 %vm3890_vm4, %v3843_v36  ;;  %7539 = vmatprep.mubr.msk.f32.mxu1 %vm3890_vm4, %v3843_v36  ;;  %v3844_v1 = vmax.f32 %v3591_v14, %v3789_v54 }
 0x55c   :  { %v3593_v34 = vpop.f32.mrf.mxu0  ;;  %v3791_v37 = vpop.f32.mrf.mxu1  ;;  %4007 = vmatmul.mubr.f32.gmra.mxu0 %v3842_v63  ;;  %4163 = vmatmul.mubr.f32.gmra.mxu1 %v3842_v63 }
 0x55d   :  { %v3845_v22 = vmax.f32 %v3593_v34, %v3791_v37 }
 0x55e   :  { %v3597_v15 = vpop.f32.mrf.mxu0  ;;  %v3795_v52 = vpop.f32.mrf.mxu1 }
 0x55f   :  { %7528 = vmatprep.mubr.msk.f32.mxu0 %vm3890_vm4, %v3845_v22  ;;  %7540 = vmatprep.mubr.msk.f32.mxu1 %vm3890_vm4, %v3845_v22  ;;  %v3846_v12 = vmax.f32 %v3597_v15, %v3795_v52 }
 0x560   :  { %v3599_v53 = vpop.f32.mrf.mxu0  ;;  %v3797_v2 = vpop.f32.mrf.mxu1  ;;  %4012 = vmatmul.mubr.f32.gmra.mxu0 %v3844_v1  ;;  %4168 = vmatmul.mubr.f32.gmra.mxu1 %v3844_v1 }
 0x561   :  { %v3847_v58 = vmax.f32 %v3599_v53, %v3797_v2 }
 0x562   :  { %v3603_v45 = vpop.f32.mrf.mxu0  ;;  %v3801_v50 = vpop.f32.mrf.mxu1 }
 0x563   :  { %7529 = vmatprep.mubr.msk.f32.mxu0 %vm3890_vm4, %v3847_v58  ;;  %7541 = vmatprep.mubr.msk.f32.mxu1 %vm3890_vm4, %v3847_v58  ;;  %v3848_v41 = vmax.f32 %v3603_v45, %v3801_v50 }
 0x564   :  { %v3605_v62 = vpop.f32.mrf.mxu0  ;;  %v3803_v57 = vpop.f32.mrf.mxu1  ;;  %4017 = vmatmul.mubr.f32.gmra.mxu0 %v3846_v12  ;;  %4173 = vmatmul.mubr.f32.gmra.mxu1 %v3846_v12 }
 0x565   :  { %v3849_v18 = vmax.f32 %v3605_v62, %v3803_v57 }
 0x566   :  { %v3609_v31 = vpop.f32.mrf.mxu0  ;;  %v3807_v33 = vpop.f32.mrf.mxu1 }
 0x567   :  { %7530 = vmatprep.mubr.msk.f32.mxu0 %vm3890_vm4, %v3849_v18  ;;  %7542 = vmatprep.mubr.msk.f32.mxu1 %vm3890_vm4, %v3849_v18  ;;  %v3850_v5 = vmax.f32 %v3609_v31, %v3807_v33 }
 0x568   :  { %v3611_v9 = vpop.f32.mrf.mxu0  ;;  %v3809_v17 = vpop.f32.mrf.mxu1  ;;  %4022 = vmatmul.mubr.f32.gmra.mxu0 %v3848_v41  ;;  %4178 = vmatmul.mubr.f32.gmra.mxu1 %v3848_v41 }
 0x569   :  { %v3851_v42 = vmax.f32 %v3611_v9, %v3809_v17 }
 0x56a   :  { %v3615_v59 = vpop.f32.mrf.mxu0  ;;  %v3813_v6 = vpop.f32.mrf.mxu1 }
 0x56b   :  { %7531 = vmatprep.mubr.msk.f32.mxu0 %vm3890_vm4, %v3851_v42  ;;  %7543 = vmatprep.mubr.msk.f32.mxu1 %vm3890_vm4, %v3851_v42  ;;  %v3852_v26 = vmax.f32 %v3615_v59, %v3813_v6 }
 0x56c   :  { %v3617_v29 = vpop.f32.mrf.mxu0  ;;  %v3815_v11 = vpop.f32.mrf.mxu1  ;;  %4027 = vmatmul.mubr.f32.gmra.mxu0 %v3850_v5  ;;  %4183 = vmatmul.mubr.f32.gmra.mxu1 %v3850_v5 }
 0x56d   :  { %v3853_v47 = vmax.f32 %v3617_v29, %v3815_v11 }
 0x56e   :  { %v3621_v30 = vpop.f32.mrf.mxu0  ;;  %v3819_v16 = vpop.f32.mrf.mxu1 }
 0x56f   :  { %7532 = vmatprep.mubr.msk.f32.mxu0 %vm3890_vm4, %v3853_v47  ;;  %7544 = vmatprep.mubr.msk.f32.mxu1 %vm3890_vm4, %v3853_v47  ;;  %v3854_v61 = vmax.f32 %v3621_v30, %v3819_v16 }
 0x570   :  { %v3623_v43 = vpop.f32.mrf.mxu0  ;;  %v3821_v39 = vpop.f32.mrf.mxu1  ;;  %4032 = vmatmul.mubr.f32.gmra.mxu0 %v3852_v26  ;;  %4188 = vmatmul.mubr.f32.gmra.mxu1 %v3852_v26 }
 0x571   :  { %v3855_v21 = vmax.f32 %v3623_v43, %v3821_v39 }
 0x572   :  { %v3627_v55 = vpop.f32.mrf.mxu0  ;;  %v3825_v7 = vpop.f32.mrf.mxu1 }
 0x573   :  { %7533 = vmatprep.mubr.msk.f32.mxu0 %vm3890_vm4, %v3855_v21  ;;  %7545 = vmatprep.mubr.msk.f32.mxu1 %vm3890_vm4, %v3855_v21  ;;  %v3856_v40 = vmax.f32 %v3627_v55, %v3825_v7 }
 0x574   :  { %v3629_v13 = vpop.f32.mrf.mxu0  ;;  %v3827_v19 = vpop.f32.mrf.mxu1  ;;  %4037 = vmatmul.mubr.f32.gmra.mxu0 %v3854_v61  ;;  %4193 = vmatmul.mubr.f32.gmra.mxu1 %v3854_v61 }
 0x575   :  { %v3857_v8 = vmax.f32 %v3629_v13, %v3827_v19 }
 0x576   :  { %v3633_v60 = vpop.f32.mrf.mxu0  ;;  %v3831_v38 = vpop.f32.mrf.mxu1 }
 0x577   :  { %7534 = vmatprep.mubr.msk.f32.mxu0 %vm3890_vm4, %v3857_v8  ;;  %7546 = vmatprep.mubr.msk.f32.mxu1 %vm3890_vm4, %v3857_v8  ;;  %v3858_v10 = vmax.f32 %v3633_v60, %v3831_v38 }
 0x578   :  { %v3635_v24 = vpop.f32.mrf.mxu0  ;;  %v3833_v44 = vpop.f32.mrf.mxu1  ;;  %4042 = vmatmul.mubr.f32.gmra.mxu0 %v3856_v40  ;;  %4198 = vmatmul.mubr.f32.gmra.mxu1 %v3856_v40 }
 0x579   :  { %v3859_v51 = vmax.f32 %v3635_v24, %v3833_v44 }
 0x57b   :  { %7535 = vmatprep.mubr.msk.f32.mxu0 %vm3890_vm4, %v3859_v51  ;;  %7547 = vmatprep.mubr.msk.f32.mxu1 %vm3890_vm4, %v3859_v51 }
 0x57c   :  { %4047 = vmatmul.mubr.f32.gmra.mxu0 %v3858_v10  ;;  %4203 = vmatmul.mubr.f32.gmra.mxu1 %v3858_v10 }
 0x57d   :  { %8022 = vmatprep.mubr.msk.f32.mxu1 %vm273_vm0, %v4400_v27  ;;  %7986 = vmatprep.mubr.msk.f32.mxu0 %vm273_vm0, %v4232_v46 }
 0x610   :  { %v11228_v25 = vpop.f32.mrf.mxu0  ;;  %v11230_v4 = vpop.f32.mrf.mxu1 }
 0x611   :  { %v4208_v0 = vmax.f32 %v11228_v25, %v11230_v4  ;;  %v4233_v25 = vld [vmem:[#allocation10 + $0x8] sm:$0xff]  ;;  %v4402_v4 = vld [vmem:[#allocation10 + $0x50] sm:$0xff] }
 0x612   :  { %v3995_v32 = vpop.f32.mrf.mxu0  ;;  %v4151_v49 = vpop.f32.mrf.mxu1 }
 0x614   :  { %v11234_v28 = vpop.f32.mrf.mxu0  ;;  %v11236_v23 = vpop.f32.mrf.mxu1 }
 0x616   :  { %v4000_v56 = vpop.f32.mrf.mxu0  ;;  %v4156_v35 = vpop.f32.mrf.mxu1 }
 0x618   :  { %v11238_v36 = vpop.f32.mrf.mxu0  ;;  %v11240_v63 = vpop.f32.mrf.mxu1 }
 0x61a   :  { %v4005_v14 = vpop.f32.mrf.mxu0  ;;  %v4161_v54 = vpop.f32.mrf.mxu1 }
 0x61b   :  { %v4210_v14 = vmax.f32 %v11238_v36, %v11240_v63  ;;  %v4401_v63 = vld [vmem:[#allocation10 + $0x48] sm:$0xff] }
 0x61c   :  { %v11242_v34 = vpop.f32.mrf.mxu0  ;;  %v11244_v37 = vpop.f32.mrf.mxu1 }
 0x61d   :  { %v4211_v56 = vmax.f32 %v11242_v34, %v11244_v37  ;;  %v4209_v34 = vmax.f32 %v11234_v28, %v11236_v23  ;;  %v11311_v36 = vmax.f32 %v4210_v14, 0.0  ;;  %v11326_v23 = vmax.f32 %v4208_v0, 0.0  ;;  %v7592_v0 = vld [vmem:[%s12305_s7 + $0x1d0] sm:$0xff] }
 0x61e   :  { %v4010_v22 = vpop.f32.mrf.mxu0  ;;  %v4166_v1 = vpop.f32.mrf.mxu1  ;;  %v4395_v14 = vld [vmem:[%s12305_s7 + $0xd0] sm:$0xff] }
 0x61f   :  { %v11305_v37 = vmax.f32 %v4211_v56, 0.0  ;;  %v11317_v28 = vmax.f32 %v4209_v34, 0.0  ;;  %v7593_v22 = vld [vmem:[%s12305_s7 + $0x1d8] sm:$0xff]  ;;  %v4234_v1 = vld [vmem:[#allocation10 + $0x10] sm:$0xff]  ;;  %v4394_v34 = vld [vmem:[%s12305_s7 + $0xc8] sm:$0xff] }
 0x620   :  { %v11246_v15 = vpop.f32.mrf.mxu0  ;;  %v11248_v52 = vpop.f32.mrf.mxu1  ;;  %v4396_v56 = vld [vmem:[%s12305_s7 + $0xd8] sm:$0xff] }
 0x621   :  { %v4212_v32 = vmax.f32 %v11246_v15, %v11248_v52  ;;  %v7591_v15 = vld [vmem:[%s12305_s7 + $0x1c8] sm:$0xff]  ;;  %v7590_v52 = vld [vmem:[%s12305_s7 + $0x1c0] sm:$0xff] }
 0x622   :  { %v4015_v53 = vpop.f32.mrf.mxu0  ;;  %v4171_v2 = vpop.f32.mrf.mxu1 }
 0x623   :  { %v11297_v54 = vmax.f32 %v4212_v32, 0.0  ;;  %v4403_v53 = vld [vmem:[#allocation10 + $0x58] sm:$0xff]  ;;  %v4397_v32 = vld [vmem:[%s12305_s7 + $0xe0] sm:$0xff] }
 0x624   :  { %v11250_v58 = vpop.f32.mrf.mxu0  ;;  %v4174_v12 = vpop.f32.mrf.mxu1  ;;  %v7589_v2 = vld [vmem:[%s12305_s7 + $0x1b8] sm:$0xff] }
 0x625   :  { %v4213_v27 = vmax.f32 %v11250_v58, %v4174_v12  ;;  %v4404_v58 = vld [vmem:[#allocation10 + $0x60] sm:$0xff]  ;;  %v7588_v12 = vld [vmem:[%s12305_s7 + $0x1b0] sm:$0xff] }
 0x626   :  { %v4020_v45 = vpop.f32.mrf.mxu0  ;;  %v4176_v50 = vpop.f32.mrf.mxu1 }
 0x627   :  { %v11289_v35 = vmax.f32 %v4213_v27, 0.0  ;;  %v7587_v45 = vld [vmem:[%s12305_s7 + $0x1a8] sm:$0xff]  ;;  %v4235_v50 = vld [vmem:[#allocation10 + $0x18] sm:$0xff] }
 0x628   :  { %v4023_v62 = vpop.f32.mrf.mxu0  ;;  %v4179_v57 = vpop.f32.mrf.mxu1  ;;  %v4398_v27 = vld [vmem:[%s12305_s7 + $0xe8] sm:$0xff] }
 0x629   :  { %v4214_v51 = vmax.f32 %v4023_v62, %v4179_v57  ;;  %v7586_v62 = vld [vmem:[%s12305_s7 + $0x1a0] sm:$0xff]  ;;  %v4405_v57 = vld [vmem:[#allocation10 + $0x68] sm:$0xff] }
 0x62a   :  { %v4025_v18 = vpop.f32.mrf.mxu0  ;;  %v4181_v41 = vpop.f32.mrf.mxu1 }
 0x62b   :  { %v11281_v49 = vmax.f32 %v4214_v51, 0.0  ;;  %v7585_v18 = vld [vmem:[%s12305_s7 + $0x198] sm:$0xff]  ;;  %v4406_v41 = vld [vmem:[#allocation10 + $0x70] sm:$0xff] }
 0x62c   :  { %v4028_v31 = vpop.f32.mrf.mxu0  ;;  %v4184_v33 = vpop.f32.mrf.mxu1  ;;  %v7564_v51 = vld [vmem:[%s12305_s7 + $0xf0] sm:$0xff] }
 0x62d   :  { %v4215_v24 = vmax.f32 %v4028_v31, %v4184_v33  ;;  %v7584_v31 = vld [vmem:[%s12305_s7 + $0x190] sm:$0xff]  ;;  %v4236_v33 = vld [vmem:[#allocation10 + $0x20] sm:$0xff] }
 0x62e   :  { %v4030_v9 = vpop.f32.mrf.mxu0  ;;  %v4186_v17 = vpop.f32.mrf.mxu1 }
 0x62f   :  { %v11273_v46 = vmax.f32 %v4215_v24, 0.0  ;;  %v7583_v9 = vld [vmem:[%s12305_s7 + $0x188] sm:$0xff]  ;;  %v7565_v24 = vld [vmem:[%s12305_s7 + $0xf8] sm:$0xff] }
 0x630   :  { %v4033_v42 = vpop.f32.mrf.mxu0  ;;  %v4189_v5 = vpop.f32.mrf.mxu1  ;;  %v4237_v17 = vld [vmem:[#allocation10 + $0x28] sm:$0xff] }
 0x631   :  { %v4216_v60 = vmax.f32 %v4033_v42, %v4189_v5  ;;  %v7582_v42 = vld [vmem:[%s12305_s7 + $0x180] sm:$0xff]  ;;  %v4407_v5 = vld [vmem:[#allocation10 + $0x78] sm:$0xff] }
 0x632   :  { %v4035_v59 = vpop.f32.mrf.mxu0  ;;  %v4191_v6 = vpop.f32.mrf.mxu1 }
 0x633   :  { %v11266_v10 = vmax.f32 %v4216_v60, 0.0  ;;  %v7581_v59 = vld [vmem:[%s12305_s7 + $0x178] sm:$0xff]  ;;  %v4238_v6 = vld [vmem:[#allocation10 + $0x30] sm:$0xff]  ;;  %v7566_v60 = vld [vmem:[%s12305_s7 + $0x100] sm:$0xff] }
 0x634   :  { %v4038_v29 = vpop.f32.mrf.mxu0  ;;  %v4194_v11 = vpop.f32.mrf.mxu1 }
 0x635   :  { %v4217_v8 = vmax.f32 %v4038_v29, %v4194_v11  ;;  %v7580_v29 = vld [vmem:[%s12305_s7 + $0x170] sm:$0xff]  ;;  %v7579_v11 = vld [vmem:[%s12305_s7 + $0x168] sm:$0xff] }
 0x636   :  { %v4040_v47 = vpop.f32.mrf.mxu0  ;;  %v4196_v26 = vpop.f32.mrf.mxu1 }
 0x637   :  { %v11260_v44 = vmax.f32 %v4217_v8, 0.0  ;;  %v4239_v47 = vld [vmem:[#allocation10 + $0x38] sm:$0xff]  ;;  %v7578_v26 = vld [vmem:[%s12305_s7 + $0x160] sm:$0xff]  ;;  %v7567_v8 = vld [vmem:[%s12305_s7 + $0x108] sm:$0xff] }
 0x638   :  { %v4043_v30 = vpop.f32.mrf.mxu0  ;;  %v4199_v16 = vpop.f32.mrf.mxu1 }
 0x639   :  { %v4218_v55 = vmax.f32 %v4043_v30, %v4199_v16  ;;  %v7577_v30 = vld [vmem:[%s12305_s7 + $0x158] sm:$0xff]  ;;  %v7576_v16 = vld [vmem:[%s12305_s7 + $0x150] sm:$0xff] }
 0x63a   :  { %v4045_v43 = vpop.f32.mrf.mxu0  ;;  %v4201_v39 = vpop.f32.mrf.mxu1 }
 0x63b   :  { %v11254_v38 = vmax.f32 %v4218_v55, 0.0  ;;  %v7575_v43 = vld [vmem:[%s12305_s7 + $0x148] sm:$0xff]  ;;  %v7574_v39 = vld [vmem:[%s12305_s7 + $0x140] sm:$0xff] }
 0x63c   :  { %v4048_v21 = vpop.f32.mrf.mxu0  ;;  %v4204_v61 = vpop.f32.mrf.mxu1  ;;  %v7571_v55 = vld [vmem:[%s12305_s7 + $0x128] sm:$0xff] }
 0x63d   :  { %v4219_v7 = vmax.f32 %v4048_v21, %v4204_v61  ;;  %v7573_v21 = vld [vmem:[%s12305_s7 + $0x138] sm:$0xff]  ;;  %v7572_v61 = vld [vmem:[%s12305_s7 + $0x130] sm:$0xff] }
 0x63e   :  { %v4050_v13 = vpop.f32.mrf.mxu0  ;;  %v4206_v19 = vpop.f32.mrf.mxu1 }
 0x63f   :  { %v11252_v40 = vmax.f32 %v4219_v7, 0.0  ;;  %v7570_v7 = vld [vmem:[%s12305_s7 + $0x120] sm:$0xff]  ;;  %v7569_v13 = vld [vmem:[%s12305_s7 + $0x118] sm:$0xff]  ;;  %v7568_v19 = vld [vmem:[%s12305_s7 + $0x110] sm:$0xff] }
 0x641   :  { %7962 = vmatprep.subr.mxu0 %v11252_v40  ;;  %7998 = vmatprep.subr.mxu1 %v11252_v40 }
 0x642   :  { %7963 = vmatpush3.msra.mxu0 %v11252_v40  ;;  %7999 = vmatpush3.msra.mxu1 %v11252_v40 }
 0x643   :  { %7964 = vmatprep.subr.mxu0 %v11254_v38  ;;  %8000 = vmatprep.subr.mxu1 %v11254_v38 }
 0x644   :  { %7965 = vmatpush3.msra.mxu0 %v11254_v38  ;;  %8001 = vmatpush3.msra.mxu1 %v11254_v38 }
 0x645   :  { %7966 = vmatprep.subr.mxu0 %v11260_v44  ;;  %8002 = vmatprep.subr.mxu1 %v11260_v44 }
 0x646   :  { %7967 = vmatpush3.msra.mxu0 %v11260_v44  ;;  %8003 = vmatpush3.msra.mxu1 %v11260_v44 }
 0x647   :  { %7968 = vmatprep.subr.mxu0 %v11266_v10  ;;  %8004 = vmatprep.subr.mxu1 %v11266_v10 }
 0x648   :  { %7969 = vmatpush3.msra.mxu0 %v11266_v10  ;;  %8005 = vmatpush3.msra.mxu1 %v11266_v10 }
 0x649   :  { %7970 = vmatprep.subr.mxu0 %v11273_v46  ;;  %8006 = vmatprep.subr.mxu1 %v11273_v46 }
 0x64a   :  { %7971 = vmatpush3.msra.mxu0 %v11273_v46  ;;  %8007 = vmatpush3.msra.mxu1 %v11273_v46 }
 0x64b   :  { %7972 = vmatprep.subr.mxu0 %v11281_v49  ;;  %8008 = vmatprep.subr.mxu1 %v11281_v49 }
 0x64c   :  { %7973 = vmatpush3.msra.mxu0 %v11281_v49  ;;  %8009 = vmatpush3.msra.mxu1 %v11281_v49 }
 0x64d   :  { %7974 = vmatprep.subr.mxu0 %v11289_v35  ;;  %8010 = vmatprep.subr.mxu1 %v11289_v35 }
 0x64e   :  { %7975 = vmatpush3.msra.mxu0 %v11289_v35  ;;  %8011 = vmatpush3.msra.mxu1 %v11289_v35 }
 0x64f   :  { %7976 = vmatprep.subr.mxu0 %v11297_v54  ;;  %8012 = vmatprep.subr.mxu1 %v11297_v54 }
 0x650   :  { %7977 = vmatpush3.msra.mxu0 %v11297_v54  ;;  %8013 = vmatpush3.msra.mxu1 %v11297_v54 }
 0x651   :  { %7978 = vmatprep.subr.mxu0 %v11305_v37  ;;  %8014 = vmatprep.subr.mxu1 %v11305_v37 }
 0x652   :  { %7979 = vmatpush3.msra.mxu0 %v11305_v37  ;;  %8015 = vmatpush3.msra.mxu1 %v11305_v37 }
 0x653   :  { %7980 = vmatprep.subr.mxu0 %v11311_v36  ;;  %8016 = vmatprep.subr.mxu1 %v11311_v36 }
 0x654   :  { %7981 = vmatpush3.msra.mxu0 %v11311_v36  ;;  %8017 = vmatpush3.msra.mxu1 %v11311_v36 }
 0x655   :  { %7982 = vmatprep.subr.mxu0 %v11317_v28  ;;  %8018 = vmatprep.subr.mxu1 %v11317_v28 }
 0x656   :  { %7983 = vmatpush3.msra.mxu0 %v11317_v28  ;;  %8019 = vmatpush3.msra.mxu1 %v11317_v28 }
 0x657   :  { %7984 = vmatprep.subr.mxu0 %v11326_v23  ;;  %8020 = vmatprep.subr.mxu1 %v11326_v23 }
 0x658   :  { %7985 = vmatpush3.msra.mxu0 %v11326_v23  ;;  %8021 = vmatpush3.msra.mxu1 %v11326_v23 }
 0x659   :  { %8023 = vmatmul.mubr.msk.f32.vlgmr.msra.gmra.mxu1 %vm273_vm0, %v4401_v63  ;;  %4595 = vmatprep.subr.mxu0 %v7593_v22  ;;  %v4393_v63 = vld [vmem:[%s12305_s7 + $0xc0] sm:$0xff]  ;;  %v4392_v22 = vld [vmem:[%s12305_s7 + $0xb8] sm:$0xff] }
 0x65a   :  { %7987 = vmatmul.mubr.msk.f32.vlgmr.msra.gmra.mxu0 %vm273_vm0, %v4233_v25  ;;  %8025 = vmatprep.mubr.msk.f32.mxu1 %vm273_vm0, %v4402_v4  ;;  %v4391_v25 = vld [vmem:[%s12305_s7 + $0xb0] sm:$0xff]  ;;  %v4390_v4 = vld [vmem:[%s12305_s7 + $0xa8] sm:$0xff] }
 0x65b   :  { %4596 = vmatpush1.msra.mxu0 %v7592_v0  ;;  %7989 = vmatprep.mubr.msk.f32.mxu0 %vm273_vm0, %v4234_v1  ;;  %v4389_v0 = vld [vmem:[%s12305_s7 + $0xa0] sm:$0xff]  ;;  %v4388_v1 = vld [vmem:[%s12305_s7 + $0x98] sm:$0xff] }
 0x65c   :  { %4597 = vmatprep.subr.mxu0 %v7591_v15  ;;  %4732 = vmatprep.subr.mxu1 %v4398_v27  ;;  %v4387_v15 = vld [vmem:[%s12305_s7 + $0x90] sm:$0xff]  ;;  %v4847_v27 = vld [vmem:[#allocation10 + $0x98] sm:$0xff] }
 0x65d   :  { %4598 = vmatpush1.msra.mxu0 %v7590_v52  ;;  %8026 = vmatmul.mubr.msk.f32.gmra.mxu1 %vm273_vm0, %v4403_v53  ;;  %v4386_v52 = vld [vmem:[%s12305_s7 + $0x88] sm:$0xff]  ;;  %v4385_v53 = vld [vmem:[%s12305_s7 + $0x80] sm:$0xff] }
 0x65e   :  { %4599 = vmatprep.subr.mxu0 %v7589_v2  ;;  %8028 = vmatprep.mubr.msk.f32.mxu1 %vm273_vm0, %v4404_v58  ;;  %v4384_v2 = vld [vmem:[%s12305_s7 + $0x78] sm:$0xff]  ;;  %v4383_v58 = vld [vmem:[%s12305_s7 + $0x70] sm:$0xff] }
 0x65f   :  { %4600 = vmatpush1.msra.mxu0 %v7588_v12  ;;  %4733 = vmatpush1.msra.mxu1 %v4397_v32  ;;  %v4382_v12 = vld [vmem:[%s12305_s7 + $0x68] sm:$0xff]  ;;  %v4848_v32 = vld [vmem:[#allocation10 + $0xa0] sm:$0xff] }
 0x660   :  { %4601 = vmatprep.subr.mxu0 %v7587_v45  ;;  %7990 = vmatmul.mubr.msk.f32.gmra.mxu0 %vm273_vm0, %v4235_v50  ;;  %v4381_v45 = vld [vmem:[%s12305_s7 + $0x60] sm:$0xff]  ;;  %v4380_v50 = vld [vmem:[%s12305_s7 + $0x58] sm:$0xff] }
 0x661   :  { %4602 = vmatpush1.msra.mxu0 %v7586_v62  ;;  %8029 = vmatmul.mubr.msk.f32.gmra.mxu1 %vm273_vm0, %v4405_v57  ;;  %v4379_v62 = vld [vmem:[%s12305_s7 + $0x50] sm:$0xff]  ;;  %v4378_v57 = vld [vmem:[%s12305_s7 + $0x48] sm:$0xff] }
 0x662   :  { %4603 = vmatprep.subr.mxu0 %v7585_v18  ;;  %8031 = vmatprep.mubr.msk.f32.mxu1 %vm273_vm0, %v4406_v41  ;;  %v4377_v18 = vld [vmem:[%s12305_s7 + $0x40] sm:$0xff]  ;;  %v4376_v41 = vld [vmem:[%s12305_s7 + $0x38] sm:$0xff] }
 0x663   :  { %4604 = vmatpush1.msra.mxu0 %v7584_v31  ;;  %7992 = vmatprep.mubr.msk.f32.mxu0 %vm273_vm0, %v4236_v33  ;;  %v4375_v31 = vld [vmem:[%s12305_s7 + $0x30] sm:$0xff]  ;;  %v4374_v33 = vld [vmem:[%s12305_s7 + $0x28] sm:$0xff] }
 0x664   :  { %4605 = vmatprep.subr.mxu0 %v7583_v9  ;;  %7993 = vmatmul.mubr.msk.f32.gmra.mxu0 %vm273_vm0, %v4237_v17  ;;  %v4373_v9 = vld [vmem:[%s12305_s7 + $0x20] sm:$0xff]  ;;  %v4372_v17 = vld [vmem:[%s12305_s7 + $0x18] sm:$0xff] }
 0x665   :  { %4606 = vmatpush1.msra.mxu0 %v7582_v42  ;;  %8032 = vmatmul.mubr.msk.f32.gmra.mxu1 %vm273_vm0, %v4407_v5  ;;  %v4371_v42 = vld [vmem:[%s12305_s7 + $0x10] sm:$0xff]  ;;  %v4370_v5 = vld [vmem:[%s12305_s7 + $0x8] sm:$0xff] }
 0x666   :  { %4607 = vmatprep.subr.mxu0 %v7581_v59  ;;  %7995 = vmatprep.mubr.msk.f32.mxu0 %vm273_vm0, %v4238_v6  ;;  %v4369_v59 = vld [vmem:[%s12305_s7] sm:$0xff] }
 0x667   :  { %4608 = vmatpush1.msra.mxu0 %v7580_v29  ;;  %4794 = vmatprep.mubr.f32.mxu1 %v12530_v20 }
 0x668   :  { %4609 = vmatprep.subr.mxu0 %v7579_v11  ;;  %7996 = vmatmul.mubr.msk.f32.gmra.mxu0 %vm273_vm0, %v4239_v47 }
 0x669   :  { %4610 = vmatpush1.msra.mxu0 %v7578_v26  ;;  %4657 = vmatprep.mubr.f32.mxu0 %v12530_v20 }
 0x66a   :  { %4611 = vmatprep.subr.mxu0 %v7577_v30  ;;  %4734 = vmatprep.subr.mxu1 %v4396_v56  ;;  %v4849_v56 = vld [vmem:[#allocation10 + $0xa8] sm:$0xff] }
 0x66b   :  { %4612 = vmatpush1.msra.mxu0 %v7576_v16  ;;  %4735 = vmatpush1.msra.mxu1 %v4395_v14  ;;  %v4850_v14 = vld [vmem:[#allocation10 + $0xb0] sm:$0xff] }
 0x66c   :  { %4613 = vmatprep.subr.mxu0 %v7575_v43  ;;  %4736 = vmatprep.subr.mxu1 %v4394_v34  ;;  %v4851_v34 = vld [vmem:[#allocation10 + $0xb8] sm:$0xff] }
 0x66d   :  { %4614 = vmatpush1.msra.mxu0 %v7574_v39  ;;  %4737 = vmatpush1.msra.mxu1 %v4393_v63  ;;  %v5166_v63 = vld [vmem:[#allocation10 + $0xc0] sm:$0xff] }
 0x66e   :  { %4615 = vmatprep.subr.mxu0 %v7573_v21  ;;  %4738 = vmatprep.subr.mxu1 %v4392_v22  ;;  %v5167_v22 = vld [vmem:[#allocation10 + $0xc8] sm:$0xff] }
 0x66f   :  { %4616 = vmatpush1.msra.mxu0 %v7572_v61  ;;  %4739 = vmatpush1.msra.mxu1 %v4391_v25  ;;  %v5168_v25 = vld [vmem:[#allocation10 + $0xd0] sm:$0xff] }
 0x670   :  { %4617 = vmatprep.subr.mxu0 %v7571_v55  ;;  %4740 = vmatprep.subr.mxu1 %v4390_v4  ;;  %v5169_v4 = vld [vmem:[#allocation10 + $0xd8] sm:$0xff] }
 0x671   :  { %4618 = vmatpush1.msra.mxu0 %v7570_v7  ;;  %4741 = vmatpush1.msra.mxu1 %v4389_v0  ;;  %v5170_v0 = vld [vmem:[#allocation10 + $0xe0] sm:$0xff] }
 0x672   :  { %4619 = vmatprep.subr.mxu0 %v7569_v13  ;;  %4742 = vmatprep.subr.mxu1 %v4388_v1  ;;  %v5171_v1 = vld [vmem:[#allocation10 + $0xe8] sm:$0xff] }
 0x673   :  { %4620 = vmatpush1.msra.mxu0 %v7568_v19  ;;  %4743 = vmatpush1.msra.mxu1 %v4387_v15  ;;  %v7643_v15 = vld [vmem:[%s12305_s7 + $0x2a8] sm:$0xff] }
 0x674   :  { %4621 = vmatprep.subr.mxu0 %v7567_v8  ;;  %4744 = vmatprep.subr.mxu1 %v4386_v52  ;;  %v7641_v52 = vld [vmem:[%s12305_s7 + $0x298] sm:$0xff] }
 0x675   :  { %4622 = vmatpush1.msra.mxu0 %v7566_v60  ;;  %4745 = vmatpush1.msra.mxu1 %v4385_v53  ;;  %v4844_v60 = vld [vmem:[#allocation10 + $0x80] sm:$0xff]  ;;  %v7639_v53 = vld [vmem:[%s12305_s7 + $0x288] sm:$0xff] }
 0x676   :  { %4623 = vmatprep.subr.mxu0 %v7565_v24  ;;  %4746 = vmatprep.subr.mxu1 %v4384_v2  ;;  %v4845_v24 = vld [vmem:[#allocation10 + $0x88] sm:$0xff] }
 0x677   :  { %4624 = vmatpush1.msra.mxu0 %v7564_v51  ;;  %4747 = vmatpush1.msra.mxu1 %v4383_v58  ;;  %v4846_v51 = vld [vmem:[#allocation10 + $0x90] sm:$0xff]  ;;  %v5489_v2 = vld [vmem:[#allocation10 + $0x108] sm:$0xff] }
 0x678   :  { %8034 = vmatprep.subr.mxu0 %v11252_v40  ;;  %4748 = vmatprep.subr.mxu1 %v4382_v12  ;;  %v5490_v58 = vld [vmem:[#allocation10 + $0x110] sm:$0xff]  ;;  %v7637_v12 = vld [vmem:[%s12305_s7 + $0x278] sm:$0xff] }
 0x679   :  { %4749 = vmatpush1.msra.mxu1 %v4381_v45  ;;  %v7635_v45 = vld [vmem:[%s12305_s7 + $0x268] sm:$0xff] }
 0x67a   :  { %4750 = vmatprep.subr.mxu1 %v4380_v50  ;;  %v5491_v50 = vld [vmem:[#allocation10 + $0x118] sm:$0xff] }
 0x67b   :  { %4751 = vmatpush1.msra.mxu1 %v4379_v62  ;;  %v5492_v62 = vld [vmem:[#allocation10 + $0x120] sm:$0xff] }
 0x67c   :  { %4752 = vmatprep.subr.mxu1 %v4378_v57  ;;  %v7633_v57 = vld [vmem:[%s12305_s7 + $0x258] sm:$0xff] }
 0x67d   :  { %4753 = vmatpush1.msra.mxu1 %v4377_v18  ;;  %v7632_v18 = vld [vmem:[%s12305_s7 + $0x250] sm:$0xff] }
 0x67e   :  { %4754 = vmatprep.subr.mxu1 %v4376_v41  ;;  %v7631_v41 = vld [vmem:[%s12305_s7 + $0x248] sm:$0xff] }
 0x67f   :  { %4755 = vmatpush1.msra.mxu1 %v4375_v31  ;;  %v5493_v31 = vld [vmem:[#allocation10 + $0x128] sm:$0xff] }
 0x680   :  { %4756 = vmatprep.subr.mxu1 %v4374_v33  ;;  %v5494_v33 = vld [vmem:[#allocation10 + $0x130] sm:$0xff] }
 0x681   :  { %4757 = vmatpush1.msra.mxu1 %v4373_v9  ;;  %v7630_v9 = vld [vmem:[%s12305_s7 + $0x240] sm:$0xff] }
 0x682   :  { %4758 = vmatprep.subr.mxu1 %v4372_v17  ;;  %v7629_v17 = vld [vmem:[%s12305_s7 + $0x238] sm:$0xff] }
 0x683   :  { %4759 = vmatpush1.msra.mxu1 %v4371_v42  ;;  %v7628_v42 = vld [vmem:[%s12305_s7 + $0x230] sm:$0xff] }
 0x684   :  { %4760 = vmatprep.subr.mxu1 %v4370_v5  ;;  %v7627_v5 = vld [vmem:[%s12305_s7 + $0x228] sm:$0xff] }
 0x685   :  { %4761 = vmatpush1.msra.mxu1 %v4369_v59  ;;  %v5495_v59 = vld [vmem:[#allocation10 + $0x138] sm:$0xff] }
 0x719   :  { %v8024_v6 = vpop.f32.mrf.mxu1 }
 0x71a   :  { %v7988_v29 = vpop.f32.mrf.mxu0 }
 0x71b   :  { %v4498_v11 = vpop.f32.mrf.mxu1 }
 0x71c   :  { %7594 = vmatmul.mubr.msk.f32.vlgmr.msra.gmra.mxu0 %vm4568_vm5, %v4498_v11  ;;  %v4330_v47 = vpop.f32.mrf.mxu0  ;;  %v7624_v11 = vld [vmem:[%s12305_s7 + $0x210] sm:$0xff] }
 0x71d   :  { %8035 = vmatpush3.msra.mxu0 %v11252_v40  ;;  %4663 = vmatprep.mubr.f32.mxu0 %v12530_v20  ;;  %v8027_v26 = vpop.f32.mrf.mxu1 }
 0x71e   :  { %8036 = vmatprep.subr.mxu0 %v11254_v38  ;;  %7602 = vmatmul.mubr.msk.f32.vlgmr.msra.gmra.mxu1 %vm4568_vm5, %v4330_v47  ;;  %v7623_v47 = vld [vmem:[%s12305_s7 + $0x208] sm:$0xff] }
 0x71f   :  { %8037 = vmatpush3.msra.mxu0 %v11254_v38  ;;  %4800 = vmatprep.mubr.f32.mxu1 %v12530_v20  ;;  %v4508_v16 = vpop.f32.mrf.mxu1 }
 0x720   :  { %8038 = vmatprep.subr.mxu0 %v11260_v44  ;;  %7595 = vmatmul.mubr.msk.f32.gmra.mxu0 %vm4568_vm5, %v8024_v6  ;;  %v7991_v30 = vpop.f32.mrf.mxu0  ;;  %v7626_v6 = vld [vmem:[%s12305_s7 + $0x220] sm:$0xff] }
 0x721   :  { %8039 = vmatpush3.msra.mxu0 %v11260_v44  ;;  %4669 = vmatprep.mubr.f32.mxu0 %v12530_v20  ;;  %v8030_v39 = vpop.f32.mrf.mxu1 }
 0x722   :  { %8040 = vmatprep.subr.mxu0 %v11266_v10  ;;  %7603 = vmatmul.mubr.msk.f32.gmra.mxu1 %vm4568_vm5, %v7988_v29  ;;  %v4340_v43 = vpop.f32.mrf.mxu0  ;;  %v7625_v29 = vld [vmem:[%s12305_s7 + $0x218] sm:$0xff] }
 0x723   :  { %8041 = vmatpush3.msra.mxu0 %v11266_v10  ;;  %4806 = vmatprep.mubr.f32.mxu1 %v12530_v20  ;;  %v4518_v61 = vpop.f32.mrf.mxu1 }
 0x724   :  { %8042 = vmatprep.subr.mxu0 %v11273_v46  ;;  %7596 = vmatmul.mubr.msk.f32.gmra.mxu0 %vm4568_vm5, %v4508_v16  ;;  %v7994_v21 = vpop.f32.mrf.mxu0  ;;  %v7620_v16 = vld [vmem:[%s12305_s7 + $0x1f0] sm:$0xff] }
 0x725   :  { %8043 = vmatpush3.msra.mxu0 %v11273_v46  ;;  %4675 = vmatprep.mubr.f32.mxu0 %v12530_v20  ;;  %v8033_v7 = vpop.f32.mrf.mxu1 }
 0x726   :  { %8044 = vmatprep.subr.mxu0 %v11281_v49  ;;  %7604 = vmatmul.mubr.msk.f32.gmra.mxu1 %vm4568_vm5, %v4340_v43  ;;  %v4350_v55 = vpop.f32.mrf.mxu0  ;;  %v7619_v43 = vld [vmem:[%s12305_s7 + $0x1e8] sm:$0xff] }
 0x727   :  { %8045 = vmatpush3.msra.mxu0 %v11281_v49  ;;  %4812 = vmatprep.mubr.f32.mxu1 %v12530_v20  ;;  %v4528_v19 = vpop.f32.mrf.mxu1 }
 0x728   :  { %8046 = vmatprep.subr.mxu0 %v11289_v35  ;;  %7597 = vmatmul.mubr.msk.f32.gmra.mxu0 %vm4568_vm5, %v8027_v26  ;;  %v7997_v13 = vpop.f32.mrf.mxu0  ;;  %v7622_v26 = vld [vmem:[%s12305_s7 + $0x200] sm:$0xff] }
 0x729   :  { %8047 = vmatpush3.msra.mxu0 %v11289_v35  ;;  %4681 = vmatprep.mubr.f32.mxu0 %v12530_v20 }
 0x72a   :  { %8048 = vmatprep.subr.mxu0 %v11297_v54  ;;  %7605 = vmatmul.mubr.msk.f32.gmra.mxu1 %vm4568_vm5, %v7991_v30  ;;  %v4360_v8 = vpop.f32.mrf.mxu0  ;;  %v7621_v30 = vld [vmem:[%s12305_s7 + $0x1f8] sm:$0xff] }
 0x72b   :  { %8049 = vmatpush3.msra.mxu0 %v11297_v54  ;;  %4818 = vmatprep.mubr.f32.mxu1 %v12530_v20 }
 0x72c   :  { %8050 = vmatprep.subr.mxu0 %v11305_v37  ;;  %7598 = vmatmul.mubr.msk.f32.gmra.mxu0 %vm4568_vm5, %v4518_v61 }
 0x72d   :  { %8051 = vmatpush3.msra.mxu0 %v11305_v37  ;;  %4687 = vmatprep.mubr.f32.mxu0 %v12530_v20 }
 0x72e   :  { %8052 = vmatprep.subr.mxu0 %v11311_v36  ;;  %7606 = vmatmul.mubr.msk.f32.gmra.mxu1 %vm4568_vm5, %v4350_v55 }
 0x72f   :  { %8053 = vmatpush3.msra.mxu0 %v11311_v36  ;;  %4824 = vmatprep.mubr.f32.mxu1 %v12530_v20 }
 0x730   :  { %8054 = vmatprep.subr.mxu0 %v11317_v28  ;;  %7599 = vmatmul.mubr.msk.f32.gmra.mxu0 %vm4568_vm5, %v8030_v39  ;;  %v7618_v39 = vld [vmem:[%s12305_s7 + $0x1e0] sm:$0xff] }
 0x731   :  { %8055 = vmatpush3.msra.mxu0 %v11317_v28  ;;  %4693 = vmatprep.mubr.f32.mxu0 %v12530_v20 }
 0x732   :  { %8056 = vmatprep.subr.mxu0 %v11326_v23  ;;  %7607 = vmatmul.mubr.msk.f32.gmra.mxu1 %vm4568_vm5, %v7994_v21  ;;  %v7693_v21 = vld [vmem:[%s12305_s7 + $0x3b8] sm:$0xff] }
 0x733   :  { %8057 = vmatpush3.msra.mxu0 %v11326_v23  ;;  %4830 = vmatprep.mubr.f32.mxu1 %v12530_v20 }
 0x734   :  { %8070 = vmatprep.subr.mxu0 %v11252_v40  ;;  %7600 = vmatmul.mubr.msk.f32.gmra.mxu0 %vm4568_vm5, %v4528_v19 }
 0x735   :  { %4699 = vmatprep.mubr.f32.mxu0 %v12530_v20 }
 0x736   :  { %7608 = vmatmul.mubr.msk.f32.gmra.mxu1 %vm4568_vm5, %v4360_v8 }
 0x737   :  { %4836 = vmatprep.mubr.f32.mxu1 %v12530_v20 }
 0x738   :  { %7601 = vmatmul.mubr.msk.f32.gmra.mxu0 %vm4568_vm5, %v8033_v7 }
 0x739   :  { %8058 = vmatprep.mubr.msk.f32.mxu0 %vm273_vm0, %v4844_v60 }
 0x73a   :  { %7609 = vmatmul.mubr.msk.f32.gmra.mxu1 %vm4568_vm5, %v7997_v13 }
 0x73b   :  { %5100 = vmatprep.mubr.f32.mxu1 %v12530_v20 }
 0x73c   :  { %8059 = vmatmul.mubr.msk.f32.vlgmr.msra.gmra.mxu0 %vm273_vm0, %v4845_v24 }
 0x73d   :  { %8071 = vmatpush3.msra.mxu0 %v11252_v40  ;;  %8061 = vmatprep.mubr.msk.f32.mxu0 %vm273_vm0, %v4846_v51 }
 0x73e   :  { %8072 = vmatprep.subr.mxu0 %v11254_v38 }
 0x73f   :  { %8073 = vmatpush3.msra.mxu0 %v11254_v38 }
 0x740   :  { %8074 = vmatprep.subr.mxu0 %v11260_v44  ;;  %8062 = vmatmul.mubr.msk.f32.gmra.mxu0 %vm273_vm0, %v4847_v27 }
 0x741   :  { %8075 = vmatpush3.msra.mxu0 %v11260_v44  ;;  %8064 = vmatprep.mubr.msk.f32.mxu0 %vm273_vm0, %v4848_v32 }
 0x742   :  { %8076 = vmatprep.subr.mxu0 %v11266_v10 }
 0x743   :  { %8077 = vmatpush3.msra.mxu0 %v11266_v10 }
 0x744   :  { %8078 = vmatprep.subr.mxu0 %v11273_v46  ;;  %8065 = vmatmul.mubr.msk.f32.gmra.mxu0 %vm273_vm0, %v4849_v56 }
 0x745   :  { %8079 = vmatpush3.msra.mxu0 %v11273_v46  ;;  %8067 = vmatprep.mubr.msk.f32.mxu0 %vm273_vm0, %v4850_v14 }
 0x746   :  { %8080 = vmatprep.subr.mxu0 %v11281_v49 }
 0x747   :  { %8081 = vmatpush3.msra.mxu0 %v11281_v49 }
 0x748   :  { %8082 = vmatprep.subr.mxu0 %v11289_v35  ;;  %8068 = vmatmul.mubr.msk.f32.gmra.mxu0 %vm273_vm0, %v4851_v34 }
 0x749   :  { %8083 = vmatpush3.msra.mxu0 %v11289_v35  ;;  %8094 = vmatprep.mubr.msk.f32.mxu0 %vm273_vm0, %v5166_v63 }
 0x74a   :  { %8084 = vmatprep.subr.mxu0 %v11297_v54 }
 0x74b   :  { %8085 = vmatpush3.msra.mxu0 %v11297_v54 }
 0x74c   :  { %8086 = vmatprep.subr.mxu0 %v11305_v37 }
 0x74d   :  { %8087 = vmatpush3.msra.mxu0 %v11305_v37 }
 0x74e   :  { %8088 = vmatprep.subr.mxu0 %v11311_v36 }
 0x74f   :  { %8089 = vmatpush3.msra.mxu0 %v11311_v36 }
 0x750   :  { %8090 = vmatprep.subr.mxu0 %v11317_v28 }
 0x751   :  { %8091 = vmatpush3.msra.mxu0 %v11317_v28 }
 0x752   :  { %8092 = vmatprep.subr.mxu0 %v11326_v23 }
 0x753   :  { %8093 = vmatpush3.msra.mxu0 %v11326_v23 }
 0x754   :  { %8106 = vmatprep.subr.mxu0 %v11252_v40  ;;  %8095 = vmatmul.mubr.msk.f32.vlgmr.msra.gmra.mxu0 %vm273_vm0, %v5167_v22 }
 0x755   :  { %8107 = vmatpush3.msra.mxu0 %v11252_v40  ;;  %8097 = vmatprep.mubr.msk.f32.mxu0 %vm273_vm0, %v5168_v25  ;;  %v5172_v40 = vld [vmem:[#allocation10 + $0xf0] sm:$0xff] }
 0x756   :  { %8108 = vmatprep.subr.mxu0 %v11254_v38 }
 0x757   :  { %8109 = vmatpush3.msra.mxu0 %v11254_v38  ;;  %v5173_v38 = vld [vmem:[#allocation10 + $0xf8] sm:$0xff] }
 0x758   :  { %8110 = vmatprep.subr.mxu0 %v11260_v44  ;;  %8098 = vmatmul.mubr.msk.f32.gmra.mxu0 %vm273_vm0, %v5169_v4 }
 0x759   :  { %8111 = vmatpush3.msra.mxu0 %v11260_v44  ;;  %8100 = vmatprep.mubr.msk.f32.mxu0 %vm273_vm0, %v5170_v0  ;;  %v5488_v44 = vld [vmem:[#allocation10 + $0x100] sm:$0xff] }
 0x75a   :  { %8112 = vmatprep.subr.mxu0 %v11266_v10 }
 0x75b   :  { %8113 = vmatpush3.msra.mxu0 %v11266_v10  ;;  %v7647_v10 = vld [vmem:[%s12305_s7 + $0x2c8] sm:$0xff] }
 0x75c   :  { %8114 = vmatprep.subr.mxu0 %v11273_v46  ;;  %8101 = vmatmul.mubr.msk.f32.gmra.mxu0 %vm273_vm0, %v5171_v1 }
 0x75d   :  { %8115 = vmatpush3.msra.mxu0 %v11273_v46  ;;  %8103 = vmatprep.mubr.msk.f32.mxu0 %vm273_vm0, %v5172_v40  ;;  %v7646_v46 = vld [vmem:[%s12305_s7 + $0x2c0] sm:$0xff] }
 0x75e   :  { %8116 = vmatprep.subr.mxu0 %v11281_v49  ;;  %5038 = vmatprep.subr.mxu1 %v7647_v10 }
 0x75f   :  { %8117 = vmatpush3.msra.mxu0 %v11281_v49  ;;  %v7645_v49 = vld [vmem:[%s12305_s7 + $0x2b8] sm:$0xff]  ;;  %5039 = vmatpush1.msra.mxu1 %v7646_v46 }
 0x760   :  { %8118 = vmatprep.subr.mxu0 %v11289_v35  ;;  %8104 = vmatmul.mubr.msk.f32.gmra.mxu0 %vm273_vm0, %v5173_v38 }
 0x761   :  { %8119 = vmatpush3.msra.mxu0 %v11289_v35  ;;  %8130 = vmatprep.mubr.msk.f32.mxu0 %vm273_vm0, %v5488_v44  ;;  %v7644_v35 = vld [vmem:[%s12305_s7 + $0x2b0] sm:$0xff] }
 0x762   :  { %8120 = vmatprep.subr.mxu0 %v11297_v54  ;;  %5040 = vmatprep.subr.mxu1 %v7645_v49 }
 0x763   :  { %8121 = vmatpush3.msra.mxu0 %v11297_v54  ;;  %5041 = vmatpush1.msra.mxu1 %v7644_v35  ;;  %v7642_v54 = vld [vmem:[%s12305_s7 + $0x2a0] sm:$0xff] }
 0x764   :  { %8122 = vmatprep.subr.mxu0 %v11305_v37  ;;  %5042 = vmatprep.subr.mxu1 %v7643_v15 }
 0x765   :  { %8123 = vmatpush3.msra.mxu0 %v11305_v37  ;;  %5043 = vmatpush1.msra.mxu1 %v7642_v54  ;;  %v7640_v37 = vld [vmem:[%s12305_s7 + $0x290] sm:$0xff] }
 0x766   :  { %8124 = vmatprep.subr.mxu0 %v11311_v36  ;;  %5044 = vmatprep.subr.mxu1 %v7641_v52 }
 0x767   :  { %8125 = vmatpush3.msra.mxu0 %v11311_v36  ;;  %5045 = vmatpush1.msra.mxu1 %v7640_v37  ;;  %v7638_v36 = vld [vmem:[%s12305_s7 + $0x280] sm:$0xff] }
 0x768   :  { %8126 = vmatprep.subr.mxu0 %v11317_v28  ;;  %5046 = vmatprep.subr.mxu1 %v7639_v53 }
 0x769   :  { %8127 = vmatpush3.msra.mxu0 %v11317_v28  ;;  %5047 = vmatpush1.msra.mxu1 %v7638_v36  ;;  %v7636_v28 = vld [vmem:[%s12305_s7 + $0x270] sm:$0xff] }
 0x76a   :  { %8128 = vmatprep.subr.mxu0 %v11326_v23  ;;  %5048 = vmatprep.subr.mxu1 %v7637_v12 }
 0x76b   :  { %8129 = vmatpush3.msra.mxu0 %v11326_v23  ;;  %5049 = vmatpush1.msra.mxu1 %v7636_v28  ;;  %v7634_v23 = vld [vmem:[%s12305_s7 + $0x260] sm:$0xff] }
 0x76c   :  { %8131 = vmatmul.mubr.msk.f32.vlgmr.msra.gmra.mxu0 %vm273_vm0, %v5489_v2  ;;  %5050 = vmatprep.subr.mxu1 %v7635_v45 }
 0x76d   :  { %8133 = vmatprep.mubr.msk.f32.mxu0 %vm273_vm0, %v5490_v58  ;;  %5051 = vmatpush1.msra.mxu1 %v7634_v23 }
 0x76e   :  { %5052 = vmatprep.subr.mxu1 %v7633_v57 }
 0x76f   :  { %5053 = vmatpush1.msra.mxu1 %v7632_v18 }
 0x770   :  { %8134 = vmatmul.mubr.msk.f32.gmra.mxu0 %vm273_vm0, %v5491_v50  ;;  %5054 = vmatprep.subr.mxu1 %v7631_v41 }
 0x771   :  { %8136 = vmatprep.mubr.msk.f32.mxu0 %vm273_vm0, %v5492_v62  ;;  %5055 = vmatpush1.msra.mxu1 %v7630_v9 }
 0x772   :  { %5056 = vmatprep.subr.mxu1 %v7629_v17  ;;  %v7692_v17 = vld [vmem:[%s12305_s7 + $0x3b0] sm:$0xff] }
 0x773   :  { %5057 = vmatpush1.msra.mxu1 %v7628_v42 }
 0x774   :  { %8137 = vmatmul.mubr.msk.f32.gmra.mxu0 %vm273_vm0, %v5493_v31  ;;  %5058 = vmatprep.subr.mxu1 %v7627_v5  ;;  %v7691_v5 = vld [vmem:[%s12305_s7 + $0x3a8] sm:$0xff] }
 0x775   :  { %8139 = vmatprep.mubr.msk.f32.mxu0 %vm273_vm0, %v5494_v33  ;;  %5059 = vmatpush1.msra.mxu1 %v7626_v6  ;;  %v7689_v6 = vld [vmem:[%s12305_s7 + $0x398] sm:$0xff] }
 0x776   :  { %5060 = vmatprep.subr.mxu1 %v7625_v29  ;;  %v7688_v29 = vld [vmem:[%s12305_s7 + $0x390] sm:$0xff] }
 0x777   :  { %5061 = vmatpush1.msra.mxu1 %v7624_v11 }
 0x778   :  { %8140 = vmatmul.mubr.msk.f32.gmra.mxu0 %vm273_vm0, %v5495_v59  ;;  %5062 = vmatprep.subr.mxu1 %v7623_v47  ;;  %v7690_v59 = vld [vmem:[%s12305_s7 + $0x3a0] sm:$0xff]  ;;  %v7687_v47 = vld [vmem:[%s12305_s7 + $0x388] sm:$0xff] }
 0x779   :  { %5917 = vmatprep.mubr.f32.mxu0 %v12530_v20  ;;  %5063 = vmatpush1.msra.mxu1 %v7622_v26  ;;  %v7686_v26 = vld [vmem:[%s12305_s7 + $0x380] sm:$0xff] }
 0x77a   :  { %5064 = vmatprep.subr.mxu1 %v7621_v30  ;;  %v7685_v30 = vld [vmem:[%s12305_s7 + $0x378] sm:$0xff] }
 0x77b   :  { %5065 = vmatpush1.msra.mxu1 %v7620_v16  ;;  %v7684_v16 = vld [vmem:[%s12305_s7 + $0x370] sm:$0xff] }
 0x77c   :  { %5066 = vmatprep.subr.mxu1 %v7619_v43 }
 0x77d   :  { %5067 = vmatpush1.msra.mxu1 %v7618_v39  ;;  %v7683_v39 = vld [vmem:[%s12305_s7 + $0x368] sm:$0xff] }
 0x77e   :  { %5360 = vmatprep.subr.mxu1 %v7693_v21  ;;  %v7682_v21 = vld [vmem:[%s12305_s7 + $0x360] sm:$0xff] }
 0x7dc   :  { %v4659_v61 = vpop.f32.mrf.mxu0 }
 0x7de   :  { %v4661_v55 = vpop.f32.mrf.mxu0  ;;  %v4796_v7 = vpop.f32.mrf.mxu1 }
 0x7df   :  { %v11753_v13 = vadd.f32 %v4796_v7, %v4659_v61  ;;  %v7681_v61 = vld [vmem:[%s12305_s7 + $0x358] sm:$0xff] }
 0x7e0   :  { %v4665_v19 = vpop.f32.mrf.mxu0  ;;  %v4798_v8 = vpop.f32.mrf.mxu1 }
 0x7e1   :  { %v11755_v60 = vadd.f32 %v4798_v8, %v4661_v55  ;;  %v7680_v55 = vld [vmem:[%s12305_s7 + $0x350] sm:$0xff]  ;;  %v7678_v8 = vld [vmem:[%s12305_s7 + $0x340] sm:$0xff] }
 0x7e2   :  { %v4667_v24 = vpop.f32.mrf.mxu0  ;;  %v4802_v51 = vpop.f32.mrf.mxu1 }
 0x7e3   :  { %v11757_v27 = vadd.f32 %v4802_v51, %v4665_v19  ;;  %v7679_v19 = vld [vmem:[%s12305_s7 + $0x348] sm:$0xff]  ;;  %v7676_v51 = vld [vmem:[%s12305_s7 + $0x330] sm:$0xff] }
 0x7e4   :  { %v4671_v32 = vpop.f32.mrf.mxu0  ;;  %v4804_v56 = vpop.f32.mrf.mxu1 }
 0x7e5   :  { %v11759_v14 = vadd.f32 %v4804_v56, %v4667_v24  ;;  %v7677_v24 = vld [vmem:[%s12305_s7 + $0x338] sm:$0xff]  ;;  %v7675_v56 = vld [vmem:[%s12305_s7 + $0x328] sm:$0xff] }
 0x7e6   :  { %v4673_v34 = vpop.f32.mrf.mxu0  ;;  %v4808_v63 = vpop.f32.mrf.mxu1 }
 0x7e7   :  { %v11761_v22 = vadd.f32 %v4808_v63, %v4671_v32  ;;  %v7673_v63 = vld [vmem:[%s12305_s7 + $0x318] sm:$0xff] }
 0x7e8   :  { %v4677_v25 = vpop.f32.mrf.mxu0  ;;  %v4810_v4 = vpop.f32.mrf.mxu1 }
 0x7e9   :  { %v11763_v0 = vadd.f32 %v4810_v4, %v4673_v34  ;;  %v7674_v34 = vld [vmem:[%s12305_s7 + $0x320] sm:$0xff] }
 0x7ea   :  { %v4679_v1 = vpop.f32.mrf.mxu0  ;;  %v4814_v40 = vpop.f32.mrf.mxu1 }
 0x7eb   :  { %v11765_v38 = vadd.f32 %v4814_v40, %v4677_v25  ;;  %v7672_v25 = vld [vmem:[%s12305_s7 + $0x310] sm:$0xff]  ;;  %v7670_v40 = vld [vmem:[%s12305_s7 + $0x300] sm:$0xff] }
 0x7ec   :  { %v4683_v44 = vpop.f32.mrf.mxu0  ;;  %v4816_v10 = vpop.f32.mrf.mxu1 }
 0x7ed   :  { %v11767_v46 = vadd.f32 %v4816_v10, %v4679_v1  ;;  %v7671_v1 = vld [vmem:[%s12305_s7 + $0x308] sm:$0xff]  ;;  %v7668_v10 = vld [vmem:[%s12305_s7 + $0x2f0] sm:$0xff] }
 0x7ee   :  { %v4685_v49 = vpop.f32.mrf.mxu0  ;;  %v4820_v35 = vpop.f32.mrf.mxu1 }
 0x7ef   :  { %v11769_v15 = vadd.f32 %v4820_v35, %v4683_v44  ;;  %v7669_v44 = vld [vmem:[%s12305_s7 + $0x2f8] sm:$0xff]  ;;  %v7667_v35 = vld [vmem:[%s12305_s7 + $0x2e8] sm:$0xff] }
 0x7f0   :  { %v4689_v54 = vpop.f32.mrf.mxu0  ;;  %v4822_v52 = vpop.f32.mrf.mxu1 }
 0x7f1   :  { %v11771_v37 = vadd.f32 %v4822_v52, %v4685_v49  ;;  %v7665_v52 = vld [vmem:[%s12305_s7 + $0x2d8] sm:$0xff] }
 0x7f2   :  { %v4691_v53 = vpop.f32.mrf.mxu0  ;;  %v4826_v2 = vpop.f32.mrf.mxu1 }
 0x7f3   :  { %v11773_v58 = vadd.f32 %v4826_v2, %v4689_v54  ;;  %v7666_v54 = vld [vmem:[%s12305_s7 + $0x2e0] sm:$0xff] }
 0x7f4   :  { %v4695_v36 = vpop.f32.mrf.mxu0  ;;  %v4828_v12 = vpop.f32.mrf.mxu1 }
 0x7f5   :  { %v11775_v28 = vadd.f32 %v4828_v12, %v4691_v53  ;;  %v7664_v53 = vld [vmem:[%s12305_s7 + $0x2d0] sm:$0xff]  ;;  %v7738_v12 = vld [vmem:[%s12305_s7 + $0x4a0] sm:$0xff] }
 0x7f6   :  { %v4697_v45 = vpop.f32.mrf.mxu0  ;;  %v4832_v50 = vpop.f32.mrf.mxu1 }
 0x7f7   :  { %v11777_v62 = vadd.f32 %v4832_v50, %v4695_v36  ;;  %v7739_v36 = vld [vmem:[%s12305_s7 + $0x4a8] sm:$0xff]  ;;  %v7737_v50 = vld [vmem:[%s12305_s7 + $0x498] sm:$0xff] }
 0x7f8   :  { %v4701_v23 = vpop.f32.mrf.mxu0  ;;  %v4834_v57 = vpop.f32.mrf.mxu1 }
 0x7f9   :  { %v11779_v18 = vadd.f32 %v4834_v57, %v4697_v45  ;;  %v7735_v57 = vld [vmem:[%s12305_s7 + $0x488] sm:$0xff] }
 0x7fa   :  { %v11781_v41 = vpop.f32.mrf.mxu0  ;;  %v4838_v31 = vpop.f32.mrf.mxu1 }
 0x7fb   :  { %v11783_v33 = vadd.f32 %v4838_v31, %v4701_v23  ;;  %v7736_v23 = vld [vmem:[%s12305_s7 + $0x490] sm:$0xff]  ;;  %v7734_v31 = vld [vmem:[%s12305_s7 + $0x480] sm:$0xff] }
 0x7fc   :  { %v8060_v9 = vpop.f32.mrf.mxu0 }
 0x7fe   :  { %v4942_v42 = vpop.f32.mrf.mxu0 }
 0x7ff   :  { %7648 = vmatmul.mubr.msk.f32.vlgmr.msra.gmra.mxu1 %vm4568_vm5, %v4942_v42  ;;  %v7732_v42 = vld [vmem:[%s12305_s7 + $0x470] sm:$0xff] }
 0x800   :  { %5106 = vmatprep.mubr.f32.mxu1 %v12530_v20  ;;  %5361 = vmatpush1.msra.mxu1 %v7692_v17  ;;  %v8063_v11 = vpop.f32.mrf.mxu0  ;;  %v7733_v17 = vld [vmem:[%s12305_s7 + $0x478] sm:$0xff] }
 0x801   :  { %5362 = vmatprep.subr.mxu1 %v7691_v5  ;;  %v7731_v5 = vld [vmem:[%s12305_s7 + $0x468] sm:$0xff] }
 0x802   :  { %5363 = vmatpush1.msra.mxu1 %v7690_v59  ;;  %v4952_v43 = vpop.f32.mrf.mxu0  ;;  %v7730_v59 = vld [vmem:[%s12305_s7 + $0x460] sm:$0xff] }
 0x803   :  { %7649 = vmatmul.mubr.msk.f32.gmra.mxu1 %vm4568_vm5, %v8060_v9  ;;  %5364 = vmatprep.subr.mxu1 %v7689_v6 }
 0x804   :  { %5112 = vmatprep.mubr.f32.mxu1 %v12530_v20  ;;  %5365 = vmatpush1.msra.mxu1 %v7688_v29  ;;  %v8066_v7 = vpop.f32.mrf.mxu0  ;;  %v7729_v29 = vld [vmem:[%s12305_s7 + $0x458] sm:$0xff] }
 0x805   :  { %5366 = vmatprep.subr.mxu1 %v7687_v47  ;;  %v7727_v47 = vld [vmem:[%s12305_s7 + $0x448] sm:$0xff] }
 0x806   :  { %5367 = vmatpush1.msra.mxu1 %v7686_v26  ;;  %v4962_v32 = vpop.f32.mrf.mxu0  ;;  %v7726_v26 = vld [vmem:[%s12305_s7 + $0x440] sm:$0xff] }
 0x807   :  { %7650 = vmatmul.mubr.msk.f32.gmra.mxu1 %vm4568_vm5, %v4952_v43  ;;  %5368 = vmatprep.subr.mxu1 %v7685_v30  ;;  %v7724_v43 = vld [vmem:[%s12305_s7 + $0x430] sm:$0xff] }
 0x808   :  { %5118 = vmatprep.mubr.f32.mxu1 %v12530_v20  ;;  %5369 = vmatpush1.msra.mxu1 %v7684_v16  ;;  %v8069_v4 = vpop.f32.mrf.mxu0  ;;  %v7725_v16 = vld [vmem:[%s12305_s7 + $0x438] sm:$0xff] }
 0x809   :  { %5370 = vmatprep.subr.mxu1 %v7683_v39  ;;  %v7723_v39 = vld [vmem:[%s12305_s7 + $0x428] sm:$0xff] }
 0x80a   :  { %5371 = vmatpush1.msra.mxu1 %v7682_v21  ;;  %v4972_v49 = vpop.f32.mrf.mxu0  ;;  %v7722_v21 = vld [vmem:[%s12305_s7 + $0x420] sm:$0xff] }
 0x80b   :  { %7651 = vmatmul.mubr.msk.f32.gmra.mxu1 %vm4568_vm5, %v8063_v11  ;;  %5372 = vmatprep.subr.mxu1 %v7681_v61  ;;  %v7728_v11 = vld [vmem:[%s12305_s7 + $0x450] sm:$0xff] }
 0x80c   :  { %5124 = vmatprep.mubr.f32.mxu1 %v12530_v20  ;;  %5373 = vmatpush1.msra.mxu1 %v7680_v55  ;;  %v7721_v55 = vld [vmem:[%s12305_s7 + $0x418] sm:$0xff] }
 0x80d   :  { %5374 = vmatprep.subr.mxu1 %v7679_v19  ;;  %v7719_v19 = vld [vmem:[%s12305_s7 + $0x408] sm:$0xff] }
 0x80e   :  { %5375 = vmatpush1.msra.mxu1 %v7678_v8  ;;  %v7718_v8 = vld [vmem:[%s12305_s7 + $0x400] sm:$0xff] }
 0x80f   :  { %7652 = vmatmul.mubr.msk.f32.gmra.mxu1 %vm4568_vm5, %v4962_v32  ;;  %5376 = vmatprep.subr.mxu1 %v7677_v24  ;;  %v7716_v32 = vld [vmem:[%s12305_s7 + $0x3f0] sm:$0xff] }
 0x810   :  { %5130 = vmatprep.mubr.f32.mxu1 %v12530_v20  ;;  %5377 = vmatpush1.msra.mxu1 %v7676_v51  ;;  %v7717_v51 = vld [vmem:[%s12305_s7 + $0x3f8] sm:$0xff] }
 0x811   :  { %5378 = vmatprep.subr.mxu1 %v7675_v56  ;;  %v7715_v56 = vld [vmem:[%s12305_s7 + $0x3e8] sm:$0xff] }
 0x812   :  { %5379 = vmatpush1.msra.mxu1 %v7674_v34  ;;  %v7714_v34 = vld [vmem:[%s12305_s7 + $0x3e0] sm:$0xff] }
 0x813   :  { %7653 = vmatmul.mubr.msk.f32.gmra.mxu1 %vm4568_vm5, %v8066_v7  ;;  %5380 = vmatprep.subr.mxu1 %v7673_v63  ;;  %v7720_v7 = vld [vmem:[%s12305_s7 + $0x410] sm:$0xff] }
 0x814   :  { %5136 = vmatprep.mubr.f32.mxu1 %v12530_v20  ;;  %5381 = vmatpush1.msra.mxu1 %v7672_v25  ;;  %v8096_v2 = vpop.f32.mrf.mxu0  ;;  %v7713_v25 = vld [vmem:[%s12305_s7 + $0x3d8] sm:$0xff] }
 0x815   :  { %5382 = vmatprep.subr.mxu1 %v7671_v1  ;;  %v7711_v1 = vld [vmem:[%s12305_s7 + $0x3c8] sm:$0xff] }
 0x816   :  { %5383 = vmatpush1.msra.mxu1 %v7670_v40  ;;  %v5264_v45 = vpop.f32.mrf.mxu0  ;;  %v7710_v40 = vld [vmem:[%s12305_s7 + $0x3c0] sm:$0xff] }
 0x817   :  { %7654 = vmatmul.mubr.msk.f32.gmra.mxu1 %vm4568_vm5, %v4972_v49  ;;  %5384 = vmatprep.subr.mxu1 %v7669_v44 }
 0x818   :  { %5142 = vmatprep.mubr.f32.mxu1 %v12530_v20  ;;  %5385 = vmatpush1.msra.mxu1 %v7668_v10  ;;  %v8099_v9 = vpop.f32.mrf.mxu0 }
 0x819   :  { %5386 = vmatprep.subr.mxu1 %v7667_v35 }
 0x81a   :  { %5387 = vmatpush1.msra.mxu1 %v7666_v54  ;;  %v5274_v6 = vpop.f32.mrf.mxu0 }
 0x81b   :  { %7655 = vmatmul.mubr.msk.f32.gmra.mxu1 %vm4568_vm5, %v8069_v4  ;;  %5388 = vmatprep.subr.mxu1 %v7665_v52  ;;  %v7712_v4 = vld [vmem:[%s12305_s7 + $0x3d0] sm:$0xff] }
 0x81c   :  { %5389 = vmatpush1.msra.mxu1 %v7664_v53  ;;  %5422 = vmatprep.mubr.f32.mxu1 %v12530_v20  ;;  %v8102_v30 = vpop.f32.mrf.mxu0 }
 0x81d   :  { %5682 = vmatprep.subr.mxu1 %v7739_v36  ;;  %v12010_v36 = vpop.f32.mrf.mxu1 }
 0x81e   :  { %v5284_v61 = vpop.f32.mrf.mxu0 }
 0x81f   :  { %7694 = vmatmul.mubr.msk.f32.vlgmr.msra.gmra.mxu1 %vm4568_vm5, %v5264_v45 }
 0x820   :  { %5428 = vmatprep.mubr.f32.mxu1 %v12530_v20  ;;  %5683 = vmatpush1.msra.mxu1 %v7738_v12  ;;  %v8105_v24 = vpop.f32.mrf.mxu0 }
 0x821   :  { %5684 = vmatprep.subr.mxu1 %v7737_v50 }
 0x822   :  { %5685 = vmatpush1.msra.mxu1 %v7736_v23  ;;  %v5294_v63 = vpop.f32.mrf.mxu0 }
 0x823   :  { %7695 = vmatmul.mubr.msk.f32.gmra.mxu1 %vm4568_vm5, %v8096_v2  ;;  %5686 = vmatprep.subr.mxu1 %v7735_v57 }
 0x824   :  { %5434 = vmatprep.mubr.f32.mxu1 %v12530_v20  ;;  %5687 = vmatpush1.msra.mxu1 %v7734_v31 }
 0x825   :  { %5688 = vmatprep.subr.mxu1 %v7733_v17 }
 0x826   :  { %5689 = vmatpush1.msra.mxu1 %v7732_v42 }
 0x827   :  { %7696 = vmatmul.mubr.msk.f32.gmra.mxu1 %vm4568_vm5, %v5274_v6  ;;  %5690 = vmatprep.subr.mxu1 %v7731_v5 }
 0x828   :  { %5440 = vmatprep.mubr.f32.mxu1 %v12530_v20  ;;  %5691 = vmatpush1.msra.mxu1 %v7730_v59 }
 0x829   :  { %5692 = vmatprep.subr.mxu1 %v7729_v29 }
 0x82a   :  { %5693 = vmatpush1.msra.mxu1 %v7728_v11 }
 0x82b   :  { %7697 = vmatmul.mubr.msk.f32.gmra.mxu1 %vm4568_vm5, %v8099_v9  ;;  %5694 = vmatprep.subr.mxu1 %v7727_v47  ;;  %v6070_v47 = vld [vmem:[#allocation13 + $0x70] sm:$0xff] }
 0x82c   :  { %5446 = vmatprep.mubr.f32.mxu1 %v12530_v20  ;;  %5695 = vmatpush1.msra.mxu1 %v7726_v26  ;;  %v8132_v44 = vpop.f32.mrf.mxu0 }
 0x82d   :  { %5696 = vmatprep.subr.mxu1 %v7725_v16 }
 0x82e   :  { %5697 = vmatpush1.msra.mxu1 %v7724_v43  ;;  %v5586_v10 = vpop.f32.mrf.mxu0 }
 0x82f   :  { %7698 = vmatmul.mubr.msk.f32.gmra.mxu1 %vm4568_vm5, %v5284_v61  ;;  %5698 = vmatprep.subr.mxu1 %v7723_v39 }
 0x830   :  { %5452 = vmatprep.mubr.f32.mxu1 %v12530_v20  ;;  %5699 = vmatpush1.msra.mxu1 %v7722_v21  ;;  %v8135_v49 = vpop.f32.mrf.mxu0 }
 0x831   :  { %5700 = vmatprep.subr.mxu1 %v7721_v55  ;;  %v6065_v55 = vld [vmem:[#allocation13 + $0x48] sm:$0xff] }
 0x832   :  { %5701 = vmatpush1.msra.mxu1 %v7720_v7  ;;  %v5596_v35 = vpop.f32.mrf.mxu0 }
 0x833   :  { %7699 = vmatmul.mubr.msk.f32.gmra.mxu1 %vm4568_vm5, %v8102_v30  ;;  %5702 = vmatprep.subr.mxu1 %v7719_v19  ;;  %v6064_v19 = vld [vmem:[#allocation13 + $0x40] sm:$0xff] }
 0x834   :  { %5458 = vmatprep.mubr.f32.mxu1 %v12530_v20  ;;  %5703 = vmatpush1.msra.mxu1 %v7718_v8  ;;  %v8138_v54 = vpop.f32.mrf.mxu0 }
 0x835   :  { %5704 = vmatprep.subr.mxu1 %v7717_v51 }
 0x836   :  { %5705 = vmatpush1.msra.mxu1 %v7716_v32  ;;  %v5606_v52 = vpop.f32.mrf.mxu0 }
 0x837   :  { %7700 = vmatmul.mubr.msk.f32.gmra.mxu1 %vm4568_vm5, %v5294_v63  ;;  %5706 = vmatprep.subr.mxu1 %v7715_v56 }
 0x838   :  { %5464 = vmatprep.mubr.f32.mxu1 %v12530_v20  ;;  %5707 = vmatpush1.msra.mxu1 %v7714_v34  ;;  %v8141_v53 = vpop.f32.mrf.mxu0 }
 0x839   :  { %5708 = vmatprep.subr.mxu1 %v7713_v25 }
 0x83a   :  { %5709 = vmatpush1.msra.mxu1 %v7712_v4  ;;  %v5616_v2 = vpop.f32.mrf.mxu0 }
 0x83b   :  { %7701 = vmatmul.mubr.msk.f32.gmra.mxu1 %vm4568_vm5, %v8105_v24  ;;  %5710 = vmatprep.subr.mxu1 %v7711_v1 }
 0x83c   :  { %5711 = vmatpush1.msra.mxu1 %v7710_v40  ;;  %5744 = vmatprep.mubr.f32.mxu1 %v12530_v20 }
 0x83d   :  { %6089 = vmatprep.subr.mxu1 %v12530_v20 }
 0x83f   :  { %7740 = vmatmul.mubr.msk.f32.vlgmr.msra.gmra.mxu1 %vm4568_vm5, %v5586_v10 }
 0x840   :  { %5750 = vmatprep.mubr.f32.mxu1 %v12530_v20 }
 0x843   :  { %7741 = vmatmul.mubr.msk.f32.gmra.mxu1 %vm4568_vm5, %v8132_v44 }
 0x844   :  { %5756 = vmatprep.mubr.f32.mxu1 %v12530_v20 }
 0x847   :  { %7742 = vmatmul.mubr.msk.f32.gmra.mxu1 %vm4568_vm5, %v5596_v35 }
 0x848   :  { %5762 = vmatprep.mubr.f32.mxu1 %v12530_v20 }
 0x84b   :  { %7743 = vmatmul.mubr.msk.f32.gmra.mxu1 %vm4568_vm5, %v8135_v49 }
 0x84c   :  { %5768 = vmatprep.mubr.f32.mxu1 %v12530_v20 }
 0x84f   :  { %7744 = vmatmul.mubr.msk.f32.gmra.mxu1 %vm4568_vm5, %v5606_v52 }
 0x850   :  { %5774 = vmatprep.mubr.f32.mxu1 %v12530_v20 }
 0x853   :  { %7745 = vmatmul.mubr.msk.f32.gmra.mxu1 %vm4568_vm5, %v8138_v54 }
 0x854   :  { %5780 = vmatprep.mubr.f32.mxu1 %v12530_v20 }
 0x857   :  { %7746 = vmatmul.mubr.msk.f32.gmra.mxu1 %vm4568_vm5, %v5616_v2 }
 0x858   :  { %5786 = vmatprep.mubr.f32.mxu1 %v12530_v20 }
 0x85b   :  { %7747 = vmatmul.mubr.msk.f32.gmra.mxu1 %vm4568_vm5, %v8141_v53 }
 0x8bf   :  { %v5102_v12 = vpop.f32.mrf.mxu1 }
 0x8c0   :  { %v5149_v45 = vadd.f32 %v5102_v12, %v11753_v13 }
 0x8c1   :  { %v5104_v50 = vpop.f32.mrf.mxu1 }
 0x8c2   :  { %v5150_v23 = vadd.f32 %v5104_v50, %v11755_v60 }
 0x8c3   :  { %v5108_v57 = vpop.f32.mrf.mxu1 }
 0x8c4   :  { %v5151_v31 = vadd.f32 %v5108_v57, %v11757_v27  ;;  %v6071_v27 = vld [vmem:[#allocation13 + $0x78] sm:$0xff] }
 0x8c5   :  { %v5110_v9 = vpop.f32.mrf.mxu1  ;;  %6090 = vmatpush1.msra.mxu1 %v6071_v27 }
 0x8c6   :  { %v5152_v17 = vadd.f32 %v5110_v9, %v11759_v14  ;;  %6091 = vmatprep.subr.mxu1 %v12530_v20 }
 0x8c7   :  { %v5114_v42 = vpop.f32.mrf.mxu1  ;;  %6092 = vmatpush1.msra.mxu1 %v6070_v47 }
 0x8c8   :  { %v12017_v5 = vadd.f32 %v5114_v42, %v11761_v22  ;;  %v6069_v22 = vld [vmem:[#allocation13 + $0x68] sm:$0xff]  ;;  %6093 = vmatprep.subr.mxu1 %v12530_v20 }
 0x8c9   :  { %v5116_v59 = vpop.f32.mrf.mxu1  ;;  %6094 = vmatpush1.msra.mxu1 %v6069_v22 }
 0x8ca   :  { %v12020_v6 = vadd.f32 %v5116_v59, %v11763_v0  ;;  %6095 = vmatprep.subr.mxu1 %v12530_v20 }
 0x8cb   :  { %v5120_v29 = vpop.f32.mrf.mxu1 }
 0x8cc   :  { %v12023_v13 = vadd.f32 %v5120_v29, %v11765_v38  ;;  %v6068_v38 = vld [vmem:[#allocation13 + $0x60] sm:$0xff] }
 0x8cd   :  { %v5122_v11 = vpop.f32.mrf.mxu1  ;;  %6096 = vmatpush1.msra.mxu1 %v6068_v38 }
 0x8ce   :  { %v12026_v60 = vadd.f32 %v5122_v11, %v11767_v46  ;;  %6097 = vmatprep.subr.mxu1 %v12530_v20 }
 0x8cf   :  { %v5126_v26 = vpop.f32.mrf.mxu1 }
 0x8d0   :  { %v12029_v14 = vadd.f32 %v5126_v26, %v11769_v15  ;;  %v6067_v15 = vld [vmem:[#allocation13 + $0x58] sm:$0xff]  ;;  %v4841_v26 = vadd.f32 %v12010_v36, %v11781_v41 }
 0x8d1   :  { %v5128_v0 = vpop.f32.mrf.mxu1  ;;  %6098 = vmatpush1.msra.mxu1 %v6067_v15 }
 0x8d2   :  { %v12033_v30 = vadd.f32 %v5128_v0, %v11771_v37  ;;  %v6066_v37 = vld [vmem:[#allocation13 + $0x50] sm:$0xff]  ;;  %6099 = vmatprep.subr.mxu1 %v12530_v20 }
 0x8d3   :  { %v5132_v46 = vpop.f32.mrf.mxu1  ;;  %6100 = vmatpush1.msra.mxu1 %v6066_v37 }
 0x8d4   :  { %v12037_v16 = vadd.f32 %v5132_v46, %v11773_v58  ;;  %6101 = vmatprep.subr.mxu1 %v12530_v20 }
 0x8d5   :  { %v5134_v43 = vpop.f32.mrf.mxu1  ;;  %6102 = vmatpush1.msra.mxu1 %v6065_v55 }
 0x8d6   :  { %v12041_v39 = vadd.f32 %v5134_v43, %v11775_v28  ;;  %6103 = vmatprep.subr.mxu1 %v12530_v20  ;;  %v6063_v28 = vld [vmem:[#allocation13 + $0x38] sm:$0xff] }
 0x8d7   :  { %v5138_v21 = vpop.f32.mrf.mxu1  ;;  %6104 = vmatpush1.msra.mxu1 %v6064_v19 }
 0x8d8   :  { %v5161_v61 = vadd.f32 %v5138_v21, %v11777_v62  ;;  %6105 = vmatprep.subr.mxu1 %v12530_v20  ;;  %v5809_v21 = vld [vmem:[#allocation11] sm:$0x3] }
 0x8d9   :  { %v5140_v58 = vpop.f32.mrf.mxu1  ;;  %6106 = vmatpush1.msra.mxu1 %v6063_v28 }
 0x8da   :  { %v5162_v7 = vadd.f32 %v5140_v58, %v11779_v18  ;;  %6107 = vmatprep.subr.mxu1 %v12530_v20 }
 0x8db   :  { %v5144_v8 = vpop.f32.mrf.mxu1 }
 0x8dc   :  { %v5163_v22 = vadd.f32 %v5144_v8, %v11783_v33  ;;  %v12531_v33 = vsub.s32 0, %v10856_v48 }
 0x8dd   :  { %v5146_v24 = vpop.f32.mrf.mxu1 }
 0x8de   :  { %v5164_v38 = vadd.f32 %v5146_v24, %v4841_v26  ;;  %v5814_v36 = vrot.slane %v5809_v21, %v12531_v33  ;;  %v6187_v26 = vld [vmem:[#allocation13 + $0x100] sm:$0xff]  ;;  %v6177_v33 = vld [vmem:[#allocation13 + $0xb0] sm:$0xff] }
 0x8df   :  { %v5424_v62 = vpop.f32.mrf.mxu1 }
 0x8e0   :  { %v12050_v51 = vadd.f32 %v5424_v62, %v5149_v45  ;;  %v5818_v62 = vrot.slane %v5809_v21, %v3388_v3  ;;  %v6062_v21 = vld [vmem:[#allocation13 + $0x30] sm:$0xff] }
 0x8e1   :  { %v5426_v32 = vpop.f32.mrf.mxu1  ;;  %6108 = vmatpush1.msra.mxu1 %v6062_v21 }
 0x8e2   :  { %v12053_v18 = vadd.f32 %v5426_v32, %v5150_v23  ;;  %6109 = vmatprep.subr.mxu1 %v12530_v20 }
 0x8e3   :  { %v5430_v56 = vpop.f32.mrf.mxu1 }
 0x8e4   :  { %v12055_v34 = vadd.f32 %v5430_v56, %v5151_v31 }
 0x8e5   :  { %v5432_v63 = vpop.f32.mrf.mxu1 }
 0x8e6   :  { %v12057_v25 = vadd.f32 %v5432_v63, %v5152_v17 }
 0x8e7   :  { %v5436_v4 = vpop.f32.mrf.mxu1 }
 0x8e9   :  { %v5438_v1 = vpop.f32.mrf.mxu1 }
 0x8ea   :  { %v5476_v48 = vadd.f32 %v5438_v1, %v12020_v6 }
 0x8eb   :  { %v5442_v40 = vpop.f32.mrf.mxu1 }
 0x8ed   :  { %v5444_v44 = vpop.f32.mrf.mxu1 }
 0x8ef   :  { %v5448_v10 = vpop.f32.mrf.mxu1 }
 0x8f1   :  { %v5450_v49 = vpop.f32.mrf.mxu1 }
 0x8f3   :  { %v5454_v35 = vpop.f32.mrf.mxu1 }
 0x8f4   :  { %v5481_v41 = vadd.f32 %v5454_v35, %v12037_v16 }
 0x8f5   :  { %v5456_v54 = vpop.f32.mrf.mxu1 }
 0x8f6   :  { %v5482_v28 = vadd.f32 %v5456_v54, %v12041_v39  ;;  %v5478_v39 = vadd.f32 %v5444_v44, %v12026_v60 }
 0x8f7   :  { %v5460_v52 = vpop.f32.mrf.mxu1 }
 0x8f8   :  { %v5483_v55 = vadd.f32 %v5460_v52, %v5161_v61  ;;  %v5479_v61 = vadd.f32 %v5448_v10, %v12029_v14 }
 0x8f9   :  { %v5462_v53 = vpop.f32.mrf.mxu1 }
 0x8fa   :  { %v5484_v43 = vadd.f32 %v5462_v53, %v5162_v7  ;;  %v5480_v7 = vadd.f32 %v5450_v49, %v12033_v30  ;;  %v5475_v49 = vadd.f32 %v5436_v4, %v12017_v5 }
 0x8fb   :  { %v5466_v2 = vpop.f32.mrf.mxu1 }
 0x8fc   :  { %v5485_v46 = vadd.f32 %v5466_v2, %v5163_v22  ;;  %v5477_v2 = vadd.f32 %v5442_v40, %v12023_v13  ;;  %v7754_v22 = vld [vmem:[%s12307_s9 + $0x30] sm:$0xff] }
 0x8fd   :  { %v5468_v12 = vpop.f32.mrf.mxu1 }
 0x8fe   :  { %v5486_v37 = vadd.f32 %v5468_v12, %v5164_v38  ;;  %v6185_v38 = vld [vmem:[#allocation13 + $0xf0] sm:$0xff] }
 0x8ff   :  { %v12059_v45 = vpop.f32.mrf.mxu1 }
 0x901   :  { %v12061_v50 = vpop.f32.mrf.mxu1 }
 0x902   :  { %v5794_v5 = vadd.f32 %v12061_v50, %v12053_v18  ;;  %v5839_v18 = vld [vmem:[%s12307_s9 + $0x10] sm:$0xff]  ;;  %v7752_v50 = vld [vmem:[%s12307_s9 + $0x20] sm:$0xff] }
 0x903   :  { %v5752_v23 = vpop.f32.mrf.mxu1 }
 0x904   :  { %v5795_v6 = vadd.f32 %v5752_v23, %v12055_v34  ;;  %v5837_v34 = vld [vmem:[%s12307_s9] sm:$0xff] }
 0x905   :  { %v5754_v57 = vpop.f32.mrf.mxu1  ;;  %v6190_v23 = vld [vmem:[#allocation13 + $0x118] sm:$0xff] }
 0x906   :  { %v5796_v13 = vadd.f32 %v5754_v57, %v12057_v25  ;;  %v5822_v25 = vadd.f32 %v5818_v62, %v5794_v5 }
 0x907   :  { %v5758_v31 = vpop.f32.mrf.mxu1 }
 0x908   :  { %v5797_v44 = vadd.f32 %v5758_v31, %v5475_v49  ;;  %v5824_v31 = vadd.f32 %v5818_v62, %v5796_v13 }
 0x909   :  { %v5760_v9 = vpop.f32.mrf.mxu1 }
 0x90b   :  { %v5764_v17 = vpop.f32.mrf.mxu1 }
 0x90c   :  { %v5799_v14 = vadd.f32 %v5764_v17, %v5477_v2  ;;  %v5825_v17 = vadd.f32 %v5814_v36, %v5797_v44  ;;  %v6191_v2 = vld [vmem:[#allocation13 + $0x120] sm:$0xff] }
 0x90d   :  { %v5766_v42 = vpop.f32.mrf.mxu1 }
 0x90e   :  { %v5800_v12 = vadd.f32 %v5766_v42, %v5478_v39  ;;  %v5827_v1 = vadd.f32 %v5814_v36, %v5799_v14  ;;  %v5823_v42 = vadd.f32 %v5814_v36, %v5795_v6  ;;  %v6073_v39 = vld [vmem:[#allocation13 + $0x88] sm:$0xff] }
 0x90f   :  { %v5770_v59 = vpop.f32.mrf.mxu1 }
 0x910   :  { %v5801_v16 = vadd.f32 %v5770_v59, %v5479_v61  ;;  %v5828_v40 = vadd.f32 %v5818_v62, %v5800_v12  ;;  %v6189_v59 = vld [vmem:[#allocation13 + $0x110] sm:$0xff]  ;;  %v6194_v61 = vld [vmem:[#allocation13 + $0x138] sm:$0xff] }
 0x911   :  { %v5772_v29 = vpop.f32.mrf.mxu1 }
 0x912   :  { %v5802_v54 = vadd.f32 %v5772_v29, %v5480_v7  ;;  %v5829_v29 = vadd.f32 %v5814_v36, %v5801_v16  ;;  %v6056_v7 = vld [vmem:[#allocation13] sm:$0xff] }
 0x913   :  { %v5776_v11 = vpop.f32.mrf.mxu1 }
 0x914   :  { %v5803_v52 = vadd.f32 %v5776_v11, %v5481_v41  ;;  %v5798_v11 = vadd.f32 %v5760_v9, %v5476_v48  ;;  %v5830_v60 = vadd.f32 %v5818_v62, %v5802_v54  ;;  %v5793_v9 = vadd.f32 %v12059_v45, %v12050_v51  ;;  %v5838_v51 = vld [vmem:[%s12307_s9 + $0x8] sm:$0xff]  ;;  %v5840_v45 = vld [vmem:[%s12307_s9 + $0x18] sm:$0xff] }
 0x915   :  { %v5778_v27 = vpop.f32.mrf.mxu1  ;;  %v6058_v41 = vld [vmem:[#allocation13 + $0x10] sm:$0xff]  ;;  %v6192_v54 = vld [vmem:[#allocation13 + $0x128] sm:$0xff] }
 0x916   :  { %v5804_v24 = vadd.f32 %v5778_v27, %v5482_v28  ;;  %v5831_v10 = vadd.f32 %v5814_v36, %v5803_v52  ;;  %v5826_v4 = vadd.f32 %v5818_v62, %v5798_v11  ;;  %v5821_v57 = vadd.f32 %v5814_v36, %v5793_v9  ;;  %v7753_v27 = vld [vmem:[%s12307_s9 + $0x28] sm:$0xff]  ;;  %v6074_v52 = vld [vmem:[#allocation13 + $0x90] sm:$0xff] }
 0x917   :  { %v5782_v47 = vpop.f32.mrf.mxu1  ;;  %v6060_v28 = vld [vmem:[#allocation13 + $0x20] sm:$0xff] }
 0x918   :  { %v5805_v8 = vadd.f32 %v5782_v47, %v5483_v55  ;;  %v5832_v30 = vadd.f32 %v5818_v62, %v5804_v24  ;;  %v6188_v47 = vld [vmem:[#allocation13 + $0x108] sm:$0xff]  ;;  %v6181_v55 = vld [vmem:[#allocation13 + $0xd0] sm:$0xff]  ;;  %v6175_v24 = vld [vmem:[#allocation13 + $0xa0] sm:$0xff] }
 0x919   :  { %v5784_v0 = vpop.f32.mrf.mxu1 }
 0x91a   :  { %v5806_v32 = vadd.f32 %v5784_v0, %v5484_v43  ;;  %v5833_v35 = vadd.f32 %v5814_v36, %v5805_v8  ;;  %v6186_v0 = vld [vmem:[#allocation13 + $0xf8] sm:$0xff]  ;;  %v6183_v43 = vld [vmem:[#allocation13 + $0xe0] sm:$0xff]  ;;  %v6176_v8 = vld [vmem:[#allocation13 + $0xa8] sm:$0xff] }
 0x91b   :  { %v5788_v15 = vpop.f32.mrf.mxu1 }
 0x91c   :  { %v5807_v58 = vadd.f32 %v5788_v15, %v5485_v46  ;;  %v5834_v3 = vadd.f32 %v5818_v62, %v5806_v32  ;;  %v7755_v46 = vld [vmem:[%s12307_s9 + $0x38] sm:$0xff]  ;;  %v6184_v15 = vld [vmem:[#allocation13 + $0xe8] sm:$0xff] }
 0x91d   :  { %v5790_v19 = vpop.f32.mrf.mxu1  ;;  %v6059_v32 = vld [vmem:[#allocation13 + $0x18] sm:$0xff] }
 0x91e   :  { %v5808_v56 = vadd.f32 %v5790_v19, %v5486_v37  ;;  %v5835_v53 = vadd.f32 %v5814_v36, %v5807_v58  ;;  %v6182_v37 = vld [vmem:[#allocation13 + $0xd8] sm:$0xff]  ;;  %v6061_v58 = vld [vmem:[#allocation13 + $0x28] sm:$0xff] }
 0x91f   :  { %v6180_v19 = vld [vmem:[#allocation13 + $0xc8] sm:$0xff]  ;;  %6110 = vmatpush1.msra.mxu1 %v6061_v58 }
 0x920   :  { %v5836_v63 = vadd.f32 %v5818_v62, %v5808_v56  ;;  %6111 = vmatprep.subr.mxu1 %v12530_v20  ;;  %v6179_v62 = vld [vmem:[#allocation13 + $0xc0] sm:$0xff]  ;;  %v6178_v56 = vld [vmem:[#allocation13 + $0xb8] sm:$0xff]  ;;  %v6057_v36 = vld [vmem:[#allocation13 + $0x8] sm:$0xff] }
 0x921   :  { %6112 = vmatpush1.msra.mxu1 %v6060_v28 }
 0x922   :  { %5869 = vmatprep.subr.mxu0 %v5836_v63  ;;  %6113 = vmatprep.subr.mxu1 %v12530_v20 }
 0x923   :  { %5870 = vmatpush1.msra.mxu0 %v5835_v53  ;;  %6114 = vmatpush1.msra.mxu1 %v6059_v32 }
 0x924   :  { %5871 = vmatprep.subr.mxu0 %v5834_v3  ;;  %6115 = vmatprep.subr.mxu1 %v12530_v20 }
 0x925   :  { %5872 = vmatpush1.msra.mxu0 %v5833_v35  ;;  %6116 = vmatpush1.msra.mxu1 %v6058_v41 }
 0x926   :  { %5873 = vmatprep.subr.mxu0 %v5832_v30  ;;  %6117 = vmatprep.subr.mxu1 %v12530_v20 }
 0x927   :  { %5874 = vmatpush1.msra.mxu0 %v5831_v10  ;;  %6118 = vmatpush1.msra.mxu1 %v6057_v36 }
 0x928   :  { %5875 = vmatprep.subr.mxu0 %v5830_v60  ;;  %6119 = vmatprep.subr.mxu1 %v12530_v20 }
 0x929   :  { %5876 = vmatpush1.msra.mxu0 %v5829_v29  ;;  %6120 = vmatpush1.msra.mxu1 %v6056_v7 }
 0x92a   :  { %5877 = vmatprep.subr.mxu0 %v5828_v40  ;;  %6145 = vmatprep.subr.mxu1 %v12530_v20 }
 0x92b   :  { %5878 = vmatpush1.msra.mxu0 %v5827_v1 }
 0x92c   :  { %5879 = vmatprep.subr.mxu0 %v5826_v4 }
 0x92d   :  { %5880 = vmatpush1.msra.mxu0 %v5825_v17 }
 0x92e   :  { %5881 = vmatprep.subr.mxu0 %v5824_v31 }
 0x92f   :  { %5882 = vmatpush1.msra.mxu0 %v5823_v42 }
 0x930   :  { %5883 = vmatprep.subr.mxu0 %v5822_v25 }
 0x931   :  { %5884 = vmatpush1.msra.mxu0 %v5821_v57 }
 0x932   :  { %7748 = vmatmul.mubr.msk.f32.vlgmr.msra.gmra.mxu0 %vm3464_vm3, %v5837_v34  ;;  %5975 = vmatprep.subr.mxu0 %v5836_v63  ;;  %v6075_v63 = vld [vmem:[#allocation13 + $0x98] sm:$0xff] }
 0x933   :  { %5976 = vmatpush1.msra.mxu0 %v5835_v53  ;;  %5923 = vmatprep.mubr.f32.mxu0 %v12530_v20  ;;  %v6193_v53 = vld [vmem:[#allocation13 + $0x130] sm:$0xff]  ;;  %v6457_v34 = vld [vmem:[#allocation14 + $0x98] sm:$0xff] }
 0x934   :  { %5977 = vmatprep.subr.mxu0 %v5834_v3  ;;  %6146 = vmatpush2.msra.mxu1 %v6075_v63  ;;  %v6072_v3 = vld [vmem:[#allocation13 + $0x80] sm:$0xff] }
 0x935   :  { %5978 = vmatpush1.msra.mxu0 %v5833_v35  ;;  %6147 = vmatprep.subr.mxu1 %v12530_v20  ;;  %v7769_v63 = vld [vmem:[%s12309_s11 + $0x8] sm:$0xff] }
 0x936   :  { %7749 = vmatmul.mubr.msk.f32.gmra.mxu0 %vm3464_vm3, %v5838_v51  ;;  %5979 = vmatprep.subr.mxu0 %v5832_v30  ;;  %v6456_v51 = vld [vmem:[#allocation14 + $0x90] sm:$0xff] }
 0x937   :  { %5980 = vmatpush1.msra.mxu0 %v5831_v10  ;;  %5929 = vmatprep.mubr.f32.mxu0 %v12530_v20 }
 0x938   :  { %5981 = vmatprep.subr.mxu0 %v5830_v60  ;;  %6148 = vmatpush2.msra.mxu1 %v6074_v52  ;;  %v6370_v52 = vld [vmem:[#allocation14 + $0x40] sm:$0xff] }
 0x939   :  { %5982 = vmatpush1.msra.mxu0 %v5829_v29  ;;  %6149 = vmatprep.subr.mxu1 %v12530_v20 }
 0x93a   :  { %7750 = vmatmul.mubr.msk.f32.gmra.mxu0 %vm3464_vm3, %v5839_v18  ;;  %5983 = vmatprep.subr.mxu0 %v5828_v40  ;;  %v6455_v18 = vld [vmem:[#allocation14 + $0x88] sm:$0xff] }
 0x93b   :  { %5984 = vmatpush1.msra.mxu0 %v5827_v1  ;;  %5935 = vmatprep.mubr.f32.mxu0 %v12530_v20 }
 0x93c   :  { %5985 = vmatprep.subr.mxu0 %v5826_v4  ;;  %6150 = vmatpush2.msra.mxu1 %v6073_v39  ;;  %v6368_v39 = vld [vmem:[#allocation14 + $0x30] sm:$0xff] }
 0x93d   :  { %5986 = vmatpush1.msra.mxu0 %v5825_v17  ;;  %6151 = vmatprep.subr.mxu1 %v12530_v20 }
 0x93e   :  { %7751 = vmatmul.mubr.msk.f32.gmra.mxu0 %vm3464_vm3, %v5840_v45  ;;  %5987 = vmatprep.subr.mxu0 %v5824_v31  ;;  %v6454_v45 = vld [vmem:[#allocation14 + $0x80] sm:$0xff] }
 0x93f   :  { %5988 = vmatpush1.msra.mxu0 %v5823_v42  ;;  %6023 = vmatprep.mubr.f32.mxu0 %v12530_v20 }
 0x940   :  { %5989 = vmatprep.subr.mxu0 %v5822_v25  ;;  %6152 = vmatpush2.msra.mxu1 %v6072_v3  ;;  %v6366_v3 = vld [vmem:[#allocation14 + $0x20] sm:$0xff] }
 0x941   :  { %5990 = vmatpush1.msra.mxu0 %v5821_v57  ;;  %8142 = vmatprep.subr.mxu1 %v12530_v20 }
 0x942   :  { %7756 = vmatmul.mubr.msk.f32.vlgmr.msra.gmra.mxu0 %vm3464_vm3, %v7752_v50  ;;  %6195 = vmatprep.subr.mxu0 %v12530_v20  ;;  %v6453_v50 = vld [vmem:[#allocation14 + $0x78] sm:$0xff] }
 0x943   :  { %6029 = vmatprep.mubr.f32.mxu0 %v12530_v20  ;;  %6196 = vmatpush1.msra.mxu0 %v6190_v23  ;;  %v6452_v23 = vld [vmem:[#allocation14 + $0x70] sm:$0xff] }
 0x944   :  { %6197 = vmatprep.subr.mxu0 %v12530_v20 }
 0x945   :  { %6198 = vmatpush1.msra.mxu0 %v6189_v59 }
 0x946   :  { %7757 = vmatmul.mubr.msk.f32.gmra.mxu0 %vm3464_vm3, %v7753_v27  ;;  %6199 = vmatprep.subr.mxu0 %v12530_v20 }
 0x947   :  { %6035 = vmatprep.mubr.f32.mxu0 %v12530_v20  ;;  %6200 = vmatpush1.msra.mxu0 %v6188_v47 }
 0x948   :  { %6201 = vmatprep.subr.mxu0 %v12530_v20 }
 0x949   :  { %6202 = vmatpush1.msra.mxu0 %v6187_v26 }
 0x94a   :  { %7758 = vmatmul.mubr.msk.f32.gmra.mxu0 %vm3464_vm3, %v7754_v22  ;;  %6203 = vmatprep.subr.mxu0 %v12530_v20 }
 0x94b   :  { %6041 = vmatprep.mubr.f32.mxu0 %v12530_v20  ;;  %6204 = vmatpush1.msra.mxu0 %v6186_v0 }
 0x94c   :  { %6205 = vmatprep.subr.mxu0 %v12530_v20 }
 0x94d   :  { %6206 = vmatpush1.msra.mxu0 %v6185_v38 }
 0x94e   :  { %7759 = vmatmul.mubr.msk.f32.gmra.mxu0 %vm3464_vm3, %v7755_v46  ;;  %6207 = vmatprep.subr.mxu0 %v12530_v20 }
 0x94f   :  { %6208 = vmatpush1.msra.mxu0 %v6184_v15 }
 0x950   :  { %6209 = vmatprep.subr.mxu0 %v12530_v20 }
 0x951   :  { %6210 = vmatpush1.msra.mxu0 %v6183_v43 }
 0x952   :  { %6211 = vmatprep.subr.mxu0 %v12530_v20 }
 0x953   :  { %6212 = vmatpush1.msra.mxu0 %v6182_v37 }
 0x954   :  { %6213 = vmatprep.subr.mxu0 %v12530_v20 }
 0x955   :  { %6214 = vmatpush1.msra.mxu0 %v6181_v55 }
 0x956   :  { %6215 = vmatprep.subr.mxu0 %v12530_v20 }
 0x957   :  { %6216 = vmatpush1.msra.mxu0 %v6180_v19 }
 0x958   :  { %6217 = vmatprep.subr.mxu0 %v12530_v20 }
 0x959   :  { %6218 = vmatpush1.msra.mxu0 %v6179_v62 }
 0x95a   :  { %6219 = vmatprep.subr.mxu0 %v12530_v20 }
 0x95b   :  { %6220 = vmatpush1.msra.mxu0 %v6178_v56 }
 0x95c   :  { %6221 = vmatprep.subr.mxu0 %v12530_v20 }
 0x95d   :  { %6222 = vmatpush1.msra.mxu0 %v6177_v33 }
 0x95e   :  { %6223 = vmatprep.subr.mxu0 %v12530_v20 }
 0x95f   :  { %6224 = vmatpush1.msra.mxu0 %v6176_v8 }
 0x960   :  { %6225 = vmatprep.subr.mxu0 %v12530_v20 }
 0x961   :  { %6226 = vmatpush1.msra.mxu0 %v6175_v24  ;;  %v6288_v24 = vld [vmem:[%s12309_s11] sm:$0xff] }
 0x962   :  { %6251 = vmatprep.subr.mxu0 %v12530_v20 }
 0x963   :  { %6252 = vmatpush2.msra.mxu0 %v6194_v61  ;;  %v6371_v61 = vld [vmem:[#allocation14 + $0x48] sm:$0xff] }
 0x964   :  { %6253 = vmatprep.subr.mxu0 %v12530_v20 }
 0x965   :  { %6254 = vmatpush2.msra.mxu0 %v6193_v53  ;;  %v6369_v53 = vld [vmem:[#allocation14 + $0x38] sm:$0xff] }
 0x966   :  { %6255 = vmatprep.subr.mxu0 %v12530_v20 }
 0x967   :  { %6256 = vmatpush2.msra.mxu0 %v6192_v54  ;;  %v6367_v54 = vld [vmem:[#allocation14 + $0x28] sm:$0xff] }
 0x968   :  { %6257 = vmatprep.subr.mxu0 %v12530_v20 }
 0x969   :  { %6258 = vmatpush2.msra.mxu0 %v6191_v2  ;;  %v6365_v2 = vld [vmem:[#allocation14 + $0x18] sm:$0xff] }
 0x96a   :  { %8164 = vmatprep.subr.mxu0 %v12530_v20 }
 0x9f2   :  { %v5919_v16 = vpop.f32.mrf.mxu0 }
 0x9f4   :  { %v5921_v35 = vpop.f32.mrf.mxu0 }
 0x9f6   :  { %v5925_v48 = vpop.f32.mrf.mxu0 }
 0x9f8   :  { %v5927_v12 = vpop.f32.mrf.mxu0 }
 0x9fa   :  { %v5931_v30 = vpop.f32.mrf.mxu0 }
 0x9fc   :  { %v5933_v49 = vpop.f32.mrf.mxu0 }
 0x9fe   :  { %v5937_v14 = vpop.f32.mrf.mxu0 }
 0xa00   :  { %v5939_v10 = vpop.f32.mrf.mxu0 }
 0xa02   :  { %v6025_v11 = vpop.f32.mrf.mxu0 }
 0xa03   :  { %v6048_v29 = vmax.f32 %v5919_v16, %v6025_v11  ;;  %v6364_v16 = vld [vmem:[#allocation14 + $0x10] sm:$0xff] }
 0xa04   :  { %v6027_v60 = vpop.f32.mrf.mxu0 }
 0xa05   :  { %v6049_v44 = vmax.f32 %v5921_v35, %v6027_v60  ;;  %v6363_v35 = vld [vmem:[#allocation14 + $0x8] sm:$0xff]  ;;  %v7776_v60 = vld [vmem:[%s12309_s11 + $0x18] sm:$0xff] }
 0xa06   :  { %v6031_v13 = vpop.f32.mrf.mxu0 }
 0xa07   :  { %7760 = vmatprep.mubr.msk.f32.mxu1 %vm6076_vm6, %v6049_v44  ;;  %7764 = vmatprep.mubr.msk.f32.mxu0 %vm6076_vm6, %v6049_v44  ;;  %v6050_v1 = vmax.f32 %v5925_v48, %v6031_v13  ;;  %v6362_v48 = vld [vmem:[#allocation14] sm:$0xff] }
 0xa08   :  { %v6033_v40 = vpop.f32.mrf.mxu0  ;;  %6154 = vmatmul.mubr.f32.vlgmr.msra.gmra.mxu1 %v6048_v29  ;;  %6260 = vmatmul.mubr.f32.vlgmr.msra.gmra.mxu0 %v6048_v29  ;;  %v6850_v29 = vld [vmem:[#allocation14 + $0x138] sm:$0xff] }
 0xa09   :  { %v6051_v6 = vmax.f32 %v5927_v12, %v6033_v40  ;;  %8165 = vmatpush3.msra.mxu0 %v6457_v34  ;;  %v6451_v12 = vld [vmem:[#allocation14 + $0x68] sm:$0xff]  ;;  %v6849_v40 = vld [vmem:[#allocation14 + $0x130] sm:$0xff]  ;;  %v6685_v34 = vld [vmem:[#allocation14 + $0xc0] sm:$0xff] }
 0xa0a   :  { %v6037_v5 = vpop.f32.mrf.mxu0  ;;  %8166 = vmatprep.subr.mxu0 %v12530_v20 }
 0xa0b   :  { %7761 = vmatprep.mubr.msk.f32.mxu1 %vm6076_vm6, %v6051_v6  ;;  %7765 = vmatprep.mubr.msk.f32.mxu0 %vm6076_vm6, %v6051_v6  ;;  %v6052_v17 = vmax.f32 %v5931_v30, %v6037_v5  ;;  %v6450_v30 = vld [vmem:[#allocation14 + $0x60] sm:$0xff]  ;;  %v6848_v6 = vld [vmem:[#allocation14 + $0x128] sm:$0xff] }
 0xa0c   :  { %v6039_v4 = vpop.f32.mrf.mxu0  ;;  %6159 = vmatmul.mubr.f32.gmra.mxu1 %v6050_v1  ;;  %6265 = vmatmul.mubr.f32.gmra.mxu0 %v6050_v1  ;;  %v7773_v1 = vld [vmem:[%s12309_s11 + $0x10] sm:$0xff]  ;;  %s8642_s11 = smov [#allocation20]  }
 0xa0d   :  { %v6053_v9 = vmax.f32 %v5933_v49, %v6039_v4  ;;  %8167 = vmatpush3.msra.mxu0 %v6456_v51  ;;  %v6449_v49 = vld [vmem:[#allocation14 + $0x58] sm:$0xff]  ;;  %v6690_v5 = vld [vmem:[#allocation14 + $0xe8] sm:$0xff]  ;;  %v6847_v4 = vld [vmem:[#allocation14 + $0x120] sm:$0xff]  ;;  %s7044_s1 = sshll.u32 %s8642_s11, 4  ;;  %s7045_s1 = int_to_ptr.vmem [resolvable:$true] %s7044_s1 }
 0xa0e   :  { %v6043_v31 = vpop.f32.mrf.mxu0  ;;  %8168 = vmatprep.subr.mxu0 %v12530_v20  ;;  %v6684_v51 = vld [vmem:[#allocation14 + $0xb8] sm:$0xff]  ;;  %s8591_s8 = scalar_lea.vmem %s7045_s1, 128  ;;  %p8596_p0 = scmp.lt.s32.totalorder %s7045_s1, %s7045_s1 }
 0xa0f   :  { %7762 = vmatprep.mubr.msk.f32.mxu1 %vm6076_vm6, %v6053_v9  ;;  %7766 = vmatprep.mubr.msk.f32.mxu0 %vm6076_vm6, %v6053_v9  ;;  %v6054_v57 = vmax.f32 %v5937_v14, %v6043_v31  ;;  %v6448_v14 = vld [vmem:[#allocation14 + $0x50] sm:$0xff]  ;;  %v6689_v9 = vld [vmem:[#allocation14 + $0xe0] sm:$0xff]  ;;  %v6688_v31 = vld [vmem:[#allocation14 + $0xd8] sm:$0xff]  ;;  %p8592_p13 = scmp.ne.s32.totalorder %s7045_s1, %s8591_s8  ;;  %p8597_p1 = scmp.lt.s32.totalorder %s8591_s8, %s8591_s8 }
 0xa10   :  { %v6045_v42 = vpop.f32.mrf.mxu0  ;;  %6164 = vmatmul.mubr.f32.gmra.mxu1 %v6052_v17  ;;  %6270 = vmatmul.mubr.f32.gmra.mxu0 %v6052_v17  ;;  %v6846_v17 = vld [vmem:[#allocation14 + $0x118] sm:$0xff] }
 0xa11   :  { %v6055_v25 = vmax.f32 %v5939_v10, %v6045_v42  ;;  %8169 = vmatpush3.msra.mxu0 %v6455_v18  ;;  %v6845_v42 = vld [vmem:[#allocation14 + $0x110] sm:$0xff]  ;;  %p8598_p2 = por %p8597_p1, %p8596_p0 }
 0xa12   :  { %8170 = vmatprep.subr.mxu0 %v12530_v20  ;;  %v6683_v18 = vld [vmem:[#allocation14 + $0xb0] sm:$0xff] }
 0xa13   :  { %7763 = vmatprep.mubr.msk.f32.mxu1 %vm6076_vm6, %v6055_v25  ;;  %7767 = vmatprep.mubr.msk.f32.mxu0 %vm6076_vm6, %v6055_v25  ;;  %v6687_v25 = vld [vmem:[#allocation14 + $0xd0] sm:$0xff]  ;;  %p8599_p3 = pnand %p8598_p2, %p8592_p13 }
 0xa14   :  { %6169 = vmatmul.mubr.f32.gmra.mxu1 %v6054_v57  ;;  %6275 = vmatmul.mubr.f32.gmra.mxu0 %v6054_v57  ;;  %v6686_v57 = vld [vmem:[#allocation14 + $0xc8] sm:$0xff] }
 0xa15   :  { %8150 = vmatprep.mubr.msk.f32.mxu1 %vm8641_vm7, %v12530_v20  ;;  %8184 = vmatprep.mubr.msk.f32.mxu0 %vm8641_vm7, %v12530_v20 }
 0xa16   :  { %8171 = vmatpush3.msra.mxu0 %v6454_v45  ;;  %v6844_v45 = vld [vmem:[#allocation14 + $0x108] sm:$0xff] }
 0xa17   :  { %8172 = vmatprep.subr.mxu0 %v12530_v20 }
 0xa18   :  { %8173 = vmatpush3.msra.mxu0 %v6453_v50  ;;  %v6682_v50 = vld [vmem:[#allocation14 + $0xa8] sm:$0xff] }
 0xa19   :  { %8174 = vmatprep.subr.mxu0 %v12530_v20 }
 0xa1a   :  { %8175 = vmatpush3.msra.mxu0 %v6452_v23  ;;  %v6843_v23 = vld [vmem:[#allocation14 + $0x100] sm:$0xff] }
 0xa1b   :  { %8176 = vmatprep.subr.mxu0 %v12530_v20 }
 0xa1c   :  { %8177 = vmatpush3.msra.mxu0 %v6451_v12 }
 0xa1d   :  { %8178 = vmatprep.subr.mxu0 %v12530_v20 }
 0xa1e   :  { %8179 = vmatpush3.msra.mxu0 %v6450_v30  ;;  %v7780_v30 = vld [vmem:[#allocation19] ss:$0 sm:$0xff] }
 0xa1f   :  { %8180 = vmatprep.subr.mxu0 %v12530_v20 }
 0xa20   :  { %8181 = vmatpush3.msra.mxu0 %v6449_v49 }
 0xa21   :  { %8182 = vmatprep.subr.mxu0 %v12530_v20 }
 0xa22   :  { %8183 = vmatpush3.msra.mxu0 %v6448_v14 }
 0xa23   :  { %8210 = vmatprep.subr.mxu0 %v12530_v20 }
 0xac8   :  { %v6155_v59 = vpop.f32.mrf.mxu1  ;;  %v6261_v27 = vpop.f32.mrf.mxu0 }
 0xac9   :  { %v6280_v33 = vmax.f32 %v6155_v59, %v6261_v27  ;;  %v6842_v59 = vld [vmem:[#allocation14 + $0xf8] sm:$0xff]  ;;  %v6681_v27 = vld [vmem:[#allocation14 + $0xa0] sm:$0xff] }
 0xaca   :  { %v6157_v47 = vpop.f32.mrf.mxu1  ;;  %v6263_v26 = vpop.f32.mrf.mxu0 }
 0xacb   :  { %v12183_v7 = vmax.f32 %v6280_v33, 0.0  ;;  %v6841_v47 = vld [vmem:[#allocation14 + $0xf0] sm:$0xff]  ;;  %v6941_v33 = vld [vmem:[#allocation17 + $0x38] sm:$0xff] }
 0xacc   :  { %v6160_v22 = vpop.f32.mrf.mxu1  ;;  %v6266_v0 = vpop.f32.mrf.mxu0 }
 0xacd   :  { %v6281_v56 = vmax.f32 %v6160_v22, %v6266_v0 }
 0xace   :  { %v6162_v38 = vpop.f32.mrf.mxu1  ;;  %v6268_v46 = vpop.f32.mrf.mxu0 }
 0xacf   :  { %v12179_v8 = vmax.f32 %v6281_v56, 0.0  ;;  %v6943_v56 = vld [vmem:[#allocation17 + $0x48] sm:$0xff] }
 0xad0   :  { %v6165_v15 = vpop.f32.mrf.mxu1  ;;  %v6271_v43 = vpop.f32.mrf.mxu0 }
 0xad1   :  { %v6282_v19 = vmax.f32 %v6165_v15, %v6271_v43 }
 0xad2   :  { %v6167_v37 = vpop.f32.mrf.mxu1  ;;  %v6273_v21 = vpop.f32.mrf.mxu0 }
 0xad3   :  { %v12175_v36 = vmax.f32 %v6282_v19, 0.0  ;;  %v6949_v37 = vld [vmem:[#allocation17 + $0x78] sm:$0xff]  ;;  %v6947_v19 = vld [vmem:[#allocation17 + $0x68] sm:$0xff] }
 0xad4   :  { %v6170_v55 = vpop.f32.mrf.mxu1  ;;  %v6276_v58 = vpop.f32.mrf.mxu0 }
 0xad5   :  { %v6283_v28 = vmax.f32 %v6170_v55, %v6276_v58  ;;  %v6948_v55 = vld [vmem:[#allocation17 + $0x70] sm:$0xff] }
 0xad6   :  { %v6172_v62 = vpop.f32.mrf.mxu1  ;;  %v6278_v32 = vpop.f32.mrf.mxu0 }
 0xad7   :  { %v12173_v41 = vmax.f32 %v6283_v28, 0.0  ;;  %v6946_v28 = vld [vmem:[#allocation17 + $0x60] sm:$0xff]  ;;  %v6945_v62 = vld [vmem:[#allocation17 + $0x58] sm:$0xff]  ;;  %v6944_v32 = vld [vmem:[#allocation17 + $0x50] sm:$0xff] }
 0xad9   :  { %8143 = vmatpush3.msra.mxu1 %v12173_v41 }
 0xada   :  { %8144 = vmatprep.subr.mxu1 %v12530_v20 }
 0xadb   :  { %8145 = vmatpush3.msra.mxu1 %v12175_v36 }
 0xadc   :  { %8146 = vmatprep.subr.mxu1 %v12530_v20 }
 0xadd   :  { %8147 = vmatpush3.msra.mxu1 %v12179_v8 }
 0xade   :  { %8148 = vmatprep.subr.mxu1 %v12530_v20 }
 0xadf   :  { %8149 = vmatpush3.msra.mxu1 %v12183_v7 }
 0xae0   :  { %8151 = vmatmul.mubr.msk.f32.vlgmr.msra.gmra.mxu1 %vm6076_vm6, %v6288_v24  ;;  %8153 = vmatprep.subr.mxu1 %v12530_v20  ;;  %v6937_v24 = vld [vmem:[#allocation17 + $0x18] sm:$0xff] }
 0xae1   :  { %8154 = vmatpush3.msra.mxu1 %v12173_v41  ;;  %8161 = vmatprep.mubr.msk.f32.mxu1 %vm8641_vm7, %v12530_v20 }
 0xae2   :  { %8155 = vmatprep.subr.mxu1 %v12530_v20 }
 0xae3   :  { %8156 = vmatpush3.msra.mxu1 %v12175_v36 }
 0xae4   :  { %8157 = vmatprep.subr.mxu1 %v12530_v20 }
 0xae5   :  { %8158 = vmatpush3.msra.mxu1 %v12179_v8 }
 0xae6   :  { %8159 = vmatprep.subr.mxu1 %v12530_v20 }
 0xae7   :  { %8160 = vmatpush3.msra.mxu1 %v12183_v7 }
 0xae8   :  { %8162 = vmatmul.mubr.msk.f32.vlgmr.msra.gmra.mxu1 %vm6076_vm6, %v7769_v63  ;;  %8187 = vmatprep.subr.mxu1 %v12530_v20  ;;  %v6936_v63 = vld [vmem:[#allocation17 + $0x10] sm:$0xff] }
 0xae9   :  { %8188 = vmatpush3.msra.mxu1 %v6371_v61  ;;  %8207 = vmatprep.mubr.msk.f32.mxu1 %vm8641_vm7, %v12530_v20  ;;  %v6935_v61 = vld [vmem:[#allocation17 + $0x8] sm:$0xff] }
 0xaea   :  { %8189 = vmatprep.subr.mxu1 %v12530_v20 }
 0xaeb   :  { %8190 = vmatpush3.msra.mxu1 %v6370_v52  ;;  %v6934_v52 = vld [vmem:[#allocation17] sm:$0xff] }
 0xaec   :  { %8191 = vmatprep.subr.mxu1 %v12530_v20 }
 0xaed   :  { %8192 = vmatpush3.msra.mxu1 %v6369_v53 }
 0xaee   :  { %8193 = vmatprep.subr.mxu1 %v12530_v20 }
 0xaef   :  { %8194 = vmatpush3.msra.mxu1 %v6368_v39 }
 0xaf0   :  { %8195 = vmatprep.subr.mxu1 %v12530_v20 }
 0xaf1   :  { %8196 = vmatpush3.msra.mxu1 %v6367_v54 }
 0xaf2   :  { %8197 = vmatprep.subr.mxu1 %v12530_v20 }
 0xaf3   :  { %8198 = vmatpush3.msra.mxu1 %v6366_v3 }
 0xaf4   :  { %8199 = vmatprep.subr.mxu1 %v12530_v20 }
 0xaf5   :  { %8200 = vmatpush3.msra.mxu1 %v6365_v2  ;;  %v7779_v2 = vld [vmem:[#allocation16] ss:$0 sm:$0xff] }
 0xaf6   :  { %8201 = vmatprep.subr.mxu1 %v12530_v20 }
 0xaf7   :  { %8202 = vmatpush3.msra.mxu1 %v6364_v16 }
 0xaf8   :  { %8203 = vmatprep.subr.mxu1 %v12530_v20 }
 0xaf9   :  { %8204 = vmatpush3.msra.mxu1 %v6363_v35 }
 0xafa   :  { %8205 = vmatprep.subr.mxu1 %v12530_v20 }
 0xafb   :  { %8206 = vmatpush3.msra.mxu1 %v6362_v48 }
 0xafc   :  { %8244 = vmatprep.subr.mxu1 %v12530_v20 }
 0xba0   :  { %v6358_v10 = vpop.f32.mrf.mxu1 }
 0xba1   :  { %8208 = vmatmul.mubr.msk.f32.vlgmr.msra.gmra.mxu1 %vm6458_vm8, %v6358_v10 }
 0xba2   :  { %8245 = vmatpush3.msra.mxu1 %v12173_v41  ;;  %v8152_v11 = vpop.f32.mrf.mxu1  ;;  %8252 = vmatprep.mubr.msk.f32.mxu1 %vm8641_vm7, %v12530_v20 }
 0xba3   :  { %8246 = vmatprep.subr.mxu1 %v12530_v20 }
 0xba4   :  { %8247 = vmatpush3.msra.mxu1 %v12175_v36 }
 0xba5   :  { %8248 = vmatprep.subr.mxu1 %v12530_v20 }
 0xba6   :  { %8249 = vmatpush3.msra.mxu1 %v12179_v8 }
 0xba7   :  { %8250 = vmatprep.subr.mxu1 %v12530_v20 }
 0xba8   :  { %8251 = vmatpush3.msra.mxu1 %v12183_v7  ;;  %v6443_v44 = vpop.f32.mrf.mxu1 }
 0xba9   :  { %8185 = vmatmul.mubr.msk.f32.vlgmr.msra.gmra.mxu0 %vm6458_vm8, %v6443_v44  ;;  %8253 = vmatmul.mubr.msk.f32.vlgmr.msra.gmra.mxu1 %vm6076_vm6, %v7776_v60 }
 0xbaa   :  { %8211 = vmatpush3.msra.mxu0 %v12173_v41  ;;  %8218 = vmatprep.mubr.msk.f32.mxu0 %vm8641_vm7, %v12530_v20  ;;  %v8163_v13 = vpop.f32.mrf.mxu1  ;;  %v6942_v41 = vld [vmem:[#allocation17 + $0x40] sm:$0xff] }
 0xbab   :  { %8212 = vmatprep.subr.mxu0 %v12530_v20  ;;  %8255 = vmatprep.subr.mxu1 %v12530_v20 }
 0xbac   :  { %8213 = vmatpush3.msra.mxu0 %v12175_v36  ;;  %8256 = vmatpush3.msra.mxu1 %v6850_v29  ;;  %v6940_v36 = vld [vmem:[#allocation17 + $0x30] sm:$0xff] }
 0xbad   :  { %8214 = vmatprep.subr.mxu0 %v12530_v20  ;;  %8257 = vmatprep.subr.mxu1 %v12530_v20 }
 0xbae   :  { %8215 = vmatpush3.msra.mxu0 %v12179_v8  ;;  %8258 = vmatpush3.msra.mxu1 %v6849_v40  ;;  %v6939_v8 = vld [vmem:[#allocation17 + $0x28] sm:$0xff] }
 0xbaf   :  { %8216 = vmatprep.subr.mxu0 %v12530_v20  ;;  %8259 = vmatprep.subr.mxu1 %v12530_v20 }
 0xbb0   :  { %8217 = vmatpush3.msra.mxu0 %v12183_v7  ;;  %8260 = vmatpush3.msra.mxu1 %v6848_v6  ;;  %v6938_v7 = vld [vmem:[#allocation17 + $0x20] sm:$0xff] }
 0xbb1   :  { %8219 = vmatmul.mubr.msk.f32.vlgmr.msra.gmra.mxu0 %vm6076_vm6, %v7773_v1  ;;  %8221 = vmatprep.subr.mxu0 %v12530_v20 }
 0xbb2   :  { %8222 = vmatpush3.msra.mxu0 %v6690_v5  ;;  %8261 = vmatprep.subr.mxu1 %v12530_v20 }
 0xbb3   :  { %8223 = vmatprep.subr.mxu0 %v12530_v20  ;;  %8262 = vmatpush3.msra.mxu1 %v6847_v4 }
 0xbb4   :  { %8224 = vmatpush3.msra.mxu0 %v6689_v9  ;;  %8263 = vmatprep.subr.mxu1 %v12530_v20 }
 0xbb5   :  { %8225 = vmatprep.subr.mxu0 %v12530_v20  ;;  %8264 = vmatpush3.msra.mxu1 %v6846_v17 }
 0xbb6   :  { %8226 = vmatpush3.msra.mxu0 %v6688_v31  ;;  %8265 = vmatprep.subr.mxu1 %v12530_v20 }
 0xbb7   :  { %8227 = vmatprep.subr.mxu0 %v12530_v20  ;;  %8266 = vmatpush3.msra.mxu1 %v6845_v42 }
 0xbb8   :  { %8228 = vmatpush3.msra.mxu0 %v6687_v25  ;;  %8267 = vmatprep.subr.mxu1 %v12530_v20 }
 0xbb9   :  { %8229 = vmatprep.subr.mxu0 %v12530_v20  ;;  %8241 = vmatprep.mubr.msk.f32.mxu0 %vm8641_vm7, %v12530_v20 }
 0xbba   :  { %8230 = vmatpush3.msra.mxu0 %v6686_v57  ;;  %8275 = vmatprep.mubr.msk.f32.mxu1 %vm8641_vm7, %v12530_v20 }
 0xbbb   :  { %8231 = vmatprep.subr.mxu0 %v12530_v20  ;;  %8268 = vmatpush3.msra.mxu1 %v6844_v45 }
 0xbbc   :  { %8232 = vmatpush3.msra.mxu0 %v6685_v34  ;;  %8269 = vmatprep.subr.mxu1 %v12530_v20 }
 0xbbd   :  { %8233 = vmatprep.subr.mxu0 %v12530_v20  ;;  %8270 = vmatpush3.msra.mxu1 %v6843_v23 }
 0xbbe   :  { %8234 = vmatpush3.msra.mxu0 %v6684_v51  ;;  %8271 = vmatprep.subr.mxu1 %v12530_v20 }
 0xbbf   :  { %8235 = vmatprep.subr.mxu0 %v12530_v20  ;;  %8272 = vmatpush3.msra.mxu1 %v6842_v59 }
 0xbc0   :  { %8236 = vmatpush3.msra.mxu0 %v6683_v18  ;;  %8273 = vmatprep.subr.mxu1 %v12530_v20 }
 0xbc1   :  { %8237 = vmatprep.subr.mxu0 %v12530_v20  ;;  %8274 = vmatpush3.msra.mxu1 %v6841_v47 }
 0xbc2   :  { %8238 = vmatpush3.msra.mxu0 %v6682_v50 }
 0xbc3   :  { %8239 = vmatprep.subr.mxu0 %v12530_v20 }
 0xbc4   :  { %8240 = vmatpush3.msra.mxu0 %v6681_v27 }
 0xbc5   :  { %8278 = vmatprep.subr.mxu0 %v12530_v20 }
 0xc61   :  { %v6601_v26 = vpop.f32.mrf.mxu1 }
 0xc63   :  { %v8209_v22 = vpop.f32.mrf.mxu1 }
 0xc69   :  { %v6528_v0 = vpop.f32.mrf.mxu0  ;;  %v6836_v38 = vpop.f32.mrf.mxu1 }
 0xc6a   :  { %v6602_v46 = vadd.f32 %v6601_v26, %v6528_v0  ;;  %8276 = vmatmul.mubr.msk.f32.vlgmr.msra.gmra.mxu1 %vm6458_vm8, %v6836_v38 }
 0xc6b   :  { %v8186_v15 = vpop.f32.mrf.mxu0  ;;  %v8254_v43 = vpop.f32.mrf.mxu1 }
 0xc71   :  { %v6676_v21 = vpop.f32.mrf.mxu0 }
 0xc72   :  { %8242 = vmatmul.mubr.msk.f32.vlgmr.msra.gmra.mxu0 %vm6458_vm8, %v6676_v21 }
 0xc73   :  { %v8220_v58 = vpop.f32.mrf.mxu0  ;;  %8279 = vmatpush3.msra.mxu0 %v6949_v37  ;;  %8310 = vmatprep.mubr.msk.f32.mxu0 %vm8641_vm7, %v12530_v20 }
 0xc74   :  { %8280 = vmatprep.subr.mxu0 %v12530_v20 }
 0xc75   :  { %8281 = vmatpush3.msra.mxu0 %v6948_v55 }
 0xc76   :  { %8282 = vmatprep.subr.mxu0 %v12530_v20 }
 0xc77   :  { %8283 = vmatpush3.msra.mxu0 %v6947_v19 }
 0xc78   :  { %8284 = vmatprep.subr.mxu0 %v12530_v20 }
 0xc79   :  { %8285 = vmatpush3.msra.mxu0 %v6946_v28 }
 0xc7a   :  { %8286 = vmatprep.subr.mxu0 %v12530_v20 }
 0xc7b   :  { %8287 = vmatpush3.msra.mxu0 %v6945_v62 }
 0xc7c   :  { %8288 = vmatprep.subr.mxu0 %v12530_v20 }
 0xc7d   :  { %8289 = vmatpush3.msra.mxu0 %v6944_v32 }
 0xc7e   :  { %8290 = vmatprep.subr.mxu0 %v12530_v20 }
 0xc7f   :  { %8291 = vmatpush3.msra.mxu0 %v6943_v56 }
 0xc80   :  { %8292 = vmatprep.subr.mxu0 %v12530_v20 }
 0xc81   :  { %8293 = vmatpush3.msra.mxu0 %v6942_v41 }
 0xc82   :  { %8294 = vmatprep.subr.mxu0 %v12530_v20 }
 0xc83   :  { %8295 = vmatpush3.msra.mxu0 %v6941_v33 }
 0xc84   :  { %8296 = vmatprep.subr.mxu0 %v12530_v20 }
 0xc85   :  { %8297 = vmatpush3.msra.mxu0 %v6940_v36 }
 0xc86   :  { %8298 = vmatprep.subr.mxu0 %v12530_v20 }
 0xc87   :  { %8299 = vmatpush3.msra.mxu0 %v6939_v8 }
 0xc88   :  { %8300 = vmatprep.subr.mxu0 %v12530_v20 }
 0xc89   :  { %8301 = vmatpush3.msra.mxu0 %v6938_v7 }
 0xc8a   :  { %8302 = vmatprep.subr.mxu0 %v12530_v20 }
 0xc8b   :  { %8303 = vmatpush3.msra.mxu0 %v6937_v24 }
 0xc8c   :  { %8304 = vmatprep.subr.mxu0 %v12530_v20 }
 0xc8d   :  { %8305 = vmatpush3.msra.mxu0 %v6936_v63 }
 0xc8e   :  { %8306 = vmatprep.subr.mxu0 %v12530_v20 }
 0xc8f   :  { %8307 = vmatpush3.msra.mxu0 %v6935_v61 }
 0xc90   :  { %8308 = vmatprep.subr.mxu0 %v12530_v20 }
 0xc91   :  { %8309 = vmatpush3.msra.mxu0 %v6934_v52 }
 0xd2a   :  { %v6920_v53 = vpop.f32.mrf.mxu1 }
 0xd2c   :  { %v8277_v39 = vpop.f32.mrf.mxu1 }
 0xd32   :  { %v6760_v54 = vpop.f32.mrf.mxu0 }
 0xd33   :  { %v6764_v3 = vadd.f32 %v6760_v54, %v6602_v46 }
 0xd34   :  { %v8243_v16 = vpop.f32.mrf.mxu0 }
 0xd35   :  { %v6924_v35 = vadd.f32 %v6920_v53, %v6764_v3 }
 0xd37   :  { %v6932_v48 = vadd.f32 %v7779_v2, %v6924_v35 }
 0xd39   :  { %v6933_v12 = vmax.f32 %v6932_v48, 0.0 }
 0xd3b   :  { %8311 = vmatmul.mubr.f32.vlgmr.msra.gmra.mxu0 %v6933_v12 }
 0xdfb   :  { %v7023_v49 = vpop.f32.mrf.mxu0 }
 0xdfc   :  { %v7024_v14 = vadd.f32 %v7780_v30, %v7023_v49 }
 0xdfd   :  { %v8312_v10 = vpop.f32.mrf.mxu0 }
 0xdfe   :  { %7027 = vmax.xlane.f32.xlu0 %v7024_v14 }
 0xe87   :  { %v7028_v11 = vpop.xlane.xlu0 %7027 }
 0xe88   :  { %v7029_v60 = vsub.f32 %v7024_v14, %v7028_v11 }
 0xe8a   :  { %v7030_v44 = vmul.f32 1.442695, %v7029_v60 }
 0xe8c   :  { %8339 = vpow2.f32 %v7030_v44 }
 0xe99   :  { %v8340_v20 = vpop.eup %8339 }
 0xe9a   :  { %7032 = vadd.xlane.f32.xlu0 %v8340_v20 }
 0xf23   :  { %v7033_v29 = vpop.xlane.xlu0 %7032 }
 0xf24   :  { %8341 = vlog2.f32 %v7033_v29 }
 0xf31   :  { %v8342_v13 = vpop.eup %8341 }
 0xf32   :  { %v7035_v40 = vmul.f32 0.6931472, %v8342_v13 }
 0xf34   :  { %v7036_v6 = vsub.f32 %v7029_v60, %v7035_v40 }
 0xf36   :  { %7037 = vst [vmem:[#allocation20] sm:$0xff] %v7036_v6 }
 0xf37   :  { %8602 = shalt.err (!%p8599_p3)
}
 0xf38   :  { %7047 = dma.vmem_to_hbm [thread:$0]  %s7045_s1, 128, %s12314_s16, [#allocation4]  }
 0xf39   :  { %8623 = dma.done.wait [#allocation4], 128  }
 0xf3a   :  { %8624 = vsyncadd [#allocation4], 4294967168 }
 0xf3b   :  { %7051 = vsyncpa [#allocation3], 1 }
 0xf3c   :  { %7052 = vsyncpa [#allocation6], 1 }
 0xf3d   :  { %7053 = vsyncpa [#allocation9], 1 }
 0xf3e   :  { %7054 = vsyncpa [#allocation12], 1 }
 0xf3f   :  { %7055 = vsyncpa [#allocation15], 1 }
 0xf40   :  { %7056 = vsyncpa [#allocation18], 1 }
 0xf41   :  { %7057 = vsyncpa [#allocation4], 1 }

</bundles_post_ra>
